<compile_context>
chip_gen: v5e
topology: v5e:2x2
jax: 0.10.0
libtpu: 0.0.40
codegen_flags: <defaults>
</compile_context>

<pallas_src>
import math
import numpy as np
import jax
import jax.numpy as jnp
from jax.experimental import pallas as pl
from jax.experimental.pallas import tpu as pltpu

# ----- irreps / tensor-product constants ------------------------------------
NS_IN, NV_IN = 8, 4            # 8x0e + 4x1o
NS_OUT, NV_OUT = 8, 4
IN_DIM = NS_IN + 3 * NV_IN     # 20
OUT_DIM = NS_OUT + 3 * NV_OUT  # 20
OUT_PAD = 128                  # lane-dense accumulator / output width
SH_DIM = 4                     # 1x0e + 1x1o
WEIGHT_NUMEL = 144
OFF_A, OFF_B, OFF_C, OFF_D = 0, 64, 96, 112
C_SCALAR = 1.0 / math.sqrt(12.0)   # path norm for 0e outputs
C_VECTOR = 0.5                     # path norm for 1o outputs (= sqrt(3/12))
INV_SQRT3 = 1.0 / math.sqrt(3.0)   # wigner_3j coupling factor
LN_EPS = 1e-5
P_PAD = 384                        # 304 real path elements, padded to 3*128 lanes
H_PAD = 128                        # padded hidden width (col H = folded b2 "ones")


def _build_static_constants(tot_pad):
    """Parameter-independent constants recasting the TP as MXU matmuls."""
    entries = []  # (x_col, sh_comp, weight_idx, out_idx, coeff)
    for u in range(NS_IN):                          # A: 0e x 0e -> 0e
        for w in range(NS_OUT):
            entries.append((u, 0, OFF_A + u * NS_OUT + w, w, C_SCALAR))
    for u in range(NS_IN):                          # B: 0e x 1o -> 1o
        for w in range(NV_OUT):
            for k in range(3):
                entries.append((u, 1 + k, OFF_B + u * NV_OUT + w,
                                NS_OUT + 3 * w + k, C_VECTOR * INV_SQRT3))
    for u in range(NV_IN):                          # C: 1o x 0e -> 1o
        for w in range(NV_OUT):
            for k in range(3):
                entries.append((NS_IN + 3 * u + k, 0, OFF_C + u * NV_OUT + w,
                                NS_OUT + 3 * w + k, C_VECTOR * INV_SQRT3))
    for u in range(NV_IN):                          # D: 1o x 1o -> 0e
        for w in range(NS_OUT):
            for k in range(3):
                entries.append((NS_IN + 3 * u + k, 1 + k, OFF_D + u * NS_OUT + w,
                                w, C_SCALAR * INV_SQRT3))
    assert len(entries) == 304 <= P_PAD

    S_x = np.zeros((tot_pad, P_PAD), np.float32)
    S_sh = np.zeros((tot_pad, P_PAD), np.float32)
    C3j = np.zeros((P_PAD, OUT_PAD), np.float32)
    widx = np.zeros((P_PAD,), np.int32)
    wmask = np.zeros((1, P_PAD), np.float32)
    for p, (xi, si, wi, oi, c) in enumerate(entries):
        S_x[xi, p] = 1.0
        S_sh[IN_DIM + si, p] = 1.0
        C3j[p, oi] = c
        widx[p] = wi
        wmask[0, p] = 1.0

    REP3 = np.zeros((NV_OUT, 3 * NV_OUT), np.float32)   # per-mul scale -> components
    for u in range(NV_OUT):
        REP3[u, 3 * u:3 * u + 3] = 1.0
    return S_x, S_sh, C3j, widx, wmask, REP3


# ----- Pallas kernel ----------------------------------------------------------
def tpconv_kernel(ein_ref, src_ref, mcomb_ref, w2e_ref, c3j_ref, res_ref,
                  lnw_ref, lnb_ref, rep3_ref, out_ref, acc_ref):
    k = pl.program_id(1)                         # edge-tile (reduction) axis
    node_tile = acc_ref.shape[0]
    edge_tile = ein_ref.shape[0]

    @pl.when(k == 0)
    def _():
        acc_ref[...] = jnp.zeros_like(acc_ref)

    ein = ein_ref[...]                           # (tE, TOT_PAD); last col is 1

    # --- ONE fused MXU pass shared by edge-MLP layer 1 (b1 folded) + S_x + S_sh
    big = jnp.dot(ein, mcomb_ref[...], preferred_element_type=jnp.float32)
    h = jnp.maximum(big[:, :H_PAD], 0.0)         # relu; dropout(p=0) is identity
    xk = big[:, H_PAD:H_PAD + P_PAD]
    sk = big[:, H_PAD + P_PAD:H_PAD + 2 * P_PAD]

    # --- edge-MLP layer 2; the 144->384 path expansion and b2 are folded in w2e
    we = jnp.dot(h, w2e_ref[...], preferred_element_type=jnp.float32)

    # --- FullyConnectedTensorProduct -> lane-dense (tE, 128)
    tp_e = jnp.dot(we * xk * sk, c3j_ref[...], preferred_element_type=jnp.float32)
    # Column OUT_DIM carries a constant 1 so the scatter matmul also counts edges.
    col = jax.lax.broadcasted_iota(jnp.int32, tp_e.shape, 1)
    tp_e = jnp.where(col == OUT_DIM, 1.0, tp_e)

    # --- scatter-sum via in-kernel one-hot (no HBM scatter-matrix traffic).
    # Padded edges have src = -1 -> match no row -> contribute nothing.
    base = pl.program_id(0) * node_tile
    rows = jax.lax.broadcasted_iota(jnp.int32, (node_tile, edge_tile), 0) + base
    onehot = (rows == src_ref[...]).astype(jnp.float32)      # src is (1, tE) int32
    acc_ref[...] += jnp.dot(onehot, tp_e, preferred_element_type=jnp.float32)

    # --- last edge tile: mean, residual, irreps LayerNorm, write output ---
    @pl.when(k == pl.num_programs(1) - 1)
    def _():
        acc = acc_ref[...]
        inv_c = 1.0 / jnp.maximum(acc[:, OUT_DIM:OUT_DIM + 1], 1.0)   # scatter mean
        x = acc[:, :OUT_DIM] * inv_c + res_ref[...][:, :OUT_DIM]      # + residual
        lnw = lnw_ref[...]
        # scalars (mean_shift == 1): center over multiplicity, scale, add bias
        s = x[:, :NS_OUT]
        s_c = s - jnp.mean(s, axis=1, keepdims=True)
        s_scale = jax.lax.rsqrt(jnp.mean(s_c * s_c, axis=1, keepdims=True) + LN_EPS)
        s_out = s_c * (s_scale * lnw[:, :NS_OUT]) + lnb_ref[...]
        # vectors (mean_shift == 0): component norm over all 12 comps, no bias
        v = x[:, NS_OUT:]
        v_scale = jax.lax.rsqrt(jnp.mean(v * v, axis=1, keepdims=True) + LN_EPS)
        fnv = v_scale * lnw[:, NS_OUT:]                               # (tN, NV_OUT)
        v_out = v * jnp.dot(fnv, rep3_ref[...],
                            preferred_element_type=jnp.float32)       # (tN, 12)
        pad = jnp.zeros((node_tile, OUT_PAD - OUT_DIM), jnp.float32)
        out_ref[...] = jnp.concatenate([s_out, v_out, pad],
                                       axis=-1).astype(out_ref.dtype)


# ----- wrapper ----------------------------------------------------------------
def tensor_product_conv(node_attr, edge_index, edge_attr, edge_sh, params,
                        out_nodes=None, *, edge_tile=512, node_tile=None):
    N = node_attr.shape[0]
    E = edge_attr.shape[0]
    out_nodes = int(out_nodes or N)
    F = edge_attr.shape[1]
    W1, b1, W2, b2, lnw, lnb = params
    H = W1.shape[1]
    assert H < H_PAD, "hidden_features must be < 128 (last column folds b2)"
    TOT = IN_DIM + SH_DIM + F
    TOT1 = TOT + 1                                   # + ones column (folds b1)
    TOT_PAD = ((TOT1 + 7) // 8) * 8

    if node_tile is None:
        node_tile = min(((out_nodes + 7) // 8) * 8, 2048)   # VMEM-safe on v7x too
    node_tile = max(8, ((node_tile + 7) // 8) * 8)
    N_pad = ((out_nodes + node_tile - 1) // node_tile) * node_tile
    E_pad = ((max(E, 1) + edge_tile - 1) // edge_tile) * edge_tile

    edge_src, edge_dst = edge_index[0], edge_index[1]

    # ---- glue (plain JAX): gather + concat edge inputs (with ones col), pad ----
    ones = jnp.ones((E, 1), jnp.float32)
    edge_in = jnp.concatenate(
        [node_attr[edge_dst].astype(jnp.float32), edge_sh.astype(jnp.float32),
         edge_attr.astype(jnp.float32), ones], axis=-1)
    edge_in = jnp.pad(edge_in, ((0, E_pad - E), (0, TOT_PAD - TOT1)))  # pad rows = 0

    # O(E) int32 scatter ids (padded edges -> -1, match no node).
    src_ids = jnp.pad(edge_src.astype(jnp.int32), (0, E_pad - E),
                      constant_values=-1).reshape(1, E_pad)

    # Residual (module semantics require out_nodes == N for residual; be robust).
    node_res = node_attr.astype(jnp.float32)
    node_res = node_res[:out_nodes] if out_nodes <= N else \
        jnp.pad(node_res, ((0, out_nodes - N), (0, 0)))
    res = jnp.pad(node_res, ((0, N_pad - node_res.shape[0]), (0, OUT_PAD - IN_DIM)))

    S_x, S_sh, C3j, widx, wmask, REP3 = _build_static_constants(TOT_PAD)

    # Combined [W1+b1 | S_x | S_sh] constant for the single fused ein matmul.
    w1_block = jnp.zeros((TOT_PAD, H_PAD), jnp.float32)
    w1_block = w1_block.at[IN_DIM + SH_DIM:IN_DIM + SH_DIM + F, :H].set(
        W1.astype(jnp.float32))
    w1_block = w1_block.at[TOT, :H].set(b1.astype(jnp.float32).reshape(-1))
    w1_block = w1_block.at[TOT, H].set(1.0)          # hidden col H == 1 -> folds b2
    mcomb = jnp.concatenate([w1_block, jnp.asarray(S_x), jnp.asarray(S_sh)], axis=1)

    # Second MLP layer, expanded 144 -> 384 path elements; row H carries b2.
    wmask_j = jnp.asarray(wmask)                     # (1, P_PAD)
    w2e = jnp.zeros((H_PAD, P_PAD), jnp.float32)
    w2e = w2e.at[:H, :].set(W2.astype(jnp.float32)[:, widx] * wmask_j)
    w2e = w2e.at[H, :].set(b2.astype(jnp.float32).reshape(-1)[widx] * wmask_j[0])

    edge_map = lambda n, k: (k, 0)
    edge_lane_map = lambda n, k: (0, k)
    node_map = lambda n, k: (n, 0)
    full = lambda n, k: (0, 0)

    grid_spec = pltpu.PrefetchScalarGridSpec(
        num_scalar_prefetch=0,
        grid=(N_pad // node_tile, E_pad // edge_tile),
        in_specs=[
            pl.BlockSpec((edge_tile, TOT_PAD), edge_map),            # edge inputs
            pl.BlockSpec((1, edge_tile), edge_lane_map),             # src ids (i32)
            pl.BlockSpec((TOT_PAD, H_PAD + 2 * P_PAD), full),        # [W1|S_x|S_sh]
            pl.BlockSpec((H_PAD, P_PAD), full),                      # W2 expanded
            pl.BlockSpec((P_PAD, OUT_PAD), full),                    # C3j (128 lanes)
            pl.BlockSpec((node_tile, OUT_PAD), node_map),            # residual
            pl.BlockSpec((1, NS_OUT + NV_OUT), full),                # ln weight
            pl.BlockSpec((1, NS_OUT), full),                         # ln bias
            pl.BlockSpec((NV_OUT, 3 * NV_OUT), full),                # REP3
        ],
        out_specs=pl.BlockSpec((node_tile, OUT_PAD), node_map),
        scratch_shapes=[pltpu.VMEM((node_tile, OUT_PAD), jnp.float32)],
    )
    out = pl.pallas_call(
        tpconv_kernel,
        out_shape=jax.ShapeDtypeStruct((N_pad, OUT_PAD), jnp.float32),
        grid_spec=grid_spec,
        compiler_params=pltpu.CompilerParams(
            dimension_semantics=("parallel", "arbitrary"),   # node blocks || edge reduce
            vmem_limit_bytes=32 * 1024 * 1024),
    )(edge_in, src_ids, mcomb, w2e, jnp.asarray(C3j), res,
      lnw.astype(jnp.float32), lnb.astype(jnp.float32), jnp.asarray(REP3))
    return out[:out_nodes, :OUT_DIM]


# ----- pure-JAX reference (same math, for a correctness check) ----------------
def reference(node_attr, edge_index, edge_attr, edge_sh, params):
    W1, b1, W2, b2, lnw, lnb = params
    edge_src, edge_dst = edge_index[0], edge_index[1]
    N = node_attr.shape[0]
    h = jnp.maximum(edge_attr @ W1 + b1, 0.0)
    w = h @ W2 + b2
    x1 = node_attr[edge_dst]
    x1s, x1v = x1[:, :NS_IN], x1[:, NS_IN:].reshape(-1, NV_IN, 3)
    shs, shv = edge_sh[:, 0:1], edge_sh[:, 1:4]
    wA = w[:, OFF_A:OFF_A + 64].reshape(-1, NS_IN, NS_OUT)
    wB = w[:, OFF_B:OFF_B + 32].reshape(-1, NS_IN, NV_OUT)
    wC = w[:, OFF_C:OFF_C + 16].reshape(-1, NV_IN, NV_OUT)
    wD = w[:, OFF_D:OFF_D + 32].reshape(-1, NV_IN, NS_OUT)
    outA = jnp.einsum('euw,eu->ew', wA, x1s) * shs
    outD = jnp.einsum('euw,eui,ei->ew', wD, x1v, shv) * INV_SQRT3
    out_s = C_SCALAR * (outA + outD)
    outB = jnp.einsum('euw,eu->ew', wB, x1s)[:, :, None] * shv[:, None, :] * INV_SQRT3
    outC = jnp.einsum('euw,euk->ewk', wC, x1v) * shs[:, :, None] * INV_SQRT3
    out_v = C_VECTOR * (outB + outC)
    tp = jnp.concatenate([out_s, out_v.reshape(-1, 3 * NV_OUT)], axis=-1)
    summed = jnp.zeros((N, OUT_DIM), jnp.float32).at[edge_src].add(tp)
    counts = jnp.maximum(jnp.zeros((N,), jnp.float32).at[edge_src].add(1.0), 1.0)
    out = summed / counts[:, None]
    out = out + jnp.pad(node_attr, ((0, 0), (0, OUT_DIM - IN_DIM)))
    s = out[:, :NS_OUT]
    v = out[:, NS_OUT:].reshape(-1, NV_OUT, 3)
    s_c = s - s.mean(axis=1, keepdims=True)
    s_scale = jax.lax.rsqrt((s_c ** 2).mean(axis=1, keepdims=True) + LN_EPS)
    s_out = s_c * (s_scale * lnw[:, :NS_OUT]) + lnb
    vn = (v ** 2).mean(-1).mean(axis=1, keepdims=True)
    v_scale = jax.lax.rsqrt(vn + LN_EPS)
    v_out = v * (v_scale * lnw[:, NS_OUT:])[:, :, None]
    return jnp.concatenate([s_out, v_out.reshape(-1, 3 * NV_OUT)], axis=-1)


# ----- main -------------------------------------------------------------------
if __name__ == "__main__":
    key = jax.random.PRNGKey(0)
    N, E, F, H = 8, 500, 16, 16              # E not a multiple of 512 -> exercises padding
    ks = jax.random.split(key, 12)

    node_attr = jax.random.normal(ks[0], (N, IN_DIM), jnp.float32)
    edge_src = jax.random.randint(ks[1], (E,), 0, N)
    edge_dst = jax.random.randint(ks[2], (E,), 0, N)
    edge_index = jnp.stack([edge_src, edge_dst])
    edge_attr = jax.random.normal(ks[3], (E, F), jnp.float32)
    edge_sh = jax.random.normal(ks[4], (E, SH_DIM), jnp.float32)  # surrogate SH features

    # deterministic parameter init (shapes from __init__; xavier-like uniform)
    W1 = jax.random.uniform(ks[5], (F, H), jnp.float32, -1, 1) * math.sqrt(6.0 / (F + H))
    b1 = jax.random.normal(ks[6], (1, H), jnp.float32) * 0.1
    W2 = jax.random.uniform(ks[7], (H, WEIGHT_NUMEL), jnp.float32, -1, 1) * math.sqrt(6.0 / (H + WEIGHT_NUMEL))
    b2 = jax.random.normal(ks[8], (1, WEIGHT_NUMEL), jnp.float32) * 0.1
    lnw = jax.random.uniform(ks[9], (1, NS_OUT + NV_OUT), jnp.float32, 0.5, 1.5)
    lnb = jax.random.normal(ks[10], (1, NS_OUT), jnp.float32) * 0.1
    params = (W1, b1, W2, b2, lnw, lnb)

    out = tensor_product_conv(node_attr, edge_index, edge_attr, edge_sh, params)
    out = jax.block_until_ready(out)

    ref = jax.block_until_ready(reference(node_attr, edge_index, edge_attr, edge_sh, params))
    np.testing.assert_allclose(np.asarray(out), np.asarray(ref), rtol=2e-4, atol=2e-4)

    print("KERNEL_OK")
</pallas_src>

<mosaic_0001>
module attributes {stable_mosaic.version = 11 : i64} {
  func.func @tpconv_kernel(%arg0: i32, %arg1: i32, %arg2: memref<512x48xf32, #tpu.memory_space<vmem>>, %arg3: memref<1x512xi32, #tpu.memory_space<vmem>>, %arg4: memref<48x896xf32, #tpu.memory_space<vmem>>, %arg5: memref<128x384xf32, #tpu.memory_space<vmem>>, %arg6: memref<384x128xf32, #tpu.memory_space<vmem>>, %arg7: memref<8x128xf32, #tpu.memory_space<vmem>>, %arg8: memref<1x12xf32, #tpu.memory_space<vmem>>, %arg9: memref<1x8xf32, #tpu.memory_space<vmem>>, %arg10: memref<4x12xf32, #tpu.memory_space<vmem>>, %arg11: memref<8x128xf32, #tpu.memory_space<vmem>>, %arg12: memref<8x128xf32, #tpu.memory_space<vmem>>) attributes {dimension_semantics = [#tpu.dimension_semantics<parallel>, #tpu.dimension_semantics<arbitrary>], iteration_bounds = array<i64: 1, 1>, scalar_prefetch = 0 : i64, scratch_operands = 1 : i64, tpu.core_type = #tpu.core_type<tc>, window_params = [{transform_indices = @transform_0, window_bounds = array<i64: 512, 48>}, {transform_indices = @transform_1, window_bounds = array<i64: 1, 512>}, {pipeline_mode = #tpu.pipeline_mode<synchronous>, transform_indices = @transform_2, window_bounds = array<i64: 48, 896>}, {pipeline_mode = #tpu.pipeline_mode<synchronous>, transform_indices = @transform_3, window_bounds = array<i64: 128, 384>}, {pipeline_mode = #tpu.pipeline_mode<synchronous>, transform_indices = @transform_4, window_bounds = array<i64: 384, 128>}, {transform_indices = @transform_5, window_bounds = array<i64: 8, 128>}, {pipeline_mode = #tpu.pipeline_mode<synchronous>, transform_indices = @transform_6, window_bounds = array<i64: 1, 12>}, {pipeline_mode = #tpu.pipeline_mode<synchronous>, transform_indices = @transform_7, window_bounds = array<i64: 1, 8>}, {pipeline_mode = #tpu.pipeline_mode<synchronous>, transform_indices = @transform_8, window_bounds = array<i64: 4, 12>}, {transform_indices = @transform_9, window_bounds = array<i64: 8, 128>}]} {
    %c0_i32 = arith.constant 0 : i32
    %0 = arith.cmpi eq, %arg1, %c0_i32 : i32
    %1 = arith.extui %0 : i1 to i32
    %c0_i32_0 = arith.constant 0 : i32
    %2 = arith.cmpi ne, %1, %c0_i32_0 : i32
    scf.if %2 {
      %cst_21 = arith.constant 0.000000e+00 : f32
      %38 = vector.broadcast %cst_21 : f32 to vector<8x128xf32>
      %c0_22 = arith.constant 0 : index
      %c0_23 = arith.constant 0 : index
      %39 = vector.load %arg12[%c0_22, %c0_23] : memref<8x128xf32, #tpu.memory_space<vmem>>, vector<8x128xf32>
      tpu.vector_store %arg12[%c0_22, %c0_23], %38 {strides = array<i32>} : memref<8x128xf32, #tpu.memory_space<vmem>>, vector<8x128xf32>,
    } else {
    }
    %c0 = arith.constant 0 : index
    %c0_1 = arith.constant 0 : index
    %3 = vector.load %arg2[%c0, %c0_1] : memref<512x48xf32, #tpu.memory_space<vmem>>, vector<512x48xf32>
    %c0_2 = arith.constant 0 : index
    %c0_3 = arith.constant 0 : index
    %4 = vector.load %arg4[%c0_2, %c0_3] : memref<48x896xf32, #tpu.memory_space<vmem>>, vector<48x896xf32>
    %cst = arith.constant dense<0.000000e+00> : vector<512x896xf32>
    %5 = tpu.matmul %3, %4, %cst {dimension_numbers = #tpu.dot_dimension_numbers<[1], [0], [0], [1], [0, 0, 1, 1], [], []>} : vector<512x48xf32>, vector<48x896xf32>, vector<512x896xf32> -> vector<512x896xf32>
    %6 = vector.extract_strided_slice %5 {offsets = [0, 0], sizes = [512, 128], strides = [1, 1]} : vector<512x896xf32> to vector<512x128xf32>
    %cst_4 = arith.constant 0.000000e+00 : f32
    %7 = vector.broadcast %cst_4 : f32 to vector<512x128xf32>
    %8 = arith.maximumf %6, %7 : vector<512x128xf32>
    %9 = vector.extract_strided_slice %5 {offsets = [0, 128], sizes = [512, 384], strides = [1, 1]} : vector<512x896xf32> to vector<512x384xf32>
    %10 = vector.extract_strided_slice %5 {offsets = [0, 512], sizes = [512, 384], strides = [1, 1]} : vector<512x896xf32> to vector<512x384xf32>
    %c0_5 = arith.constant 0 : index
    %c0_6 = arith.constant 0 : index
    %11 = vector.load %arg5[%c0_5, %c0_6] : memref<128x384xf32, #tpu.memory_space<vmem>>, vector<128x384xf32>
    %cst_7 = arith.constant dense<0.000000e+00> : vector<512x384xf32>
    %12 = tpu.matmul %8, %11, %cst_7 {dimension_numbers = #tpu.dot_dimension_numbers<[1], [0], [0], [1], [0, 0, 1, 1], [], []>} : vector<512x128xf32>, vector<128x384xf32>, vector<512x384xf32> -> vector<512x384xf32>
    %13 = arith.mulf %12, %9 : vector<512x384xf32>
    %14 = arith.mulf %13, %10 : vector<512x384xf32>
    %c0_8 = arith.constant 0 : index
    %c0_9 = arith.constant 0 : index
    %15 = vector.load %arg6[%c0_8, %c0_9] : memref<384x128xf32, #tpu.memory_space<vmem>>, vector<384x128xf32>
    %cst_10 = arith.constant dense<0.000000e+00> : vector<512x128xf32>
    %16 = tpu.matmul %14, %15, %cst_10 {dimension_numbers = #tpu.dot_dimension_numbers<[1], [0], [0], [1], [0, 0, 1, 1], [], []>} : vector<512x384xf32>, vector<384x128xf32>, vector<512x128xf32> -> vector<512x128xf32>
    %17 = tpu.iota {dimensions = array<i32: 1>} : vector<512x128xi32>
    %c20_i32 = arith.constant 20 : i32
    %18 = vector.broadcast %c20_i32 : i32 to vector<512x128xi32>
    %19 = arith.cmpi eq, %17, %18 : vector<512x128xi32>
    %cst_11 = arith.constant 1.000000e+00 : f32
    %20 = vector.broadcast %cst_11 : f32 to vector<512x128xf32>
    %21 = arith.select %19, %20, %16 : vector<512x128xi1>, vector<512x128xf32>
    %c8_i32 = arith.constant 8 : i32
    %22 = arith.muli %arg0, %c8_i32 : i32
    %23 = tpu.iota {dimensions = array<i32: 0>} : vector<8x512xi32>
    %24 = vector.broadcast %22 : i32 to vector<8x512xi32>
    %25 = arith.addi %23, %24 : vector<8x512xi32>
    %c0_12 = arith.constant 0 : index
    %c0_13 = arith.constant 0 : index
    %26 = vector.load %arg3[%c0_12, %c0_13] : memref<1x512xi32, #tpu.memory_space<vmem>>, vector<1x512xi32>
    %27 = vector.broadcast %26 : vector<1x512xi32> to vector<8x512xi32>
    %28 = arith.cmpi eq, %25, %27 : vector<8x512xi32>
    %29 = arith.extui %28 : vector<8x512xi1> to vector<8x512xi32>
    %30 = arith.sitofp %29 : vector<8x512xi32> to vector<8x512xf32>
    %c0_14 = arith.constant 0 : index
    %c0_15 = arith.constant 0 : index
    %31 = vector.load %arg12[%c0_14, %c0_15] : memref<8x128xf32, #tpu.memory_space<vmem>>, vector<8x128xf32>
    %cst_16 = arith.constant dense<0.000000e+00> : vector<8x128xf32>
    %32 = tpu.matmul %30, %21, %cst_16 {dimension_numbers = #tpu.dot_dimension_numbers<[1], [0], [0], [1], [0, 0, 1, 1], [], []>} : vector<8x512xf32>, vector<512x128xf32>, vector<8x128xf32> -> vector<8x128xf32>
    %33 = arith.addf %31, %32 : vector<8x128xf32>
    %c0_17 = arith.constant 0 : index
    %c0_18 = arith.constant 0 : index
    %34 = vector.load %arg12[%c0_17, %c0_18] : memref<8x128xf32, #tpu.memory_space<vmem>>, vector<8x128xf32>
    tpu.vector_store %arg12[%c0_17, %c0_18], %33 {strides = array<i32>} : memref<8x128xf32, #tpu.memory_space<vmem>>, vector<8x128xf32>,
    %c0_i32_19 = arith.constant 0 : i32
    %35 = arith.cmpi eq, %arg1, %c0_i32_19 : i32
    %36 = arith.extui %35 : i1 to i32
    %c0_i32_20 = arith.constant 0 : i32
    %37 = arith.cmpi ne, %36, %c0_i32_20 : i32
    scf.if %37 {
      %c0_21 = arith.constant 0 : index
      %c0_22 = arith.constant 0 : index
      %38 = vector.load %arg12[%c0_21, %c0_22] : memref<8x128xf32, #tpu.memory_space<vmem>>, vector<8x128xf32>
      %39 = vector.extract_strided_slice %38 {offsets = [0, 20], sizes = [8, 1], strides = [1, 1]} : vector<8x128xf32> to vector<8x1xf32>
      %cst_23 = arith.constant 1.000000e+00 : f32
      %40 = vector.broadcast %cst_23 : f32 to vector<8x1xf32>
      %41 = arith.maximumf %39, %40 : vector<8x1xf32>
      %cst_24 = arith.constant 1.000000e+00 : f32
      %42 = vector.broadcast %cst_24 : f32 to vector<8x1xf32>
      %43 = arith.divf %42, %41 : vector<8x1xf32>
      %44 = vector.extract_strided_slice %38 {offsets = [0, 0], sizes = [8, 20], strides = [1, 1]} : vector<8x128xf32> to vector<8x20xf32>
      %45 = vector.broadcast %43 : vector<8x1xf32> to vector<8x20xf32>
      %46 = arith.mulf %44, %45 : vector<8x20xf32>
      %c0_25 = arith.constant 0 : index
      %c0_26 = arith.constant 0 : index
      %47 = vector.load %arg7[%c0_25, %c0_26] : memref<8x128xf32, #tpu.memory_space<vmem>>, vector<8x128xf32>
      %48 = vector.extract_strided_slice %47 {offsets = [0, 0], sizes = [8, 20], strides = [1, 1]} : vector<8x128xf32> to vector<8x20xf32>
      %49 = arith.addf %46, %48 : vector<8x20xf32>
      %c0_27 = arith.constant 0 : index
      %c0_28 = arith.constant 0 : index
      %50 = vector.load %arg8[%c0_27, %c0_28] : memref<1x12xf32, #tpu.memory_space<vmem>>, vector<1x12xf32>
      %51 = vector.extract_strided_slice %49 {offsets = [0, 0], sizes = [8, 8], strides = [1, 1]} : vector<8x20xf32> to vector<8x8xf32>
      %cst_29 = arith.constant dense<0.000000e+00> : vector<8xf32>
      %52 = vector.multi_reduction <add>, %51, %cst_29 [1] : vector<8x8xf32> to vector<8xf32>
      %53 = vector.shape_cast %52 : vector<8xf32> to vector<8x1xf32>
      %cst_30 = arith.constant 8.000000e+00 : f32
      %54 = vector.broadcast %cst_30 : f32 to vector<8x1xf32>
      %55 = arith.divf %53, %54 : vector<8x1xf32>
      %56 = vector.broadcast %55 : vector<8x1xf32> to vector<8x8xf32>
      %57 = arith.subf %51, %56 : vector<8x8xf32>
      %58 = arith.mulf %57, %57 : vector<8x8xf32>
      %cst_31 = arith.constant dense<0.000000e+00> : vector<8xf32>
      %59 = vector.multi_reduction <add>, %58, %cst_31 [1] : vector<8x8xf32> to vector<8xf32>
      %60 = vector.shape_cast %59 : vector<8xf32> to vector<8x1xf32>
      %cst_32 = arith.constant 8.000000e+00 : f32
      %61 = vector.broadcast %cst_32 : f32 to vector<8x1xf32>
      %62 = arith.divf %60, %61 : vector<8x1xf32>
      %cst_33 = arith.constant 9.99999974E-6 : f32
      %63 = vector.broadcast %cst_33 : f32 to vector<8x1xf32>
      %64 = arith.addf %62, %63 : vector<8x1xf32>
      %65 = math.rsqrt %64 : vector<8x1xf32>
      %66 = vector.extract_strided_slice %50 {offsets = [0, 0], sizes = [1, 8], strides = [1, 1]} : vector<1x12xf32> to vector<1x8xf32>
      %67 = vector.broadcast %65 : vector<8x1xf32> to vector<8x8xf32>
      %68 = vector.broadcast %66 : vector<1x8xf32> to vector<8x8xf32>
      %69 = arith.mulf %67, %68 : vector<8x8xf32>
      %70 = arith.mulf %57, %69 : vector<8x8xf32>
      %c0_34 = arith.constant 0 : index
      %c0_35 = arith.constant 0 : index
      %71 = vector.load %arg9[%c0_34, %c0_35] : memref<1x8xf32, #tpu.memory_space<vmem>>, vector<1x8xf32>
      %72 = vector.broadcast %71 : vector<1x8xf32> to vector<8x8xf32>
      %73 = arith.addf %70, %72 : vector<8x8xf32>
      %74 = vector.extract_strided_slice %49 {offsets = [0, 8], sizes = [8, 12], strides = [1, 1]} : vector<8x20xf32> to vector<8x12xf32>
      %75 = arith.mulf %74, %74 : vector<8x12xf32>
      %cst_36 = arith.constant dense<0.000000e+00> : vector<8xf32>
      %76 = vector.multi_reduction <add>, %75, %cst_36 [1] : vector<8x12xf32> to vector<8xf32>
      %77 = vector.shape_cast %76 : vector<8xf32> to vector<8x1xf32>
      %cst_37 = arith.constant 1.200000e+01 : f32
      %78 = vector.broadcast %cst_37 : f32 to vector<8x1xf32>
      %79 = arith.divf %77, %78 : vector<8x1xf32>
      %cst_38 = arith.constant 9.99999974E-6 : f32
      %80 = vector.broadcast %cst_38 : f32 to vector<8x1xf32>
      %81 = arith.addf %79, %80 : vector<8x1xf32>
      %82 = math.rsqrt %81 : vector<8x1xf32>
      %83 = vector.extract_strided_slice %50 {offsets = [0, 8], sizes = [1, 4], strides = [1, 1]} : vector<1x12xf32> to vector<1x4xf32>
      %84 = vector.broadcast %82 : vector<8x1xf32> to vector<8x4xf32>
      %85 = vector.broadcast %83 : vector<1x4xf32> to vector<8x4xf32>
      %86 = arith.mulf %84, %85 : vector<8x4xf32>
      %c0_39 = arith.constant 0 : index
      %c0_40 = arith.constant 0 : index
      %87 = vector.load %arg10[%c0_39, %c0_40] : memref<4x12xf32, #tpu.memory_space<vmem>>, vector<4x12xf32>
      %cst_41 = arith.constant dense<0.000000e+00> : vector<8x12xf32>
      %88 = tpu.matmul %86, %87, %cst_41 {dimension_numbers = #tpu.dot_dimension_numbers<[1], [0], [0], [1], [0, 0, 1, 1], [], []>} : vector<8x4xf32>, vector<4x12xf32>, vector<8x12xf32> -> vector<8x12xf32>
      %89 = arith.mulf %74, %88 : vector<8x12xf32>
      %cst_42 = arith.constant 0.000000e+00 : f32
      %90 = vector.broadcast %cst_42 : f32 to vector<8x108xf32>
      %91 = tpu.concatenate %73, %89, %90 in 1 : vector<8x8xf32>, vector<8x12xf32>, vector<8x108xf32> -> vector<8x128xf32>
      %c0_43 = arith.constant 0 : index
      %c0_44 = arith.constant 0 : index
      %92 = vector.load %arg11[%c0_43, %c0_44] : memref<8x128xf32, #tpu.memory_space<vmem>>, vector<8x128xf32>
      tpu.vector_store %arg11[%c0_43, %c0_44], %91 {strides = array<i32>} : memref<8x128xf32, #tpu.memory_space<vmem>>, vector<8x128xf32>,
    } else {
    }
    return
  }
  func.func @transform_0(%arg0: i32, %arg1: i32) -> (i32, i32) {
    %c0_i32 = arith.constant 0 : i32
    %c0_i32_0 = arith.constant 0 : i32
    return %arg1, %c0_i32 : i32, i32
  }
  func.func @transform_1(%arg0: i32, %arg1: i32) -> (i32, i32) {
    %c0_i32 = arith.constant 0 : i32
    %c0_i32_0 = arith.constant 0 : i32
    return %c0_i32, %arg1 : i32, i32
  }
  func.func @transform_2(%arg0: i32, %arg1: i32) -> (i32, i32) {
    %c0_i32 = arith.constant 0 : i32
    %c0_i32_0 = arith.constant 0 : i32
    %c0_i32_1 = arith.constant 0 : i32
    return %c0_i32, %c0_i32_0 : i32, i32
  }
  func.func @transform_3(%arg0: i32, %arg1: i32) -> (i32, i32) {
    %c0_i32 = arith.constant 0 : i32
    %c0_i32_0 = arith.constant 0 : i32
    %c0_i32_1 = arith.constant 0 : i32
    return %c0_i32, %c0_i32_0 : i32, i32
  }
  func.func @transform_4(%arg0: i32, %arg1: i32) -> (i32, i32) {
    %c0_i32 = arith.constant 0 : i32
    %c0_i32_0 = arith.constant 0 : i32
    %c0_i32_1 = arith.constant 0 : i32
    return %c0_i32, %c0_i32_0 : i32, i32
  }
  func.func @transform_5(%arg0: i32, %arg1: i32) -> (i32, i32) {
    %c0_i32 = arith.constant 0 : i32
    %c0_i32_0 = arith.constant 0 : i32
    return %arg0, %c0_i32 : i32, i32
  }
  func.func @transform_6(%arg0: i32, %arg1: i32) -> (i32, i32) {
    %c0_i32 = arith.constant 0 : i32
    %c0_i32_0 = arith.constant 0 : i32
    %c0_i32_1 = arith.constant 0 : i32
    return %c0_i32, %c0_i32_0 : i32, i32
  }
  func.func @transform_7(%arg0: i32, %arg1: i32) -> (i32, i32) {
    %c0_i32 = arith.constant 0 : i32
    %c0_i32_0 = arith.constant 0 : i32
    %c0_i32_1 = arith.constant 0 : i32
    return %c0_i32, %c0_i32_0 : i32, i32
  }
  func.func @transform_8(%arg0: i32, %arg1: i32) -> (i32, i32) {
    %c0_i32 = arith.constant 0 : i32
    %c0_i32_0 = arith.constant 0 : i32
    %c0_i32_1 = arith.constant 0 : i32
    return %c0_i32, %c0_i32_0 : i32, i32
  }
  func.func @transform_9(%arg0: i32, %arg1: i32) -> (i32, i32) {
    %c0_i32 = arith.constant 0 : i32
    %c0_i32_0 = arith.constant 0 : i32
    return %arg0, %c0_i32 : i32, i32
  }
}

</mosaic_0001>

<bundles_post_ra>
// kernel: tpu_custom_call.1
= control target key start
LH: loop header
LB: loop body
LE: loop exit
PB: predicated region body
PF: predicated region fallthrough
CT: control target
= control target key end

     0   :  { %14 = vsyncpa [#allocation4], 0  ;;  %s8677_s0 = inlined_call_operand.vmem [shape: f32[512,48], index: 0, kind: input, shape index: {}]   ;;  %s8678_s1 = inlined_call_operand.vmem [shape: s32[1,512], index: 1, kind: input, shape index: {}]   ;;  %s8679_s2 = inlined_call_operand.hbm [shape: f32[48,896], index: 2, kind: input, shape index: {}]   ;;  %s8680_s3 = inlined_call_operand.vmem [shape: f32[128,384], index: 3, kind: input, shape index: {}]   ;;  %s8681_s4 = inlined_call_operand.hbm [shape: f32[384,128], index: 4, kind: input, shape index: {}]   ;;  %s8682_s5 = inlined_call_operand.vmem [shape: f32[8,128], index: 5, kind: input, shape index: {}]   ;;  %s8683_s6 = inlined_call_operand.vmem [shape: f32[1,12], index: 6, kind: input, shape index: {}]   ;;  %s8684_s7 = inlined_call_operand.vmem [shape: f32[1,8], index: 7, kind: input, shape index: {}]   ;;  %s8685_s8 = inlined_call_operand.vmem [shape: f32[4,12], index: 8, kind: input, shape index: {}]   ;;  %s8686_s9 = inlined_call_operand.hbm [shape: f32[8,128], index: 9, kind: output, shape index: {}]  }
   0x1   :  { %15 = vsyncpa [#allocation7], 0 }
   0x2   :  { %16 = vsyncpa [#allocation5], 0  ;;  %s25_s11 = sshll.u32 %s8679_s2, 4  ;;  %s4617_s12 = smov [#allocation3]   ;;  %s26_s11 = int_to_ptr.hbm [resolvable:$true] %s25_s11 }
   0x3   :  { %s27_s13 = sshll.u32 %s4617_s12, 4  ;;  %s40_s16 = sshll.u32 %s8681_s4, 4  ;;  %s28_s13 = int_to_ptr.vmem [resolvable:$true] %s27_s13  ;;  %s41_s16 = int_to_ptr.hbm [resolvable:$true] %s40_s16 }
   0x4   :  { %s4618_s17 = smov 896   ;;  %s4619_s18 = smov 56  }
   0x5   :  { %33 = dma.hbm_to_vmem [thread:$0]  %s26_s11, 5376, %s28_s13, [#allocation4], %s4618_s17, %s4618_s17, %s4619_s18  }
   0x6   :  { %s4620_s19 = smov [#allocation6]   ;;  %s4621_s21 = smov 128  }
   0x7   :  { %s42_s20 = sshll.u32 %s4620_s19, 4  ;;  %s4622_s22 = smov 8   ;;  %s43_s20 = int_to_ptr.vmem [resolvable:$true] %s42_s20 }
   0x8   :  { %48 = dma.hbm_to_vmem [thread:$0]  %s41_s16, 6144, %s43_s20, [#allocation7], %s4621_s21, %s4621_s21, %s4622_s22  }
   0x9   :  { %4611 = dma.done.wait [#allocation4], 5376  }
   0xa   :  { %4612 = vsyncadd [#allocation4], 4294961920 }
   0xb   :  { %4613 = dma.done.wait [#allocation7], 6144  }
   0xc   :  { %4614 = vsyncadd [#allocation7], 4294961152  ;;  %v169_v0 = vld [vmem:[#allocation3 + $0x118] sm:$0xff]  ;;  %v162_v1 = vld [vmem:[#allocation3 + $0xe0] sm:$0xff]  ;;  %vm176_vm0 = vcmask 392192   ;;  %vm3831_vm10 = vcmask 64512  }
   0xd   :  { %379 = vmatpush.msra.mxu0 %v169_v0  ;;  %4415 = vmatpush.msra.mxu1 %v169_v0  ;;  %v155_v2 = vld [vmem:[#allocation3 + $0xa8] sm:$0xff]  ;;  %v148_v3 = vld [vmem:[#allocation3 + $0x70] sm:$0xff]  ;;  %v141_v4 = vld [vmem:[#allocation3 + $0x38] sm:$0xff]  ;;  %s4625_s13 = smov 120   ;;  %vm3875_vm12 = vcmask 97280   ;;  %vm3906_vm14 = vcmask 1043456  }
   0xe   :  { %4416 = vmatpush.msra.mxu2 %v169_v0  ;;  %4417 = vmatpush.msra.mxu3 %v169_v0  ;;  %v134_v5 = vld [vmem:[#allocation3] sm:$0xff]  ;;  %v4694_v7 = vld [vmem:[%s8677_s0 + $0x90] sm:$0xff]  ;;  %v4699_v8 = vld [vmem:[%s8677_s0 + $0xf8] sm:$0xff]  ;;  %s3946_s20 = sshll.u32 %s8686_s9, 4  ;;  %s3947_s20 = int_to_ptr.hbm [resolvable:$true] %s3946_s20 }
   0xf   :  { %380 = vmatpush.msra.mxu0 %v162_v1  ;;  %4418 = vmatpush.msra.mxu1 %v162_v1  ;;  %v4689_v6 = vld [vmem:[%s8677_s0] sm:$0xff]  ;;  %v117_v9 = vld [vmem:[%s8677_s0 + $0x178] sm:$0xff]  ;;  %v4714_v10 = vld [vmem:[%s8677_s0 + $0x8] sm:$0xff] }
  0x10   :  { %4419 = vmatpush.msra.mxu2 %v162_v1  ;;  %4420 = vmatpush.msra.mxu3 %v162_v1  ;;  %v4719_v11 = vld [vmem:[%s8677_s0 + $0x98] sm:$0xff]  ;;  %v4724_v12 = vld [vmem:[%s8677_s0 + $0x100] sm:$0xff]  ;;  %v4739_v14 = vld [vmem:[%s8677_s0 + $0x10] sm:$0xff] }
  0x11   :  { %381 = vmatpush.msra.mxu0 %v155_v2  ;;  %4421 = vmatpush.msra.mxu1 %v155_v2  ;;  %v118_v13 = vld [vmem:[%s8677_s0 + $0x180] sm:$0xff]  ;;  %v4749_v16 = vld [vmem:[%s8677_s0 + $0x108] sm:$0xff]  ;;  %v4764_v18 = vld [vmem:[%s8677_s0 + $0x18] sm:$0xff] }
  0x12   :  { %4422 = vmatpush.msra.mxu2 %v155_v2  ;;  %4423 = vmatpush.msra.mxu3 %v155_v2  ;;  %v4744_v15 = vld [vmem:[%s8677_s0 + $0xa0] sm:$0xff]  ;;  %v119_v17 = vld [vmem:[%s8677_s0 + $0x188] sm:$0xff]  ;;  %v4774_v20 = vld [vmem:[%s8677_s0 + $0x110] sm:$0xff] }
  0x13   :  { %382 = vmatpush.msra.mxu0 %v148_v3  ;;  %4424 = vmatpush.msra.mxu1 %v148_v3  ;;  %v4769_v19 = vld [vmem:[%s8677_s0 + $0xa8] sm:$0xff]  ;;  %v120_v21 = vld [vmem:[%s8677_s0 + $0x190] sm:$0xff]  ;;  %v4789_v22 = vld [vmem:[%s8677_s0 + $0x20] sm:$0xff] }
  0x14   :  { %4425 = vmatpush.msra.mxu2 %v148_v3  ;;  %4426 = vmatpush.msra.mxu3 %v148_v3  ;;  %v4794_v23 = vld [vmem:[%s8677_s0 + $0xb0] sm:$0xff]  ;;  %v4799_v24 = vld [vmem:[%s8677_s0 + $0x118] sm:$0xff]  ;;  %v4814_v26 = vld [vmem:[%s8677_s0 + $0x28] sm:$0xff] }
  0x15   :  { %383 = vmatpush.msra.mxu0 %v141_v4  ;;  %4427 = vmatpush.msra.mxu1 %v141_v4  ;;  %v121_v25 = vld [vmem:[%s8677_s0 + $0x198] sm:$0xff]  ;;  %v4824_v28 = vld [vmem:[%s8677_s0 + $0x120] sm:$0xff]  ;;  %v4839_v30 = vld [vmem:[%s8677_s0 + $0x30] sm:$0xff] }
  0x16   :  { %4428 = vmatpush.msra.mxu2 %v141_v4  ;;  %4429 = vmatpush.msra.mxu3 %v141_v4  ;;  %v4819_v27 = vld [vmem:[%s8677_s0 + $0xb8] sm:$0xff]  ;;  %v122_v29 = vld [vmem:[%s8677_s0 + $0x1a0] sm:$0xff]  ;;  %v4849_v32 = vld [vmem:[%s8677_s0 + $0x128] sm:$0xff] }
  0x17   :  { %384 = vmatpush.msra.mxu0 %v134_v5  ;;  %4430 = vmatpush.msra.mxu1 %v134_v5  ;;  %v4844_v31 = vld [vmem:[%s8677_s0 + $0xc0] sm:$0xff]  ;;  %v123_v33 = vld [vmem:[%s8677_s0 + $0x1a8] sm:$0xff]  ;;  %v4864_v34 = vld [vmem:[%s8677_s0 + $0x38] sm:$0xff] }
  0x18   :  { %4431 = vmatpush.msra.mxu2 %v134_v5  ;;  %4432 = vmatpush.msra.mxu3 %v134_v5  ;;  %v4869_v35 = vld [vmem:[%s8677_s0 + $0xc8] sm:$0xff]  ;;  %v4874_v36 = vld [vmem:[%s8677_s0 + $0x130] sm:$0xff]  ;;  %v170_v38 = vld [vmem:[#allocation3 + $0x120] sm:$0xff] }
  0x19   :  { %3957 = vmatmul.msk.f32.vlgmr.msra.gmra.mxu0 %vm176_vm0, %v4689_v6  ;;  %3975 = vmatmul.msk.f32.vlgmr.msra.gmra.mxu1 %vm176_vm0, %v4694_v7  ;;  %v124_v37 = vld [vmem:[%s8677_s0 + $0x1b0] sm:$0xff]  ;;  %v163_v39 = vld [vmem:[#allocation3 + $0xe8] sm:$0xff]  ;;  %v4889_v40 = vld [vmem:[%s8677_s0 + $0x40] sm:$0xff] }
  0x1a   :  { %3988 = vmatmul.msk.f32.vlgmr.msra.gmra.mxu2 %vm176_vm0, %v4699_v8  ;;  %4004 = vmatmul.msk.f32.vlgmr.msra.gmra.mxu3 %vm176_vm0, %v117_v9  ;;  %v4894_v41 = vld [vmem:[%s8677_s0 + $0xd0] sm:$0xff]  ;;  %v4899_v42 = vld [vmem:[%s8677_s0 + $0x138] sm:$0xff]  ;;  %v142_v46 = vld [vmem:[#allocation3 + $0x40] sm:$0xff] }
  0x1b   :  { %588 = vmatpush.msrb.mxu1 %v170_v38  ;;  %v125_v43 = vld [vmem:[%s8677_s0 + $0x1b8] sm:$0xff]  ;;  %v156_v44 = vld [vmem:[#allocation3 + $0xb0] sm:$0xff]  ;;  %v4914_v47 = vld [vmem:[%s8677_s0 + $0x48] sm:$0xff] }
  0x1c   :  { %v149_v45 = vld [vmem:[#allocation3 + $0x78] sm:$0xff]  ;;  %v4924_v49 = vld [vmem:[%s8677_s0 + $0x140] sm:$0xff]  ;;  %v135_v51 = vld [vmem:[#allocation3 + $0x8] sm:$0xff] }
  0x1d   :  { %589 = vmatpush.msrb.mxu1 %v163_v39  ;;  %v4919_v48 = vld [vmem:[%s8677_s0 + $0xd8] sm:$0xff]  ;;  %v126_v50 = vld [vmem:[%s8677_s0 + $0x1c0] sm:$0xff]  ;;  %v4939_v52 = vld [vmem:[%s8677_s0 + $0x50] sm:$0xff] }
  0x1e   :  { %v4944_v53 = vld [vmem:[%s8677_s0 + $0xe0] sm:$0xff]  ;;  %v4949_v54 = vld [vmem:[%s8677_s0 + $0x148] sm:$0xff]  ;;  %v164_v57 = vld [vmem:[#allocation3 + $0xf0] sm:$0xff] }
  0x1f   :  { %590 = vmatpush.msrb.mxu1 %v156_v44  ;;  %v127_v55 = vld [vmem:[%s8677_s0 + $0x1c8] sm:$0xff]  ;;  %v4964_v58 = vld [vmem:[%s8677_s0 + $0x58] sm:$0xff]  ;;  %v4974_v60 = vld [vmem:[%s8677_s0 + $0x150] sm:$0xff] }
  0x20   :  { %v171_v56 = vld [vmem:[#allocation3 + $0x128] sm:$0xff]  ;;  %v128_v61 = vld [vmem:[%s8677_s0 + $0x1d0] sm:$0xff]  ;;  %v157_v62 = vld [vmem:[#allocation3 + $0xb8] sm:$0xff] }
  0x21   :  { %3958 = vmatmul.msk.f32.gmra.mxu0 %vm176_vm0, %v4714_v10  ;;  %3976 = vmatmul.msk.f32.gmra.mxu1 %vm176_vm0, %v4719_v11  ;;  %v4969_v59 = vld [vmem:[%s8677_s0 + $0xe8] sm:$0xff]  ;;  %v150_v63 = vld [vmem:[#allocation3 + $0x80] sm:$0xff]  ;;  %v4994_v1 = vld [vmem:[%s8677_s0 + $0xf0] sm:$0xff] }
  0x22   :  { %3989 = vmatmul.msk.f32.gmra.mxu2 %vm176_vm0, %v4724_v12  ;;  %4005 = vmatmul.msk.f32.gmra.mxu3 %vm176_vm0, %v118_v13  ;;  %v4989_v0 = vld [vmem:[%s8677_s0 + $0x60] sm:$0xff]  ;;  %v143_v2 = vld [vmem:[#allocation3 + $0x48] sm:$0xff]  ;;  %v172_v3 = vld [vmem:[#allocation3 + $0x130] sm:$0xff] }
  0x23   :  { %591 = vmatpush.msrb.mxu1 %v149_v45  ;;  %797 = vmatpush.msrb.mxu2 %v171_v56  ;;  %v4999_v4 = vld [vmem:[%s8677_s0 + $0x158] sm:$0xff]  ;;  %v136_v9 = vld [vmem:[#allocation3 + $0x10] sm:$0xff]  ;;  %v166_v39 = vld [vmem:[#allocation3 + $0x100] sm:$0xff] }
  0x24   :  { %v129_v5 = vld [vmem:[%s8677_s0 + $0x1d8] sm:$0xff]  ;;  %1006 = vmatpush.msrb.mxu3 %v172_v3  ;;  %v144_v38 = vld [vmem:[#allocation3 + $0x50] sm:$0xff]  ;;  %v159_v44 = vld [vmem:[#allocation3 + $0xc8] sm:$0xff] }
  0x25   :  { %592 = vmatpush.msrb.mxu1 %v142_v46  ;;  %798 = vmatpush.msrb.mxu2 %v164_v57  ;;  %v165_v13 = vld [vmem:[#allocation3 + $0xf8] sm:$0xff]  ;;  %v152_v45 = vld [vmem:[#allocation3 + $0x90] sm:$0xff]  ;;  %v138_v56 = vld [vmem:[#allocation3 + $0x20] sm:$0xff] }
  0x26   :  { %1007 = vmatpush.msrb.mxu3 %v165_v13  ;;  %v5034_v46 = vld [vmem:[%s8677_s0 + $0x70] sm:$0xff]  ;;  %v5057_v57 = vld [vmem:[%s8677_s0 + $0x78] sm:$0xff]  ;;  %v5081_v3 = vld [vmem:[%s8677_s0 + $0x80] sm:$0xff] }
  0x27   :  { %593 = vmatpush.msrb.mxu1 %v135_v51  ;;  %799 = vmatpush.msrb.mxu2 %v157_v62  ;;  %v5044_v51 = vld [vmem:[%s8677_s0 + $0x1e8] sm:$0xff]  ;;  %v132_v62 = vld [vmem:[%s8677_s0 + $0x1f0] sm:$0xff] }
  0x29   :  { %3959 = vmatmul.msk.f32.gmra.mxu0 %vm176_vm0, %v4739_v14  ;;  %3977 = vmatmul.msk.f32.gmra.mxu1 %vm176_vm0, %v4744_v15 }
  0x2a   :  { %3990 = vmatmul.msk.f32.gmra.mxu2 %vm176_vm0, %v4749_v16  ;;  %4006 = vmatmul.msk.f32.gmra.mxu3 %vm176_vm0, %v119_v17  ;;  %v158_v17 = vld [vmem:[#allocation3 + $0xc0] sm:$0xff] }
  0x2b   :  { %800 = vmatpush.msrb.mxu2 %v150_v63  ;;  %1008 = vmatpush.msrb.mxu3 %v158_v17 }
  0x2d   :  { %801 = vmatpush.msrb.mxu2 %v143_v2 }
  0x2f   :  { %802 = vmatpush.msrb.mxu2 %v136_v9 }
  0x31   :  { %3960 = vmatmul.msk.f32.gmra.mxu0 %vm176_vm0, %v4764_v18  ;;  %3978 = vmatmul.msk.f32.gmra.mxu1 %vm176_vm0, %v4769_v19 }
  0x32   :  { %3991 = vmatmul.msk.f32.gmra.mxu2 %vm176_vm0, %v4774_v20  ;;  %4007 = vmatmul.msk.f32.gmra.mxu3 %vm176_vm0, %v120_v21  ;;  %v151_v21 = vld [vmem:[#allocation3 + $0x88] sm:$0xff] }
  0x33   :  { %1009 = vmatpush.msrb.mxu3 %v151_v21 }
  0x35   :  { %1010 = vmatpush.msrb.mxu3 %v144_v38 }
  0x39   :  { %3961 = vmatmul.msk.f32.gmra.mxu0 %vm176_vm0, %v4789_v22  ;;  %3979 = vmatmul.msk.f32.gmra.mxu1 %vm176_vm0, %v4794_v23 }
  0x3a   :  { %3992 = vmatmul.msk.f32.gmra.mxu2 %vm176_vm0, %v4799_v24  ;;  %4008 = vmatmul.msk.f32.gmra.mxu3 %vm176_vm0, %v121_v25  ;;  %v5014_v25 = vld [vmem:[%s8677_s0 + $0x68] sm:$0xff] }
  0x41   :  { %3962 = vmatmul.msk.f32.gmra.mxu0 %vm176_vm0, %v4814_v26  ;;  %3980 = vmatmul.msk.f32.gmra.mxu1 %vm176_vm0, %v4819_v27 }
  0x42   :  { %3993 = vmatmul.msk.f32.gmra.mxu2 %vm176_vm0, %v4824_v28  ;;  %4009 = vmatmul.msk.f32.gmra.mxu3 %vm176_vm0, %v122_v29  ;;  %v173_v29 = vld [vmem:[#allocation3 + $0x138] sm:$0xff] }
  0x43   :  { %1215 = vmatpush.msrb.mxu0 %v173_v29  ;;  %v5104_v29 = vld [vmem:[%s8677_s0 + $0x88] sm:$0xff] }
  0x45   :  { %1216 = vmatpush.msrb.mxu0 %v166_v39 }
  0x47   :  { %1217 = vmatpush.msrb.mxu0 %v159_v44 }
  0x49   :  { %3963 = vmatmul.msk.f32.gmra.mxu0 %vm176_vm0, %v4839_v30  ;;  %3981 = vmatmul.msk.f32.gmra.mxu1 %vm176_vm0, %v4844_v31 }
  0x4a   :  { %3994 = vmatmul.msk.f32.gmra.mxu2 %vm176_vm0, %v4849_v32  ;;  %4010 = vmatmul.msk.f32.gmra.mxu3 %vm176_vm0, %v123_v33  ;;  %v5019_v33 = vld [vmem:[%s8677_s0 + $0x160] sm:$0xff] }
  0x4b   :  { %1218 = vmatpush.msrb.mxu0 %v152_v45 }
  0x51   :  { %3964 = vmatmul.msk.f32.gmra.mxu0 %vm176_vm0, %v4864_v34  ;;  %3982 = vmatmul.msk.f32.gmra.mxu1 %vm176_vm0, %v4869_v35 }
  0x52   :  { %3995 = vmatmul.msk.f32.gmra.mxu2 %vm176_vm0, %v4874_v36  ;;  %4011 = vmatmul.msk.f32.gmra.mxu3 %vm176_vm0, %v124_v37  ;;  %v130_v37 = vld [vmem:[%s8677_s0 + $0x1e0] sm:$0xff] }
  0x59   :  { %3965 = vmatmul.msk.f32.gmra.mxu0 %vm176_vm0, %v4889_v40  ;;  %3983 = vmatmul.msk.f32.gmra.mxu1 %vm176_vm0, %v4894_v41 }
  0x5a   :  { %3996 = vmatmul.msk.f32.gmra.mxu2 %vm176_vm0, %v4899_v42  ;;  %4012 = vmatmul.msk.f32.gmra.mxu3 %vm176_vm0, %v125_v43  ;;  %v137_v43 = vld [vmem:[#allocation3 + $0x18] sm:$0xff] }
  0x5b   :  { %1011 = vmatpush.msrb.mxu3 %v137_v43 }
  0x61   :  { %3966 = vmatmul.msk.f32.gmra.mxu0 %vm176_vm0, %v4914_v47  ;;  %3984 = vmatmul.msk.f32.gmra.mxu1 %vm176_vm0, %v4919_v48 }
  0x62   :  { %3997 = vmatmul.msk.f32.gmra.mxu2 %vm176_vm0, %v4924_v49  ;;  %4013 = vmatmul.msk.f32.gmra.mxu3 %vm176_vm0, %v126_v50  ;;  %v5039_v50 = vld [vmem:[%s8677_s0 + $0x168] sm:$0xff] }
  0x69   :  { %3967 = vmatmul.msk.f32.gmra.mxu0 %vm176_vm0, %v4939_v52  ;;  %3985 = vmatmul.msk.f32.gmra.mxu1 %vm176_vm0, %v4944_v53 }
  0x6a   :  { %3998 = vmatmul.msk.f32.gmra.mxu2 %vm176_vm0, %v4949_v54  ;;  %4014 = vmatmul.msk.f32.gmra.mxu3 %vm176_vm0, %v127_v55  ;;  %v145_v55 = vld [vmem:[#allocation3 + $0x58] sm:$0xff] }
  0x6b   :  { %1219 = vmatpush.msrb.mxu0 %v145_v55 }
  0x6d   :  { %1220 = vmatpush.msrb.mxu0 %v138_v56 }
  0x71   :  { %3968 = vmatmul.msk.f32.gmra.mxu0 %vm176_vm0, %v4964_v58  ;;  %3986 = vmatmul.msk.f32.gmra.mxu1 %vm176_vm0, %v4969_v59 }
  0x72   :  { %3999 = vmatmul.msk.f32.gmra.mxu2 %vm176_vm0, %v4974_v60  ;;  %4015 = vmatmul.msk.f32.gmra.mxu3 %vm176_vm0, %v128_v61  ;;  %v5062_v61 = vld [vmem:[%s8677_s0 + $0x170] sm:$0xff] }
  0x79   :  { %3969 = vmatmul.msk.f32.gmra.mxu0 %vm176_vm0, %v4989_v0  ;;  %3987 = vmatmul.msk.f32.gmra.mxu1 %vm176_vm0, %v4994_v1 }
  0x7a   :  { %4000 = vmatmul.msk.f32.gmra.mxu2 %vm176_vm0, %v4999_v4  ;;  %4016 = vmatmul.msk.f32.gmra.mxu3 %vm176_vm0, %v129_v5  ;;  %v133_v5 = vld [vmem:[%s8677_s0 + $0x1f8] sm:$0xff] }
  0x81   :  { %3970 = vmatmul.msk.f32.gmra.mxu0 %vm176_vm0, %v5014_v25  ;;  %4021 = vmatmul.msk.f32.vlgmr.msrb.gmra.mxu1 %vm176_vm0, %v4689_v6 }
  0x82   :  { %4001 = vmatmul.msk.f32.gmra.mxu2 %vm176_vm0, %v5019_v33  ;;  %4017 = vmatmul.msk.f32.gmra.mxu3 %vm176_vm0, %v130_v37 }
  0x89   :  { %3971 = vmatmul.msk.f32.gmra.mxu0 %vm176_vm0, %v5034_v46  ;;  %4022 = vmatmul.msk.f32.gmra.mxu1 %vm176_vm0, %v4714_v10 }
  0x8a   :  { %4002 = vmatmul.msk.f32.gmra.mxu2 %vm176_vm0, %v5039_v50  ;;  %4018 = vmatmul.msk.f32.gmra.mxu3 %vm176_vm0, %v5044_v51 }
  0x91   :  { %3972 = vmatmul.msk.f32.gmra.mxu0 %vm176_vm0, %v5057_v57  ;;  %4023 = vmatmul.msk.f32.gmra.mxu1 %vm176_vm0, %v4739_v14 }
  0x92   :  { %4003 = vmatmul.msk.f32.gmra.mxu2 %vm176_vm0, %v5062_v61  ;;  %4019 = vmatmul.msk.f32.gmra.mxu3 %vm176_vm0, %v132_v62 }
  0x96   :  { %v5074_v63 = vpop.f32.mrf.mxu0  ;;  %v5076_v2 = vpop.f32.mrf.mxu1 }
  0x99   :  { %3973 = vmatmul.msk.f32.gmra.mxu0 %vm176_vm0, %v5081_v3  ;;  %4024 = vmatmul.msk.f32.gmra.mxu1 %vm176_vm0, %v4764_v18 }
  0x9a   :  { %4020 = vmatmul.msk.f32.gmra.mxu3 %vm176_vm0, %v133_v5  ;;  %4085 = vmatmul.msk.f32.vlgmr.msrb.gmra.mxu2 %vm176_vm0, %v4689_v6 }
  0x9d   :  { %v5093_v9 = vpop.f32.mrf.mxu2  ;;  %v5095_v13 = vpop.f32.mrf.mxu3 }
  0x9e   :  { %8740 = vst [vmem:[#allocation12_spill] sm:$0xff] %v5093_v9  ;;  %v5097_v17 = vpop.f32.mrf.mxu0  ;;  %v5099_v21 = vpop.f32.mrf.mxu1 }
  0x9f   :  { %8741 = vst [vmem:[#allocation13_spill] sm:$0xff] %v5095_v13 }
  0xa1   :  { %3974 = vmatmul.msk.f32.gmra.mxu0 %vm176_vm0, %v5104_v29  ;;  %4025 = vmatmul.msk.f32.gmra.mxu1 %vm176_vm0, %v4789_v22 }
  0xa2   :  { %4086 = vmatmul.msk.f32.gmra.mxu2 %vm176_vm0, %v4714_v10  ;;  %4149 = vmatmul.msk.f32.vlgmr.msrb.gmra.mxu3 %vm176_vm0, %v4689_v6 }
  0xa5   :  { %v5114_v37 = vpop.f32.mrf.mxu2  ;;  %v5116_v38 = vpop.f32.mrf.mxu3 }
  0xa6   :  { %8742 = vst [vmem:[#allocation14_spill] sm:$0xff] %v5114_v37  ;;  %v5118_v39 = vpop.f32.mrf.mxu0  ;;  %v5120_v43 = vpop.f32.mrf.mxu1 }
  0xa7   :  { %8743 = vst [vmem:[#allocation15_spill] sm:$0xff] %v5116_v38 }
  0xa9   :  { %4026 = vmatmul.msk.f32.gmra.mxu1 %vm176_vm0, %v4814_v26  ;;  %4213 = vmatmul.msk.f32.vlgmr.msrb.gmra.mxu0 %vm176_vm0, %v4689_v6 }
  0xaa   :  { %4087 = vmatmul.msk.f32.gmra.mxu2 %vm176_vm0, %v4739_v14  ;;  %4150 = vmatmul.msk.f32.gmra.mxu3 %vm176_vm0, %v4714_v10 }
  0xad   :  { %v5130_v44 = vpop.f32.mrf.mxu2  ;;  %v5132_v45 = vpop.f32.mrf.mxu3 }
  0xae   :  { %8744 = vst [vmem:[#allocation16_spill] sm:$0xff] %v5130_v44  ;;  %v5134_v55 = vpop.f32.mrf.mxu0  ;;  %v5136_v56 = vpop.f32.mrf.mxu1 }
  0xaf   :  { %8745 = vst [vmem:[#allocation17_spill] sm:$0xff] %v5132_v45 }
  0xb1   :  { %4027 = vmatmul.msk.f32.gmra.mxu1 %vm176_vm0, %v4839_v30  ;;  %4214 = vmatmul.msk.f32.gmra.mxu0 %vm176_vm0, %v4714_v10 }
  0xb2   :  { %4088 = vmatmul.msk.f32.gmra.mxu2 %vm176_vm0, %v4764_v18  ;;  %4151 = vmatmul.msk.f32.gmra.mxu3 %vm176_vm0, %v4739_v14 }
  0xb5   :  { %v5146_v6 = vpop.f32.mrf.mxu2  ;;  %v5148_v62 = vpop.f32.mrf.mxu3 }
  0xb6   :  { %8746 = vst [vmem:[#allocation18_spill] sm:$0xff] %v5146_v6  ;;  %v5150_v5 = vpop.f32.mrf.mxu0  ;;  %v5152_v45 = vpop.f32.mrf.mxu1 }
  0xb7   :  { %8747 = vst [vmem:[#allocation19_spill] sm:$0xff] %v5148_v62 }
  0xb9   :  { %4028 = vmatmul.msk.f32.gmra.mxu1 %vm176_vm0, %v4864_v34  ;;  %4215 = vmatmul.msk.f32.gmra.mxu0 %vm176_vm0, %v4739_v14 }
  0xba   :  { %4089 = vmatmul.msk.f32.gmra.mxu2 %vm176_vm0, %v4789_v22  ;;  %4152 = vmatmul.msk.f32.gmra.mxu3 %vm176_vm0, %v4764_v18 }
  0xbd   :  { %v5162_v10 = vpop.f32.mrf.mxu2  ;;  %v5164_v38 = vpop.f32.mrf.mxu3 }
  0xbe   :  { %8748 = vst [vmem:[#allocation20_spill] sm:$0xff] %v5162_v10  ;;  %v5166_v62 = vpop.f32.mrf.mxu0  ;;  %v5168_v13 = vpop.f32.mrf.mxu1 }
  0xbf   :  { %8749 = vst [vmem:[#allocation21_spill] sm:$0xff] %v5164_v38 }
  0xc1   :  { %4029 = vmatmul.msk.f32.gmra.mxu1 %vm176_vm0, %v4889_v40  ;;  %4216 = vmatmul.msk.f32.gmra.mxu0 %vm176_vm0, %v4764_v18 }
  0xc2   :  { %4090 = vmatmul.msk.f32.gmra.mxu2 %vm176_vm0, %v4814_v26  ;;  %4153 = vmatmul.msk.f32.gmra.mxu3 %vm176_vm0, %v4789_v22 }
  0xc5   :  { %v5178_v14 = vpop.f32.mrf.mxu2  ;;  %v5180_v10 = vpop.f32.mrf.mxu3 }
  0xc6   :  { %8750 = vst [vmem:[#allocation22_spill] sm:$0xff] %v5178_v14  ;;  %v5182_v38 = vpop.f32.mrf.mxu0  ;;  %v5184_v6 = vpop.f32.mrf.mxu1 }
  0xc7   :  { %8751 = vst [vmem:[#allocation23_spill] sm:$0xff] %v5180_v10 }
  0xc9   :  { %4030 = vmatmul.msk.f32.gmra.mxu1 %vm176_vm0, %v4914_v47  ;;  %4217 = vmatmul.msk.f32.gmra.mxu0 %vm176_vm0, %v4789_v22 }
  0xca   :  { %4091 = vmatmul.msk.f32.gmra.mxu2 %vm176_vm0, %v4839_v30  ;;  %4154 = vmatmul.msk.f32.gmra.mxu3 %vm176_vm0, %v4814_v26 }
  0xcd   :  { %v5194_v18 = vpop.f32.mrf.mxu2  ;;  %v5196_v14 = vpop.f32.mrf.mxu3 }
  0xce   :  { %8752 = vst [vmem:[#allocation24_spill] sm:$0xff] %v5194_v18  ;;  %v5198_v10 = vpop.f32.mrf.mxu0  ;;  %v5200_v44 = vpop.f32.mrf.mxu1 }
  0xcf   :  { %8753 = vst [vmem:[#allocation25_spill] sm:$0xff] %v5196_v14 }
  0xd1   :  { %4031 = vmatmul.msk.f32.gmra.mxu1 %vm176_vm0, %v4939_v52  ;;  %4218 = vmatmul.msk.f32.gmra.mxu0 %vm176_vm0, %v4814_v26 }
  0xd2   :  { %4092 = vmatmul.msk.f32.gmra.mxu2 %vm176_vm0, %v4864_v34  ;;  %4155 = vmatmul.msk.f32.gmra.mxu3 %vm176_vm0, %v4839_v30 }
  0xd5   :  { %v5210_v22 = vpop.f32.mrf.mxu2  ;;  %v5212_v18 = vpop.f32.mrf.mxu3 }
  0xd6   :  { %8754 = vst [vmem:[#allocation26_spill] sm:$0xff] %v5210_v22  ;;  %v5214_v14 = vpop.f32.mrf.mxu0  ;;  %v5216_v37 = vpop.f32.mrf.mxu1 }
  0xd7   :  { %8755 = vst [vmem:[#allocation27_spill] sm:$0xff] %v5212_v18 }
  0xd8   :  { %8756 = vst [vmem:[#allocation28_spill] sm:$0xff] %v5216_v37 }
  0xd9   :  { %4032 = vmatmul.msk.f32.gmra.mxu1 %vm176_vm0, %v4964_v58  ;;  %4219 = vmatmul.msk.f32.gmra.mxu0 %vm176_vm0, %v4839_v30 }
  0xda   :  { %4093 = vmatmul.msk.f32.gmra.mxu2 %vm176_vm0, %v4889_v40  ;;  %4156 = vmatmul.msk.f32.gmra.mxu3 %vm176_vm0, %v4864_v34 }
  0xdd   :  { %v5226_v26 = vpop.f32.mrf.mxu2  ;;  %v5228_v22 = vpop.f32.mrf.mxu3 }
  0xde   :  { %8757 = vst [vmem:[#allocation29_spill] sm:$0xff] %v5226_v26  ;;  %v5230_v18 = vpop.f32.mrf.mxu0  ;;  %v5232_v9 = vpop.f32.mrf.mxu1 }
  0xdf   :  { %8758 = vst [vmem:[#allocation30_spill] sm:$0xff] %v5228_v22 }
  0xe0   :  { %8759 = vst [vmem:[#allocation31_spill] sm:$0xff] %v5232_v9 }
  0xe1   :  { %4033 = vmatmul.msk.f32.gmra.mxu1 %vm176_vm0, %v4989_v0  ;;  %4220 = vmatmul.msk.f32.gmra.mxu0 %vm176_vm0, %v4864_v34 }
  0xe2   :  { %4094 = vmatmul.msk.f32.gmra.mxu2 %vm176_vm0, %v4914_v47  ;;  %4157 = vmatmul.msk.f32.gmra.mxu3 %vm176_vm0, %v4889_v40 }
  0xe5   :  { %v5242_v30 = vpop.f32.mrf.mxu2  ;;  %v5244_v26 = vpop.f32.mrf.mxu3 }
  0xe6   :  { %8760 = vst [vmem:[#allocation32_spill] sm:$0xff] %v5242_v30  ;;  %v5246_v22 = vpop.f32.mrf.mxu0  ;;  %v5248_v37 = vpop.f32.mrf.mxu1 }
  0xe7   :  { %8761 = vst [vmem:[#allocation33_spill] sm:$0xff] %v5244_v26 }
  0xe8   :  { %8762 = vst [vmem:[#allocation34_spill] sm:$0xff] %v5248_v37 }
  0xe9   :  { %4034 = vmatmul.msk.f32.gmra.mxu1 %vm176_vm0, %v5014_v25  ;;  %4221 = vmatmul.msk.f32.gmra.mxu0 %vm176_vm0, %v4889_v40 }
  0xea   :  { %4095 = vmatmul.msk.f32.gmra.mxu2 %vm176_vm0, %v4939_v52  ;;  %4158 = vmatmul.msk.f32.gmra.mxu3 %vm176_vm0, %v4914_v47 }
  0xed   :  { %v5258_v34 = vpop.f32.mrf.mxu2  ;;  %v5260_v30 = vpop.f32.mrf.mxu3 }
  0xee   :  { %8763 = vst [vmem:[#allocation35_spill] sm:$0xff] %v5258_v34  ;;  %v5262_v26 = vpop.f32.mrf.mxu0  ;;  %v5264_v9 = vpop.f32.mrf.mxu1 }
  0xef   :  { %8764 = vst [vmem:[#allocation36_spill] sm:$0xff] %v5260_v30 }
  0xf0   :  { %8765 = vst [vmem:[#allocation37_spill] sm:$0xff] %v5264_v9 }
  0xf1   :  { %4035 = vmatmul.msk.f32.gmra.mxu1 %vm176_vm0, %v5034_v46  ;;  %4222 = vmatmul.msk.f32.gmra.mxu0 %vm176_vm0, %v4914_v47 }
  0xf2   :  { %4096 = vmatmul.msk.f32.gmra.mxu2 %vm176_vm0, %v4964_v58  ;;  %4159 = vmatmul.msk.f32.gmra.mxu3 %vm176_vm0, %v4939_v52 }
  0xf5   :  { %v5274_v40 = vpop.f32.mrf.mxu2  ;;  %v5276_v34 = vpop.f32.mrf.mxu3 }
  0xf6   :  { %8766 = vst [vmem:[#allocation38_spill] sm:$0xff] %v5274_v40  ;;  %v5278_v30 = vpop.f32.mrf.mxu0  ;;  %v5280_v37 = vpop.f32.mrf.mxu1 }
  0xf7   :  { %8767 = vst [vmem:[#allocation39_spill] sm:$0xff] %v5276_v34 }
  0xf8   :  { %8768 = vst [vmem:[#allocation40_spill] sm:$0xff] %v5280_v37 }
  0xf9   :  { %4036 = vmatmul.msk.f32.gmra.mxu1 %vm176_vm0, %v5057_v57  ;;  %4223 = vmatmul.msk.f32.gmra.mxu0 %vm176_vm0, %v4939_v52 }
  0xfa   :  { %4097 = vmatmul.msk.f32.gmra.mxu2 %vm176_vm0, %v4989_v0  ;;  %4160 = vmatmul.msk.f32.gmra.mxu3 %vm176_vm0, %v4964_v58 }
  0xfd   :  { %v5290_v47 = vpop.f32.mrf.mxu2  ;;  %v5292_v40 = vpop.f32.mrf.mxu3 }
  0xfe   :  { %8769 = vst [vmem:[#allocation41_spill] sm:$0xff] %v5290_v47  ;;  %v5294_v34 = vpop.f32.mrf.mxu0  ;;  %v5296_v9 = vpop.f32.mrf.mxu1 }
  0xff   :  { %8770 = vst [vmem:[#allocation42_spill] sm:$0xff] %v5292_v40 }
 0x100   :  { %8771 = vst [vmem:[#allocation43_spill] sm:$0xff] %v5296_v9 }
 0x101   :  { %4037 = vmatmul.msk.f32.gmra.mxu1 %vm176_vm0, %v5081_v3  ;;  %4224 = vmatmul.msk.f32.gmra.mxu0 %vm176_vm0, %v4964_v58 }
 0x102   :  { %4098 = vmatmul.msk.f32.gmra.mxu2 %vm176_vm0, %v5014_v25  ;;  %4161 = vmatmul.msk.f32.gmra.mxu3 %vm176_vm0, %v4989_v0 }
 0x105   :  { %v5306_v52 = vpop.f32.mrf.mxu2  ;;  %v5308_v47 = vpop.f32.mrf.mxu3 }
 0x106   :  { %8772 = vst [vmem:[#allocation44_spill] sm:$0xff] %v5306_v52  ;;  %v5310_v40 = vpop.f32.mrf.mxu0  ;;  %v5312_v37 = vpop.f32.mrf.mxu1 }
 0x107   :  { %8773 = vst [vmem:[#allocation45_spill] sm:$0xff] %v5308_v47 }
 0x108   :  { %8774 = vst [vmem:[#allocation46_spill] sm:$0xff] %v5312_v37 }
 0x109   :  { %4038 = vmatmul.msk.f32.gmra.mxu1 %vm176_vm0, %v5104_v29  ;;  %4225 = vmatmul.msk.f32.gmra.mxu0 %vm176_vm0, %v4989_v0 }
 0x10a   :  { %4099 = vmatmul.msk.f32.gmra.mxu2 %vm176_vm0, %v5034_v46  ;;  %4162 = vmatmul.msk.f32.gmra.mxu3 %vm176_vm0, %v5014_v25 }
 0x10d   :  { %v5322_v58 = vpop.f32.mrf.mxu2  ;;  %v5324_v9 = vpop.f32.mrf.mxu3 }
 0x10e   :  { %8775 = vst [vmem:[#allocation47_spill] sm:$0xff] %v5322_v58  ;;  %v5326_v47 = vpop.f32.mrf.mxu0  ;;  %v5328_v52 = vpop.f32.mrf.mxu1 }
 0x10f   :  { %8776 = vst [vmem:[#allocation48_spill] sm:$0xff] %v5324_v9 }
 0x110   :  { %8777 = vst [vmem:[#allocation49_spill] sm:$0xff] %v5328_v52 }
 0x111   :  { %4039 = vmatmul.msk.f32.gmra.mxu1 %vm176_vm0, %v4694_v7  ;;  %4226 = vmatmul.msk.f32.gmra.mxu0 %vm176_vm0, %v5014_v25 }
 0x112   :  { %4100 = vmatmul.msk.f32.gmra.mxu2 %vm176_vm0, %v5057_v57  ;;  %4163 = vmatmul.msk.f32.gmra.mxu3 %vm176_vm0, %v5034_v46 }
 0x115   :  { %v5338_v0 = vpop.f32.mrf.mxu2  ;;  %v5340_v37 = vpop.f32.mrf.mxu3 }
 0x116   :  { %8778 = vst [vmem:[#allocation50_spill] sm:$0xff] %v5338_v0  ;;  %v5342_v9 = vpop.f32.mrf.mxu0  ;;  %v5344_v58 = vpop.f32.mrf.mxu1 }
 0x117   :  { %8779 = vst [vmem:[#allocation51_spill] sm:$0xff] %v5340_v37 }
 0x118   :  { %8780 = vst [vmem:[#allocation52_spill] sm:$0xff] %v5344_v58 }
 0x119   :  { %4040 = vmatmul.msk.f32.gmra.mxu1 %vm176_vm0, %v4719_v11  ;;  %4227 = vmatmul.msk.f32.gmra.mxu0 %vm176_vm0, %v5034_v46 }
 0x11a   :  { %4101 = vmatmul.msk.f32.gmra.mxu2 %vm176_vm0, %v5081_v3  ;;  %4164 = vmatmul.msk.f32.gmra.mxu3 %vm176_vm0, %v5057_v57 }
 0x11d   :  { %v5354_v25 = vpop.f32.mrf.mxu3  ;;  %v5356_v52 = vpop.f32.mrf.mxu2 }
 0x11e   :  { %8781 = vst [vmem:[#allocation53_spill] sm:$0xff] %v5354_v25  ;;  %v5358_v37 = vpop.f32.mrf.mxu0  ;;  %v5360_v0 = vpop.f32.mrf.mxu1 }
 0x11f   :  { %8782 = vst [vmem:[#allocation54_spill] sm:$0xff] %v5356_v52 }
 0x120   :  { %8783 = vst [vmem:[#allocation55_spill] sm:$0xff] %v5360_v0 }
 0x121   :  { %4041 = vmatmul.msk.f32.gmra.mxu1 %vm176_vm0, %v4744_v15  ;;  %4228 = vmatmul.msk.f32.gmra.mxu0 %vm176_vm0, %v5057_v57 }
 0x122   :  { %4102 = vmatmul.msk.f32.gmra.mxu2 %vm176_vm0, %v5104_v29  ;;  %4165 = vmatmul.msk.f32.gmra.mxu3 %vm176_vm0, %v5081_v3 }
 0x125   :  { %v5370_v46 = vpop.f32.mrf.mxu2  ;;  %v5372_v58 = vpop.f32.mrf.mxu3 }
 0x126   :  { %8784 = vst [vmem:[#allocation56_spill] sm:$0xff] %v5372_v58  ;;  %v5374_v52 = vpop.f32.mrf.mxu1  ;;  %v5376_v25 = vpop.f32.mrf.mxu0 }
 0x127   :  { %8785 = vst [vmem:[#allocation57_spill] sm:$0xff] %v5374_v52 }
 0x129   :  { %4042 = vmatmul.msk.f32.gmra.mxu1 %vm176_vm0, %v4769_v19  ;;  %4229 = vmatmul.msk.f32.gmra.mxu0 %vm176_vm0, %v5081_v3 }
 0x12a   :  { %4103 = vmatmul.msk.f32.gmra.mxu2 %vm176_vm0, %v4694_v7  ;;  %4166 = vmatmul.msk.f32.gmra.mxu3 %vm176_vm0, %v5104_v29 }
 0x12d   :  { %v5386_v57 = vpop.f32.mrf.mxu2  ;;  %v5388_v0 = vpop.f32.mrf.mxu3 }
 0x12e   :  { %8786 = vst [vmem:[#allocation58_spill] sm:$0xff] %v5386_v57  ;;  %v5390_v58 = vpop.f32.mrf.mxu1  ;;  %v5392_v52 = vpop.f32.mrf.mxu0 }
 0x12f   :  { %8787 = vst [vmem:[#allocation59_spill] sm:$0xff] %v5388_v0 }
 0x130   :  { %8788 = vst [vmem:[#allocation60_spill] sm:$0xff] %v5390_v58 }
 0x131   :  { %4043 = vmatmul.msk.f32.gmra.mxu1 %vm176_vm0, %v4794_v23  ;;  %4230 = vmatmul.msk.f32.gmra.mxu0 %vm176_vm0, %v5104_v29 }
 0x132   :  { %4104 = vmatmul.msk.f32.gmra.mxu2 %vm176_vm0, %v4719_v11  ;;  %4167 = vmatmul.msk.f32.gmra.mxu3 %vm176_vm0, %v4694_v7 }
 0x135   :  { %v5402_v3 = vpop.f32.mrf.mxu2  ;;  %v5404_v57 = vpop.f32.mrf.mxu3 }
 0x136   :  { %8789 = vst [vmem:[#allocation61_spill] sm:$0xff] %v5402_v3  ;;  %v5406_v0 = vpop.f32.mrf.mxu1  ;;  %v5408_v58 = vpop.f32.mrf.mxu0 }
 0x137   :  { %8790 = vst [vmem:[#allocation62_spill] sm:$0xff] %v5404_v57 }
 0x138   :  { %8791 = vst [vmem:[#allocation63_spill] sm:$0xff] %v5406_v0 }
 0x139   :  { %4044 = vmatmul.msk.f32.gmra.mxu1 %vm176_vm0, %v4819_v27  ;;  %4231 = vmatmul.msk.f32.gmra.mxu0 %vm176_vm0, %v4694_v7 }
 0x13a   :  { %4105 = vmatmul.msk.f32.gmra.mxu2 %vm176_vm0, %v4744_v15  ;;  %4168 = vmatmul.msk.f32.gmra.mxu3 %vm176_vm0, %v4719_v11 }
 0x13d   :  { %v5418_v29 = vpop.f32.mrf.mxu2  ;;  %v5420_v3 = vpop.f32.mrf.mxu3 }
 0x13e   :  { %8792 = vst [vmem:[#allocation64_spill] sm:$0xff] %v5418_v29  ;;  %v5422_v57 = vpop.f32.mrf.mxu1  ;;  %v5424_v0 = vpop.f32.mrf.mxu0 }
 0x13f   :  { %8793 = vst [vmem:[#allocation65_spill] sm:$0xff] %v5420_v3 }
 0x140   :  { %8794 = vst [vmem:[#allocation66_spill] sm:$0xff] %v5422_v57 }
 0x141   :  { %4045 = vmatmul.msk.f32.gmra.mxu1 %vm176_vm0, %v4844_v31  ;;  %4232 = vmatmul.msk.f32.gmra.mxu0 %vm176_vm0, %v4719_v11 }
 0x142   :  { %4106 = vmatmul.msk.f32.gmra.mxu2 %vm176_vm0, %v4769_v19  ;;  %4169 = vmatmul.msk.f32.gmra.mxu3 %vm176_vm0, %v4744_v15 }
 0x145   :  { %v5434_v7 = vpop.f32.mrf.mxu2  ;;  %v5436_v29 = vpop.f32.mrf.mxu3 }
 0x146   :  { %8795 = vst [vmem:[#allocation67_spill] sm:$0xff] %v5434_v7  ;;  %v5438_v3 = vpop.f32.mrf.mxu1  ;;  %v5440_v57 = vpop.f32.mrf.mxu0 }
 0x147   :  { %8796 = vst [vmem:[#allocation68_spill] sm:$0xff] %v5436_v29 }
 0x148   :  { %8797 = vst [vmem:[#allocation69_spill] sm:$0xff] %v5438_v3 }
 0x149   :  { %4046 = vmatmul.msk.f32.gmra.mxu1 %vm176_vm0, %v4869_v35  ;;  %4233 = vmatmul.msk.f32.gmra.mxu0 %vm176_vm0, %v4744_v15 }
 0x14a   :  { %4107 = vmatmul.msk.f32.gmra.mxu2 %vm176_vm0, %v4794_v23  ;;  %4170 = vmatmul.msk.f32.gmra.mxu3 %vm176_vm0, %v4769_v19 }
 0x14d   :  { %v5450_v11 = vpop.f32.mrf.mxu2  ;;  %v5452_v7 = vpop.f32.mrf.mxu3 }
 0x14e   :  { %8798 = vst [vmem:[#allocation70_spill] sm:$0xff] %v5450_v11  ;;  %v5454_v29 = vpop.f32.mrf.mxu1  ;;  %v5456_v3 = vpop.f32.mrf.mxu0 }
 0x14f   :  { %8799 = vst [vmem:[#allocation71_spill] sm:$0xff] %v5452_v7 }
 0x150   :  { %8800 = vst [vmem:[#allocation72_spill] sm:$0xff] %v5454_v29 }
 0x151   :  { %4047 = vmatmul.msk.f32.gmra.mxu1 %vm176_vm0, %v4894_v41  ;;  %4234 = vmatmul.msk.f32.gmra.mxu0 %vm176_vm0, %v4769_v19 }
 0x152   :  { %4108 = vmatmul.msk.f32.gmra.mxu2 %vm176_vm0, %v4819_v27  ;;  %4171 = vmatmul.msk.f32.gmra.mxu3 %vm176_vm0, %v4794_v23 }
 0x155   :  { %v5466_v15 = vpop.f32.mrf.mxu2  ;;  %v5468_v11 = vpop.f32.mrf.mxu3 }
 0x156   :  { %8801 = vst [vmem:[#allocation73_spill] sm:$0xff] %v5466_v15  ;;  %v5470_v7 = vpop.f32.mrf.mxu1  ;;  %v5472_v29 = vpop.f32.mrf.mxu0 }
 0x157   :  { %8802 = vst [vmem:[#allocation74_spill] sm:$0xff] %v5468_v11 }
 0x158   :  { %8803 = vst [vmem:[#allocation75_spill] sm:$0xff] %v5470_v7 }
 0x159   :  { %4048 = vmatmul.msk.f32.gmra.mxu1 %vm176_vm0, %v4919_v48  ;;  %4235 = vmatmul.msk.f32.gmra.mxu0 %vm176_vm0, %v4794_v23 }
 0x15a   :  { %4109 = vmatmul.msk.f32.gmra.mxu2 %vm176_vm0, %v4844_v31  ;;  %4172 = vmatmul.msk.f32.gmra.mxu3 %vm176_vm0, %v4819_v27 }
 0x15d   :  { %v5482_v19 = vpop.f32.mrf.mxu2  ;;  %v5484_v15 = vpop.f32.mrf.mxu3 }
 0x15e   :  { %8804 = vst [vmem:[#allocation76_spill] sm:$0xff] %v5482_v19  ;;  %v5486_v11 = vpop.f32.mrf.mxu1  ;;  %v5488_v7 = vpop.f32.mrf.mxu0 }
 0x15f   :  { %8805 = vst [vmem:[#allocation77_spill] sm:$0xff] %v5484_v15 }
 0x160   :  { %8806 = vst [vmem:[#allocation78_spill] sm:$0xff] %v5486_v11 }
 0x161   :  { %4049 = vmatmul.msk.f32.gmra.mxu1 %vm176_vm0, %v4944_v53  ;;  %4236 = vmatmul.msk.f32.gmra.mxu0 %vm176_vm0, %v4819_v27 }
 0x162   :  { %4110 = vmatmul.msk.f32.gmra.mxu2 %vm176_vm0, %v4869_v35  ;;  %4173 = vmatmul.msk.f32.gmra.mxu3 %vm176_vm0, %v4844_v31 }
 0x165   :  { %v5498_v23 = vpop.f32.mrf.mxu2  ;;  %v5500_v19 = vpop.f32.mrf.mxu3 }
 0x166   :  { %8807 = vst [vmem:[#allocation79_spill] sm:$0xff] %v5498_v23  ;;  %v5502_v15 = vpop.f32.mrf.mxu1  ;;  %v5504_v11 = vpop.f32.mrf.mxu0 }
 0x167   :  { %8808 = vst [vmem:[#allocation80_spill] sm:$0xff] %v5500_v19 }
 0x168   :  { %8809 = vst [vmem:[#allocation81_spill] sm:$0xff] %v5502_v15 }
 0x169   :  { %4050 = vmatmul.msk.f32.gmra.mxu1 %vm176_vm0, %v4969_v59  ;;  %4237 = vmatmul.msk.f32.gmra.mxu0 %vm176_vm0, %v4844_v31 }
 0x16a   :  { %4111 = vmatmul.msk.f32.gmra.mxu2 %vm176_vm0, %v4894_v41  ;;  %4174 = vmatmul.msk.f32.gmra.mxu3 %vm176_vm0, %v4869_v35 }
 0x16d   :  { %v5514_v27 = vpop.f32.mrf.mxu2  ;;  %v5516_v23 = vpop.f32.mrf.mxu3 }
 0x16e   :  { %8810 = vst [vmem:[#allocation82_spill] sm:$0xff] %v5514_v27  ;;  %v5518_v19 = vpop.f32.mrf.mxu1  ;;  %v5520_v15 = vpop.f32.mrf.mxu0 }
 0x16f   :  { %8811 = vst [vmem:[#allocation83_spill] sm:$0xff] %v5516_v23 }
 0x170   :  { %8812 = vst [vmem:[#allocation84_spill] sm:$0xff] %v5518_v19 }
 0x171   :  { %8813 = vst [vmem:[#allocation85_spill] sm:$0xff] %v5520_v15  ;;  %4051 = vmatmul.msk.f32.gmra.mxu1 %vm176_vm0, %v4994_v1  ;;  %4238 = vmatmul.msk.f32.gmra.mxu0 %vm176_vm0, %v4869_v35  ;;  %v2986_v15 = vld [vmem:[#allocation6 + $0xf8] sm:$0xff] }
 0x172   :  { %4112 = vmatmul.msk.f32.gmra.mxu2 %vm176_vm0, %v4919_v48  ;;  %4175 = vmatmul.msk.f32.gmra.mxu3 %vm176_vm0, %v4894_v41 }
 0x175   :  { %v5530_v31 = vpop.f32.mrf.mxu2  ;;  %v5532_v27 = vpop.f32.mrf.mxu3 }
 0x176   :  { %8814 = vst [vmem:[#allocation86_spill] sm:$0xff] %v5530_v31  ;;  %v5534_v23 = vpop.f32.mrf.mxu1  ;;  %v5536_v19 = vpop.f32.mrf.mxu0 }
 0x177   :  { %8815 = vst [vmem:[#allocation87_spill] sm:$0xff] %v5532_v27 }
 0x178   :  { %8816 = vst [vmem:[#allocation88_spill] sm:$0xff] %v5534_v23 }
 0x179   :  { %8817 = vst [vmem:[#allocation89_spill] sm:$0xff] %v5536_v19  ;;  %4052 = vmatmul.msk.f32.gmra.mxu1 %vm176_vm0, %v4699_v8  ;;  %4239 = vmatmul.msk.f32.gmra.mxu0 %vm176_vm0, %v4894_v41 }
 0x17a   :  { %4113 = vmatmul.msk.f32.gmra.mxu2 %vm176_vm0, %v4944_v53  ;;  %4176 = vmatmul.msk.f32.gmra.mxu3 %vm176_vm0, %v4919_v48 }
 0x17d   :  { %v5546_v35 = vpop.f32.mrf.mxu2  ;;  %v5548_v31 = vpop.f32.mrf.mxu3 }
 0x17e   :  { %8818 = vst [vmem:[#allocation90_spill] sm:$0xff] %v5546_v35  ;;  %v5550_v27 = vpop.f32.mrf.mxu1  ;;  %v5552_v23 = vpop.f32.mrf.mxu0 }
 0x17f   :  { %8819 = vst [vmem:[#allocation91_spill] sm:$0xff] %v5548_v31 }
 0x180   :  { %8820 = vst [vmem:[#allocation92_spill] sm:$0xff] %v5550_v27 }
 0x181   :  { %8821 = vst [vmem:[#allocation93_spill] sm:$0xff] %v5552_v23  ;;  %4053 = vmatmul.msk.f32.gmra.mxu1 %vm176_vm0, %v4724_v12  ;;  %4240 = vmatmul.msk.f32.gmra.mxu0 %vm176_vm0, %v4919_v48  ;;  %v4502_v23 = vld [vmem:[%s8677_s0 + $0xd8] sm:$0xff] }
 0x182   :  { %4114 = vmatmul.msk.f32.gmra.mxu2 %vm176_vm0, %v4969_v59  ;;  %4177 = vmatmul.msk.f32.gmra.mxu3 %vm176_vm0, %v4944_v53 }
 0x185   :  { %v5562_v41 = vpop.f32.mrf.mxu2  ;;  %v5564_v35 = vpop.f32.mrf.mxu3 }
 0x186   :  { %8822 = vst [vmem:[#allocation94_spill] sm:$0xff] %v5562_v41  ;;  %v5566_v31 = vpop.f32.mrf.mxu1  ;;  %v5568_v27 = vpop.f32.mrf.mxu0 }
 0x187   :  { %8823 = vst [vmem:[#allocation95_spill] sm:$0xff] %v5564_v35 }
 0x188   :  { %8824 = vst [vmem:[#allocation96_spill] sm:$0xff] %v5566_v31 }
 0x189   :  { %8825 = vst [vmem:[#allocation97_spill] sm:$0xff] %v5568_v27  ;;  %4054 = vmatmul.msk.f32.gmra.mxu1 %vm176_vm0, %v4749_v16  ;;  %4241 = vmatmul.msk.f32.gmra.mxu0 %vm176_vm0, %v4944_v53  ;;  %v4501_v27 = vld [vmem:[%s8677_s0 + $0xd0] sm:$0xff] }
 0x18a   :  { %4115 = vmatmul.msk.f32.gmra.mxu2 %vm176_vm0, %v4994_v1  ;;  %4178 = vmatmul.msk.f32.gmra.mxu3 %vm176_vm0, %v4969_v59 }
 0x18d   :  { %v5578_v48 = vpop.f32.mrf.mxu2  ;;  %v5580_v41 = vpop.f32.mrf.mxu3 }
 0x18e   :  { %8826 = vst [vmem:[#allocation98_spill] sm:$0xff] %v5578_v48  ;;  %v5582_v35 = vpop.f32.mrf.mxu1  ;;  %v5584_v31 = vpop.f32.mrf.mxu0 }
 0x18f   :  { %8827 = vst [vmem:[#allocation99_spill] sm:$0xff] %v5580_v41 }
 0x190   :  { %8828 = vst [vmem:[#allocation100_spill] sm:$0xff] %v5582_v35 }
 0x191   :  { %8829 = vst [vmem:[#allocation101_spill] sm:$0xff] %v5584_v31  ;;  %4055 = vmatmul.msk.f32.gmra.mxu1 %vm176_vm0, %v4774_v20  ;;  %4242 = vmatmul.msk.f32.gmra.mxu0 %vm176_vm0, %v4969_v59  ;;  %v4500_v31 = vld [vmem:[%s8677_s0 + $0xc8] sm:$0xff] }
 0x192   :  { %4116 = vmatmul.msk.f32.gmra.mxu2 %vm176_vm0, %v4699_v8  ;;  %4179 = vmatmul.msk.f32.gmra.mxu3 %vm176_vm0, %v4994_v1 }
 0x195   :  { %v5594_v53 = vpop.f32.mrf.mxu2  ;;  %v5596_v48 = vpop.f32.mrf.mxu3 }
 0x196   :  { %8830 = vst [vmem:[#allocation102_spill] sm:$0xff] %v5594_v53  ;;  %v5598_v41 = vpop.f32.mrf.mxu1  ;;  %v5600_v35 = vpop.f32.mrf.mxu0 }
 0x197   :  { %8831 = vst [vmem:[#allocation103_spill] sm:$0xff] %v5596_v48 }
 0x198   :  { %8832 = vst [vmem:[#allocation104_spill] sm:$0xff] %v5598_v41 }
 0x199   :  { %8833 = vst [vmem:[#allocation105_spill] sm:$0xff] %v5600_v35  ;;  %4056 = vmatmul.msk.f32.gmra.mxu1 %vm176_vm0, %v4799_v24  ;;  %4243 = vmatmul.msk.f32.gmra.mxu0 %vm176_vm0, %v4994_v1  ;;  %v6621_v35 = vmax.f32 %v5120_v43, 0.0 }
 0x19a   :  { %4117 = vmatmul.msk.f32.gmra.mxu2 %vm176_vm0, %v4724_v12  ;;  %4180 = vmatmul.msk.f32.gmra.mxu3 %vm176_vm0, %v4699_v8 }
 0x19b   :  { %9038 = vst [vmem:[#allocation310_spill] sm:$0xff] %v6621_v35 }
 0x19d   :  { %v5610_v59 = vpop.f32.mrf.mxu2  ;;  %v5612_v53 = vpop.f32.mrf.mxu3 }
 0x19e   :  { %8834 = vst [vmem:[#allocation106_spill] sm:$0xff] %v5610_v59  ;;  %v5614_v48 = vpop.f32.mrf.mxu1  ;;  %v5616_v41 = vpop.f32.mrf.mxu0 }
 0x19f   :  { %8835 = vst [vmem:[#allocation107_spill] sm:$0xff] %v5612_v53 }
 0x1a0   :  { %8836 = vst [vmem:[#allocation108_spill] sm:$0xff] %v5614_v48 }
 0x1a1   :  { %8837 = vst [vmem:[#allocation109_spill] sm:$0xff] %v5616_v41  ;;  %4057 = vmatmul.msk.f32.gmra.mxu1 %vm176_vm0, %v4824_v28  ;;  %4244 = vmatmul.msk.f32.gmra.mxu0 %vm176_vm0, %v4699_v8  ;;  %v6603_v41 = vmax.f32 %v5099_v21, 0.0 }
 0x1a2   :  { %4118 = vmatmul.msk.f32.gmra.mxu2 %vm176_vm0, %v4749_v16  ;;  %4181 = vmatmul.msk.f32.gmra.mxu3 %vm176_vm0, %v4724_v12 }
 0x1a3   :  { %9035 = vst [vmem:[#allocation307_spill] sm:$0xff] %v6603_v41 }
 0x1a5   :  { %v5626_v1 = vpop.f32.mrf.mxu2  ;;  %v5628_v59 = vpop.f32.mrf.mxu3 }
 0x1a6   :  { %8838 = vst [vmem:[#allocation110_spill] sm:$0xff] %v5626_v1  ;;  %v5630_v53 = vpop.f32.mrf.mxu1  ;;  %v5632_v48 = vpop.f32.mrf.mxu0 }
 0x1a7   :  { %8839 = vst [vmem:[#allocation111_spill] sm:$0xff] %v5628_v59 }
 0x1a8   :  { %8840 = vst [vmem:[#allocation112_spill] sm:$0xff] %v5630_v53 }
 0x1a9   :  { %8841 = vst [vmem:[#allocation113_spill] sm:$0xff] %v5632_v48  ;;  %4058 = vmatmul.msk.f32.gmra.mxu1 %vm176_vm0, %v4849_v32  ;;  %4245 = vmatmul.msk.f32.gmra.mxu0 %vm176_vm0, %v4724_v12 }
 0x1aa   :  { %4119 = vmatmul.msk.f32.gmra.mxu2 %vm176_vm0, %v4774_v20  ;;  %4182 = vmatmul.msk.f32.gmra.mxu3 %vm176_vm0, %v4749_v16 }
 0x1ad   :  { %v5642_v8 = vpop.f32.mrf.mxu2  ;;  %v5644_v1 = vpop.f32.mrf.mxu3 }
 0x1ae   :  { %8842 = vst [vmem:[#allocation114_spill] sm:$0xff] %v5642_v8  ;;  %v5646_v59 = vpop.f32.mrf.mxu1  ;;  %v5648_v53 = vpop.f32.mrf.mxu0 }
 0x1af   :  { %8843 = vst [vmem:[#allocation115_spill] sm:$0xff] %v5644_v1 }
 0x1b0   :  { %8844 = vst [vmem:[#allocation116_spill] sm:$0xff] %v5646_v59 }
 0x1b1   :  { %8845 = vst [vmem:[#allocation117_spill] sm:$0xff] %v5648_v53  ;;  %4059 = vmatmul.msk.f32.gmra.mxu1 %vm176_vm0, %v4874_v36  ;;  %4246 = vmatmul.msk.f32.gmra.mxu0 %vm176_vm0, %v4749_v16  ;;  %v4497_v53 = vld [vmem:[%s8677_s0 + $0xb0] sm:$0xff] }
 0x1b2   :  { %4120 = vmatmul.msk.f32.gmra.mxu2 %vm176_vm0, %v4799_v24  ;;  %4183 = vmatmul.msk.f32.gmra.mxu3 %vm176_vm0, %v4774_v20 }
 0x1b5   :  { %v5658_v12 = vpop.f32.mrf.mxu2  ;;  %v5660_v8 = vpop.f32.mrf.mxu3 }
 0x1b6   :  { %8846 = vst [vmem:[#allocation118_spill] sm:$0xff] %v5658_v12  ;;  %v5662_v1 = vpop.f32.mrf.mxu1  ;;  %v5664_v59 = vpop.f32.mrf.mxu0 }
 0x1b7   :  { %8847 = vst [vmem:[#allocation119_spill] sm:$0xff] %v5660_v8 }
 0x1b8   :  { %8848 = vst [vmem:[#allocation120_spill] sm:$0xff] %v5662_v1 }
 0x1b9   :  { %8849 = vst [vmem:[#allocation121_spill] sm:$0xff] %v5664_v59  ;;  %4060 = vmatmul.msk.f32.gmra.mxu1 %vm176_vm0, %v4899_v42  ;;  %4247 = vmatmul.msk.f32.gmra.mxu0 %vm176_vm0, %v4774_v20  ;;  %v6585_v59 = vmax.f32 %v5076_v2, 0.0 }
 0x1ba   :  { %4121 = vmatmul.msk.f32.gmra.mxu2 %vm176_vm0, %v4824_v28  ;;  %4184 = vmatmul.msk.f32.gmra.mxu3 %vm176_vm0, %v4799_v24 }
 0x1bb   :  { %9033 = vst [vmem:[#allocation305_spill] sm:$0xff] %v6585_v59 }
 0x1bd   :  { %v5674_v16 = vpop.f32.mrf.mxu2  ;;  %v5676_v12 = vpop.f32.mrf.mxu3 }
 0x1be   :  { %8850 = vst [vmem:[#allocation122_spill] sm:$0xff] %v5674_v16  ;;  %v5678_v8 = vpop.f32.mrf.mxu1  ;;  %v5680_v1 = vpop.f32.mrf.mxu0 }
 0x1bf   :  { %8851 = vst [vmem:[#allocation123_spill] sm:$0xff] %v5676_v12 }
 0x1c0   :  { %8852 = vst [vmem:[#allocation124_spill] sm:$0xff] %v5678_v8 }
 0x1c1   :  { %8853 = vst [vmem:[#allocation125_spill] sm:$0xff] %v5680_v1  ;;  %4061 = vmatmul.msk.f32.gmra.mxu1 %vm176_vm0, %v4924_v49  ;;  %4248 = vmatmul.msk.f32.gmra.mxu0 %vm176_vm0, %v4799_v24  ;;  %v174_v24 = vld [vmem:[#allocation3 + $0x140] sm:$0xff] }
 0x1c2   :  { %4122 = vmatmul.msk.f32.gmra.mxu2 %vm176_vm0, %v4849_v32  ;;  %4185 = vmatmul.msk.f32.gmra.mxu3 %vm176_vm0, %v4824_v28 }
 0x1c3   :  { %1424 = vmatpush.msra.mxu1 %v174_v24 }
 0x1c5   :  { %v5690_v20 = vpop.f32.mrf.mxu2  ;;  %v5692_v16 = vpop.f32.mrf.mxu3 }
 0x1c6   :  { %8854 = vst [vmem:[#allocation126_spill] sm:$0xff] %v5690_v20  ;;  %v5694_v12 = vpop.f32.mrf.mxu1  ;;  %v5696_v8 = vpop.f32.mrf.mxu0 }
 0x1c7   :  { %8855 = vst [vmem:[#allocation127_spill] sm:$0xff] %v5692_v16 }
 0x1c8   :  { %8856 = vst [vmem:[#allocation128_spill] sm:$0xff] %v5694_v12 }
 0x1c9   :  { %8857 = vst [vmem:[#allocation129_spill] sm:$0xff] %v5696_v8  ;;  %4062 = vmatmul.msk.f32.gmra.mxu1 %vm176_vm0, %v4949_v54  ;;  %4249 = vmatmul.msk.f32.gmra.mxu0 %vm176_vm0, %v4824_v28 }
 0x1ca   :  { %4123 = vmatmul.msk.f32.gmra.mxu2 %vm176_vm0, %v4874_v36  ;;  %4186 = vmatmul.msk.f32.gmra.mxu3 %vm176_vm0, %v4849_v32 }
 0x1cd   :  { %v5706_v20 = vpop.f32.mrf.mxu2  ;;  %v5708_v16 = vpop.f32.mrf.mxu3 }
 0x1ce   :  { %8858 = vst [vmem:[#allocation130_spill] sm:$0xff] %v5706_v20  ;;  %v5710_v12 = vpop.f32.mrf.mxu1  ;;  %v5712_v8 = vpop.f32.mrf.mxu0  ;;  %v6023_v20 = vld [vmem:[%s8677_s0 + $0x1e0] sm:$0xff] }
 0x1cf   :  { %8859 = vst [vmem:[#allocation131_spill] sm:$0xff] %v5708_v16 }
 0x1d0   :  { %8860 = vst [vmem:[#allocation132_spill] sm:$0xff] %v5710_v12 }
 0x1d1   :  { %8861 = vst [vmem:[#allocation133_spill] sm:$0xff] %v5712_v8  ;;  %4063 = vmatmul.msk.f32.gmra.mxu1 %vm176_vm0, %v4974_v60  ;;  %4250 = vmatmul.msk.f32.gmra.mxu0 %vm176_vm0, %v4849_v32 }
 0x1d2   :  { %4124 = vmatmul.msk.f32.gmra.mxu2 %vm176_vm0, %v4899_v42  ;;  %4187 = vmatmul.msk.f32.gmra.mxu3 %vm176_vm0, %v4874_v36 }
 0x1d5   :  { %v5722_v28 = vpop.f32.mrf.mxu2  ;;  %v5724_v24 = vpop.f32.mrf.mxu3 }
 0x1d6   :  { %8862 = vst [vmem:[#allocation134_spill] sm:$0xff] %v5722_v28  ;;  %v5726_v16 = vpop.f32.mrf.mxu1  ;;  %v5728_v12 = vpop.f32.mrf.mxu0 }
 0x1d7   :  { %8863 = vst [vmem:[#allocation135_spill] sm:$0xff] %v5724_v24 }
 0x1d8   :  { %8864 = vst [vmem:[#allocation136_spill] sm:$0xff] %v5726_v16 }
 0x1d9   :  { %8865 = vst [vmem:[#allocation137_spill] sm:$0xff] %v5728_v12  ;;  %4064 = vmatmul.msk.f32.gmra.mxu1 %vm176_vm0, %v4999_v4  ;;  %4251 = vmatmul.msk.f32.gmra.mxu0 %vm176_vm0, %v4874_v36  ;;  %v4496_v12 = vld [vmem:[%s8677_s0 + $0xa8] sm:$0xff] }
 0x1da   :  { %4125 = vmatmul.msk.f32.gmra.mxu2 %vm176_vm0, %v4924_v49  ;;  %4188 = vmatmul.msk.f32.gmra.mxu3 %vm176_vm0, %v4899_v42 }
 0x1dd   :  { %v5738_v32 = vpop.f32.mrf.mxu2  ;;  %v5740_v28 = vpop.f32.mrf.mxu3 }
 0x1de   :  { %8866 = vst [vmem:[#allocation138_spill] sm:$0xff] %v5738_v32  ;;  %v5742_v24 = vpop.f32.mrf.mxu1  ;;  %v5744_v16 = vpop.f32.mrf.mxu0 }
 0x1df   :  { %8867 = vst [vmem:[#allocation139_spill] sm:$0xff] %v5740_v28 }
 0x1e0   :  { %8868 = vst [vmem:[#allocation140_spill] sm:$0xff] %v5742_v24 }
 0x1e1   :  { %8869 = vst [vmem:[#allocation141_spill] sm:$0xff] %v5744_v16  ;;  %4065 = vmatmul.msk.f32.gmra.mxu1 %vm176_vm0, %v5019_v33  ;;  %4252 = vmatmul.msk.f32.gmra.mxu0 %vm176_vm0, %v4899_v42  ;;  %v146_v16 = vld [vmem:[#allocation3 + $0x60] sm:$0xff] }
 0x1e2   :  { %4126 = vmatmul.msk.f32.gmra.mxu2 %vm176_vm0, %v4949_v54  ;;  %4189 = vmatmul.msk.f32.gmra.mxu3 %vm176_vm0, %v4924_v49 }
 0x1e5   :  { %v5754_v36 = vpop.f32.mrf.mxu2  ;;  %v5756_v32 = vpop.f32.mrf.mxu3 }
 0x1e6   :  { %8870 = vst [vmem:[#allocation142_spill] sm:$0xff] %v5754_v36  ;;  %v5758_v28 = vpop.f32.mrf.mxu1  ;;  %v5760_v24 = vpop.f32.mrf.mxu0 }
 0x1e7   :  { %8871 = vst [vmem:[#allocation143_spill] sm:$0xff] %v5756_v32 }
 0x1e8   :  { %8872 = vst [vmem:[#allocation144_spill] sm:$0xff] %v5758_v28 }
 0x1e9   :  { %8873 = vst [vmem:[#allocation145_spill] sm:$0xff] %v5760_v24  ;;  %4066 = vmatmul.msk.f32.gmra.mxu1 %vm176_vm0, %v5039_v50  ;;  %4253 = vmatmul.msk.f32.gmra.mxu0 %vm176_vm0, %v4924_v49  ;;  %v4463_v24 = vld [vmem:[%s8677_s0 + $0x1a0] sm:$0xff] }
 0x1ea   :  { %4127 = vmatmul.msk.f32.gmra.mxu2 %vm176_vm0, %v4974_v60  ;;  %4190 = vmatmul.msk.f32.gmra.mxu3 %vm176_vm0, %v4949_v54 }
 0x1ed   :  { %v5770_v42 = vpop.f32.mrf.mxu2  ;;  %v5772_v36 = vpop.f32.mrf.mxu3 }
 0x1ee   :  { %8874 = vst [vmem:[#allocation146_spill] sm:$0xff] %v5770_v42  ;;  %v5774_v32 = vpop.f32.mrf.mxu1  ;;  %v5776_v28 = vpop.f32.mrf.mxu0 }
 0x1ef   :  { %8875 = vst [vmem:[#allocation147_spill] sm:$0xff] %v5772_v36 }
 0x1f0   :  { %8876 = vst [vmem:[#allocation148_spill] sm:$0xff] %v5774_v32 }
 0x1f1   :  { %8877 = vst [vmem:[#allocation149_spill] sm:$0xff] %v5776_v28  ;;  %4067 = vmatmul.msk.f32.gmra.mxu1 %vm176_vm0, %v5062_v61  ;;  %4254 = vmatmul.msk.f32.gmra.mxu0 %vm176_vm0, %v4949_v54  ;;  %v4458_v28 = vld [vmem:[%s8677_s0 + $0x178] sm:$0xff] }
 0x1f2   :  { %4128 = vmatmul.msk.f32.gmra.mxu2 %vm176_vm0, %v4999_v4  ;;  %4191 = vmatmul.msk.f32.gmra.mxu3 %vm176_vm0, %v4974_v60 }
 0x1f5   :  { %v5786_v49 = vpop.f32.mrf.mxu2  ;;  %v5788_v42 = vpop.f32.mrf.mxu3 }
 0x1f6   :  { %8878 = vst [vmem:[#allocation150_spill] sm:$0xff] %v5786_v49  ;;  %v5790_v36 = vpop.f32.mrf.mxu1  ;;  %v5792_v32 = vpop.f32.mrf.mxu0 }
 0x1f7   :  { %8879 = vst [vmem:[#allocation151_spill] sm:$0xff] %v5788_v42 }
 0x1f8   :  { %8880 = vst [vmem:[#allocation152_spill] sm:$0xff] %v5790_v36 }
 0x1f9   :  { %8881 = vst [vmem:[#allocation153_spill] sm:$0xff] %v5792_v32  ;;  %4068 = vmatmul.msk.f32.gmra.mxu1 %vm176_vm0, %v4458_v28  ;;  %4255 = vmatmul.msk.f32.gmra.mxu0 %vm176_vm0, %v4974_v60  ;;  %v4459_v32 = vld [vmem:[%s8677_s0 + $0x180] sm:$0xff] }
 0x1fa   :  { %4129 = vmatmul.msk.f32.gmra.mxu2 %vm176_vm0, %v5019_v33  ;;  %4192 = vmatmul.msk.f32.gmra.mxu3 %vm176_vm0, %v4999_v4 }
 0x1fd   :  { %v5804_v54 = vpop.f32.mrf.mxu2  ;;  %v5806_v42 = vpop.f32.mrf.mxu3 }
 0x1fe   :  { %8882 = vst [vmem:[#allocation154_spill] sm:$0xff] %v5804_v54  ;;  %v5808_v36 = vpop.f32.mrf.mxu1  ;;  %v5810_v49 = vpop.f32.mrf.mxu0 }
 0x1ff   :  { %8883 = vst [vmem:[#allocation155_spill] sm:$0xff] %v5806_v42 }
 0x200   :  { %8884 = vst [vmem:[#allocation156_spill] sm:$0xff] %v5808_v36 }
 0x201   :  { %8885 = vst [vmem:[#allocation157_spill] sm:$0xff] %v5810_v49  ;;  %4069 = vmatmul.msk.f32.gmra.mxu1 %vm176_vm0, %v4459_v32  ;;  %4256 = vmatmul.msk.f32.gmra.mxu0 %vm176_vm0, %v4999_v4  ;;  %v4460_v49 = vld [vmem:[%s8677_s0 + $0x188] sm:$0xff] }
 0x202   :  { %4130 = vmatmul.msk.f32.gmra.mxu2 %vm176_vm0, %v5039_v50  ;;  %4193 = vmatmul.msk.f32.gmra.mxu3 %vm176_vm0, %v5019_v33 }
 0x205   :  { %v5822_v60 = vpop.f32.mrf.mxu2  ;;  %v5824_v42 = vpop.f32.mrf.mxu3 }
 0x206   :  { %8886 = vst [vmem:[#allocation158_spill] sm:$0xff] %v5822_v60  ;;  %v5826_v36 = vpop.f32.mrf.mxu1  ;;  %v5828_v54 = vpop.f32.mrf.mxu0 }
 0x207   :  { %8887 = vst [vmem:[#allocation159_spill] sm:$0xff] %v5824_v42 }
 0x208   :  { %8888 = vst [vmem:[#allocation160_spill] sm:$0xff] %v5826_v36 }
 0x209   :  { %8889 = vst [vmem:[#allocation161_spill] sm:$0xff] %v5828_v54  ;;  %4070 = vmatmul.msk.f32.gmra.mxu1 %vm176_vm0, %v4460_v49  ;;  %4257 = vmatmul.msk.f32.gmra.mxu0 %vm176_vm0, %v5019_v33  ;;  %v4461_v54 = vld [vmem:[%s8677_s0 + $0x190] sm:$0xff] }
 0x20a   :  { %4131 = vmatmul.msk.f32.gmra.mxu2 %vm176_vm0, %v5062_v61  ;;  %4194 = vmatmul.msk.f32.gmra.mxu3 %vm176_vm0, %v5039_v50 }
 0x20d   :  { %v5840_v4 = vpop.f32.mrf.mxu2  ;;  %v5842_v42 = vpop.f32.mrf.mxu3 }
 0x20e   :  { %8890 = vst [vmem:[#allocation162_spill] sm:$0xff] %v5840_v4  ;;  %v5844_v36 = vpop.f32.mrf.mxu1  ;;  %v5846_v60 = vpop.f32.mrf.mxu0 }
 0x20f   :  { %8891 = vst [vmem:[#allocation163_spill] sm:$0xff] %v5842_v42 }
 0x210   :  { %8892 = vst [vmem:[#allocation164_spill] sm:$0xff] %v5844_v36 }
 0x211   :  { %8893 = vst [vmem:[#allocation165_spill] sm:$0xff] %v5846_v60  ;;  %4071 = vmatmul.msk.f32.gmra.mxu1 %vm176_vm0, %v4461_v54  ;;  %4258 = vmatmul.msk.f32.gmra.mxu0 %vm176_vm0, %v5039_v50  ;;  %v4462_v60 = vld [vmem:[%s8677_s0 + $0x198] sm:$0xff] }
 0x212   :  { %4132 = vmatmul.msk.f32.gmra.mxu2 %vm176_vm0, %v4458_v28  ;;  %4195 = vmatmul.msk.f32.gmra.mxu3 %vm176_vm0, %v5062_v61 }
 0x215   :  { %v5857_v33 = vpop.f32.mrf.mxu2  ;;  %v5859_v42 = vpop.f32.mrf.mxu3 }
 0x216   :  { %8894 = vst [vmem:[#allocation166_spill] sm:$0xff] %v5857_v33  ;;  %v5861_v36 = vpop.f32.mrf.mxu1  ;;  %v5863_v4 = vpop.f32.mrf.mxu0 }
 0x217   :  { %8895 = vst [vmem:[#allocation167_spill] sm:$0xff] %v5859_v42 }
 0x218   :  { %8896 = vst [vmem:[#allocation168_spill] sm:$0xff] %v5861_v36 }
 0x219   :  { %8897 = vst [vmem:[#allocation169_spill] sm:$0xff] %v5863_v4  ;;  %4072 = vmatmul.msk.f32.gmra.mxu1 %vm176_vm0, %v4462_v60  ;;  %4259 = vmatmul.msk.f32.gmra.mxu0 %vm176_vm0, %v5062_v61  ;;  %v167_v4 = vld [vmem:[#allocation3 + $0x108] sm:$0xff] }
 0x21a   :  { %4133 = vmatmul.msk.f32.gmra.mxu2 %vm176_vm0, %v4459_v32  ;;  %4196 = vmatmul.msk.f32.gmra.mxu3 %vm176_vm0, %v4458_v28 }
 0x21b   :  { %1425 = vmatpush.msra.mxu1 %v167_v4  ;;  %v4464_v4 = vld [vmem:[%s8677_s0 + $0x1a8] sm:$0xff] }
 0x21d   :  { %v5873_v50 = vpop.f32.mrf.mxu2  ;;  %v5875_v42 = vpop.f32.mrf.mxu3 }
 0x21e   :  { %8898 = vst [vmem:[#allocation170_spill] sm:$0xff] %v5873_v50  ;;  %v5877_v36 = vpop.f32.mrf.mxu1  ;;  %v5879_v33 = vpop.f32.mrf.mxu0 }
 0x21f   :  { %8899 = vst [vmem:[#allocation171_spill] sm:$0xff] %v5875_v42 }
 0x220   :  { %8900 = vst [vmem:[#allocation172_spill] sm:$0xff] %v5877_v36 }
 0x221   :  { %8901 = vst [vmem:[#allocation173_spill] sm:$0xff] %v5879_v33  ;;  %4073 = vmatmul.msk.f32.gmra.mxu1 %vm176_vm0, %v4463_v24  ;;  %4260 = vmatmul.msk.f32.gmra.mxu0 %vm176_vm0, %v4458_v28 }
 0x222   :  { %4134 = vmatmul.msk.f32.gmra.mxu2 %vm176_vm0, %v4460_v49  ;;  %4197 = vmatmul.msk.f32.gmra.mxu3 %vm176_vm0, %v4459_v32 }
 0x225   :  { %v5888_v61 = vpop.f32.mrf.mxu2  ;;  %v5890_v42 = vpop.f32.mrf.mxu3 }
 0x226   :  { %8902 = vst [vmem:[#allocation174_spill] sm:$0xff] %v5888_v61  ;;  %v5892_v36 = vpop.f32.mrf.mxu1  ;;  %v5894_v50 = vpop.f32.mrf.mxu0 }
 0x227   :  { %8903 = vst [vmem:[#allocation175_spill] sm:$0xff] %v5890_v42 }
 0x228   :  { %8904 = vst [vmem:[#allocation176_spill] sm:$0xff] %v5892_v36 }
 0x229   :  { %8905 = vst [vmem:[#allocation177_spill] sm:$0xff] %v5894_v50  ;;  %4074 = vmatmul.msk.f32.gmra.mxu1 %vm176_vm0, %v4464_v4  ;;  %4261 = vmatmul.msk.f32.gmra.mxu0 %vm176_vm0, %v4459_v32  ;;  %v4465_v50 = vld [vmem:[%s8677_s0 + $0x1b0] sm:$0xff] }
 0x22a   :  { %4135 = vmatmul.msk.f32.gmra.mxu2 %vm176_vm0, %v4461_v54  ;;  %4198 = vmatmul.msk.f32.gmra.mxu3 %vm176_vm0, %v4460_v49 }
 0x22d   :  { %v5903_v28 = vpop.f32.mrf.mxu2  ;;  %v5905_v61 = vpop.f32.mrf.mxu3 }
 0x22e   :  { %8906 = vst [vmem:[#allocation178_spill] sm:$0xff] %v5903_v28  ;;  %v5907_v42 = vpop.f32.mrf.mxu1  ;;  %v5909_v36 = vpop.f32.mrf.mxu0 }
 0x22f   :  { %8907 = vst [vmem:[#allocation179_spill] sm:$0xff] %v5905_v61 }
 0x230   :  { %8908 = vst [vmem:[#allocation180_spill] sm:$0xff] %v5907_v42 }
 0x231   :  { %8909 = vst [vmem:[#allocation181_spill] sm:$0xff] %v5909_v36  ;;  %4075 = vmatmul.msk.f32.gmra.mxu1 %vm176_vm0, %v4465_v50  ;;  %4262 = vmatmul.msk.f32.gmra.mxu0 %vm176_vm0, %v4460_v49  ;;  %v4466_v36 = vld [vmem:[%s8677_s0 + $0x1b8] sm:$0xff] }
 0x232   :  { %4136 = vmatmul.msk.f32.gmra.mxu2 %vm176_vm0, %v4462_v60  ;;  %4199 = vmatmul.msk.f32.gmra.mxu3 %vm176_vm0, %v4461_v54 }
 0x235   :  { %v5918_v32 = vpop.f32.mrf.mxu2  ;;  %v5920_v28 = vpop.f32.mrf.mxu3 }
 0x236   :  { %8910 = vst [vmem:[#allocation182_spill] sm:$0xff] %v5918_v32  ;;  %v5922_v61 = vpop.f32.mrf.mxu1  ;;  %v5924_v42 = vpop.f32.mrf.mxu0 }
 0x237   :  { %8911 = vst [vmem:[#allocation183_spill] sm:$0xff] %v5920_v28 }
 0x238   :  { %8912 = vst [vmem:[#allocation184_spill] sm:$0xff] %v5922_v61 }
 0x239   :  { %8913 = vst [vmem:[#allocation185_spill] sm:$0xff] %v5924_v42  ;;  %4076 = vmatmul.msk.f32.gmra.mxu1 %vm176_vm0, %v4466_v36  ;;  %4263 = vmatmul.msk.f32.gmra.mxu0 %vm176_vm0, %v4461_v54  ;;  %v5944_v42 = vld [vmem:[%s8677_s0 + $0x1c0] sm:$0xff] }
 0x23a   :  { %4137 = vmatmul.msk.f32.gmra.mxu2 %vm176_vm0, %v4463_v24  ;;  %4200 = vmatmul.msk.f32.gmra.mxu3 %vm176_vm0, %v4462_v60 }
 0x23d   :  { %v5933_v49 = vpop.f32.mrf.mxu2  ;;  %v5935_v32 = vpop.f32.mrf.mxu3 }
 0x23e   :  { %8914 = vst [vmem:[#allocation186_spill] sm:$0xff] %v5933_v49  ;;  %v5937_v28 = vpop.f32.mrf.mxu1  ;;  %v5939_v61 = vpop.f32.mrf.mxu0  ;;  %v1941_v49 = vld [vmem:[%s8680_s3 + $0x168] sm:$0xff] }
 0x23f   :  { %8915 = vst [vmem:[#allocation187_spill] sm:$0xff] %v5935_v32  ;;  %1944 = vmatpush.msra.mxu3 %v1941_v49 }
 0x240   :  { %8916 = vst [vmem:[#allocation188_spill] sm:$0xff] %v5937_v28  ;;  %v175_v28 = vld [vmem:[#allocation3 + $0x148] sm:$0xff] }
 0x241   :  { %8917 = vst [vmem:[#allocation189_spill] sm:$0xff] %v5939_v61  ;;  %4077 = vmatmul.msk.f32.gmra.mxu1 %vm176_vm0, %v5944_v42  ;;  %4264 = vmatmul.msk.f32.gmra.mxu0 %vm176_vm0, %v4462_v60  ;;  %v5965_v60 = vld [vmem:[%s8677_s0 + $0x1c8] sm:$0xff] }
 0x242   :  { %4138 = vmatmul.msk.f32.gmra.mxu2 %vm176_vm0, %v4464_v4  ;;  %4201 = vmatmul.msk.f32.gmra.mxu3 %vm176_vm0, %v4463_v24 }
 0x243   :  { %1633 = vmatpush.msra.mxu2 %v175_v28  ;;  %v1942_v28 = vld [vmem:[%s8680_s3 + $0x170] sm:$0xff] }
 0x244   :  { %2153 = vmatpush.msra.mxu0 %v1942_v28 }
 0x245   :  { %v5951_v54 = vpop.f32.mrf.mxu2  ;;  %v5953_v32 = vpop.f32.mrf.mxu3 }
 0x246   :  { %8918 = vst [vmem:[#allocation190_spill] sm:$0xff] %v5951_v54  ;;  %v5958_v61 = vpop.f32.mrf.mxu1  ;;  %v5960_v33 = vpop.f32.mrf.mxu0 }
 0x247   :  { %8919 = vst [vmem:[#allocation191_spill] sm:$0xff] %v5953_v32 }
 0x248   :  { %8920 = vst [vmem:[#allocation192_spill] sm:$0xff] %v5958_v61 }
 0x249   :  { %8921 = vst [vmem:[#allocation193_spill] sm:$0xff] %v5960_v33  ;;  %4078 = vmatmul.msk.f32.gmra.mxu1 %vm176_vm0, %v5965_v60  ;;  %4265 = vmatmul.msk.f32.gmra.mxu0 %vm176_vm0, %v4463_v24  ;;  %v5986_v24 = vld [vmem:[%s8677_s0 + $0x1d0] sm:$0xff] }
 0x24a   :  { %4139 = vmatmul.msk.f32.gmra.mxu2 %vm176_vm0, %v4465_v50  ;;  %4202 = vmatmul.msk.f32.gmra.mxu3 %vm176_vm0, %v4464_v4 }
 0x24d   :  { %v5972_v32 = vpop.f32.mrf.mxu2  ;;  %v5974_v61 = vpop.f32.mrf.mxu3 }
 0x24e   :  { %8922 = vst [vmem:[#allocation194_spill] sm:$0xff] %v5972_v32  ;;  %v5979_v49 = vpop.f32.mrf.mxu1  ;;  %v5981_v54 = vpop.f32.mrf.mxu0 }
 0x24f   :  { %8923 = vst [vmem:[#allocation195_spill] sm:$0xff] %v5974_v61 }
 0x250   :  { %8924 = vst [vmem:[#allocation196_spill] sm:$0xff] %v5979_v49 }
 0x251   :  { %8925 = vst [vmem:[#allocation197_spill] sm:$0xff] %v5981_v54  ;;  %4079 = vmatmul.msk.f32.gmra.mxu1 %vm176_vm0, %v5986_v24  ;;  %4266 = vmatmul.msk.f32.gmra.mxu0 %vm176_vm0, %v4464_v4  ;;  %v6004_v54 = vld [vmem:[%s8677_s0 + $0x1d8] sm:$0xff]  ;;  %v160_v4 = vld [vmem:[#allocation3 + $0xd0] sm:$0xff] }
 0x252   :  { %4140 = vmatmul.msk.f32.gmra.mxu2 %vm176_vm0, %v4466_v36  ;;  %4203 = vmatmul.msk.f32.gmra.mxu3 %vm176_vm0, %v4465_v50 }
 0x253   :  { %1426 = vmatpush.msra.mxu1 %v160_v4 }
 0x255   :  { %v5993_v61 = vpop.f32.mrf.mxu2  ;;  %v5995_v49 = vpop.f32.mrf.mxu3 }
 0x256   :  { %8926 = vst [vmem:[#allocation198_spill] sm:$0xff] %v5993_v61  ;;  %v5997_v32 = vpop.f32.mrf.mxu1  ;;  %v5999_v28 = vpop.f32.mrf.mxu0 }
 0x257   :  { %8927 = vst [vmem:[#allocation199_spill] sm:$0xff] %v5995_v49  ;;  %v153_v49 = vld [vmem:[#allocation3 + $0x98] sm:$0xff] }
 0x258   :  { %8928 = vst [vmem:[#allocation200_spill] sm:$0xff] %v5997_v32  ;;  %1427 = vmatpush.msra.mxu1 %v153_v49 }
 0x259   :  { %8929 = vst [vmem:[#allocation201_spill] sm:$0xff] %v5999_v28  ;;  %4080 = vmatmul.msk.f32.gmra.mxu1 %vm176_vm0, %v6004_v54  ;;  %4267 = vmatmul.msk.f32.gmra.mxu0 %vm176_vm0, %v4465_v50  ;;  %v139_v50 = vld [vmem:[#allocation3 + $0x28] sm:$0xff] }
 0x25a   :  { %4141 = vmatmul.msk.f32.gmra.mxu2 %vm176_vm0, %v5944_v42  ;;  %4204 = vmatmul.msk.f32.gmra.mxu3 %vm176_vm0, %v4466_v36 }
 0x25b   :  { %1428 = vmatpush.msra.mxu1 %v146_v16  ;;  %v1938_v16 = vld [vmem:[%s8680_s3 + $0x150] sm:$0xff] }
 0x25c   :  { %1945 = vmatpush.msra.mxu3 %v1938_v16  ;;  %v1929_v16 = vld [vmem:[%s8680_s3 + $0x108] sm:$0xff] }
 0x25d   :  { %v6012_v32 = vpop.f32.mrf.mxu2  ;;  %v6014_v61 = vpop.f32.mrf.mxu3  ;;  %1429 = vmatpush.msra.mxu1 %v139_v50  ;;  %v1932_v50 = vld [vmem:[%s8680_s3 + $0x120] sm:$0xff] }
 0x25e   :  { %8930 = vst [vmem:[#allocation202_spill] sm:$0xff] %v6012_v32  ;;  %v6016_v28 = vpop.f32.mrf.mxu1  ;;  %v6018_v33 = vpop.f32.mrf.mxu0  ;;  %v168_v32 = vld [vmem:[#allocation3 + $0x110] sm:$0xff] }
 0x25f   :  { %8931 = vst [vmem:[#allocation203_spill] sm:$0xff] %v6014_v61  ;;  %1634 = vmatpush.msra.mxu2 %v168_v32  ;;  %v1920_v32 = vld [vmem:[%s8680_s3 + $0xc0] sm:$0xff] }
 0x260   :  { %8932 = vst [vmem:[#allocation204_spill] sm:$0xff] %v6016_v28 }
 0x261   :  { %8933 = vst [vmem:[#allocation205_spill] sm:$0xff] %v6018_v33  ;;  %4081 = vmatmul.msk.f32.gmra.mxu1 %vm176_vm0, %v6023_v20  ;;  %4268 = vmatmul.msk.f32.gmra.mxu0 %vm176_vm0, %v4466_v36  ;;  %v1935_v36 = vld [vmem:[%s8680_s3 + $0x138] sm:$0xff] }
 0x262   :  { %4142 = vmatmul.msk.f32.gmra.mxu2 %vm176_vm0, %v5965_v60  ;;  %4205 = vmatmul.msk.f32.gmra.mxu3 %vm176_vm0, %v5944_v42 }
 0x263   :  { %1946 = vmatpush.msra.mxu3 %v1935_v36  ;;  %v1926_v36 = vld [vmem:[%s8680_s3 + $0xf0] sm:$0xff] }
 0x265   :  { %v6035_v49 = vpop.f32.mrf.mxu2  ;;  %v6037_v4 = vpop.f32.mrf.mxu3  ;;  %1947 = vmatpush.msra.mxu3 %v1932_v50  ;;  %v1936_v50 = vld [vmem:[%s8680_s3 + $0x140] sm:$0xff] }
 0x266   :  { %8934 = vst [vmem:[#allocation206_spill] sm:$0xff] %v6035_v49  ;;  %v6039_v61 = vpop.f32.mrf.mxu1  ;;  %v6041_v28 = vpop.f32.mrf.mxu0 }
 0x267   :  { %8935 = vst [vmem:[#allocation207_spill] sm:$0xff] %v6037_v4  ;;  %1948 = vmatpush.msra.mxu3 %v1929_v16  ;;  %v1933_v16 = vld [vmem:[%s8680_s3 + $0x128] sm:$0xff] }
 0x268   :  { %8936 = vst [vmem:[#allocation208_spill] sm:$0xff] %v6039_v61 }
 0x269   :  { %8937 = vst [vmem:[#allocation209_spill] sm:$0xff] %v6041_v28  ;;  %4082 = vmatmul.msk.f32.gmra.mxu1 %vm176_vm0, %v5044_v51  ;;  %4269 = vmatmul.msk.f32.gmra.mxu0 %vm176_vm0, %v5944_v42  ;;  %v1939_v51 = vld [vmem:[%s8680_s3 + $0x158] sm:$0xff] }
 0x26a   :  { %4143 = vmatmul.msk.f32.gmra.mxu2 %vm176_vm0, %v5986_v24  ;;  %4206 = vmatmul.msk.f32.gmra.mxu3 %vm176_vm0, %v5965_v60  ;;  %v1923_v28 = vld [vmem:[%s8680_s3 + $0xd8] sm:$0xff] }
 0x26b   :  { %2154 = vmatpush.msra.mxu0 %v1939_v51  ;;  %1949 = vmatpush.msra.mxu3 %v1926_v36  ;;  %v6086_v51 = vld [vmem:[%s8677_s0 + $0x1f0] sm:$0xff]  ;;  %v161_v36 = vld [vmem:[#allocation3 + $0xd8] sm:$0xff] }
 0x26c   :  { %1635 = vmatpush.msra.mxu2 %v161_v36  ;;  %v1914_v36 = vld [vmem:[%s8680_s3 + $0x90] sm:$0xff] }
 0x26d   :  { %v6066_v42 = vpop.f32.mrf.mxu2  ;;  %v6068_v4 = vpop.f32.mrf.mxu3  ;;  %2155 = vmatpush.msra.mxu0 %v1936_v50  ;;  %v1930_v50 = vld [vmem:[%s8680_s3 + $0x110] sm:$0xff]  ;;  %1950 = vmatpush.msra.mxu3 %v1923_v28 }
 0x26e   :  { %8938 = vst [vmem:[#allocation210_spill] sm:$0xff] %v6066_v42  ;;  %v6070_v61 = vpop.f32.mrf.mxu1  ;;  %v6072_v49 = vpop.f32.mrf.mxu0 }
 0x26f   :  { %8939 = vst [vmem:[#allocation211_spill] sm:$0xff] %v6068_v4  ;;  %2156 = vmatpush.msra.mxu0 %v1933_v16  ;;  %v154_v4 = vld [vmem:[#allocation3 + $0xa0] sm:$0xff]  ;;  %1951 = vmatpush.msra.mxu3 %v1920_v32  ;;  %v147_v16 = vld [vmem:[#allocation3 + $0x68] sm:$0xff]  ;;  %v6125_v32 = vld [vmem:[%s8677_s0 + $0x1f8] sm:$0xff] }
 0x270   :  { %8940 = vst [vmem:[#allocation212_spill] sm:$0xff] %v6070_v61  ;;  %v1927_v61 = vld [vmem:[%s8680_s3 + $0xf8] sm:$0xff]  ;;  %1636 = vmatpush.msra.mxu2 %v154_v4 }
 0x271   :  { %8941 = vst [vmem:[#allocation213_spill] sm:$0xff] %v6072_v49  ;;  %4083 = vmatmul.msk.f32.gmra.mxu1 %vm176_vm0, %v6086_v51  ;;  %4270 = vmatmul.msk.f32.gmra.mxu0 %vm176_vm0, %v5965_v60  ;;  %v1917_v60 = vld [vmem:[%s8680_s3 + $0xa8] sm:$0xff]  ;;  %v1911_v4 = vld [vmem:[%s8680_s3 + $0x78] sm:$0xff] }
 0x272   :  { %4144 = vmatmul.msk.f32.gmra.mxu2 %vm176_vm0, %v6004_v54  ;;  %4207 = vmatmul.msk.f32.gmra.mxu3 %vm176_vm0, %v5986_v24 }
 0x273   :  { %2157 = vmatpush.msra.mxu0 %v1930_v50  ;;  %1952 = vmatpush.msra.mxu3 %v1917_v60  ;;  %v1921_v50 = vld [vmem:[%s8680_s3 + $0xc8] sm:$0xff]  ;;  %v1918_v60 = vld [vmem:[%s8680_s3 + $0xb0] sm:$0xff] }
 0x274   :  { %1637 = vmatpush.msra.mxu2 %v147_v16 }
 0x275   :  { %v6108_v42 = vpop.f32.mrf.mxu2  ;;  %v6110_v49 = vpop.f32.mrf.mxu3  ;;  %2158 = vmatpush.msra.mxu0 %v1927_v61  ;;  %v140_v61 = vld [vmem:[#allocation3 + $0x30] sm:$0xff]  ;;  %1953 = vmatpush.msra.mxu3 %v1914_v36  ;;  %v1915_v36 = vld [vmem:[%s8680_s3 + $0x98] sm:$0xff] }
 0x276   :  { %8942 = vst [vmem:[#allocation214_spill] sm:$0xff] %v6108_v42  ;;  %v6112_v33 = vpop.f32.mrf.mxu1  ;;  %v6114_v28 = vpop.f32.mrf.mxu0  ;;  %v1924_v42 = vld [vmem:[%s8680_s3 + $0xe0] sm:$0xff]  ;;  %1638 = vmatpush.msra.mxu2 %v140_v61 }
 0x277   :  { %8943 = vst [vmem:[#allocation215_spill] sm:$0xff] %v6110_v49  ;;  %2159 = vmatpush.msra.mxu0 %v1924_v42  ;;  %1954 = vmatpush.msra.mxu3 %v1911_v4  ;;  %v1905_v42 = vld [vmem:[%s8680_s3 + $0x48] sm:$0xff]  ;;  %v4474_v61 = vld [vmem:[%s8677_s0] sm:$0xff] }
 0x278   :  { %8944 = vst [vmem:[#allocation216_spill] sm:$0xff] %v6112_v33  ;;  %v4475_v4 = vld [vmem:[%s8677_s0 + $0x1e8] sm:$0xff] }
 0x279   :  { %8945 = vst [vmem:[#allocation217_spill] sm:$0xff] %v6114_v28  ;;  %4084 = vmatmul.msk.f32.gmra.mxu1 %vm176_vm0, %v6125_v32  ;;  %4271 = vmatmul.msk.f32.gmra.mxu0 %vm176_vm0, %v5986_v24  ;;  %v1908_v24 = vld [vmem:[%s8680_s3 + $0x60] sm:$0xff] }
 0x27a   :  { %4145 = vmatmul.msk.f32.gmra.mxu2 %vm176_vm0, %v6023_v20  ;;  %4208 = vmatmul.msk.f32.gmra.mxu3 %vm176_vm0, %v6004_v54 }
 0x27b   :  { %2160 = vmatpush.msra.mxu0 %v1921_v50  ;;  %1955 = vmatpush.msra.mxu3 %v1908_v24  ;;  %v1902_v50 = vld [vmem:[%s8680_s3 + $0x30] sm:$0xff]  ;;  %v1899_v24 = vld [vmem:[%s8680_s3 + $0x18] sm:$0xff] }
 0x27d   :  { %v6147_v16 = vpop.f32.mrf.mxu2  ;;  %v6149_v49 = vpop.f32.mrf.mxu3  ;;  %2161 = vmatpush.msra.mxu0 %v1918_v60  ;;  %1956 = vmatpush.msra.mxu3 %v1905_v42  ;;  %v1909_v60 = vld [vmem:[%s8680_s3 + $0x68] sm:$0xff]  ;;  %v1896_v42 = vld [vmem:[%s8680_s3] sm:$0xff] }
 0x27e   :  { %8946 = vst [vmem:[#allocation218_spill] sm:$0xff] %v6147_v16  ;;  %v6151_v33 = vpop.f32.mrf.mxu1  ;;  %v6153_v28 = vpop.f32.mrf.mxu0 }
 0x27f   :  { %8947 = vst [vmem:[#allocation219_spill] sm:$0xff] %v6149_v49  ;;  %2162 = vmatpush.msra.mxu0 %v1915_v36  ;;  %1957 = vmatpush.msra.mxu3 %v1902_v50  ;;  %v1906_v36 = vld [vmem:[%s8680_s3 + $0x50] sm:$0xff]  ;;  %v4476_v50 = vld [vmem:[%s8677_s0 + $0x8] sm:$0xff] }
 0x280   :  { %8948 = vst [vmem:[#allocation220_spill] sm:$0xff] %v6151_v33 }
 0x281   :  { %8949 = vst [vmem:[#allocation221_spill] sm:$0xff] %v6153_v28  ;;  %4272 = vmatmul.msk.f32.gmra.mxu0 %vm176_vm0, %v6004_v54  ;;  %4277 = vmatmul.msk.f32.vlgmr.msra.gmra.mxu1 %vm176_vm0, %v4474_v61  ;;  %v1912_v54 = vld [vmem:[%s8680_s3 + $0x80] sm:$0xff] }
 0x282   :  { %4146 = vmatmul.msk.f32.gmra.mxu2 %vm176_vm0, %v4475_v4  ;;  %4209 = vmatmul.msk.f32.gmra.mxu3 %vm176_vm0, %v6023_v20 }
 0x283   :  { %2163 = vmatpush.msra.mxu0 %v1912_v54  ;;  %1958 = vmatpush.msra.mxu3 %v1899_v24  ;;  %v1903_v54 = vld [vmem:[%s8680_s3 + $0x38] sm:$0xff] }
 0x285   :  { %v6185_v49 = vpop.f32.mrf.mxu2  ;;  %v6187_v33 = vpop.f32.mrf.mxu3  ;;  %2164 = vmatpush.msra.mxu0 %v1909_v60  ;;  %1959 = vmatpush.msra.mxu3 %v1896_v42  ;;  %v4477_v42 = vld [vmem:[%s8677_s0 + $0x10] sm:$0xff] }
 0x286   :  { %8950 = vst [vmem:[#allocation222_spill] sm:$0xff] %v6185_v49  ;;  %v6189_v16 = vpop.f32.mrf.mxu1  ;;  %v6191_v28 = vpop.f32.mrf.mxu0  ;;  %v1897_v49 = vld [vmem:[%s8680_s3 + $0x8] sm:$0xff] }
 0x287   :  { %8951 = vst [vmem:[#allocation223_spill] sm:$0xff] %v6187_v33  ;;  %2165 = vmatpush.msra.mxu0 %v1906_v36  ;;  %3212 = vmatpush.msrb.mxu3 %v2986_v15 }
 0x288   :  { %8952 = vst [vmem:[#allocation224_spill] sm:$0xff] %v6189_v16 }
 0x289   :  { %8953 = vst [vmem:[#allocation225_spill] sm:$0xff] %v6191_v28  ;;  %4273 = vmatmul.msk.f32.gmra.mxu0 %vm176_vm0, %v6023_v20  ;;  %4278 = vmatmul.msk.f32.gmra.mxu1 %vm176_vm0, %v4476_v50  ;;  %v1900_v20 = vld [vmem:[%s8680_s3 + $0x20] sm:$0xff]  ;;  %v6567_v28 = vmax.f32 %v5358_v37, 0.0 }
 0x28a   :  { %4147 = vmatmul.msk.f32.gmra.mxu2 %vm176_vm0, %v6086_v51  ;;  %4210 = vmatmul.msk.f32.gmra.mxu3 %vm176_vm0, %v4475_v4 }
 0x28b   :  { %2166 = vmatpush.msra.mxu0 %v1903_v54  ;;  %9031 = vst [vmem:[#allocation303_spill] sm:$0xff] %v6567_v28 }
 0x28d   :  { %v6214_v24 = vpop.f32.mrf.mxu2  ;;  %v6216_v60 = vpop.f32.mrf.mxu3  ;;  %2167 = vmatpush.msra.mxu0 %v1900_v20 }
 0x28e   :  { %8954 = vst [vmem:[#allocation226_spill] sm:$0xff] %v6214_v24  ;;  %v6218_v33 = vpop.f32.mrf.mxu1  ;;  %v6220_v16 = vpop.f32.mrf.mxu0  ;;  %v4493_v24 = vld [vmem:[%s8677_s0 + $0x90] sm:$0xff] }
 0x28f   :  { %8955 = vst [vmem:[#allocation227_spill] sm:$0xff] %v6216_v60  ;;  %2168 = vmatpush.msra.mxu0 %v1897_v49  ;;  %v4478_v60 = vld [vmem:[%s8677_s0 + $0x18] sm:$0xff] }
 0x290   :  { %8956 = vst [vmem:[#allocation228_spill] sm:$0xff] %v6218_v33 }
 0x291   :  { %8957 = vst [vmem:[#allocation229_spill] sm:$0xff] %v6220_v16  ;;  %4274 = vmatmul.msk.f32.gmra.mxu0 %vm176_vm0, %v4475_v4  ;;  %4279 = vmatmul.msk.f32.gmra.mxu1 %vm176_vm0, %v4477_v42  ;;  %v4495_v16 = vld [vmem:[%s8677_s0 + $0xa0] sm:$0xff] }
 0x292   :  { %4148 = vmatmul.msk.f32.gmra.mxu2 %vm176_vm0, %v6125_v32  ;;  %4211 = vmatmul.msk.f32.gmra.mxu3 %vm176_vm0, %v6086_v51 }
 0x295   :  { %v6234_v36 = vpop.f32.mrf.mxu2  ;;  %v6236_v54 = vpop.f32.mrf.mxu3 }
 0x296   :  { %8958 = vst [vmem:[#allocation230_spill] sm:$0xff] %v6234_v36  ;;  %v6238_v20 = vpop.f32.mrf.mxu1  ;;  %v6240_v4 = vpop.f32.mrf.mxu0  ;;  %v4479_v36 = vld [vmem:[%s8677_s0 + $0x20] sm:$0xff] }
 0x297   :  { %8959 = vst [vmem:[#allocation231_spill] sm:$0xff] %v6236_v54 }
 0x298   :  { %8960 = vst [vmem:[#allocation232_spill] sm:$0xff] %v6238_v20 }
 0x299   :  { %8961 = vst [vmem:[#allocation233_spill] sm:$0xff] %v6240_v4  ;;  %4275 = vmatmul.msk.f32.gmra.mxu0 %vm176_vm0, %v6086_v51  ;;  %4280 = vmatmul.msk.f32.gmra.mxu1 %vm176_vm0, %v4478_v60  ;;  %v6260_v51 = vmax.f32 %v5074_v63, 0.0  ;;  %v4494_v4 = vld [vmem:[%s8677_s0 + $0x98] sm:$0xff] }
 0x29a   :  { %4212 = vmatmul.msk.f32.gmra.mxu3 %vm176_vm0, %v6125_v32  ;;  %4341 = vmatmul.msk.f32.vlgmr.msra.gmra.mxu2 %vm176_vm0, %v4474_v61 }
 0x29d   :  { %v6251_v49 = vpop.f32.mrf.mxu2  ;;  %v6253_v54 = vpop.f32.mrf.mxu3 }
 0x29e   :  { %8962 = vst [vmem:[#allocation234_spill] sm:$0xff] %v6251_v49  ;;  %v6255_v20 = vpop.f32.mrf.mxu1  ;;  %v6257_v33 = vpop.f32.mrf.mxu0  ;;  %v4480_v49 = vld [vmem:[%s8677_s0 + $0x28] sm:$0xff] }
 0x29f   :  { %8963 = vst [vmem:[#allocation235_spill] sm:$0xff] %v6253_v54 }
 0x2a0   :  { %8964 = vst [vmem:[#allocation236_spill] sm:$0xff] %v6255_v20 }
 0x2a1   :  { %8965 = vst [vmem:[#allocation237_spill] sm:$0xff] %v6257_v33  ;;  %4276 = vmatmul.msk.f32.gmra.mxu0 %vm176_vm0, %v6125_v32  ;;  %4281 = vmatmul.msk.f32.gmra.mxu1 %vm176_vm0, %v4479_v36  ;;  %v6279_v32 = vmax.f32 %v5097_v17, 0.0  ;;  %v4492_v33 = vld [vmem:[%s8677_s0 + $0x88] sm:$0xff] }
 0x2a2   :  { %4342 = vmatmul.msk.f32.gmra.mxu2 %vm176_vm0, %v4476_v50  ;;  %1960 = vmatmul.f32.vlgmr.msra.gmra.mxu3 %v6260_v51 }
 0x2a5   :  { %v6270_v61 = vpop.f32.mrf.mxu2  ;;  %v6272_v54 = vpop.f32.mrf.mxu3 }
 0x2a6   :  { %8966 = vst [vmem:[#allocation238_spill] sm:$0xff] %v6270_v61  ;;  %v6274_v20 = vpop.f32.mrf.mxu1  ;;  %v6276_v63 = vpop.f32.mrf.mxu0  ;;  %v6297_v61 = vmax.f32 %v5118_v39, 0.0 }
 0x2a7   :  { %8967 = vst [vmem:[#allocation239_spill] sm:$0xff] %v6272_v54 }
 0x2a8   :  { %8968 = vst [vmem:[#allocation240_spill] sm:$0xff] %v6274_v20 }
 0x2a9   :  { %8969 = vst [vmem:[#allocation241_spill] sm:$0xff] %v6276_v63  ;;  %4282 = vmatmul.msk.f32.gmra.mxu1 %vm176_vm0, %v4480_v49  ;;  %2169 = vmatmul.f32.vlgmr.msra.gmra.mxu0 %v6260_v51  ;;  %v4481_v63 = vld [vmem:[%s8677_s0 + $0x30] sm:$0xff] }
 0x2aa   :  { %4343 = vmatmul.msk.f32.gmra.mxu2 %vm176_vm0, %v4477_v42  ;;  %1963 = vmatmul.f32.gmra.mxu3 %v6279_v32 }
 0x2ad   :  { %v6288_v50 = vpop.f32.mrf.mxu2  ;;  %v6290_v54 = vpop.f32.mrf.mxu3 }
 0x2ae   :  { %8970 = vst [vmem:[#allocation242_spill] sm:$0xff] %v6288_v50  ;;  %v6292_v20 = vpop.f32.mrf.mxu1  ;;  %v6294_v17 = vpop.f32.mrf.mxu0  ;;  %v6315_v50 = vmax.f32 %v5134_v55, 0.0 }
 0x2af   :  { %8971 = vst [vmem:[#allocation243_spill] sm:$0xff] %v6290_v54 }
 0x2b0   :  { %8972 = vst [vmem:[#allocation244_spill] sm:$0xff] %v6292_v20 }
 0x2b1   :  { %8973 = vst [vmem:[#allocation245_spill] sm:$0xff] %v6294_v17  ;;  %4283 = vmatmul.msk.f32.gmra.mxu1 %vm176_vm0, %v4481_v63  ;;  %2172 = vmatmul.f32.gmra.mxu0 %v6279_v32  ;;  %v4482_v17 = vld [vmem:[%s8677_s0 + $0x38] sm:$0xff] }
 0x2b2   :  { %4344 = vmatmul.msk.f32.gmra.mxu2 %vm176_vm0, %v4478_v60  ;;  %1966 = vmatmul.f32.gmra.mxu3 %v6297_v61 }
 0x2b5   :  { %v6306_v42 = vpop.f32.mrf.mxu2  ;;  %v6308_v54 = vpop.f32.mrf.mxu3 }
 0x2b6   :  { %8974 = vst [vmem:[#allocation246_spill] sm:$0xff] %v6306_v42  ;;  %v6310_v20 = vpop.f32.mrf.mxu1  ;;  %v6312_v39 = vpop.f32.mrf.mxu0  ;;  %v6333_v42 = vmax.f32 %v5150_v5, 0.0 }
 0x2b7   :  { %8975 = vst [vmem:[#allocation247_spill] sm:$0xff] %v6308_v54 }
 0x2b8   :  { %8976 = vst [vmem:[#allocation248_spill] sm:$0xff] %v6310_v20 }
 0x2b9   :  { %8977 = vst [vmem:[#allocation249_spill] sm:$0xff] %v6312_v39  ;;  %4284 = vmatmul.msk.f32.gmra.mxu1 %vm176_vm0, %v4482_v17  ;;  %2175 = vmatmul.f32.gmra.mxu0 %v6297_v61  ;;  %v4483_v39 = vld [vmem:[%s8677_s0 + $0x40] sm:$0xff] }
 0x2ba   :  { %4345 = vmatmul.msk.f32.gmra.mxu2 %vm176_vm0, %v4479_v36  ;;  %1969 = vmatmul.f32.gmra.mxu3 %v6315_v50 }
 0x2bd   :  { %v6324_v60 = vpop.f32.mrf.mxu2  ;;  %v6326_v54 = vpop.f32.mrf.mxu3 }
 0x2be   :  { %8978 = vst [vmem:[#allocation250_spill] sm:$0xff] %v6324_v60  ;;  %v6328_v20 = vpop.f32.mrf.mxu1  ;;  %v6330_v55 = vpop.f32.mrf.mxu0  ;;  %v6351_v60 = vmax.f32 %v5166_v62, 0.0 }
 0x2bf   :  { %8979 = vst [vmem:[#allocation251_spill] sm:$0xff] %v6326_v54 }
 0x2c0   :  { %8980 = vst [vmem:[#allocation252_spill] sm:$0xff] %v6328_v20 }
 0x2c1   :  { %8981 = vst [vmem:[#allocation253_spill] sm:$0xff] %v6330_v55  ;;  %4285 = vmatmul.msk.f32.gmra.mxu1 %vm176_vm0, %v4483_v39  ;;  %2178 = vmatmul.f32.gmra.mxu0 %v6315_v50  ;;  %v4484_v55 = vld [vmem:[%s8677_s0 + $0x48] sm:$0xff] }
 0x2c2   :  { %4346 = vmatmul.msk.f32.gmra.mxu2 %vm176_vm0, %v4480_v49  ;;  %1972 = vmatmul.f32.gmra.mxu3 %v6333_v42 }
 0x2c5   :  { %v6342_v36 = vpop.f32.mrf.mxu2  ;;  %v6344_v54 = vpop.f32.mrf.mxu3 }
 0x2c6   :  { %8982 = vst [vmem:[#allocation254_spill] sm:$0xff] %v6342_v36  ;;  %v6346_v20 = vpop.f32.mrf.mxu1  ;;  %v6348_v5 = vpop.f32.mrf.mxu0  ;;  %v6369_v36 = vmax.f32 %v5182_v38, 0.0 }
 0x2c7   :  { %8983 = vst [vmem:[#allocation255_spill] sm:$0xff] %v6344_v54 }
 0x2c8   :  { %8984 = vst [vmem:[#allocation256_spill] sm:$0xff] %v6346_v20 }
 0x2c9   :  { %8985 = vst [vmem:[#allocation257_spill] sm:$0xff] %v6348_v5  ;;  %4286 = vmatmul.msk.f32.gmra.mxu1 %vm176_vm0, %v4484_v55  ;;  %2181 = vmatmul.f32.gmra.mxu0 %v6333_v42  ;;  %v4485_v5 = vld [vmem:[%s8677_s0 + $0x50] sm:$0xff] }
 0x2ca   :  { %4347 = vmatmul.msk.f32.gmra.mxu2 %vm176_vm0, %v4481_v63  ;;  %1975 = vmatmul.f32.gmra.mxu3 %v6351_v60 }
 0x2cd   :  { %v6360_v49 = vpop.f32.mrf.mxu2  ;;  %v6362_v54 = vpop.f32.mrf.mxu3 }
 0x2ce   :  { %8986 = vst [vmem:[#allocation258_spill] sm:$0xff] %v6360_v49  ;;  %v6364_v20 = vpop.f32.mrf.mxu1  ;;  %v6366_v62 = vpop.f32.mrf.mxu0  ;;  %v6387_v49 = vmax.f32 %v5198_v10, 0.0 }
 0x2cf   :  { %8987 = vst [vmem:[#allocation259_spill] sm:$0xff] %v6362_v54 }
 0x2d0   :  { %8988 = vst [vmem:[#allocation260_spill] sm:$0xff] %v6364_v20 }
 0x2d1   :  { %8989 = vst [vmem:[#allocation261_spill] sm:$0xff] %v6366_v62  ;;  %4287 = vmatmul.msk.f32.gmra.mxu1 %vm176_vm0, %v4485_v5  ;;  %2184 = vmatmul.f32.gmra.mxu0 %v6351_v60  ;;  %v4486_v62 = vld [vmem:[%s8677_s0 + $0x58] sm:$0xff] }
 0x2d2   :  { %4348 = vmatmul.msk.f32.gmra.mxu2 %vm176_vm0, %v4482_v17  ;;  %1978 = vmatmul.f32.gmra.mxu3 %v6369_v36 }
 0x2d5   :  { %v6378_v63 = vpop.f32.mrf.mxu2  ;;  %v6380_v54 = vpop.f32.mrf.mxu3 }
 0x2d6   :  { %8990 = vst [vmem:[#allocation262_spill] sm:$0xff] %v6378_v63  ;;  %v6382_v20 = vpop.f32.mrf.mxu1  ;;  %v6384_v38 = vpop.f32.mrf.mxu0  ;;  %v6405_v63 = vmax.f32 %v5214_v14, 0.0 }
 0x2d7   :  { %8991 = vst [vmem:[#allocation263_spill] sm:$0xff] %v6380_v54 }
 0x2d8   :  { %8992 = vst [vmem:[#allocation264_spill] sm:$0xff] %v6382_v20 }
 0x2d9   :  { %8993 = vst [vmem:[#allocation265_spill] sm:$0xff] %v6384_v38  ;;  %4288 = vmatmul.msk.f32.gmra.mxu1 %vm176_vm0, %v4486_v62  ;;  %2187 = vmatmul.f32.gmra.mxu0 %v6369_v36  ;;  %v4487_v38 = vld [vmem:[%s8677_s0 + $0x60] sm:$0xff] }
 0x2da   :  { %4349 = vmatmul.msk.f32.gmra.mxu2 %vm176_vm0, %v4483_v39  ;;  %1981 = vmatmul.f32.gmra.mxu3 %v6387_v49 }
 0x2dd   :  { %v6396_v17 = vpop.f32.mrf.mxu2  ;;  %v6398_v54 = vpop.f32.mrf.mxu3 }
 0x2de   :  { %8994 = vst [vmem:[#allocation266_spill] sm:$0xff] %v6396_v17  ;;  %v6400_v20 = vpop.f32.mrf.mxu1  ;;  %v6402_v10 = vpop.f32.mrf.mxu0  ;;  %v6423_v17 = vmax.f32 %v5230_v18, 0.0 }
 0x2df   :  { %8995 = vst [vmem:[#allocation267_spill] sm:$0xff] %v6398_v54 }
 0x2e0   :  { %8996 = vst [vmem:[#allocation268_spill] sm:$0xff] %v6400_v20 }
 0x2e1   :  { %8997 = vst [vmem:[#allocation269_spill] sm:$0xff] %v6402_v10  ;;  %4289 = vmatmul.msk.f32.gmra.mxu1 %vm176_vm0, %v4487_v38  ;;  %2190 = vmatmul.f32.gmra.mxu0 %v6387_v49  ;;  %v4488_v10 = vld [vmem:[%s8677_s0 + $0x68] sm:$0xff] }
 0x2e2   :  { %4350 = vmatmul.msk.f32.gmra.mxu2 %vm176_vm0, %v4484_v55  ;;  %1984 = vmatmul.f32.gmra.mxu3 %v6405_v63 }
 0x2e5   :  { %v6414_v39 = vpop.f32.mrf.mxu2  ;;  %v6416_v54 = vpop.f32.mrf.mxu3 }
 0x2e6   :  { %8998 = vst [vmem:[#allocation270_spill] sm:$0xff] %v6414_v39  ;;  %v6418_v20 = vpop.f32.mrf.mxu1  ;;  %v6420_v14 = vpop.f32.mrf.mxu0  ;;  %v6441_v39 = vmax.f32 %v5246_v22, 0.0 }
 0x2e7   :  { %8999 = vst [vmem:[#allocation271_spill] sm:$0xff] %v6416_v54 }
 0x2e8   :  { %9000 = vst [vmem:[#allocation272_spill] sm:$0xff] %v6418_v20 }
 0x2e9   :  { %9001 = vst [vmem:[#allocation273_spill] sm:$0xff] %v6420_v14  ;;  %4290 = vmatmul.msk.f32.gmra.mxu1 %vm176_vm0, %v4488_v10  ;;  %2193 = vmatmul.f32.gmra.mxu0 %v6405_v63  ;;  %v4489_v14 = vld [vmem:[%s8677_s0 + $0x70] sm:$0xff] }
 0x2ea   :  { %4351 = vmatmul.msk.f32.gmra.mxu2 %vm176_vm0, %v4485_v5  ;;  %1987 = vmatmul.f32.gmra.mxu3 %v6423_v17 }
 0x2ed   :  { %v6432_v55 = vpop.f32.mrf.mxu2  ;;  %v6434_v54 = vpop.f32.mrf.mxu3 }
 0x2ee   :  { %9002 = vst [vmem:[#allocation274_spill] sm:$0xff] %v6432_v55  ;;  %v6436_v20 = vpop.f32.mrf.mxu1  ;;  %v6438_v18 = vpop.f32.mrf.mxu0  ;;  %v6459_v55 = vmax.f32 %v5262_v26, 0.0 }
 0x2ef   :  { %9003 = vst [vmem:[#allocation275_spill] sm:$0xff] %v6434_v54 }
 0x2f0   :  { %9004 = vst [vmem:[#allocation276_spill] sm:$0xff] %v6436_v20 }
 0x2f1   :  { %9005 = vst [vmem:[#allocation277_spill] sm:$0xff] %v6438_v18  ;;  %4291 = vmatmul.msk.f32.gmra.mxu1 %vm176_vm0, %v4489_v14  ;;  %2196 = vmatmul.f32.gmra.mxu0 %v6423_v17  ;;  %v4490_v18 = vld [vmem:[%s8677_s0 + $0x78] sm:$0xff] }
 0x2f2   :  { %4352 = vmatmul.msk.f32.gmra.mxu2 %vm176_vm0, %v4486_v62  ;;  %1990 = vmatmul.f32.gmra.mxu3 %v6441_v39 }
 0x2f5   :  { %v6450_v5 = vpop.f32.mrf.mxu2  ;;  %v6452_v54 = vpop.f32.mrf.mxu3 }
 0x2f6   :  { %9006 = vst [vmem:[#allocation278_spill] sm:$0xff] %v6450_v5  ;;  %v6454_v20 = vpop.f32.mrf.mxu1  ;;  %v6456_v22 = vpop.f32.mrf.mxu0  ;;  %v6477_v5 = vmax.f32 %v5278_v30, 0.0 }
 0x2f7   :  { %9007 = vst [vmem:[#allocation279_spill] sm:$0xff] %v6452_v54 }
 0x2f8   :  { %9008 = vst [vmem:[#allocation280_spill] sm:$0xff] %v6454_v20 }
 0x2f9   :  { %9009 = vst [vmem:[#allocation281_spill] sm:$0xff] %v6456_v22  ;;  %4292 = vmatmul.msk.f32.gmra.mxu1 %vm176_vm0, %v4490_v18  ;;  %2199 = vmatmul.f32.gmra.mxu0 %v6441_v39  ;;  %v4491_v22 = vld [vmem:[%s8677_s0 + $0x80] sm:$0xff] }
 0x2fa   :  { %4353 = vmatmul.msk.f32.gmra.mxu2 %vm176_vm0, %v4487_v38  ;;  %1993 = vmatmul.f32.gmra.mxu3 %v6459_v55  ;;  %9013 = vst [vmem:[#allocation285_spill] sm:$0xff] %v6477_v5 }
 0x2fd   :  { %v6468_v62 = vpop.f32.mrf.mxu2  ;;  %v6470_v54 = vpop.f32.mrf.mxu3 }
 0x2fe   :  { %9010 = vst [vmem:[#allocation282_spill] sm:$0xff] %v6468_v62  ;;  %v6472_v20 = vpop.f32.mrf.mxu0  ;;  %v6474_v26 = vpop.f32.mrf.mxu1 }
 0x2ff   :  { %9011 = vst [vmem:[#allocation283_spill] sm:$0xff] %v6470_v54 }
 0x300   :  { %9012 = vst [vmem:[#allocation284_spill] sm:$0xff] %v6472_v20  ;;  %v6495_v20 = vmax.f32 %v5294_v34, 0.0 }
 0x301   :  { %4293 = vmatmul.msk.f32.gmra.mxu1 %vm176_vm0, %v4491_v22  ;;  %2202 = vmatmul.f32.gmra.mxu0 %v6459_v55 }
 0x302   :  { %4354 = vmatmul.msk.f32.gmra.mxu2 %vm176_vm0, %v4488_v10  ;;  %1996 = vmatmul.f32.gmra.mxu3 %v6477_v5  ;;  %9017 = vst [vmem:[#allocation289_spill] sm:$0xff] %v6495_v20 }
 0x305   :  { %v6486_v38 = vpop.f32.mrf.mxu2  ;;  %v6488_v54 = vpop.f32.mrf.mxu3 }
 0x306   :  { %9014 = vst [vmem:[#allocation286_spill] sm:$0xff] %v6486_v38  ;;  %v6490_v62 = vpop.f32.mrf.mxu0  ;;  %v6492_v30 = vpop.f32.mrf.mxu1 }
 0x307   :  { %9015 = vst [vmem:[#allocation287_spill] sm:$0xff] %v6488_v54 }
 0x308   :  { %9016 = vst [vmem:[#allocation288_spill] sm:$0xff] %v6490_v62  ;;  %v6513_v62 = vmax.f32 %v5310_v40, 0.0 }
 0x309   :  { %4294 = vmatmul.msk.f32.gmra.mxu1 %vm176_vm0, %v4492_v33  ;;  %2205 = vmatmul.f32.gmra.mxu0 %v6477_v5  ;;  %v4506_v5 = vld [vmem:[%s8677_s0 + $0xf8] sm:$0xff] }
 0x30a   :  { %4355 = vmatmul.msk.f32.gmra.mxu2 %vm176_vm0, %v4489_v14  ;;  %1999 = vmatmul.f32.gmra.mxu3 %v6495_v20  ;;  %9021 = vst [vmem:[#allocation293_spill] sm:$0xff] %v6513_v62 }
 0x30d   :  { %v6504_v10 = vpop.f32.mrf.mxu2  ;;  %v6506_v54 = vpop.f32.mrf.mxu3 }
 0x30e   :  { %9018 = vst [vmem:[#allocation290_spill] sm:$0xff] %v6504_v10  ;;  %v6508_v38 = vpop.f32.mrf.mxu0  ;;  %v6510_v34 = vpop.f32.mrf.mxu1 }
 0x30f   :  { %9019 = vst [vmem:[#allocation291_spill] sm:$0xff] %v6506_v54 }
 0x310   :  { %9020 = vst [vmem:[#allocation292_spill] sm:$0xff] %v6508_v38  ;;  %v6531_v38 = vmax.f32 %v5326_v47, 0.0 }
 0x311   :  { %4295 = vmatmul.msk.f32.gmra.mxu1 %vm176_vm0, %v4493_v24  ;;  %2208 = vmatmul.f32.gmra.mxu0 %v6495_v20  ;;  %v4504_v20 = vld [vmem:[%s8677_s0 + $0xe8] sm:$0xff] }
 0x312   :  { %4356 = vmatmul.msk.f32.gmra.mxu2 %vm176_vm0, %v4490_v18  ;;  %2002 = vmatmul.f32.gmra.mxu3 %v6513_v62  ;;  %9025 = vst [vmem:[#allocation297_spill] sm:$0xff] %v6531_v38 }
 0x315   :  { %v6522_v14 = vpop.f32.mrf.mxu2  ;;  %v6524_v54 = vpop.f32.mrf.mxu3 }
 0x316   :  { %9022 = vst [vmem:[#allocation294_spill] sm:$0xff] %v6522_v14  ;;  %v6526_v10 = vpop.f32.mrf.mxu0  ;;  %v6528_v40 = vpop.f32.mrf.mxu1 }
 0x317   :  { %9023 = vst [vmem:[#allocation295_spill] sm:$0xff] %v6524_v54 }
 0x318   :  { %9024 = vst [vmem:[#allocation296_spill] sm:$0xff] %v6526_v10  ;;  %v6549_v10 = vmax.f32 %v5342_v9, 0.0 }
 0x319   :  { %4296 = vmatmul.msk.f32.gmra.mxu1 %vm176_vm0, %v4494_v4  ;;  %2211 = vmatmul.f32.gmra.mxu0 %v6513_v62  ;;  %v6675_v62 = vmax.f32 %v5168_v13, 0.0 }
 0x31a   :  { %4357 = vmatmul.msk.f32.gmra.mxu2 %vm176_vm0, %v4491_v22  ;;  %2005 = vmatmul.f32.gmra.mxu3 %v6531_v38  ;;  %9029 = vst [vmem:[#allocation301_spill] sm:$0xff] %v6549_v10 }
 0x31b   :  { %9047 = vst [vmem:[#allocation319_spill] sm:$0xff] %v6675_v62 }
 0x31d   :  { %v6540_v18 = vpop.f32.mrf.mxu3  ;;  %v6542_v54 = vpop.f32.mrf.mxu2 }
 0x31e   :  { %9026 = vst [vmem:[#allocation298_spill] sm:$0xff] %v6540_v18  ;;  %v6544_v14 = vpop.f32.mrf.mxu0  ;;  %v6546_v47 = vpop.f32.mrf.mxu1 }
 0x31f   :  { %9027 = vst [vmem:[#allocation299_spill] sm:$0xff] %v6542_v54  ;;  %v6639_v54 = vmax.f32 %v5136_v56, 0.0 }
 0x320   :  { %9028 = vst [vmem:[#allocation300_spill] sm:$0xff] %v6544_v14 }
 0x321   :  { %4297 = vmatmul.msk.f32.gmra.mxu1 %vm176_vm0, %v4495_v16  ;;  %2214 = vmatmul.f32.gmra.mxu0 %v6531_v38  ;;  %9041 = vst [vmem:[#allocation313_spill] sm:$0xff] %v6639_v54  ;;  %v6657_v38 = vmax.f32 %v5152_v45, 0.0 }
 0x322   :  { %4358 = vmatmul.msk.f32.gmra.mxu2 %vm176_vm0, %v4492_v33  ;;  %2008 = vmatmul.f32.gmra.mxu3 %v6549_v10 }
 0x323   :  { %9044 = vst [vmem:[#allocation316_spill] sm:$0xff] %v6657_v38 }
 0x325   :  { %v6558_v22 = vpop.f32.mrf.mxu2  ;;  %v6560_v18 = vpop.f32.mrf.mxu3 }
 0x326   :  { %9030 = vst [vmem:[#allocation302_spill] sm:$0xff] %v6558_v22  ;;  %v6562_v14 = vpop.f32.mrf.mxu1  ;;  %v6564_v9 = vpop.f32.mrf.mxu0  ;;  %v4498_v22 = vld [vmem:[%s8677_s0 + $0xb8] sm:$0xff] }
 0x329   :  { %4298 = vmatmul.msk.f32.gmra.mxu1 %vm176_vm0, %v4496_v12  ;;  %2217 = vmatmul.f32.gmra.mxu0 %v6549_v10  ;;  %v4499_v10 = vld [vmem:[%s8677_s0 + $0xc0] sm:$0xff] }
 0x32a   :  { %4359 = vmatmul.msk.f32.gmra.mxu2 %vm176_vm0, %v4493_v24  ;;  %2011 = vmatmul.f32.gmra.mxu3 %v6567_v28 }
 0x32d   :  { %v6576_v33 = vpop.f32.mrf.mxu2  ;;  %v6578_v8 = vpop.f32.mrf.mxu3 }
 0x32e   :  { %9032 = vst [vmem:[#allocation304_spill] sm:$0xff] %v6576_v33  ;;  %v6580_v1 = vpop.f32.mrf.mxu1  ;;  %v6582_v37 = vpop.f32.mrf.mxu0 }
 0x331   :  { %4299 = vmatmul.msk.f32.gmra.mxu1 %vm176_vm0, %v4497_v53  ;;  %2220 = vmatmul.f32.gmra.mxu0 %v6567_v28 }
 0x332   :  { %4360 = vmatmul.msk.f32.gmra.mxu2 %vm176_vm0, %v4494_v4  ;;  %2014 = vmatmul.f32.gmra.mxu3 %v6585_v59 }
 0x335   :  { %v6594_v24 = vpop.f32.mrf.mxu2  ;;  %v6596_v48 = vpop.f32.mrf.mxu3 }
 0x336   :  { %9034 = vst [vmem:[#allocation306_spill] sm:$0xff] %v6594_v24  ;;  %v6598_v33 = vpop.f32.mrf.mxu1  ;;  %v6600_v2 = vpop.f32.mrf.mxu0 }
 0x339   :  { %4300 = vmatmul.msk.f32.gmra.mxu1 %vm176_vm0, %v4498_v22  ;;  %2223 = vmatmul.f32.gmra.mxu0 %v6585_v59 }
 0x33a   :  { %4361 = vmatmul.msk.f32.gmra.mxu2 %vm176_vm0, %v4495_v16  ;;  %2017 = vmatmul.f32.gmra.mxu3 %v6603_v41 }
 0x33d   :  { %v6612_v4 = vpop.f32.mrf.mxu2  ;;  %v6614_v24 = vpop.f32.mrf.mxu3 }
 0x33e   :  { %9036 = vst [vmem:[#allocation308_spill] sm:$0xff] %v6612_v4  ;;  %v6616_v28 = vpop.f32.mrf.mxu1  ;;  %v6618_v21 = vpop.f32.mrf.mxu0 }
 0x33f   :  { %9037 = vst [vmem:[#allocation309_spill] sm:$0xff] %v6616_v28  ;;  %v1904_v28 = vld [vmem:[%s8680_s3 + $0x40] sm:$0xff] }
 0x341   :  { %4301 = vmatmul.msk.f32.gmra.mxu1 %vm176_vm0, %v4499_v10  ;;  %2226 = vmatmul.f32.gmra.mxu0 %v6603_v41 }
 0x342   :  { %4362 = vmatmul.msk.f32.gmra.mxu2 %vm176_vm0, %v4496_v12  ;;  %2020 = vmatmul.f32.gmra.mxu3 %v6621_v35 }
 0x345   :  { %v6630_v16 = vpop.f32.mrf.mxu2  ;;  %v6632_v4 = vpop.f32.mrf.mxu3 }
 0x346   :  { %9039 = vst [vmem:[#allocation311_spill] sm:$0xff] %v6630_v16  ;;  %v6634_v59 = vpop.f32.mrf.mxu1  ;;  %v6636_v43 = vpop.f32.mrf.mxu0 }
 0x347   :  { %9040 = vst [vmem:[#allocation312_spill] sm:$0xff] %v6634_v59  ;;  %v4505_v59 = vld [vmem:[%s8677_s0 + $0xf0] sm:$0xff] }
 0x349   :  { %4302 = vmatmul.msk.f32.gmra.mxu1 %vm176_vm0, %v4500_v31  ;;  %2229 = vmatmul.f32.gmra.mxu0 %v6621_v35 }
 0x34a   :  { %4363 = vmatmul.msk.f32.gmra.mxu2 %vm176_vm0, %v4497_v53  ;;  %2023 = vmatmul.f32.gmra.mxu3 %v6639_v54 }
 0x34d   :  { %v6648_v12 = vpop.f32.mrf.mxu2  ;;  %v6650_v16 = vpop.f32.mrf.mxu3 }
 0x34e   :  { %9042 = vst [vmem:[#allocation314_spill] sm:$0xff] %v6648_v12  ;;  %v6652_v41 = vpop.f32.mrf.mxu1  ;;  %v6654_v56 = vpop.f32.mrf.mxu0 }
 0x34f   :  { %9043 = vst [vmem:[#allocation315_spill] sm:$0xff] %v6652_v41  ;;  %v4503_v41 = vld [vmem:[%s8677_s0 + $0xe0] sm:$0xff] }
 0x351   :  { %4303 = vmatmul.msk.f32.gmra.mxu1 %vm176_vm0, %v4501_v27  ;;  %2232 = vmatmul.f32.gmra.mxu0 %v6639_v54 }
 0x352   :  { %4364 = vmatmul.msk.f32.gmra.mxu2 %vm176_vm0, %v4498_v22  ;;  %2026 = vmatmul.f32.gmra.mxu3 %v6657_v38 }
 0x355   :  { %v6666_v53 = vpop.f32.mrf.mxu2  ;;  %v6668_v12 = vpop.f32.mrf.mxu3 }
 0x356   :  { %9045 = vst [vmem:[#allocation317_spill] sm:$0xff] %v6666_v53  ;;  %v6670_v35 = vpop.f32.mrf.mxu1  ;;  %v6672_v45 = vpop.f32.mrf.mxu0 }
 0x357   :  { %9046 = vst [vmem:[#allocation318_spill] sm:$0xff] %v6670_v35  ;;  %v6693_v35 = vmax.f32 %v5184_v6, 0.0 }
 0x359   :  { %4304 = vmatmul.msk.f32.gmra.mxu1 %vm176_vm0, %v4502_v23  ;;  %2235 = vmatmul.f32.gmra.mxu0 %v6657_v38  ;;  %9050 = vst [vmem:[#allocation322_spill] sm:$0xff] %v6693_v35 }
 0x35a   :  { %4365 = vmatmul.msk.f32.gmra.mxu2 %vm176_vm0, %v4499_v10  ;;  %2029 = vmatmul.f32.gmra.mxu3 %v6675_v62 }
 0x35d   :  { %v6684_v22 = vpop.f32.mrf.mxu2  ;;  %v6686_v53 = vpop.f32.mrf.mxu3 }
 0x35e   :  { %9048 = vst [vmem:[#allocation320_spill] sm:$0xff] %v6684_v22  ;;  %v6688_v54 = vpop.f32.mrf.mxu1  ;;  %v6690_v13 = vpop.f32.mrf.mxu0 }
 0x35f   :  { %9049 = vst [vmem:[#allocation321_spill] sm:$0xff] %v6688_v54  ;;  %v6711_v54 = vmax.f32 %v5200_v44, 0.0 }
 0x361   :  { %4305 = vmatmul.msk.f32.gmra.mxu1 %vm176_vm0, %v4503_v41  ;;  %2238 = vmatmul.f32.gmra.mxu0 %v6675_v62  ;;  %9054 = vst [vmem:[#allocation326_spill] sm:$0xff] %v6711_v54 }
 0x362   :  { %4366 = vmatmul.msk.f32.gmra.mxu2 %vm176_vm0, %v4500_v31  ;;  %2032 = vmatmul.f32.gmra.mxu3 %v6693_v35 }
 0x365   :  { %v6702_v10 = vpop.f32.mrf.mxu2  ;;  %v6704_v22 = vpop.f32.mrf.mxu3 }
 0x366   :  { %9051 = vst [vmem:[#allocation323_spill] sm:$0xff] %v6702_v10  ;;  %v6706_v38 = vpop.f32.mrf.mxu1  ;;  %v6708_v6 = vpop.f32.mrf.mxu0 }
 0x367   :  { %9052 = vst [vmem:[#allocation324_spill] sm:$0xff] %v6706_v38  ;;  %v9059_v38 = vld [vmem:[#allocation28_spill] sm:$0xff] }
 0x368   :  { %9053 = vst [vmem:[#allocation325_spill] sm:$0xff] %v6708_v6  ;;  %v6729_v19 = vmax.f32 %v9059_v38, 0.0  ;;  %v2983_v6 = vld [vmem:[#allocation6 + $0xe0] sm:$0xff] }
 0x369   :  { %4306 = vmatmul.msk.f32.gmra.mxu1 %vm176_vm0, %v4504_v20  ;;  %2241 = vmatmul.f32.gmra.mxu0 %v6693_v35 }
 0x36a   :  { %4367 = vmatmul.msk.f32.gmra.mxu2 %vm176_vm0, %v4501_v27  ;;  %2035 = vmatmul.f32.gmra.mxu3 %v6711_v54  ;;  %9060 = vst [vmem:[#allocation28_spill] sm:$0xff] %v6729_v19 }
 0x36d   :  { %v6720_v31 = vpop.f32.mrf.mxu2  ;;  %v6722_v10 = vpop.f32.mrf.mxu3 }
 0x36e   :  { %9055 = vst [vmem:[#allocation327_spill] sm:$0xff] %v6720_v31  ;;  %v6724_v62 = vpop.f32.mrf.mxu1  ;;  %v6726_v44 = vpop.f32.mrf.mxu0 }
 0x36f   :  { %9056 = vst [vmem:[#allocation328_spill] sm:$0xff] %v6722_v10  ;;  %v2967_v10 = vld [vmem:[#allocation6 + $0x60] sm:$0xff] }
 0x370   :  { %9057 = vst [vmem:[#allocation329_spill] sm:$0xff] %v6724_v62  ;;  %v9065_v62 = vld [vmem:[#allocation31_spill] sm:$0xff] }
 0x371   :  { %9058 = vst [vmem:[#allocation330_spill] sm:$0xff] %v6726_v44  ;;  %4307 = vmatmul.msk.f32.gmra.mxu1 %vm176_vm0, %v4505_v59  ;;  %2244 = vmatmul.f32.gmra.mxu0 %v6711_v54  ;;  %v6747_v44 = vmax.f32 %v9065_v62, 0.0 }
 0x372   :  { %4368 = vmatmul.msk.f32.gmra.mxu2 %vm176_vm0, %v4502_v23  ;;  %2038 = vmatmul.f32.gmra.mxu3 %v6729_v19 }
 0x373   :  { %9066 = vst [vmem:[#allocation31_spill] sm:$0xff] %v6747_v44 }
 0x375   :  { %v6738_v27 = vpop.f32.mrf.mxu2  ;;  %v6740_v31 = vpop.f32.mrf.mxu3 }
 0x376   :  { %9061 = vst [vmem:[#allocation331_spill] sm:$0xff] %v6738_v27  ;;  %v6742_v35 = vpop.f32.mrf.mxu1  ;;  %v6744_v38 = vpop.f32.mrf.mxu0 }
 0x377   :  { %9062 = vst [vmem:[#allocation332_spill] sm:$0xff] %v6740_v31  ;;  %v4507_v31 = vld [vmem:[%s8677_s0 + $0x100] sm:$0xff] }
 0x378   :  { %9063 = vst [vmem:[#allocation333_spill] sm:$0xff] %v6742_v35  ;;  %v9071_v35 = vld [vmem:[#allocation34_spill] sm:$0xff] }
 0x379   :  { %9064 = vst [vmem:[#allocation334_spill] sm:$0xff] %v6744_v38  ;;  %4308 = vmatmul.msk.f32.gmra.mxu1 %vm176_vm0, %v4506_v5  ;;  %2247 = vmatmul.f32.gmra.mxu0 %v6729_v19  ;;  %v6765_v38 = vmax.f32 %v9071_v35, 0.0 }
 0x37a   :  { %4369 = vmatmul.msk.f32.gmra.mxu2 %vm176_vm0, %v4503_v41  ;;  %2041 = vmatmul.f32.gmra.mxu3 %v6747_v44 }
 0x37b   :  { %9072 = vst [vmem:[#allocation34_spill] sm:$0xff] %v6765_v38 }
 0x37d   :  { %v6756_v23 = vpop.f32.mrf.mxu2  ;;  %v6758_v27 = vpop.f32.mrf.mxu3 }
 0x37e   :  { %9067 = vst [vmem:[#allocation335_spill] sm:$0xff] %v6756_v23  ;;  %v6760_v54 = vpop.f32.mrf.mxu1  ;;  %v6762_v62 = vpop.f32.mrf.mxu0 }
 0x37f   :  { %9068 = vst [vmem:[#allocation336_spill] sm:$0xff] %v6758_v27  ;;  %v4508_v27 = vld [vmem:[%s8677_s0 + $0x108] sm:$0xff] }
 0x380   :  { %9069 = vst [vmem:[#allocation337_spill] sm:$0xff] %v6760_v54  ;;  %v9077_v54 = vld [vmem:[#allocation37_spill] sm:$0xff] }
 0x381   :  { %9070 = vst [vmem:[#allocation338_spill] sm:$0xff] %v6762_v62  ;;  %4309 = vmatmul.msk.f32.gmra.mxu1 %vm176_vm0, %v4507_v31  ;;  %2250 = vmatmul.f32.gmra.mxu0 %v6747_v44  ;;  %v6783_v62 = vmax.f32 %v9077_v54, 0.0 }
 0x382   :  { %4370 = vmatmul.msk.f32.gmra.mxu2 %vm176_vm0, %v4504_v20  ;;  %2044 = vmatmul.f32.gmra.mxu3 %v6765_v38 }
 0x383   :  { %9078 = vst [vmem:[#allocation37_spill] sm:$0xff] %v6783_v62 }
 0x385   :  { %v6774_v41 = vpop.f32.mrf.mxu2  ;;  %v6776_v23 = vpop.f32.mrf.mxu3 }
 0x386   :  { %9073 = vst [vmem:[#allocation339_spill] sm:$0xff] %v6774_v41  ;;  %v6778_v19 = vpop.f32.mrf.mxu1  ;;  %v6780_v35 = vpop.f32.mrf.mxu0 }
 0x387   :  { %9074 = vst [vmem:[#allocation340_spill] sm:$0xff] %v6776_v23  ;;  %v4509_v23 = vld [vmem:[%s8677_s0 + $0x110] sm:$0xff] }
 0x388   :  { %9075 = vst [vmem:[#allocation341_spill] sm:$0xff] %v6778_v19  ;;  %v9083_v19 = vld [vmem:[#allocation40_spill] sm:$0xff] }
 0x389   :  { %9076 = vst [vmem:[#allocation342_spill] sm:$0xff] %v6780_v35  ;;  %4310 = vmatmul.msk.f32.gmra.mxu1 %vm176_vm0, %v4508_v27  ;;  %2253 = vmatmul.f32.gmra.mxu0 %v6765_v38  ;;  %v6801_v35 = vmax.f32 %v9083_v19, 0.0 }
 0x38a   :  { %4371 = vmatmul.msk.f32.gmra.mxu2 %vm176_vm0, %v4505_v59  ;;  %2047 = vmatmul.f32.gmra.mxu3 %v6783_v62 }
 0x38b   :  { %9084 = vst [vmem:[#allocation40_spill] sm:$0xff] %v6801_v35 }
 0x38d   :  { %v6792_v20 = vpop.f32.mrf.mxu2  ;;  %v6794_v41 = vpop.f32.mrf.mxu3 }
 0x38e   :  { %9079 = vst [vmem:[#allocation343_spill] sm:$0xff] %v6792_v20  ;;  %v6796_v44 = vpop.f32.mrf.mxu1  ;;  %v6798_v54 = vpop.f32.mrf.mxu0 }
 0x38f   :  { %9080 = vst [vmem:[#allocation344_spill] sm:$0xff] %v6794_v41  ;;  %v4510_v41 = vld [vmem:[%s8677_s0 + $0x118] sm:$0xff] }
 0x390   :  { %9081 = vst [vmem:[#allocation345_spill] sm:$0xff] %v6796_v44  ;;  %v9089_v44 = vld [vmem:[#allocation12_spill] sm:$0xff] }
 0x391   :  { %9082 = vst [vmem:[#allocation346_spill] sm:$0xff] %v6798_v54  ;;  %4311 = vmatmul.msk.f32.gmra.mxu1 %vm176_vm0, %v4509_v23  ;;  %2256 = vmatmul.f32.gmra.mxu0 %v6783_v62  ;;  %v6819_v54 = vmax.f32 %v9089_v44, 0.0 }
 0x392   :  { %4372 = vmatmul.msk.f32.gmra.mxu2 %vm176_vm0, %v4506_v5  ;;  %2050 = vmatmul.f32.gmra.mxu3 %v6801_v35 }
 0x393   :  { %9090 = vst [vmem:[#allocation12_spill] sm:$0xff] %v6819_v54 }
 0x395   :  { %v6810_v59 = vpop.f32.mrf.mxu2  ;;  %v6812_v20 = vpop.f32.mrf.mxu3 }
 0x396   :  { %9085 = vst [vmem:[#allocation347_spill] sm:$0xff] %v6810_v59  ;;  %v6814_v38 = vpop.f32.mrf.mxu1  ;;  %v6816_v19 = vpop.f32.mrf.mxu0 }
 0x397   :  { %9086 = vst [vmem:[#allocation348_spill] sm:$0xff] %v6812_v20  ;;  %v4511_v20 = vld [vmem:[%s8677_s0 + $0x120] sm:$0xff] }
 0x398   :  { %9087 = vst [vmem:[#allocation349_spill] sm:$0xff] %v6814_v38  ;;  %v9095_v38 = vld [vmem:[#allocation14_spill] sm:$0xff] }
 0x399   :  { %9088 = vst [vmem:[#allocation350_spill] sm:$0xff] %v6816_v19  ;;  %4312 = vmatmul.msk.f32.gmra.mxu1 %vm176_vm0, %v4510_v41  ;;  %2259 = vmatmul.f32.gmra.mxu0 %v6801_v35  ;;  %v6837_v19 = vmax.f32 %v9095_v38, 0.0 }
 0x39a   :  { %4373 = vmatmul.msk.f32.gmra.mxu2 %vm176_vm0, %v4507_v31  ;;  %2053 = vmatmul.f32.gmra.mxu3 %v6819_v54 }
 0x39b   :  { %9096 = vst [vmem:[#allocation14_spill] sm:$0xff] %v6837_v19 }
 0x39d   :  { %v6828_v5 = vpop.f32.mrf.mxu2  ;;  %v6830_v59 = vpop.f32.mrf.mxu3 }
 0x39e   :  { %9091 = vst [vmem:[#allocation351_spill] sm:$0xff] %v6828_v5  ;;  %v6832_v62 = vpop.f32.mrf.mxu1  ;;  %v6834_v44 = vpop.f32.mrf.mxu0 }
 0x39f   :  { %9092 = vst [vmem:[#allocation352_spill] sm:$0xff] %v6830_v59  ;;  %v4512_v59 = vld [vmem:[%s8677_s0 + $0x128] sm:$0xff] }
 0x3a0   :  { %9093 = vst [vmem:[#allocation353_spill] sm:$0xff] %v6832_v62  ;;  %v9101_v62 = vld [vmem:[#allocation16_spill] sm:$0xff] }
 0x3a1   :  { %9094 = vst [vmem:[#allocation354_spill] sm:$0xff] %v6834_v44  ;;  %4313 = vmatmul.msk.f32.gmra.mxu1 %vm176_vm0, %v4511_v20  ;;  %2262 = vmatmul.f32.gmra.mxu0 %v6819_v54  ;;  %v6855_v44 = vmax.f32 %v9101_v62, 0.0 }
 0x3a2   :  { %4374 = vmatmul.msk.f32.gmra.mxu2 %vm176_vm0, %v4508_v27  ;;  %2056 = vmatmul.f32.gmra.mxu3 %v6837_v19 }
 0x3a3   :  { %9102 = vst [vmem:[#allocation16_spill] sm:$0xff] %v6855_v44 }
 0x3a5   :  { %v6846_v31 = vpop.f32.mrf.mxu2  ;;  %v6848_v5 = vpop.f32.mrf.mxu3 }
 0x3a6   :  { %9097 = vst [vmem:[#allocation355_spill] sm:$0xff] %v6846_v31  ;;  %v6850_v35 = vpop.f32.mrf.mxu1  ;;  %v6852_v38 = vpop.f32.mrf.mxu0 }
 0x3a7   :  { %9098 = vst [vmem:[#allocation356_spill] sm:$0xff] %v6848_v5  ;;  %v4513_v5 = vld [vmem:[%s8677_s0 + $0x130] sm:$0xff] }
 0x3a8   :  { %9099 = vst [vmem:[#allocation357_spill] sm:$0xff] %v6850_v35  ;;  %v9107_v35 = vld [vmem:[#allocation18_spill] sm:$0xff] }
 0x3a9   :  { %9100 = vst [vmem:[#allocation358_spill] sm:$0xff] %v6852_v38  ;;  %4314 = vmatmul.msk.f32.gmra.mxu1 %vm176_vm0, %v4512_v59  ;;  %2265 = vmatmul.f32.gmra.mxu0 %v6837_v19  ;;  %v6873_v38 = vmax.f32 %v9107_v35, 0.0 }
 0x3aa   :  { %4375 = vmatmul.msk.f32.gmra.mxu2 %vm176_vm0, %v4509_v23  ;;  %2059 = vmatmul.f32.gmra.mxu3 %v6855_v44 }
 0x3ab   :  { %9108 = vst [vmem:[#allocation18_spill] sm:$0xff] %v6873_v38 }
 0x3ad   :  { %v6864_v27 = vpop.f32.mrf.mxu2  ;;  %v6866_v31 = vpop.f32.mrf.mxu3 }
 0x3ae   :  { %9103 = vst [vmem:[#allocation359_spill] sm:$0xff] %v6864_v27  ;;  %v6868_v54 = vpop.f32.mrf.mxu1  ;;  %v6870_v62 = vpop.f32.mrf.mxu0 }
 0x3af   :  { %9104 = vst [vmem:[#allocation360_spill] sm:$0xff] %v6866_v31  ;;  %v4514_v31 = vld [vmem:[%s8677_s0 + $0x138] sm:$0xff] }
 0x3b0   :  { %9105 = vst [vmem:[#allocation361_spill] sm:$0xff] %v6868_v54  ;;  %v9113_v54 = vld [vmem:[#allocation20_spill] sm:$0xff] }
 0x3b1   :  { %9106 = vst [vmem:[#allocation362_spill] sm:$0xff] %v6870_v62  ;;  %4315 = vmatmul.msk.f32.gmra.mxu1 %vm176_vm0, %v4513_v5  ;;  %2268 = vmatmul.f32.gmra.mxu0 %v6855_v44  ;;  %v6891_v62 = vmax.f32 %v9113_v54, 0.0  ;;  %v9118_v54 = vld [vmem:[#allocation22_spill] sm:$0xff] }
 0x3b2   :  { %4376 = vmatmul.msk.f32.gmra.mxu2 %vm176_vm0, %v4510_v41  ;;  %2062 = vmatmul.f32.gmra.mxu3 %v6873_v38 }
 0x3b3   :  { %9114 = vst [vmem:[#allocation20_spill] sm:$0xff] %v6891_v62 }
 0x3b5   :  { %v6882_v23 = vpop.f32.mrf.mxu2  ;;  %v6884_v27 = vpop.f32.mrf.mxu3 }
 0x3b6   :  { %9109 = vst [vmem:[#allocation363_spill] sm:$0xff] %v6882_v23  ;;  %v6886_v19 = vpop.f32.mrf.mxu1  ;;  %v6888_v35 = vpop.f32.mrf.mxu0 }
 0x3b7   :  { %9110 = vst [vmem:[#allocation364_spill] sm:$0xff] %v6884_v27  ;;  %v4515_v27 = vld [vmem:[%s8677_s0 + $0x140] sm:$0xff] }
 0x3b8   :  { %9111 = vst [vmem:[#allocation365_spill] sm:$0xff] %v6886_v19  ;;  %v6907_v19 = vmax.f32 %v9118_v54, 0.0 }
 0x3b9   :  { %9112 = vst [vmem:[#allocation366_spill] sm:$0xff] %v6888_v35  ;;  %4316 = vmatmul.msk.f32.gmra.mxu1 %vm176_vm0, %v4514_v31  ;;  %2271 = vmatmul.f32.gmra.mxu0 %v6873_v38  ;;  %v9124_v38 = vld [vmem:[#allocation24_spill] sm:$0xff] }
 0x3ba   :  { %4377 = vmatmul.msk.f32.gmra.mxu2 %vm176_vm0, %v4511_v20  ;;  %2065 = vmatmul.f32.gmra.mxu3 %v6891_v62  ;;  %9119 = vst [vmem:[#allocation22_spill] sm:$0xff] %v6907_v19 }
 0x3bd   :  { %v6900_v41 = vpop.f32.mrf.mxu2  ;;  %v6902_v23 = vpop.f32.mrf.mxu3 }
 0x3be   :  { %9115 = vst [vmem:[#allocation367_spill] sm:$0xff] %v6900_v41  ;;  %v6904_v44 = vpop.f32.mrf.mxu1  ;;  %v6909_v35 = vpop.f32.mrf.mxu0 }
 0x3bf   :  { %9116 = vst [vmem:[#allocation368_spill] sm:$0xff] %v6902_v23 }
 0x3c0   :  { %9117 = vst [vmem:[#allocation369_spill] sm:$0xff] %v6904_v44  ;;  %v6925_v44 = vmax.f32 %v9124_v38, 0.0 }
 0x3c1   :  { %9120 = vst [vmem:[#allocation370_spill] sm:$0xff] %v6909_v35  ;;  %4317 = vmatmul.msk.f32.gmra.mxu1 %vm176_vm0, %v4515_v27  ;;  %2274 = vmatmul.f32.gmra.mxu0 %v6891_v62  ;;  %v4516_v35 = vld [vmem:[%s8677_s0 + $0x148] sm:$0xff] }
 0x3c2   :  { %4378 = vmatmul.msk.f32.gmra.mxu2 %vm176_vm0, %v4512_v59  ;;  %2068 = vmatmul.f32.gmra.mxu3 %v6907_v19  ;;  %9125 = vst [vmem:[#allocation24_spill] sm:$0xff] %v6925_v44 }
 0x3c5   :  { %v6918_v20 = vpop.f32.mrf.mxu2  ;;  %v6920_v41 = vpop.f32.mrf.mxu3 }
 0x3c6   :  { %9121 = vst [vmem:[#allocation371_spill] sm:$0xff] %v6918_v20  ;;  %v6922_v54 = vpop.f32.mrf.mxu1  ;;  %v6932_v59 = vpop.f32.mrf.mxu0  ;;  %v1943_v20 = vld [vmem:[%s8680_s3 + $0x178] sm:$0xff] }
 0x3c7   :  { %9122 = vst [vmem:[#allocation372_spill] sm:$0xff] %v6920_v41  ;;  %2362 = vmatpush.msrb.mxu1 %v1943_v20  ;;  %v9130_v41 = vld [vmem:[#allocation26_spill] sm:$0xff] }
 0x3c8   :  { %9123 = vst [vmem:[#allocation373_spill] sm:$0xff] %v6922_v54  ;;  %v6946_v23 = vmax.f32 %v9130_v41, 0.0 }
 0x3c9   :  { %4318 = vmatmul.msk.f32.gmra.mxu1 %vm176_vm0, %v4516_v35  ;;  %2277 = vmatmul.f32.gmra.mxu0 %v6907_v19  ;;  %9126 = vst [vmem:[#allocation374_spill] sm:$0xff] %v6932_v59  ;;  %v4518_v59 = vld [vmem:[%s8677_s0 + $0x158] sm:$0xff] }
 0x3ca   :  { %4379 = vmatmul.msk.f32.gmra.mxu2 %vm176_vm0, %v4513_v5  ;;  %2071 = vmatmul.f32.gmra.mxu3 %v6925_v44  ;;  %9131 = vst [vmem:[#allocation26_spill] sm:$0xff] %v6946_v23  ;;  %v4517_v5 = vld [vmem:[%s8677_s0 + $0x150] sm:$0xff] }
 0x3cd   :  { %v6939_v38 = vpop.f32.mrf.mxu2  ;;  %v6941_v62 = vpop.f32.mrf.mxu3 }
 0x3ce   :  { %9127 = vst [vmem:[#allocation375_spill] sm:$0xff] %v6939_v38  ;;  %v6943_v54 = vpop.f32.mrf.mxu1  ;;  %v6955_v20 = vpop.f32.mrf.mxu0 }
 0x3cf   :  { %9128 = vst [vmem:[#allocation376_spill] sm:$0xff] %v6941_v62 }
 0x3d0   :  { %9129 = vst [vmem:[#allocation377_spill] sm:$0xff] %v6943_v54  ;;  %v9136_v54 = vld [vmem:[#allocation29_spill] sm:$0xff] }
 0x3d1   :  { %4319 = vmatmul.msk.f32.gmra.mxu1 %vm176_vm0, %v4517_v5  ;;  %2280 = vmatmul.f32.gmra.mxu0 %v6925_v44  ;;  %9132 = vst [vmem:[#allocation378_spill] sm:$0xff] %v6955_v20  ;;  %v6964_v62 = vmax.f32 %v9136_v54, 0.0  ;;  %v4519_v20 = vld [vmem:[%s8677_s0 + $0x160] sm:$0xff] }
 0x3d2   :  { %4380 = vmatmul.msk.f32.gmra.mxu2 %vm176_vm0, %v4514_v31  ;;  %2074 = vmatmul.f32.gmra.mxu3 %v6946_v23 }
 0x3d3   :  { %9137 = vst [vmem:[#allocation29_spill] sm:$0xff] %v6964_v62 }
 0x3d5   :  { %v6957_v38 = vpop.f32.mrf.mxu2  ;;  %v6959_v19 = vpop.f32.mrf.mxu3 }
 0x3d6   :  { %9133 = vst [vmem:[#allocation379_spill] sm:$0xff] %v6957_v38  ;;  %v6961_v41 = vpop.f32.mrf.mxu1  ;;  %v6977_v44 = vpop.f32.mrf.mxu0 }
 0x3d7   :  { %9134 = vst [vmem:[#allocation380_spill] sm:$0xff] %v6959_v19 }
 0x3d8   :  { %9135 = vst [vmem:[#allocation381_spill] sm:$0xff] %v6961_v41  ;;  %v9142_v41 = vld [vmem:[#allocation32_spill] sm:$0xff] }
 0x3d9   :  { %4320 = vmatmul.msk.f32.gmra.mxu1 %vm176_vm0, %v4518_v59  ;;  %2283 = vmatmul.f32.gmra.mxu0 %v6946_v23  ;;  %9140 = vst [vmem:[#allocation384_spill] sm:$0xff] %v6977_v44  ;;  %v6982_v19 = vmax.f32 %v9142_v41, 0.0  ;;  %v9147_v41 = vld [vmem:[#allocation35_spill] sm:$0xff]  ;;  %v4520_v44 = vld [vmem:[%s8677_s0 + $0x168] sm:$0xff] }
 0x3da   :  { %4381 = vmatmul.msk.f32.gmra.mxu2 %vm176_vm0, %v4515_v27  ;;  %2077 = vmatmul.f32.gmra.mxu3 %v6964_v62 }
 0x3db   :  { %9143 = vst [vmem:[#allocation32_spill] sm:$0xff] %v6982_v19 }
 0x3dd   :  { %v6973_v31 = vpop.f32.mrf.mxu2  ;;  %v6975_v38 = vpop.f32.mrf.mxu3 }
 0x3de   :  { %9138 = vst [vmem:[#allocation382_spill] sm:$0xff] %v6973_v31  ;;  %v6979_v54 = vpop.f32.mrf.mxu1 }
 0x3df   :  { %9139 = vst [vmem:[#allocation383_spill] sm:$0xff] %v6975_v38  ;;  %v7000_v38 = vpop.f32.mrf.mxu0 }
 0x3e0   :  { %9141 = vst [vmem:[#allocation385_spill] sm:$0xff] %v6979_v54  ;;  %v6998_v54 = vmax.f32 %v9147_v41, 0.0 }
 0x3e1   :  { %4321 = vmatmul.msk.f32.gmra.mxu1 %vm176_vm0, %v4519_v20  ;;  %2286 = vmatmul.f32.gmra.mxu0 %v6964_v62  ;;  %9149 = vst [vmem:[#allocation389_spill] sm:$0xff] %v7000_v38  ;;  %v4522_v38 = vld [vmem:[%s8677_s0 + $0x178] sm:$0xff] }
 0x3e2   :  { %4382 = vmatmul.msk.f32.gmra.mxu2 %vm176_vm0, %v4516_v35  ;;  %2080 = vmatmul.f32.gmra.mxu3 %v6982_v19  ;;  %9148 = vst [vmem:[#allocation35_spill] sm:$0xff] %v6998_v54  ;;  %v1940_v35 = vld [vmem:[%s8680_s3 + $0x160] sm:$0xff] }
 0x3e3   :  { %2363 = vmatpush.msrb.mxu1 %v1940_v35 }
 0x3e5   :  { %v6991_v27 = vpop.f32.mrf.mxu2  ;;  %v6993_v31 = vpop.f32.mrf.mxu3 }
 0x3e6   :  { %9144 = vst [vmem:[#allocation386_spill] sm:$0xff] %v6991_v27  ;;  %v6995_v23 = vpop.f32.mrf.mxu1 }
 0x3e7   :  { %9145 = vst [vmem:[#allocation387_spill] sm:$0xff] %v6993_v31 }
 0x3e8   :  { %9146 = vst [vmem:[#allocation388_spill] sm:$0xff] %v6995_v23  ;;  %v9153_v23 = vld [vmem:[#allocation38_spill] sm:$0xff] }
 0x3e9   :  { %4322 = vmatmul.msk.f32.gmra.mxu1 %vm176_vm0, %v4520_v44  ;;  %2289 = vmatmul.f32.gmra.mxu0 %v6982_v19  ;;  %v7019_v31 = vmax.f32 %v9153_v23, 0.0  ;;  %v7026_v19 = vpop.f32.mrf.mxu0 }
 0x3ea   :  { %4383 = vmatmul.msk.f32.gmra.mxu2 %vm176_vm0, %v4517_v5  ;;  %2083 = vmatmul.f32.gmra.mxu3 %v6998_v54  ;;  %v4521_v5 = vld [vmem:[%s8677_s0 + $0x170] sm:$0xff]  ;;  %9155 = vst [vmem:[#allocation393_spill] sm:$0xff] %v7026_v19  ;;  %v4523_v19 = vld [vmem:[%s8677_s0 + $0x180] sm:$0xff] }
 0x3eb   :  { %9154 = vst [vmem:[#allocation38_spill] sm:$0xff] %v7019_v31 }
 0x3ed   :  { %v7012_v41 = vpop.f32.mrf.mxu2  ;;  %v7014_v27 = vpop.f32.mrf.mxu3 }
 0x3ee   :  { %9150 = vst [vmem:[#allocation390_spill] sm:$0xff] %v7012_v41  ;;  %v7016_v62 = vpop.f32.mrf.mxu1 }
 0x3ef   :  { %9151 = vst [vmem:[#allocation391_spill] sm:$0xff] %v7014_v27 }
 0x3f0   :  { %9152 = vst [vmem:[#allocation392_spill] sm:$0xff] %v7016_v62  ;;  %v9159_v62 = vld [vmem:[#allocation41_spill] sm:$0xff] }
 0x3f1   :  { %4323 = vmatmul.msk.f32.gmra.mxu1 %vm176_vm0, %v4521_v5  ;;  %2292 = vmatmul.f32.gmra.mxu0 %v6998_v54  ;;  %v7037_v27 = vmax.f32 %v9159_v62, 0.0 }
 0x3f2   :  { %4384 = vmatmul.msk.f32.gmra.mxu2 %vm176_vm0, %v4518_v59  ;;  %2086 = vmatmul.f32.gmra.mxu3 %v7019_v31  ;;  %v7046_v59 = vpop.f32.mrf.mxu0 }
 0x3f3   :  { %9160 = vst [vmem:[#allocation41_spill] sm:$0xff] %v7037_v27 }
 0x3f4   :  { %9161 = vst [vmem:[#allocation397_spill] sm:$0xff] %v7046_v59  ;;  %v4524_v59 = vld [vmem:[%s8677_s0 + $0x188] sm:$0xff] }
 0x3f5   :  { %v7030_v35 = vpop.f32.mrf.mxu2  ;;  %v7032_v41 = vpop.f32.mrf.mxu3 }
 0x3f6   :  { %9156 = vst [vmem:[#allocation394_spill] sm:$0xff] %v7030_v35  ;;  %v7034_v23 = vpop.f32.mrf.mxu1 }
 0x3f7   :  { %9157 = vst [vmem:[#allocation395_spill] sm:$0xff] %v7032_v41 }
 0x3f8   :  { %9158 = vst [vmem:[#allocation396_spill] sm:$0xff] %v7034_v23  ;;  %v9165_v23 = vld [vmem:[#allocation44_spill] sm:$0xff] }
 0x3f9   :  { %4324 = vmatmul.msk.f32.gmra.mxu1 %vm176_vm0, %v4522_v38  ;;  %2295 = vmatmul.f32.gmra.mxu0 %v7019_v31  ;;  %v7055_v41 = vmax.f32 %v9165_v23, 0.0 }
 0x3fa   :  { %4385 = vmatmul.msk.f32.gmra.mxu2 %vm176_vm0, %v4519_v20  ;;  %2089 = vmatmul.f32.gmra.mxu3 %v7037_v27  ;;  %v7068_v31 = vpop.f32.mrf.mxu0 }
 0x3fb   :  { %9166 = vst [vmem:[#allocation44_spill] sm:$0xff] %v7055_v41 }
 0x3fc   :  { %9169 = vst [vmem:[#allocation403_spill] sm:$0xff] %v7068_v31 }
 0x3fd   :  { %v7048_v35 = vpop.f32.mrf.mxu2  ;;  %v7050_v54 = vpop.f32.mrf.mxu3 }
 0x3fe   :  { %9162 = vst [vmem:[#allocation398_spill] sm:$0xff] %v7048_v35  ;;  %v7052_v62 = vpop.f32.mrf.mxu1 }
 0x3ff   :  { %9163 = vst [vmem:[#allocation399_spill] sm:$0xff] %v7050_v54 }
 0x400   :  { %9164 = vst [vmem:[#allocation400_spill] sm:$0xff] %v7052_v62  ;;  %v9171_v62 = vld [vmem:[#allocation47_spill] sm:$0xff] }
 0x401   :  { %4325 = vmatmul.msk.f32.gmra.mxu1 %vm176_vm0, %v4523_v19  ;;  %2298 = vmatmul.f32.gmra.mxu0 %v7037_v27  ;;  %v7073_v54 = vmax.f32 %v9171_v62, 0.0 }
 0x402   :  { %4386 = vmatmul.msk.f32.gmra.mxu2 %vm176_vm0, %v4520_v44  ;;  %2092 = vmatmul.f32.gmra.mxu3 %v7055_v41  ;;  %v1937_v44 = vld [vmem:[%s8680_s3 + $0x148] sm:$0xff]  ;;  %v7094_v31 = vpop.f32.mrf.mxu0 }
 0x403   :  { %9172 = vst [vmem:[#allocation47_spill] sm:$0xff] %v7073_v54  ;;  %2364 = vmatpush.msrb.mxu1 %v1937_v44 }
 0x404   :  { %9178 = vst [vmem:[#allocation408_spill] sm:$0xff] %v7094_v31  ;;  %v4527_v31 = vld [vmem:[%s8677_s0 + $0x1a0] sm:$0xff] }
 0x405   :  { %v7064_v20 = vpop.f32.mrf.mxu2  ;;  %v7066_v35 = vpop.f32.mrf.mxu3 }
 0x406   :  { %9167 = vst [vmem:[#allocation401_spill] sm:$0xff] %v7064_v20  ;;  %v7070_v23 = vpop.f32.mrf.mxu1 }
 0x407   :  { %9168 = vst [vmem:[#allocation402_spill] sm:$0xff] %v7066_v35 }
 0x408   :  { %9170 = vst [vmem:[#allocation404_spill] sm:$0xff] %v7070_v23  ;;  %v9176_v23 = vld [vmem:[#allocation50_spill] sm:$0xff] }
 0x409   :  { %4326 = vmatmul.msk.f32.gmra.mxu1 %vm176_vm0, %v4524_v59  ;;  %2301 = vmatmul.f32.gmra.mxu0 %v7055_v41  ;;  %v7092_v35 = vmax.f32 %v9176_v23, 0.0  ;;  %v9182_v41 = vld [vmem:[#allocation13_spill] sm:$0xff] }
 0x40a   :  { %4387 = vmatmul.msk.f32.gmra.mxu2 %vm176_vm0, %v4521_v5  ;;  %2095 = vmatmul.f32.gmra.mxu3 %v7073_v54  ;;  %v4525_v5 = vld [vmem:[%s8677_s0 + $0x190] sm:$0xff] }
 0x40b   :  { %9177 = vst [vmem:[#allocation50_spill] sm:$0xff] %v7092_v35 }
 0x40d   :  { %v7085_v20 = vpop.f32.mrf.mxu2  ;;  %v7087_v62 = vpop.f32.mrf.mxu3 }
 0x40e   :  { %9173 = vst [vmem:[#allocation405_spill] sm:$0xff] %v7085_v20  ;;  %v7089_v27 = vpop.f32.mrf.mxu1 }
 0x40f   :  { %9174 = vst [vmem:[#allocation406_spill] sm:$0xff] %v7087_v62  ;;  %v4526_v62 = vld [vmem:[%s8677_s0 + $0x198] sm:$0xff] }
 0x410   :  { %9175 = vst [vmem:[#allocation407_spill] sm:$0xff] %v7089_v27  ;;  %v7110_v27 = vmax.f32 %v9182_v41, 0.0 }
 0x411   :  { %4327 = vmatmul.msk.f32.gmra.mxu1 %vm176_vm0, %v4525_v5  ;;  %2304 = vmatmul.f32.gmra.mxu0 %v7073_v54 }
 0x412   :  { %4388 = vmatmul.msk.f32.gmra.mxu2 %vm176_vm0, %v4522_v38  ;;  %2098 = vmatmul.f32.gmra.mxu3 %v7092_v35  ;;  %9183 = vst [vmem:[#allocation13_spill] sm:$0xff] %v7110_v27  ;;  %v7117_v38 = vpop.f32.mrf.mxu0 }
 0x413   :  { %9184 = vst [vmem:[#allocation412_spill] sm:$0xff] %v7117_v38  ;;  %v4528_v38 = vld [vmem:[%s8677_s0 + $0x1a8] sm:$0xff] }
 0x415   :  { %v7103_v44 = vpop.f32.mrf.mxu2  ;;  %v7105_v20 = vpop.f32.mrf.mxu3 }
 0x416   :  { %9179 = vst [vmem:[#allocation409_spill] sm:$0xff] %v7103_v44  ;;  %v7107_v23 = vpop.f32.mrf.mxu1 }
 0x417   :  { %9180 = vst [vmem:[#allocation410_spill] sm:$0xff] %v7105_v20 }
 0x418   :  { %9181 = vst [vmem:[#allocation411_spill] sm:$0xff] %v7107_v23  ;;  %v9188_v23 = vld [vmem:[#allocation15_spill] sm:$0xff] }
 0x419   :  { %4328 = vmatmul.msk.f32.gmra.mxu1 %vm176_vm0, %v4526_v62  ;;  %2307 = vmatmul.f32.gmra.mxu0 %v7092_v35  ;;  %v7128_v20 = vmax.f32 %v9188_v23, 0.0 }
 0x41a   :  { %4389 = vmatmul.msk.f32.gmra.mxu2 %vm176_vm0, %v4523_v19  ;;  %2101 = vmatmul.f32.gmra.mxu3 %v7110_v27  ;;  %v7137_v19 = vpop.f32.mrf.mxu0 }
 0x41b   :  { %9189 = vst [vmem:[#allocation15_spill] sm:$0xff] %v7128_v20 }
 0x41c   :  { %9190 = vst [vmem:[#allocation416_spill] sm:$0xff] %v7137_v19 }
 0x41d   :  { %v7121_v44 = vpop.f32.mrf.mxu2  ;;  %v7123_v54 = vpop.f32.mrf.mxu3 }
 0x41e   :  { %9185 = vst [vmem:[#allocation413_spill] sm:$0xff] %v7121_v44  ;;  %v7125_v41 = vpop.f32.mrf.mxu1 }
 0x41f   :  { %9186 = vst [vmem:[#allocation414_spill] sm:$0xff] %v7123_v54 }
 0x420   :  { %9187 = vst [vmem:[#allocation415_spill] sm:$0xff] %v7125_v41  ;;  %v9194_v41 = vld [vmem:[#allocation17_spill] sm:$0xff] }
 0x421   :  { %4329 = vmatmul.msk.f32.gmra.mxu1 %vm176_vm0, %v4527_v31  ;;  %2310 = vmatmul.f32.gmra.mxu0 %v7110_v27  ;;  %v7146_v54 = vmax.f32 %v9194_v41, 0.0 }
 0x422   :  { %4390 = vmatmul.msk.f32.gmra.mxu2 %vm176_vm0, %v4524_v59  ;;  %2104 = vmatmul.f32.gmra.mxu3 %v7128_v20  ;;  %v1934_v59 = vld [vmem:[%s8680_s3 + $0x130] sm:$0xff]  ;;  %v7162_v27 = vpop.f32.mrf.mxu0 }
 0x423   :  { %9195 = vst [vmem:[#allocation17_spill] sm:$0xff] %v7146_v54  ;;  %2365 = vmatpush.msrb.mxu1 %v1934_v59 }
 0x424   :  { %9198 = vst [vmem:[#allocation422_spill] sm:$0xff] %v7162_v27  ;;  %v4530_v27 = vld [vmem:[%s8677_s0 + $0x1b8] sm:$0xff] }
 0x425   :  { %v7139_v44 = vpop.f32.mrf.mxu2  ;;  %v7141_v35 = vpop.f32.mrf.mxu3 }
 0x426   :  { %9191 = vst [vmem:[#allocation417_spill] sm:$0xff] %v7139_v44  ;;  %v7143_v23 = vpop.f32.mrf.mxu1 }
 0x427   :  { %9192 = vst [vmem:[#allocation418_spill] sm:$0xff] %v7141_v35  ;;  %v9200_v35 = vld [vmem:[#allocation19_spill] sm:$0xff] }
 0x428   :  { %9193 = vst [vmem:[#allocation419_spill] sm:$0xff] %v7143_v23  ;;  %v7167_v19 = vmax.f32 %v9200_v35, 0.0  ;;  %v9205_v35 = vld [vmem:[#allocation21_spill] sm:$0xff] }
 0x429   :  { %4330 = vmatmul.msk.f32.gmra.mxu1 %vm176_vm0, %v4528_v38  ;;  %2313 = vmatmul.f32.gmra.mxu0 %v7128_v20 }
 0x42a   :  { %4391 = vmatmul.msk.f32.gmra.mxu2 %vm176_vm0, %v4525_v5  ;;  %2107 = vmatmul.f32.gmra.mxu3 %v7146_v54  ;;  %9201 = vst [vmem:[#allocation19_spill] sm:$0xff] %v7167_v19  ;;  %v4529_v5 = vld [vmem:[%s8677_s0 + $0x1b0] sm:$0xff] }
 0x42d   :  { %v7158_v44 = vpop.f32.mrf.mxu2  ;;  %v7160_v41 = vpop.f32.mrf.mxu3 }
 0x42e   :  { %9196 = vst [vmem:[#allocation420_spill] sm:$0xff] %v7158_v44  ;;  %v7164_v23 = vpop.f32.mrf.mxu1 }
 0x42f   :  { %9197 = vst [vmem:[#allocation421_spill] sm:$0xff] %v7160_v41  ;;  %v7185_v41 = vpop.f32.mrf.mxu0 }
 0x430   :  { %9199 = vst [vmem:[#allocation423_spill] sm:$0xff] %v7164_v23  ;;  %v7183_v23 = vmax.f32 %v9205_v35, 0.0 }
 0x431   :  { %4331 = vmatmul.msk.f32.gmra.mxu1 %vm176_vm0, %v4529_v5  ;;  %2316 = vmatmul.f32.gmra.mxu0 %v7146_v54  ;;  %9207 = vst [vmem:[#allocation427_spill] sm:$0xff] %v7185_v41  ;;  %v9211_v54 = vld [vmem:[#allocation23_spill] sm:$0xff]  ;;  %v2970_v41 = vld [vmem:[#allocation6 + $0x78] sm:$0xff] }
 0x432   :  { %4392 = vmatmul.msk.f32.gmra.mxu2 %vm176_vm0, %v4526_v62  ;;  %2110 = vmatmul.f32.gmra.mxu3 %v7167_v19  ;;  %9206 = vst [vmem:[#allocation21_spill] sm:$0xff] %v7183_v23 }
 0x433   :  { %3003 = vmatpush.msrb.mxu2 %v2970_v41  ;;  %v9223_v41 = vld [vmem:[#allocation27_spill] sm:$0xff] }
 0x434   :  { %v7246_v15 = vmax.f32 %v9223_v41, 0.0 }
 0x435   :  { %v7176_v59 = vpop.f32.mrf.mxu2  ;;  %v7178_v44 = vpop.f32.mrf.mxu3 }
 0x436   :  { %9202 = vst [vmem:[#allocation424_spill] sm:$0xff] %v7176_v59  ;;  %v7180_v20 = vpop.f32.mrf.mxu1 }
 0x437   :  { %9203 = vst [vmem:[#allocation425_spill] sm:$0xff] %v7178_v44  ;;  %v4531_v44 = vld [vmem:[%s8677_s0 + $0x1c0] sm:$0xff] }
 0x438   :  { %9204 = vst [vmem:[#allocation426_spill] sm:$0xff] %v7180_v20  ;;  %v7201_v20 = vmax.f32 %v9211_v54, 0.0 }
 0x439   :  { %4332 = vmatmul.msk.f32.gmra.mxu1 %vm176_vm0, %v4530_v27  ;;  %2319 = vmatmul.f32.gmra.mxu0 %v7167_v19  ;;  %9224 = vst [vmem:[#allocation27_spill] sm:$0xff] %v7246_v15 }
 0x43a   :  { %4393 = vmatmul.msk.f32.gmra.mxu2 %vm176_vm0, %v4527_v31  ;;  %2113 = vmatmul.f32.gmra.mxu3 %v7183_v23  ;;  %9212 = vst [vmem:[#allocation23_spill] sm:$0xff] %v7201_v20  ;;  %v7208_v31 = vpop.f32.mrf.mxu0 }
 0x43b   :  { %9213 = vst [vmem:[#allocation431_spill] sm:$0xff] %v7208_v31 }
 0x43d   :  { %v7194_v62 = vpop.f32.mrf.mxu2  ;;  %v7196_v59 = vpop.f32.mrf.mxu3 }
 0x43e   :  { %9208 = vst [vmem:[#allocation428_spill] sm:$0xff] %v7194_v62  ;;  %v7198_v35 = vpop.f32.mrf.mxu1 }
 0x43f   :  { %9209 = vst [vmem:[#allocation429_spill] sm:$0xff] %v7196_v59 }
 0x440   :  { %9210 = vst [vmem:[#allocation430_spill] sm:$0xff] %v7198_v35  ;;  %v9217_v35 = vld [vmem:[#allocation25_spill] sm:$0xff] }
 0x441   :  { %4333 = vmatmul.msk.f32.gmra.mxu1 %vm176_vm0, %v4531_v44  ;;  %2322 = vmatmul.f32.gmra.mxu0 %v7183_v23  ;;  %v7219_v59 = vmax.f32 %v9217_v35, 0.0  ;;  %v4532_v23 = vld [vmem:[%s8677_s0 + $0x1c8] sm:$0xff] }
 0x442   :  { %4394 = vmatmul.msk.f32.gmra.mxu2 %vm176_vm0, %v4528_v38  ;;  %2116 = vmatmul.f32.gmra.mxu3 %v7201_v20  ;;  %v1931_v38 = vld [vmem:[%s8680_s3 + $0x118] sm:$0xff]  ;;  %v7231_v35 = vpop.f32.mrf.mxu0 }
 0x443   :  { %9218 = vst [vmem:[#allocation25_spill] sm:$0xff] %v7219_v59  ;;  %2366 = vmatpush.msrb.mxu1 %v1931_v38  ;;  %v1922_v38 = vld [vmem:[%s8680_s3 + $0xd0] sm:$0xff] }
 0x444   :  { %9219 = vst [vmem:[#allocation435_spill] sm:$0xff] %v7231_v35  ;;  %v3002_v35 = vld [vmem:[#allocation6 + $0x178] sm:$0xff] }
 0x445   :  { %v7212_v62 = vpop.f32.mrf.mxu2  ;;  %v7214_v19 = vpop.f32.mrf.mxu3  ;;  %3421 = vmatpush.msrb.mxu0 %v3002_v35  ;;  %v1913_v35 = vld [vmem:[%s8680_s3 + $0x88] sm:$0xff] }
 0x446   :  { %9214 = vst [vmem:[#allocation432_spill] sm:$0xff] %v7212_v62  ;;  %v7216_v54 = vpop.f32.mrf.mxu1  ;;  %v1928_v62 = vld [vmem:[%s8680_s3 + $0x100] sm:$0xff] }
 0x447   :  { %9215 = vst [vmem:[#allocation433_spill] sm:$0xff] %v7214_v19  ;;  %2367 = vmatpush.msrb.mxu1 %v1928_v62  ;;  %v1925_v19 = vld [vmem:[%s8680_s3 + $0xe8] sm:$0xff]  ;;  %v1916_v62 = vld [vmem:[%s8680_s3 + $0xa0] sm:$0xff] }
 0x448   :  { %9216 = vst [vmem:[#allocation434_spill] sm:$0xff] %v7216_v54 }
 0x449   :  { %4334 = vmatmul.msk.f32.gmra.mxu1 %vm176_vm0, %v4532_v23  ;;  %2325 = vmatmul.f32.gmra.mxu0 %v7201_v20 }
 0x44a   :  { %4395 = vmatmul.msk.f32.gmra.mxu2 %vm176_vm0, %v4529_v5  ;;  %2119 = vmatmul.f32.gmra.mxu3 %v7219_v59 }
 0x44b   :  { %2368 = vmatpush.msrb.mxu1 %v1925_v19  ;;  %v1919_v19 = vld [vmem:[%s8680_s3 + $0xb8] sm:$0xff] }
 0x44d   :  { %v7236_v54 = vpop.f32.mrf.mxu2  ;;  %v7238_v20 = vpop.f32.mrf.mxu3  ;;  %2369 = vmatpush.msrb.mxu1 %v1922_v38  ;;  %v7284_v38 = vld [vmem:[%s8677_s0 + $0x1d8] sm:$0xff] }
 0x44e   :  { %9220 = vst [vmem:[#allocation436_spill] sm:$0xff] %v7236_v54  ;;  %v7240_v5 = vpop.f32.mrf.mxu1  ;;  %v7254_v54 = vld [vmem:[%s8677_s0 + $0x1d0] sm:$0xff] }
 0x44f   :  { %9221 = vst [vmem:[#allocation437_spill] sm:$0xff] %v7238_v20  ;;  %2370 = vmatpush.msrb.mxu1 %v1919_v19  ;;  %v9229_v20 = vld [vmem:[#allocation30_spill] sm:$0xff]  ;;  %v1907_v19 = vld [vmem:[%s8680_s3 + $0x58] sm:$0xff] }
 0x450   :  { %9222 = vst [vmem:[#allocation438_spill] sm:$0xff] %v7240_v5  ;;  %v7276_v31 = vmax.f32 %v9229_v20, 0.0  ;;  %v1910_v20 = vld [vmem:[%s8680_s3 + $0x70] sm:$0xff] }
 0x451   :  { %4335 = vmatmul.msk.f32.gmra.mxu1 %vm176_vm0, %v7254_v54  ;;  %2328 = vmatmul.f32.gmra.mxu0 %v7219_v59  ;;  %v7271_v59 = vpop.f32.mrf.mxu0 }
 0x452   :  { %4396 = vmatmul.msk.f32.gmra.mxu2 %vm176_vm0, %v4530_v27  ;;  %2122 = vmatmul.f32.gmra.mxu3 %v7246_v15  ;;  %9227 = vst [vmem:[#allocation441_spill] sm:$0xff] %v7271_v59 }
 0x453   :  { %2371 = vmatpush.msrb.mxu1 %v1916_v62  ;;  %9230 = vst [vmem:[#allocation30_spill] sm:$0xff] %v7276_v31  ;;  %v2969_v62 = vld [vmem:[#allocation6 + $0x70] sm:$0xff] }
 0x454   :  { %3004 = vmatpush.msrb.mxu2 %v2969_v62  ;;  %v1898_v62 = vld [vmem:[%s8680_s3 + $0x10] sm:$0xff] }
 0x455   :  { %v7267_v41 = vpop.f32.mrf.mxu2  ;;  %v7269_v5 = vpop.f32.mrf.mxu3  ;;  %2372 = vmatpush.msrb.mxu1 %v1913_v35 }
 0x456   :  { %9225 = vst [vmem:[#allocation439_spill] sm:$0xff] %v7267_v41  ;;  %v7273_v27 = vpop.f32.mrf.mxu1 }
 0x457   :  { %9226 = vst [vmem:[#allocation440_spill] sm:$0xff] %v7269_v5  ;;  %2373 = vmatpush.msrb.mxu1 %v1910_v20  ;;  %v9234_v5 = vld [vmem:[#allocation33_spill] sm:$0xff] }
 0x458   :  { %9228 = vst [vmem:[#allocation442_spill] sm:$0xff] %v7273_v27  ;;  %v7304_v59 = vmax.f32 %v9234_v5, 0.0  ;;  %v7314_v20 = vld [vmem:[%s8677_s0 + $0x1e0] sm:$0xff]  ;;  %v1901_v5 = vld [vmem:[%s8680_s3 + $0x28] sm:$0xff] }
 0x459   :  { %4336 = vmatmul.msk.f32.gmra.mxu1 %vm176_vm0, %v7284_v38  ;;  %2331 = vmatmul.f32.gmra.mxu0 %v7246_v15  ;;  %v7306_v35 = vpop.f32.mrf.mxu0 }
 0x45a   :  { %4397 = vmatmul.msk.f32.gmra.mxu2 %vm176_vm0, %v4531_v44  ;;  %2125 = vmatmul.f32.gmra.mxu3 %v7276_v31  ;;  %v2968_v44 = vld [vmem:[#allocation6 + $0x68] sm:$0xff]  ;;  %9235 = vst [vmem:[#allocation33_spill] sm:$0xff] %v7304_v59 }
 0x45b   :  { %2374 = vmatpush.msrb.mxu1 %v1907_v19  ;;  %3005 = vmatpush.msrb.mxu2 %v2968_v44  ;;  %9236 = vst [vmem:[#allocation446_spill] sm:$0xff] %v7306_v35  ;;  %v2966_v19 = vld [vmem:[#allocation6 + $0x58] sm:$0xff]  ;;  %v2965_v44 = vld [vmem:[#allocation6 + $0x50] sm:$0xff]  ;;  %v2964_v35 = vld [vmem:[#allocation6 + $0x48] sm:$0xff] }
 0x45d   :  { %v7297_v41 = vpop.f32.mrf.mxu2  ;;  %v7299_v27 = vpop.f32.mrf.mxu3  ;;  %2375 = vmatpush.msrb.mxu1 %v1904_v28  ;;  %3006 = vmatpush.msrb.mxu2 %v2967_v10  ;;  %v9240_v28 = vld [vmem:[#allocation36_spill] sm:$0xff] }
 0x45e   :  { %9231 = vst [vmem:[#allocation443_spill] sm:$0xff] %v7297_v41  ;;  %v7301_v15 = vpop.f32.mrf.mxu1  ;;  %v2985_v41 = vld [vmem:[#allocation6 + $0xf0] sm:$0xff]  ;;  %v7334_v10 = vmax.f32 %v9240_v28, 0.0 }
 0x45f   :  { %9232 = vst [vmem:[#allocation444_spill] sm:$0xff] %v7299_v27  ;;  %2376 = vmatpush.msrb.mxu1 %v1901_v5  ;;  %3007 = vmatpush.msrb.mxu2 %v2966_v19  ;;  %v2984_v27 = vld [vmem:[#allocation6 + $0xe8] sm:$0xff]  ;;  %v2963_v5 = vld [vmem:[#allocation6 + $0x40] sm:$0xff]  ;;  %v2962_v19 = vld [vmem:[#allocation6 + $0x38] sm:$0xff] }
 0x460   :  { %9233 = vst [vmem:[#allocation445_spill] sm:$0xff] %v7301_v15  ;;  %3213 = vmatpush.msrb.mxu3 %v2985_v41 }
 0x461   :  { %4337 = vmatmul.msk.f32.gmra.mxu1 %vm176_vm0, %v7314_v20  ;;  %2334 = vmatmul.f32.gmra.mxu0 %v7276_v31  ;;  %9241 = vst [vmem:[#allocation36_spill] sm:$0xff] %v7334_v10  ;;  %v7344_v41 = vpop.f32.mrf.mxu0 }
 0x462   :  { %4398 = vmatmul.msk.f32.gmra.mxu2 %vm176_vm0, %v4532_v23  ;;  %2128 = vmatmul.f32.gmra.mxu3 %v7304_v59  ;;  %9242 = vst [vmem:[#allocation450_spill] sm:$0xff] %v7344_v41  ;;  %v3001_v41 = vld [vmem:[#allocation6 + $0x170] sm:$0xff] }
 0x463   :  { %2377 = vmatpush.msrb.mxu1 %v1898_v62  ;;  %3008 = vmatpush.msrb.mxu2 %v2965_v44  ;;  %v2981_v62 = vld [vmem:[#allocation6 + $0xd0] sm:$0xff] }
 0x464   :  { %3214 = vmatpush.msrb.mxu3 %v2984_v27  ;;  %v2982_v27 = vld [vmem:[#allocation6 + $0xd8] sm:$0xff]  ;;  %3422 = vmatpush.msrb.mxu0 %v3001_v41  ;;  %v2977_v41 = vld [vmem:[#allocation6 + $0xb0] sm:$0xff] }
 0x465   :  { %v7327_v15 = vpop.f32.mrf.mxu2  ;;  %v7329_v31 = vpop.f32.mrf.mxu3  ;;  %3009 = vmatpush.msrb.mxu2 %v2964_v35  ;;  %v2980_v35 = vld [vmem:[#allocation6 + $0xc8] sm:$0xff] }
 0x466   :  { %9237 = vst [vmem:[#allocation447_spill] sm:$0xff] %v7327_v15  ;;  %v7331_v23 = vpop.f32.mrf.mxu1  ;;  %v7339_v15 = vld [vmem:[%s8677_s0 + $0x1e8] sm:$0xff]  ;;  %3215 = vmatpush.msrb.mxu3 %v2983_v6  ;;  %v7361_v6 = vld [vmem:[%s8677_s0 + $0x1f0] sm:$0xff] }
 0x467   :  { %9238 = vst [vmem:[#allocation448_spill] sm:$0xff] %v7329_v31  ;;  %3010 = vmatpush.msrb.mxu2 %v2963_v5  ;;  %v2961_v31 = vld [vmem:[#allocation6 + $0x30] sm:$0xff]  ;;  %v2979_v5 = vld [vmem:[#allocation6 + $0xc0] sm:$0xff] }
 0x468   :  { %9239 = vst [vmem:[#allocation449_spill] sm:$0xff] %v7331_v23  ;;  %3216 = vmatpush.msrb.mxu3 %v2982_v27  ;;  %v9246_v23 = vld [vmem:[#allocation39_spill] sm:$0xff] }
 0x469   :  { %4338 = vmatmul.msk.f32.gmra.mxu1 %vm176_vm0, %v7339_v15  ;;  %2337 = vmatmul.f32.gmra.mxu0 %v7304_v59  ;;  %v7369_v27 = vpop.f32.mrf.mxu0 }
 0x46a   :  { %4399 = vmatmul.msk.f32.gmra.mxu2 %vm176_vm0, %v7254_v54  ;;  %2131 = vmatmul.f32.gmra.mxu3 %v7334_v10  ;;  %v7356_v54 = vmax.f32 %v9246_v23, 0.0  ;;  %v2960_v23 = vld [vmem:[#allocation6 + $0x28] sm:$0xff]  ;;  %9248 = vst [vmem:[#allocation454_spill] sm:$0xff] %v7369_v27  ;;  %v2955_v27 = vld [vmem:[#allocation6] sm:$0xff] }
 0x46b   :  { %3011 = vmatpush.msrb.mxu2 %v2962_v19  ;;  %3217 = vmatpush.msrb.mxu3 %v2981_v62  ;;  %v2959_v19 = vld [vmem:[#allocation6 + $0x20] sm:$0xff] }
 0x46c   :  { %9247 = vst [vmem:[#allocation39_spill] sm:$0xff] %v7356_v54 }
 0x46d   :  { %v7349_v44 = vpop.f32.mrf.mxu2  ;;  %v7351_v28 = vpop.f32.mrf.mxu3  ;;  %3012 = vmatpush.msrb.mxu2 %v2961_v31  ;;  %3218 = vmatpush.msrb.mxu3 %v2980_v35  ;;  %v2958_v31 = vld [vmem:[#allocation6 + $0x18] sm:$0xff]  ;;  %v4538_v35 = vld [vmem:[%s8677_s0 + $0x1f8] sm:$0xff] }
 0x46e   :  { %9243 = vst [vmem:[#allocation451_spill] sm:$0xff] %v7349_v44  ;;  %v7353_v59 = vpop.f32.mrf.mxu1 }
 0x46f   :  { %9244 = vst [vmem:[#allocation452_spill] sm:$0xff] %v7351_v28  ;;  %3013 = vmatpush.msrb.mxu2 %v2960_v23  ;;  %3219 = vmatpush.msrb.mxu3 %v2979_v5  ;;  %v2957_v23 = vld [vmem:[#allocation6 + $0x10] sm:$0xff]  ;;  %v2976_v5 = vld [vmem:[#allocation6 + $0xa8] sm:$0xff] }
 0x470   :  { %9245 = vst [vmem:[#allocation453_spill] sm:$0xff] %v7353_v59 }
 0x471   :  { %4339 = vmatmul.msk.f32.gmra.mxu1 %vm176_vm0, %v7361_v6  ;;  %2340 = vmatmul.f32.gmra.mxu0 %v7334_v10  ;;  %v2978_v10 = vld [vmem:[#allocation6 + $0xb8] sm:$0xff] }
 0x472   :  { %4400 = vmatmul.msk.f32.gmra.mxu2 %vm176_vm0, %v7284_v38  ;;  %2134 = vmatmul.f32.gmra.mxu3 %v7356_v54  ;;  %v9252_v38 = vld [vmem:[#allocation42_spill] sm:$0xff] }
 0x473   :  { %3014 = vmatpush.msrb.mxu2 %v2959_v19  ;;  %v7378_v28 = vmax.f32 %v9252_v38, 0.0  ;;  %3220 = vmatpush.msrb.mxu3 %v2978_v10  ;;  %v2956_v19 = vld [vmem:[#allocation6 + $0x8] sm:$0xff]  ;;  %v2975_v10 = vld [vmem:[#allocation6 + $0xa0] sm:$0xff] }
 0x475   :  { %v7371_v62 = vpop.f32.mrf.mxu2  ;;  %v7373_v44 = vpop.f32.mrf.mxu3  ;;  %9253 = vst [vmem:[#allocation42_spill] sm:$0xff] %v7378_v28  ;;  %3015 = vmatpush.msrb.mxu2 %v2958_v31  ;;  %3221 = vmatpush.msrb.mxu3 %v2977_v41  ;;  %v2974_v31 = vld [vmem:[#allocation6 + $0x98] sm:$0xff]  ;;  %v2973_v41 = vld [vmem:[#allocation6 + $0x90] sm:$0xff] }
 0x476   :  { %9249 = vst [vmem:[#allocation455_spill] sm:$0xff] %v7371_v62  ;;  %v7375_v59 = vpop.f32.mrf.mxu1 }
 0x477   :  { %9250 = vst [vmem:[#allocation456_spill] sm:$0xff] %v7373_v44  ;;  %3016 = vmatpush.msrb.mxu2 %v2957_v23  ;;  %3222 = vmatpush.msrb.mxu3 %v2976_v5  ;;  %v2972_v23 = vld [vmem:[#allocation6 + $0x88] sm:$0xff] }
 0x478   :  { %9251 = vst [vmem:[#allocation457_spill] sm:$0xff] %v7375_v59  ;;  %v7392_v59 = vpop.f32.mrf.mxu0 }
 0x479   :  { %4340 = vmatmul.msk.f32.gmra.mxu1 %vm176_vm0, %v4538_v35  ;;  %2343 = vmatmul.f32.gmra.mxu0 %v7356_v54 }
 0x47a   :  { %4401 = vmatmul.msk.f32.gmra.mxu2 %vm176_vm0, %v7314_v20  ;;  %2137 = vmatmul.f32.gmra.mxu3 %v7378_v28  ;;  %v9256_v20 = vld [vmem:[#allocation45_spill] sm:$0xff] }
 0x47b   :  { %3017 = vmatpush.msrb.mxu2 %v2956_v19  ;;  %3223 = vmatpush.msrb.mxu3 %v2975_v10  ;;  %v7397_v44 = vmax.f32 %v9256_v20, 0.0  ;;  %v9260_v20 = vld [vmem:[#allocation48_spill] sm:$0xff] }
 0x47d   :  { %v7388_v38 = vpop.f32.mrf.mxu2  ;;  %v7390_v62 = vpop.f32.mrf.mxu3  ;;  %9257 = vst [vmem:[#allocation45_spill] sm:$0xff] %v7397_v44  ;;  %3018 = vmatpush.msrb.mxu2 %v2955_v27  ;;  %3224 = vmatpush.msrb.mxu3 %v2974_v31 }
 0x47e   :  { %9254 = vst [vmem:[#allocation458_spill] sm:$0xff] %v7388_v38  ;;  %v7394_v54 = vpop.f32.mrf.mxu1  ;;  %v7411_v38 = vmax.f32 %v9260_v20, 0.0 }
 0x47f   :  { %9255 = vst [vmem:[#allocation459_spill] sm:$0xff] %v7394_v54  ;;  %3225 = vmatpush.msrb.mxu3 %v2973_v41  ;;  %v9572_v54 = vld [vmem:[#allocation24_spill] sm:$0xff] }
 0x480   :  { %9261 = vst [vmem:[#allocation48_spill] sm:$0xff] %v7411_v38 }
 0x481   :  { %2346 = vmatmul.f32.gmra.mxu0 %v7378_v28  ;;  %2378 = vmatmul.f32.vlgmr.msrb.gmra.mxu1 %v6260_v51  ;;  %v7413_v51 = vpop.f32.mrf.mxu0  ;;  %v9269_v28 = vld [vmem:[#allocation53_spill] sm:$0xff] }
 0x482   :  { %4402 = vmatmul.msk.f32.gmra.mxu2 %vm176_vm0, %v7339_v15  ;;  %2140 = vmatmul.f32.gmra.mxu3 %v7397_v44  ;;  %v2971_v15 = vld [vmem:[#allocation6 + $0x80] sm:$0xff] }
 0x483   :  { %3226 = vmatpush.msrb.mxu3 %v2972_v23  ;;  %v9264_v23 = vld [vmem:[#allocation51_spill] sm:$0xff] }
 0x484   :  { %v7427_v20 = vmax.f32 %v9264_v23, 0.0 }
 0x485   :  { %v7404_v5 = vpop.f32.mrf.mxu2  ;;  %v7406_v19 = vpop.f32.mrf.mxu3  ;;  %3227 = vmatpush.msrb.mxu3 %v2971_v15 }
 0x486   :  { %9258 = vst [vmem:[#allocation460_spill] sm:$0xff] %v7404_v5  ;;  %v7408_v10 = vpop.f32.mrf.mxu1  ;;  %v3000_v5 = vld [vmem:[#allocation6 + $0x168] sm:$0xff] }
 0x487   :  { %9259 = vst [vmem:[#allocation461_spill] sm:$0xff] %v7408_v10  ;;  %3423 = vmatpush.msrb.mxu0 %v3000_v5  ;;  %v9272_v5 = vld [vmem:[#allocation46_spill] sm:$0xff]  ;;  %v9566_v10 = vld [vmem:[#allocation425_spill] sm:$0xff] }
 0x488   :  { %9265 = vst [vmem:[#allocation51_spill] sm:$0xff] %v7427_v20 }
 0x489   :  { %2349 = vmatmul.f32.gmra.mxu0 %v7397_v44  ;;  %2381 = vmatmul.f32.gmra.mxu1 %v6279_v32  ;;  %v7431_v32 = vpop.f32.mrf.mxu0 }
 0x48a   :  { %4403 = vmatmul.msk.f32.gmra.mxu2 %vm176_vm0, %v7361_v6  ;;  %2143 = vmatmul.f32.gmra.mxu3 %v7411_v38  ;;  %v9266_v6 = vld [vmem:[#allocation43_spill] sm:$0xff] }
 0x48b   :  { %v2571_v15 = vmul.f32 %v6560_v18, %v9266_v6  ;;  %v2574_v6 = vmul.f32 %v6578_v8, %v9272_v5  ;;  %v2575_v8 = vmul.f32 %v6582_v37, %v5370_v46  ;;  %v9278_v46 = vld [vmem:[#allocation58_spill] sm:$0xff] }
 0x48c   :  { %v2578_v37 = vmul.f32 %v6600_v2, %v9278_v46  ;;  %v9283_v2 = vld [vmem:[#allocation61_spill] sm:$0xff] }
 0x48d   :  { %v7420_v27 = vpop.f32.mrf.mxu2  ;;  %v7422_v31 = vpop.f32.mrf.mxu3 }
 0x48e   :  { %9262 = vst [vmem:[#allocation462_spill] sm:$0xff] %v7420_v27  ;;  %v7424_v41 = vpop.f32.mrf.mxu1 }
 0x48f   :  { %9263 = vst [vmem:[#allocation463_spill] sm:$0xff] %v7424_v41  ;;  %v9557_v41 = vld [vmem:[#allocation421_spill] sm:$0xff] }
 0x491   :  { %2352 = vmatmul.f32.gmra.mxu0 %v7411_v38  ;;  %2384 = vmatmul.f32.gmra.mxu1 %v6297_v61  ;;  %v7444_v38 = vmax.f32 %v9269_v28, 0.0  ;;  %v2763_v61 = vmul.f32 %v2571_v15, %v5376_v25 }
 0x492   :  { %4404 = vmatmul.msk.f32.gmra.mxu2 %vm176_vm0, %v4538_v35  ;;  %2146 = vmatmul.f32.gmra.mxu3 %v7427_v20  ;;  %v9271_v35 = vld [vmem:[#allocation54_spill] sm:$0xff] }
 0x493   :  { %9270 = vst [vmem:[#allocation53_spill] sm:$0xff] %v7444_v38  ;;  %v2572_v18 = vmul.f32 %v6564_v9, %v9271_v35  ;;  %v9275_v9 = vld [vmem:[#allocation49_spill] sm:$0xff] }
 0x495   :  { %v7437_v27 = vpop.f32.mrf.mxu2  ;;  %v7439_v44 = vpop.f32.mrf.mxu3  ;;  %v2764_v15 = vmul.f32 %v2572_v18, %v6474_v26 }
 0x496   :  { %9267 = vst [vmem:[#allocation43_spill] sm:$0xff] %v7437_v27  ;;  %v7441_v23 = vpop.f32.mrf.mxu1  ;;  %v7454_v27 = vpop.f32.mrf.mxu0 }
 0x497   :  { %9268 = vst [vmem:[#allocation464_spill] sm:$0xff] %v7441_v23 }
 0x499   :  { %2355 = vmatmul.f32.gmra.mxu0 %v7427_v20  ;;  %2387 = vmatmul.f32.gmra.mxu1 %v6315_v50  ;;  %v2766_v50 = vmul.f32 %v2574_v6, %v5392_v52  ;;  %v2767_v52 = vmul.f32 %v2575_v8, %v6492_v30  ;;  %v2770_v30 = vmul.f32 %v2578_v37, %v6510_v34 }
 0x49a   :  { %2149 = vmatmul.f32.gmra.mxu3 %v7444_v38  ;;  %3019 = vmatmul.f32.vlgmr.msrb.gmra.mxu2 %v2763_v61  ;;  %v2577_v61 = vmul.f32 %v6596_v48, %v9275_v9  ;;  %v9279_v48 = vld [vmem:[#allocation52_spill] sm:$0xff]  ;;  %v9284_v9 = vld [vmem:[#allocation55_spill] sm:$0xff] }
 0x49b   :  { %v2580_v18 = vmul.f32 %v6614_v24, %v9279_v48  ;;  %v2581_v24 = vmul.f32 %v6618_v21, %v9283_v2  ;;  %v9288_v21 = vld [vmem:[#allocation64_spill] sm:$0xff] }
 0x49c   :  { %v2584_v37 = vmul.f32 %v6636_v43, %v9288_v21 }
 0x49d   :  { %v7456_v23 = vpop.f32.mrf.mxu2  ;;  %v7458_v28 = vpop.f32.mrf.mxu3 }
 0x49e   :  { %9273 = vst [vmem:[#allocation54_spill] sm:$0xff] %v7456_v23  ;;  %v7460_v25 = vpop.f32.mrf.mxu1  ;;  %v7474_v23 = vpop.f32.mrf.mxu0 }
 0x49f   :  { %9274 = vst [vmem:[#allocation46_spill] sm:$0xff] %v7460_v25 }
 0x4a1   :  { %2358 = vmatmul.f32.gmra.mxu0 %v7444_v38  ;;  %2390 = vmatmul.f32.gmra.mxu1 %v6333_v42  ;;  %v2769_v42 = vmul.f32 %v2577_v61, %v5408_v58  ;;  %v2772_v58 = vmul.f32 %v2580_v18, %v5424_v0  ;;  %v2583_v61 = vmul.f32 %v6632_v4, %v9284_v9  ;;  %v9289_v4 = vld [vmem:[#allocation57_spill] sm:$0xff] }
 0x4a2   :  { %3022 = vmatmul.f32.gmra.mxu2 %v2766_v50  ;;  %3228 = vmatmul.f32.vlgmr.msrb.gmra.mxu3 %v2764_v15  ;;  %v2773_v0 = vmul.f32 %v2581_v24, %v6528_v40  ;;  %v2586_v48 = vmul.f32 %v6650_v16, %v9289_v4  ;;  %v9293_v40 = vld [vmem:[#allocation67_spill] sm:$0xff] }
 0x4a3   :  { %v2775_v46 = vmul.f32 %v2583_v61, %v5440_v57  ;;  %v2776_v57 = vmul.f32 %v2584_v37, %v6546_v47  ;;  %v2587_v43 = vmul.f32 %v6654_v56, %v9293_v40  ;;  %v9298_v47 = vld [vmem:[#allocation70_spill] sm:$0xff] }
 0x4a4   :  { %v2590_v56 = vmul.f32 %v6672_v45, %v9298_v47  ;;  %v2996_v45 = vld [vmem:[#allocation6 + $0x148] sm:$0xff]  ;;  %v9304_v40 = vld [vmem:[#allocation66_spill] sm:$0xff] }
 0x4a5   :  { %v7470_v35 = vpop.f32.mrf.mxu2  ;;  %v7472_v5 = vpop.f32.mrf.mxu3 }
 0x4a6   :  { %9276 = vst [vmem:[#allocation49_spill] sm:$0xff] %v7470_v35  ;;  %v7476_v26 = vpop.f32.mrf.mxu1  ;;  %v7493_v8 = vpop.f32.mrf.mxu0 }
 0x4a7   :  { %9277 = vst [vmem:[#allocation465_spill] sm:$0xff] %v7476_v26 }
 0x4a9   :  { %2393 = vmatmul.f32.gmra.mxu1 %v6351_v60  ;;  %v2999_v60 = vld [vmem:[#allocation6 + $0x160] sm:$0xff] }
 0x4aa   :  { %3025 = vmatmul.f32.gmra.mxu2 %v2769_v42  ;;  %3231 = vmatmul.f32.gmra.mxu3 %v2767_v52 }
 0x4ab   :  { %3424 = vmatpush.msrb.mxu0 %v2999_v60  ;;  %v9294_v60 = vld [vmem:[#allocation60_spill] sm:$0xff] }
 0x4ac   :  { %v2589_v16 = vmul.f32 %v6668_v12, %v9294_v60  ;;  %v9299_v12 = vld [vmem:[#allocation63_spill] sm:$0xff]  ;;  %v2994_v60 = vld [vmem:[#allocation6 + $0x138] sm:$0xff] }
 0x4ad   :  { %v7485_v6 = vpop.f32.mrf.mxu2  ;;  %v7487_v15 = vpop.f32.mrf.mxu3 }
 0x4ae   :  { %9280 = vst [vmem:[#allocation58_spill] sm:$0xff] %v7485_v6  ;;  %v7489_v50 = vpop.f32.mrf.mxu1 }
 0x4af   :  { %9281 = vst [vmem:[#allocation52_spill] sm:$0xff] %v7487_v15  ;;  %v9592_v15 = vld [vmem:[#allocation29_spill] sm:$0xff] }
 0x4b0   :  { %9282 = vst [vmem:[#allocation466_spill] sm:$0xff] %v7489_v50  ;;  %v9496_v50 = vld [vmem:[#allocation37_spill] sm:$0xff] }
 0x4b1   :  { %2396 = vmatmul.f32.gmra.mxu1 %v6369_v36  ;;  %v7509_v36 = vpop.f32.mrf.mxu0 }
 0x4b2   :  { %3028 = vmatmul.f32.gmra.mxu2 %v2772_v58  ;;  %3234 = vmatmul.f32.gmra.mxu3 %v2770_v30 }
 0x4b5   :  { %v7500_v52 = vpop.f32.mrf.mxu2  ;;  %v7502_v42 = vpop.f32.mrf.mxu3 }
 0x4b6   :  { %9285 = vst [vmem:[#allocation61_spill] sm:$0xff] %v7500_v52  ;;  %v7504_v34 = vpop.f32.mrf.mxu1 }
 0x4b7   :  { %9286 = vst [vmem:[#allocation55_spill] sm:$0xff] %v7502_v42  ;;  %v9569_v42 = vld [vmem:[#allocation404_spill] sm:$0xff] }
 0x4b8   :  { %9287 = vst [vmem:[#allocation467_spill] sm:$0xff] %v7504_v34 }
 0x4b9   :  { %2399 = vmatmul.f32.gmra.mxu1 %v6387_v49  ;;  %v2778_v49 = vmul.f32 %v2586_v48, %v5456_v3  ;;  %v7528_v2 = vpop.f32.mrf.mxu0  ;;  %v2779_v3 = vmul.f32 %v2587_v43, %v6562_v14  ;;  %v2595_v43 = vmul.f32 %v6704_v22, %v9304_v40  ;;  %v2991_v22 = vld [vmem:[#allocation6 + $0x120] sm:$0xff] }
 0x4ba   :  { %3031 = vmatmul.f32.gmra.mxu2 %v2775_v46  ;;  %3237 = vmatmul.f32.gmra.mxu3 %v2773_v0  ;;  %v2592_v0 = vmul.f32 %v6686_v53, %v9299_v12  ;;  %v2998_v46 = vld [vmem:[#allocation6 + $0x158] sm:$0xff]  ;;  %v2995_v53 = vld [vmem:[#allocation6 + $0x140] sm:$0xff]  ;;  %v9309_v12 = vld [vmem:[#allocation325_spill] sm:$0xff] }
 0x4bb   :  { %3425 = vmatpush.msrb.mxu0 %v2998_v46  ;;  %v9310_v46 = vld [vmem:[#allocation69_spill] sm:$0xff] }
 0x4bc   :  { %v2784_v48 = vmul.f32 %v2592_v0, %v5488_v7 }
 0x4bd   :  { %v7515_v18 = vpop.f32.mrf.mxu2  ;;  %v7517_v30 = vpop.f32.mrf.mxu3 }
 0x4be   :  { %9290 = vst [vmem:[#allocation64_spill] sm:$0xff] %v7515_v18  ;;  %v7519_v58 = vpop.f32.mrf.mxu1 }
 0x4bf   :  { %9291 = vst [vmem:[#allocation57_spill] sm:$0xff] %v7517_v30 }
 0x4c0   :  { %9292 = vst [vmem:[#allocation468_spill] sm:$0xff] %v7519_v58 }
 0x4c1   :  { %2402 = vmatmul.f32.gmra.mxu1 %v6405_v63  ;;  %v2781_v63 = vmul.f32 %v2589_v16, %v5472_v29  ;;  %v7547_v4 = vpop.f32.mrf.mxu0  ;;  %v2997_v29 = vld [vmem:[#allocation6 + $0x150] sm:$0xff] }
 0x4c2   :  { %3034 = vmatmul.f32.gmra.mxu2 %v2778_v49  ;;  %3240 = vmatmul.f32.gmra.mxu3 %v2776_v57  ;;  %v9303_v57 = vld [vmem:[#allocation73_spill] sm:$0xff] }
 0x4c3   :  { %3426 = vmatpush.msrb.mxu0 %v2997_v29  ;;  %v2593_v49 = vmul.f32 %v6690_v13, %v9303_v57  ;;  %v2992_v13 = vld [vmem:[#allocation6 + $0x128] sm:$0xff] }
 0x4c4   :  { %v9311_v29 = vld [vmem:[#allocation328_spill] sm:$0xff] }
 0x4c5   :  { %v7530_v24 = vpop.f32.mrf.mxu2  ;;  %v7532_v9 = vpop.f32.mrf.mxu3  ;;  %3427 = vmatpush.msrb.mxu0 %v2996_v45 }
 0x4c6   :  { %9295 = vst [vmem:[#allocation67_spill] sm:$0xff] %v7530_v24  ;;  %v7534_v61 = vpop.f32.mrf.mxu1 }
 0x4c7   :  { %9296 = vst [vmem:[#allocation60_spill] sm:$0xff] %v7532_v9  ;;  %3428 = vmatpush.msrb.mxu0 %v2995_v53  ;;  %v9315_v53 = vld [vmem:[#allocation309_spill] sm:$0xff]  ;;  %v9553_v9 = vld [vmem:[#allocation20_spill] sm:$0xff] }
 0x4c8   :  { %9297 = vst [vmem:[#allocation469_spill] sm:$0xff] %v7534_v61 }
 0x4c9   :  { %2405 = vmatmul.f32.gmra.mxu1 %v6423_v17  ;;  %v2782_v17 = vmul.f32 %v2590_v56, %v6580_v1  ;;  %3429 = vmatpush.msrb.mxu0 %v2994_v60  ;;  %v7566_v47 = vpop.f32.mrf.mxu0  ;;  %v9308_v56 = vld [vmem:[#allocation76_spill] sm:$0xff]  ;;  %v9317_v60 = vld [vmem:[#allocation285_spill] sm:$0xff] }
 0x4ca   :  { %3037 = vmatmul.f32.gmra.mxu2 %v2781_v63  ;;  %3243 = vmatmul.f32.gmra.mxu3 %v2779_v3  ;;  %v2785_v3 = vmul.f32 %v2593_v49, %v6598_v33  ;;  %v2787_v63 = vmul.f32 %v2595_v43, %v5504_v11  ;;  %v2596_v0 = vmul.f32 %v9309_v12, %v9308_v56  ;;  %v9316_v49 = vld [vmem:[#allocation85_spill] sm:$0xff]  ;;  %v2988_v43 = vld [vmem:[#allocation6 + $0x108] sm:$0xff] }
 0x4cb   :  { %v9321_v56 = vld [vmem:[#allocation72_spill] sm:$0xff] }
 0x4cc   :  { %v2788_v57 = vmul.f32 %v2596_v0, %v9315_v53  ;;  %v9322_v12 = vld [vmem:[#allocation332_spill] sm:$0xff]  ;;  %v9327_v53 = vld [vmem:[#allocation89_spill] sm:$0xff] }
 0x4cd   :  { %v7543_v21 = vpop.f32.mrf.mxu2  ;;  %v7545_v37 = vpop.f32.mrf.mxu3 }
 0x4ce   :  { %9300 = vst [vmem:[#allocation70_spill] sm:$0xff] %v7543_v21  ;;  %v7549_v14 = vpop.f32.mrf.mxu1 }
 0x4cf   :  { %9301 = vst [vmem:[#allocation63_spill] sm:$0xff] %v7545_v37  ;;  %v9548_v37 = vld [vmem:[#allocation418_spill] sm:$0xff] }
 0x4d0   :  { %9302 = vst [vmem:[#allocation470_spill] sm:$0xff] %v7549_v14 }
 0x4d1   :  { %2408 = vmatmul.f32.gmra.mxu1 %v6441_v39  ;;  %v2993_v39 = vld [vmem:[#allocation6 + $0x130] sm:$0xff] }
 0x4d2   :  { %3040 = vmatmul.f32.gmra.mxu2 %v2784_v48  ;;  %3246 = vmatmul.f32.gmra.mxu3 %v2782_v17  ;;  %v2598_v17 = vmul.f32 %v9311_v29, %v9310_v46  ;;  %v2990_v48 = vld [vmem:[#allocation6 + $0x118] sm:$0xff]  ;;  %v2601_v46 = vmul.f32 %v9322_v12, %v9321_v56 }
 0x4d3   :  { %3430 = vmatpush.msrb.mxu0 %v2993_v39  ;;  %v7582_v39 = vpop.f32.mrf.mxu0 }
 0x4d4   :  { %v2790_v40 = vmul.f32 %v2598_v17, %v9316_v49  ;;  %9318 = vst [vmem:[#allocation328_spill] sm:$0xff] %v7582_v39  ;;  %v2793_v49 = vmul.f32 %v2601_v46, %v9327_v53  ;;  %v9582_v39 = vld [vmem:[#allocation26_spill] sm:$0xff] }
 0x4d5   :  { %v7558_v16 = vpop.f32.mrf.mxu2  ;;  %v7560_v1 = vpop.f32.mrf.mxu3  ;;  %3431 = vmatpush.msrb.mxu0 %v2992_v13  ;;  %v9320_v13 = vld [vmem:[#allocation330_spill] sm:$0xff] }
 0x4d6   :  { %9305 = vst [vmem:[#allocation73_spill] sm:$0xff] %v7558_v16  ;;  %v7562_v7 = vpop.f32.mrf.mxu1 }
 0x4d7   :  { %9306 = vst [vmem:[#allocation66_spill] sm:$0xff] %v7560_v1  ;;  %3432 = vmatpush.msrb.mxu0 %v2991_v22  ;;  %v9539_v1 = vld [vmem:[#allocation414_spill] sm:$0xff] }
 0x4d8   :  { %9307 = vst [vmem:[#allocation471_spill] sm:$0xff] %v7562_v7 }
 0x4d9   :  { %2411 = vmatmul.f32.gmra.mxu1 %v6459_v55  ;;  %3433 = vmatpush.msrb.mxu0 %v2990_v48  ;;  %v2989_v55 = vld [vmem:[#allocation6 + $0x110] sm:$0xff]  ;;  %v9326_v48 = vld [vmem:[#allocation312_spill] sm:$0xff] }
 0x4da   :  { %3043 = vmatmul.f32.gmra.mxu2 %v2787_v63  ;;  %3249 = vmatmul.f32.gmra.mxu3 %v2785_v3  ;;  %v2987_v3 = vld [vmem:[#allocation6 + $0x100] sm:$0xff] }
 0x4db   :  { %3434 = vmatpush.msrb.mxu0 %v2989_v55  ;;  %v9319_v63 = vld [vmem:[#allocation79_spill] sm:$0xff]  ;;  %v7601_v56 = vpop.f32.mrf.mxu0 }
 0x4dc   :  { %v2599_v22 = vmul.f32 %v9320_v13, %v9319_v63  ;;  %v9332_v63 = vld [vmem:[#allocation336_spill] sm:$0xff]  ;;  %9333 = vst [vmem:[#allocation79_spill] sm:$0xff] %v7601_v56 }
 0x4dd   :  { %v7573_v33 = vpop.f32.mrf.mxu2  ;;  %v7575_v11 = vpop.f32.mrf.mxu3  ;;  %3435 = vmatpush.msrb.mxu0 %v2988_v43  ;;  %v9330_v43 = vld [vmem:[#allocation334_spill] sm:$0xff] }
 0x4de   :  { %9312 = vst [vmem:[#allocation76_spill] sm:$0xff] %v7573_v33  ;;  %v7577_v45 = vpop.f32.mrf.mxu1  ;;  %v2791_v55 = vmul.f32 %v2599_v22, %v9326_v48  ;;  %v9337_v22 = vld [vmem:[#allocation315_spill] sm:$0xff]  ;;  %v9338_v48 = vld [vmem:[#allocation93_spill] sm:$0xff] }
 0x4df   :  { %9313 = vst [vmem:[#allocation325_spill] sm:$0xff] %v7575_v11  ;;  %3436 = vmatpush.msrb.mxu0 %v2987_v3  ;;  %v9331_v3 = vld [vmem:[#allocation75_spill] sm:$0xff] }
 0x4e0   :  { %9314 = vst [vmem:[#allocation69_spill] sm:$0xff] %v7577_v45  ;;  %v2604_v13 = vmul.f32 %v9332_v63, %v9331_v3  ;;  %v9343_v3 = vld [vmem:[#allocation340_spill] sm:$0xff] }
 0x4e1   :  { %2414 = vmatmul.f32.gmra.mxu1 %v9317_v60 }
 0x4e2   :  { %3046 = vmatmul.f32.gmra.mxu2 %v2790_v40  ;;  %3252 = vmatmul.f32.gmra.mxu3 %v2788_v57  ;;  %v9328_v40 = vld [vmem:[#allocation289_spill] sm:$0xff]  ;;  %v9329_v57 = vld [vmem:[#allocation82_spill] sm:$0xff]  ;;  %v2796_v53 = vmul.f32 %v2604_v13, %v9338_v48 }
 0x4e3   :  { %v2602_v60 = vmul.f32 %v9330_v43, %v9329_v57  ;;  %v9342_v43 = vld [vmem:[#allocation78_spill] sm:$0xff]  ;;  %v7620_v21 = vpop.f32.mrf.mxu0 }
 0x4e4   :  { %v2607_v63 = vmul.f32 %v9343_v3, %v9342_v43  ;;  %9346 = vst [vmem:[#allocation289_spill] sm:$0xff] %v7620_v21  ;;  %v9354_v43 = vld [vmem:[#allocation344_spill] sm:$0xff] }
 0x4e5   :  { %v7588_v29 = vpop.f32.mrf.mxu2  ;;  %v7590_v0 = vpop.f32.mrf.mxu3  ;;  %v2794_v46 = vmul.f32 %v2602_v60, %v9337_v22  ;;  %v9348_v60 = vld [vmem:[#allocation318_spill] sm:$0xff]  ;;  %v9349_v22 = vld [vmem:[#allocation97_spill] sm:$0xff] }
 0x4e6   :  { %9323 = vst [vmem:[#allocation309_spill] sm:$0xff] %v7588_v29  ;;  %v7592_v17 = vpop.f32.mrf.mxu1  ;;  %v2799_v48 = vmul.f32 %v2607_v63, %v9349_v22  ;;  %v9359_v63 = vld [vmem:[#allocation101_spill] sm:$0xff] }
 0x4e7   :  { %9324 = vst [vmem:[#allocation85_spill] sm:$0xff] %v7590_v0 }
 0x4e8   :  { %9325 = vst [vmem:[#allocation285_spill] sm:$0xff] %v7592_v17 }
 0x4e9   :  { %2417 = vmatmul.f32.gmra.mxu1 %v9328_v40  ;;  %v9341_v40 = vld [vmem:[#allocation338_spill] sm:$0xff] }
 0x4ea   :  { %3049 = vmatmul.f32.gmra.mxu2 %v2793_v49  ;;  %3255 = vmatmul.f32.gmra.mxu3 %v2791_v55  ;;  %v9339_v49 = vld [vmem:[#allocation293_spill] sm:$0xff]  ;;  %v9340_v55 = vld [vmem:[#allocation86_spill] sm:$0xff] }
 0x4eb   :  { %v2605_v57 = vmul.f32 %v9341_v40, %v9340_v55  ;;  %v9353_v40 = vld [vmem:[#allocation81_spill] sm:$0xff] }
 0x4ec   :  { %v2610_v3 = vmul.f32 %v9354_v43, %v9353_v40  ;;  %v9365_v43 = vld [vmem:[#allocation84_spill] sm:$0xff] }
 0x4ed   :  { %v7603_v12 = vpop.f32.mrf.mxu2  ;;  %v7605_v29 = vpop.f32.mrf.mxu3  ;;  %v2797_v13 = vmul.f32 %v2605_v57, %v9348_v60  ;;  %v9358_v57 = vld [vmem:[#allocation321_spill] sm:$0xff] }
 0x4ee   :  { %9334 = vst [vmem:[#allocation330_spill] sm:$0xff] %v7603_v12  ;;  %v7607_v33 = vpop.f32.mrf.mxu1  ;;  %v2802_v22 = vmul.f32 %v2610_v3, %v9359_v63  ;;  %v9369_v3 = vld [vmem:[#allocation59_spill] sm:$0xff]  ;;  %v9370_v63 = vld [vmem:[#allocation324_spill] sm:$0xff] }
 0x4ef   :  { %9335 = vst [vmem:[#allocation72_spill] sm:$0xff] %v7605_v29 }
 0x4f0   :  { %9336 = vst [vmem:[#allocation332_spill] sm:$0xff] %v7607_v33  ;;  %v9362_v33 = vld [vmem:[#allocation301_spill] sm:$0xff] }
 0x4f1   :  { %2420 = vmatmul.f32.gmra.mxu1 %v9339_v49  ;;  %v9352_v49 = vld [vmem:[#allocation342_spill] sm:$0xff] }
 0x4f2   :  { %3052 = vmatmul.f32.gmra.mxu2 %v2796_v53  ;;  %3258 = vmatmul.f32.gmra.mxu3 %v2794_v46  ;;  %v9350_v53 = vld [vmem:[#allocation297_spill] sm:$0xff]  ;;  %v9351_v46 = vld [vmem:[#allocation90_spill] sm:$0xff] }
 0x4f3   :  { %v2608_v55 = vmul.f32 %v9352_v49, %v9351_v46  ;;  %v9363_v46 = vld [vmem:[#allocation94_spill] sm:$0xff] }
 0x4f4   :  { %v9364_v49 = vld [vmem:[#allocation346_spill] sm:$0xff] }
 0x4f5   :  { %v7616_v16 = vpop.f32.mrf.mxu2  ;;  %v7618_v12 = vpop.f32.mrf.mxu3  ;;  %v2800_v60 = vmul.f32 %v2608_v55, %v9358_v57  ;;  %v2611_v40 = vmul.f32 %v9364_v49, %v9363_v46  ;;  %v9376_v46 = vld [vmem:[#allocation350_spill] sm:$0xff] }
 0x4f6   :  { %9344 = vst [vmem:[#allocation312_spill] sm:$0xff] %v7616_v16  ;;  %v7622_v24 = vpop.f32.mrf.mxu1 }
 0x4f7   :  { %9345 = vst [vmem:[#allocation89_spill] sm:$0xff] %v7618_v12 }
 0x4f8   :  { %9347 = vst [vmem:[#allocation82_spill] sm:$0xff] %v7622_v24  ;;  %v9357_v24 = vld [vmem:[#allocation56_spill] sm:$0xff] }
 0x4f9   :  { %2423 = vmatmul.f32.gmra.mxu1 %v9350_v53  ;;  %v7638_v53 = vpop.f32.mrf.mxu0 }
 0x4fa   :  { %3055 = vmatmul.f32.gmra.mxu2 %v2799_v48  ;;  %3261 = vmatmul.f32.gmra.mxu3 %v2797_v13  ;;  %9360 = vst [vmem:[#allocation336_spill] sm:$0xff] %v7638_v53  ;;  %v9361_v13 = vld [vmem:[#allocation299_spill] sm:$0xff] }
 0x4fd   :  { %v7631_v16 = vpop.f32.mrf.mxu2  ;;  %v7633_v18 = vpop.f32.mrf.mxu3 }
 0x4fe   :  { %9355 = vst [vmem:[#allocation334_spill] sm:$0xff] %v7631_v16  ;;  %v2379_v52 = vpop.f32.mrf.mxu1  ;;  %v9366_v16 = vld [vmem:[#allocation348_spill] sm:$0xff] }
 0x4ff   :  { %9356 = vst [vmem:[#allocation75_spill] sm:$0xff] %v7633_v18  ;;  %v2573_v6 = vmul.f32 %v2379_v52, %v9357_v24  ;;  %v2613_v35 = vmul.f32 %v9366_v16, %v9365_v43  ;;  %v9375_v16 = vld [vmem:[#allocation98_spill] sm:$0xff]  ;;  %v9377_v43 = vld [vmem:[#allocation88_spill] sm:$0xff]  ;;  %v9424_v18 = vld [vmem:[#allocation345_spill] sm:$0xff] }
 0x500   :  { %v2614_v49 = vmul.f32 %v9376_v46, %v9375_v16  ;;  %v9386_v16 = vld [vmem:[#allocation102_spill] sm:$0xff] }
 0x501   :  { %v2765_v48 = vmul.f32 %v2573_v6, %v9361_v13  ;;  %2426 = vmatmul.f32.gmra.mxu1 %v9362_v33  ;;  %v2803_v6 = vmul.f32 %v2611_v40, %v9370_v63  ;;  %v9371_v13 = vld [vmem:[#allocation105_spill] sm:$0xff]  ;;  %v7655_v17 = vpop.f32.mrf.mxu0 }
 0x502   :  { %3058 = vmatmul.f32.gmra.mxu2 %v2802_v22  ;;  %3264 = vmatmul.f32.gmra.mxu3 %v2800_v60  ;;  %v2805_v33 = vmul.f32 %v2613_v35, %v9371_v13  ;;  %v9372_v22 = vld [vmem:[#allocation302_spill] sm:$0xff]  ;;  %9374 = vst [vmem:[#allocation293_spill] sm:$0xff] %v7655_v17  ;;  %v9382_v63 = vld [vmem:[#allocation329_spill] sm:$0xff] }
 0x503   :  { %3437 = vmatmul.f32.vlgmr.msrb.gmra.mxu0 %v2765_v48  ;;  %v9373_v48 = vld [vmem:[#allocation303_spill] sm:$0xff]  ;;  %v2806_v13 = vmul.f32 %v2614_v49, %v9382_v63  ;;  %v9394_v63 = vld [vmem:[#allocation333_spill] sm:$0xff]  ;;  %v9544_v17 = vld [vmem:[#allocation18_spill] sm:$0xff] }
 0x505   :  { %v7646_v52 = vpop.f32.mrf.mxu2  ;;  %v7648_v24 = vpop.f32.mrf.mxu3 }
 0x506   :  { %9367 = vst [vmem:[#allocation315_spill] sm:$0xff] %v7646_v52  ;;  %v2382_v55 = vpop.f32.mrf.mxu1  ;;  %v9378_v52 = vld [vmem:[#allocation352_spill] sm:$0xff] }
 0x507   :  { %9368 = vst [vmem:[#allocation93_spill] sm:$0xff] %v7648_v24  ;;  %v2576_v57 = vmul.f32 %v2382_v55, %v9369_v3  ;;  %v2616_v45 = vmul.f32 %v9378_v52, %v9377_v43  ;;  %v9381_v3 = vld [vmem:[#allocation62_spill] sm:$0xff]  ;;  %v9388_v43 = vld [vmem:[#allocation92_spill] sm:$0xff] }
 0x508   :  { %v9387_v52 = vld [vmem:[#allocation354_spill] sm:$0xff] }
 0x509   :  { %v2768_v60 = vmul.f32 %v2576_v57, %v9372_v22  ;;  %2429 = vmatmul.f32.gmra.mxu1 %v9373_v48  ;;  %v9383_v22 = vld [vmem:[#allocation109_spill] sm:$0xff]  ;;  %v2617_v46 = vmul.f32 %v9387_v52, %v9386_v16  ;;  %v7674_v38 = vpop.f32.mrf.mxu0  ;;  %v9399_v16 = vld [vmem:[#allocation358_spill] sm:$0xff] }
 0x50a   :  { %3061 = vmatmul.f32.gmra.mxu2 %v2805_v33  ;;  %3267 = vmatmul.f32.gmra.mxu3 %v2803_v6  ;;  %v2808_v48 = vmul.f32 %v2616_v45, %v9383_v22  ;;  %v9384_v33 = vld [vmem:[#allocation304_spill] sm:$0xff]  ;;  %9390 = vst [vmem:[#allocation78_spill] sm:$0xff] %v7674_v38 }
 0x50b   :  { %3440 = vmatmul.f32.gmra.mxu0 %v2768_v60  ;;  %v9385_v60 = vld [vmem:[#allocation305_spill] sm:$0xff]  ;;  %v2809_v22 = vmul.f32 %v2617_v46, %v9394_v63  ;;  %v9535_v38 = vld [vmem:[#allocation16_spill] sm:$0xff] }
 0x50d   :  { %v7661_v55 = vpop.f32.mrf.mxu2  ;;  %v7663_v40 = vpop.f32.mrf.mxu3 }
 0x50e   :  { %9379 = vst [vmem:[#allocation86_spill] sm:$0xff] %v7661_v55  ;;  %v2385_v35 = vpop.f32.mrf.mxu1  ;;  %v9389_v55 = vld [vmem:[#allocation356_spill] sm:$0xff] }
 0x50f   :  { %9380 = vst [vmem:[#allocation338_spill] sm:$0xff] %v7663_v40  ;;  %v2579_v57 = vmul.f32 %v2385_v35, %v9381_v3  ;;  %v2619_v40 = vmul.f32 %v9389_v55, %v9388_v43  ;;  %v9393_v3 = vld [vmem:[#allocation65_spill] sm:$0xff]  ;;  %v9398_v55 = vld [vmem:[#allocation106_spill] sm:$0xff]  ;;  %v9400_v43 = vld [vmem:[#allocation96_spill] sm:$0xff] }
 0x510   :  { %v2620_v52 = vmul.f32 %v9399_v16, %v9398_v55  ;;  %v9410_v55 = vld [vmem:[#allocation362_spill] sm:$0xff] }
 0x511   :  { %v2771_v6 = vmul.f32 %v2579_v57, %v9384_v33  ;;  %2432 = vmatmul.f32.gmra.mxu1 %v9385_v60  ;;  %v9396_v33 = vld [vmem:[#allocation306_spill] sm:$0xff]  ;;  %v9397_v60 = vld [vmem:[#allocation307_spill] sm:$0xff] }
 0x512   :  { %3064 = vmatmul.f32.gmra.mxu2 %v2808_v48  ;;  %3270 = vmatmul.f32.gmra.mxu3 %v2806_v13  ;;  %v9395_v48 = vld [vmem:[#allocation113_spill] sm:$0xff] }
 0x513   :  { %3443 = vmatmul.f32.gmra.mxu0 %v2771_v6  ;;  %v2811_v13 = vmul.f32 %v2619_v40, %v9395_v48  ;;  %v9404_v40 = vld [vmem:[#allocation68_spill] sm:$0xff] }
 0x515   :  { %v7676_v35 = vpop.f32.mrf.mxu2  ;;  %v7678_v49 = vpop.f32.mrf.mxu3 }
 0x516   :  { %9391 = vst [vmem:[#allocation340_spill] sm:$0xff] %v7676_v35  ;;  %v2388_v45 = vpop.f32.mrf.mxu1  ;;  %v9401_v35 = vld [vmem:[#allocation360_spill] sm:$0xff] }
 0x517   :  { %9392 = vst [vmem:[#allocation318_spill] sm:$0xff] %v7678_v49  ;;  %v2582_v57 = vmul.f32 %v2388_v45, %v9393_v3  ;;  %v2622_v49 = vmul.f32 %v9401_v35, %v9400_v43  ;;  %v7691_v3 = vpop.f32.mrf.mxu0  ;;  %v9409_v35 = vld [vmem:[#allocation110_spill] sm:$0xff]  ;;  %v9411_v43 = vld [vmem:[#allocation100_spill] sm:$0xff] }
 0x518   :  { %9403 = vst [vmem:[#allocation297_spill] sm:$0xff] %v7691_v3  ;;  %v2623_v16 = vmul.f32 %v9410_v55, %v9409_v35  ;;  %v9420_v35 = vld [vmem:[#allocation366_spill] sm:$0xff]  ;;  %v9422_v55 = vld [vmem:[#allocation368_spill] sm:$0xff] }
 0x519   :  { %v2774_v6 = vmul.f32 %v2582_v57, %v9396_v33  ;;  %2435 = vmatmul.f32.gmra.mxu1 %v9397_v60  ;;  %v9405_v57 = vld [vmem:[#allocation337_spill] sm:$0xff]  ;;  %v9408_v60 = vld [vmem:[#allocation310_spill] sm:$0xff] }
 0x51a   :  { %3067 = vmatmul.f32.gmra.mxu2 %v2811_v13  ;;  %3273 = vmatmul.f32.gmra.mxu3 %v2809_v22  ;;  %v2812_v48 = vmul.f32 %v2620_v52, %v9405_v57  ;;  %v9406_v33 = vld [vmem:[#allocation117_spill] sm:$0xff]  ;;  %v9407_v22 = vld [vmem:[#allocation308_spill] sm:$0xff] }
 0x51b   :  { %3446 = vmatmul.f32.gmra.mxu0 %v2774_v6  ;;  %v2814_v13 = vmul.f32 %v2622_v49, %v9406_v33  ;;  %v9414_v57 = vld [vmem:[#allocation341_spill] sm:$0xff] }
 0x51c   :  { %v9415_v33 = vld [vmem:[#allocation121_spill] sm:$0xff] }
 0x51d   :  { %v7689_v7 = vpop.f32.mrf.mxu3  ;;  %v3020_v45 = vpop.f32.mrf.mxu2 }
 0x51e   :  { %9402 = vst [vmem:[#allocation97_spill] sm:$0xff] %v7689_v7  ;;  %v2391_v46 = vpop.f32.mrf.mxu1  ;;  %v9412_v7 = vld [vmem:[#allocation364_spill] sm:$0xff] }
 0x51f   :  { %v2585_v63 = vmul.f32 %v2391_v46, %v9404_v40  ;;  %v2625_v24 = vmul.f32 %v9412_v7, %v9411_v43  ;;  %v9413_v40 = vld [vmem:[#allocation71_spill] sm:$0xff]  ;;  %v9419_v7 = vld [vmem:[#allocation114_spill] sm:$0xff] }
 0x521   :  { %v2777_v6 = vmul.f32 %v2585_v63, %v9407_v22  ;;  %2438 = vmatmul.f32.gmra.mxu1 %v9408_v60  ;;  %v2815_v63 = vmul.f32 %v2623_v16, %v9414_v57  ;;  %v2817_v22 = vmul.f32 %v2625_v24, %v9415_v33  ;;  %v9418_v60 = vld [vmem:[#allocation313_spill] sm:$0xff]  ;;  %v9423_v57 = vld [vmem:[#allocation74_spill] sm:$0xff] }
 0x522   :  { %3070 = vmatmul.f32.gmra.mxu2 %v2814_v13  ;;  %3276 = vmatmul.f32.gmra.mxu3 %v2812_v48  ;;  %v7707_v13 = vpop.f32.mrf.mxu0  ;;  %v9417_v48 = vld [vmem:[#allocation311_spill] sm:$0xff] }
 0x523   :  { %3449 = vmatmul.f32.gmra.mxu0 %v2777_v6  ;;  %9416 = vst [vmem:[#allocation90_spill] sm:$0xff] %v7707_v13 }
 0x525   :  { %v3023_v20 = vpop.f32.mrf.mxu2  ;;  %v3229_v14 = vpop.f32.mrf.mxu3 }
 0x526   :  { %v7702_v46 = vadd.f32 %v3229_v14, %v3020_v45  ;;  %v2394_v52 = vpop.f32.mrf.mxu1  ;;  %v2626_v14 = vmul.f32 %v9420_v35, %v9419_v7  ;;  %v9421_v45 = vld [vmem:[#allocation104_spill] sm:$0xff]  ;;  %v9429_v7 = vld [vmem:[#allocation118_spill] sm:$0xff] }
 0x527   :  { %v2588_v49 = vmul.f32 %v2394_v52, %v9413_v40  ;;  %v2628_v43 = vmul.f32 %v9422_v55, %v9421_v45  ;;  %v9430_v35 = vld [vmem:[#allocation370_spill] sm:$0xff]  ;;  %v9431_v45 = vld [vmem:[#allocation108_spill] sm:$0xff] }
 0x528   :  { %v9432_v55 = vld [vmem:[#allocation372_spill] sm:$0xff] }
 0x529   :  { %v2780_v6 = vmul.f32 %v2588_v49, %v9417_v48  ;;  %2441 = vmatmul.f32.gmra.mxu1 %v9418_v60  ;;  %v2818_v49 = vmul.f32 %v2626_v14, %v9424_v18  ;;  %v9425_v48 = vld [vmem:[#allocation125_spill] sm:$0xff] }
 0x52a   :  { %3073 = vmatmul.f32.gmra.mxu2 %v2817_v22  ;;  %3279 = vmatmul.f32.gmra.mxu3 %v2815_v63  ;;  %v2820_v60 = vmul.f32 %v2628_v43, %v9425_v48  ;;  %v9426_v22 = vld [vmem:[#allocation314_spill] sm:$0xff]  ;;  %v7722_v61 = vpop.f32.mrf.mxu0  ;;  %v9433_v43 = vld [vmem:[#allocation77_spill] sm:$0xff] }
 0x52b   :  { %3452 = vmatmul.f32.gmra.mxu0 %v2780_v6  ;;  %v9427_v6 = vld [vmem:[#allocation316_spill] sm:$0xff]  ;;  %9428 = vst [vmem:[#allocation342_spill] sm:$0xff] %v7722_v61  ;;  %v9434_v48 = vld [vmem:[#allocation349_spill] sm:$0xff]  ;;  %v9447_v61 = vld [vmem:[#allocation322_spill] sm:$0xff] }
 0x52d   :  { %v3026_v52 = vpop.f32.mrf.mxu2  ;;  %v3232_v40 = vpop.f32.mrf.mxu3 }
 0x52e   :  { %v7715_v16 = vadd.f32 %v3232_v40, %v3023_v20  ;;  %v2397_v24 = vpop.f32.mrf.mxu1  ;;  %v2629_v20 = vmul.f32 %v9430_v35, %v9429_v7  ;;  %v2631_v40 = vmul.f32 %v9432_v55, %v9431_v45  ;;  %v9438_v7 = vld [vmem:[#allocation122_spill] sm:$0xff]  ;;  %v9440_v55 = vld [vmem:[#allocation112_spill] sm:$0xff] }
 0x52f   :  { %v2591_v33 = vmul.f32 %v2397_v24, %v9423_v57  ;;  %v9439_v35 = vld [vmem:[#allocation374_spill] sm:$0xff] }
 0x530   :  { %v2632_v45 = vmul.f32 %v9439_v35, %v9438_v7  ;;  %v9448_v7 = vld [vmem:[#allocation126_spill] sm:$0xff] }
 0x531   :  { %v2783_v63 = vmul.f32 %v2591_v33, %v9426_v22  ;;  %2444 = vmatmul.f32.gmra.mxu1 %v9427_v6  ;;  %v2821_v22 = vmul.f32 %v2629_v20, %v9434_v48  ;;  %v9435_v6 = vld [vmem:[#allocation129_spill] sm:$0xff]  ;;  %v9443_v48 = vld [vmem:[#allocation80_spill] sm:$0xff]  ;;  %v9449_v35 = vld [vmem:[#allocation378_spill] sm:$0xff] }
 0x532   :  { %3076 = vmatmul.f32.gmra.mxu2 %v2820_v60  ;;  %3282 = vmatmul.f32.gmra.mxu3 %v2818_v49  ;;  %v2823_v12 = vmul.f32 %v2631_v40, %v9435_v6  ;;  %v9436_v60 = vld [vmem:[#allocation317_spill] sm:$0xff]  ;;  %v7739_v58 = vpop.f32.mrf.mxu0 }
 0x533   :  { %3455 = vmatmul.f32.gmra.mxu0 %v2783_v63  ;;  %v9437_v63 = vld [vmem:[#allocation319_spill] sm:$0xff]  ;;  %9442 = vst [vmem:[#allocation81_spill] sm:$0xff] %v7739_v58  ;;  %v9444_v6 = vld [vmem:[#allocation353_spill] sm:$0xff] }
 0x535   :  { %v3029_v24 = vpop.f32.mrf.mxu2  ;;  %v3235_v57 = vpop.f32.mrf.mxu3 }
 0x536   :  { %v7728_v18 = vadd.f32 %v3235_v57, %v3026_v52  ;;  %v2400_v14 = vpop.f32.mrf.mxu1  ;;  %v9441_v52 = vld [vmem:[#allocation376_spill] sm:$0xff] }
 0x537   :  { %v2594_v33 = vmul.f32 %v2400_v14, %v9433_v43  ;;  %v2634_v57 = vmul.f32 %v9441_v52, %v9440_v55  ;;  %v2635_v55 = vmul.f32 %v9449_v35, %v9448_v7  ;;  %v9450_v52 = vld [vmem:[#allocation116_spill] sm:$0xff]  ;;  %v9458_v7 = vld [vmem:[#allocation130_spill] sm:$0xff] }
 0x538   :  { %v9459_v35 = vld [vmem:[#allocation384_spill] sm:$0xff] }
 0x539   :  { %v2786_v49 = vmul.f32 %v2594_v33, %v9436_v60  ;;  %2447 = vmatmul.f32.gmra.mxu1 %v9437_v63  ;;  %v2824_v60 = vmul.f32 %v2632_v45, %v9444_v6  ;;  %v9454_v6 = vld [vmem:[#allocation357_spill] sm:$0xff] }
 0x53a   :  { %3079 = vmatmul.f32.gmra.mxu2 %v2823_v12  ;;  %3285 = vmatmul.f32.gmra.mxu3 %v2821_v22  ;;  %v9445_v12 = vld [vmem:[#allocation133_spill] sm:$0xff] }
 0x53b   :  { %3458 = vmatmul.f32.gmra.mxu0 %v2786_v49  ;;  %v2826_v22 = vmul.f32 %v2634_v57, %v9445_v12  ;;  %v9446_v49 = vld [vmem:[#allocation320_spill] sm:$0xff]  ;;  %v9455_v12 = vld [vmem:[#allocation137_spill] sm:$0xff] }
 0x53d   :  { %v3032_v14 = vpop.f32.mrf.mxu2  ;;  %v3238_v43 = vpop.f32.mrf.mxu3 }
 0x53e   :  { %v7741_v20 = vadd.f32 %v3238_v43, %v3029_v24  ;;  %v2403_v40 = vpop.f32.mrf.mxu1  ;;  %v9451_v24 = vld [vmem:[#allocation380_spill] sm:$0xff] }
 0x53f   :  { %v2597_v33 = vmul.f32 %v2403_v40, %v9443_v48  ;;  %v2637_v43 = vmul.f32 %v9451_v24, %v9450_v52  ;;  %v7752_v40 = vpop.f32.mrf.mxu0  ;;  %v9453_v48 = vld [vmem:[#allocation83_spill] sm:$0xff]  ;;  %v2638_v52 = vmul.f32 %v9459_v35, %v9458_v7  ;;  %v9460_v24 = vld [vmem:[#allocation120_spill] sm:$0xff]  ;;  %v9468_v7 = vld [vmem:[#allocation134_spill] sm:$0xff] }
 0x540   :  { %9452 = vst [vmem:[#allocation344_spill] sm:$0xff] %v7752_v40  ;;  %v9469_v35 = vld [vmem:[#allocation389_spill] sm:$0xff] }
 0x541   :  { %v2789_v63 = vmul.f32 %v2597_v33, %v9446_v49  ;;  %2450 = vmatmul.f32.gmra.mxu1 %v9447_v61  ;;  %v2827_v61 = vmul.f32 %v2635_v55, %v9454_v6  ;;  %v9463_v6 = vld [vmem:[#allocation361_spill] sm:$0xff] }
 0x542   :  { %3082 = vmatmul.f32.gmra.mxu2 %v2826_v22  ;;  %3288 = vmatmul.f32.gmra.mxu3 %v2824_v60  ;;  %v2829_v60 = vmul.f32 %v2637_v43, %v9455_v12  ;;  %v9456_v22 = vld [vmem:[#allocation323_spill] sm:$0xff]  ;;  %v9464_v12 = vld [vmem:[#allocation141_spill] sm:$0xff] }
 0x543   :  { %3461 = vmatmul.f32.gmra.mxu0 %v2789_v63  ;;  %v9457_v63 = vld [vmem:[#allocation326_spill] sm:$0xff] }
 0x545   :  { %v3035_v58 = vpop.f32.mrf.mxu2  ;;  %v3241_v29 = vpop.f32.mrf.mxu3 }
 0x546   :  { %v7754_v45 = vadd.f32 %v3241_v29, %v3032_v14  ;;  %v2406_v57 = vpop.f32.mrf.mxu1  ;;  %v9461_v29 = vld [vmem:[#allocation383_spill] sm:$0xff] }
 0x547   :  { %v2600_v33 = vmul.f32 %v2406_v57, %v9453_v48  ;;  %v2640_v14 = vmul.f32 %v9461_v29, %v9460_v24  ;;  %v9462_v48 = vld [vmem:[#allocation87_spill] sm:$0xff] }
 0x548   :  { %v9471_v24 = vld [vmem:[#allocation387_spill] sm:$0xff] }
 0x549   :  { %v2792_v49 = vmul.f32 %v2600_v33, %v9456_v22  ;;  %2453 = vmatmul.f32.gmra.mxu1 %v9457_v63  ;;  %v2830_v33 = vmul.f32 %v2638_v52, %v9463_v6  ;;  %v2832_v22 = vmul.f32 %v2640_v14, %v9464_v12  ;;  %v9467_v63 = vld [vmem:[#allocation28_spill] sm:$0xff]  ;;  %v9472_v6 = vld [vmem:[#allocation91_spill] sm:$0xff] }
 0x54a   :  { %3085 = vmatmul.f32.gmra.mxu2 %v2829_v60  ;;  %3291 = vmatmul.f32.gmra.mxu3 %v2827_v61  ;;  %v7770_v60 = vpop.f32.mrf.mxu0  ;;  %v9466_v61 = vld [vmem:[#allocation327_spill] sm:$0xff] }
 0x54b   :  { %3464 = vmatmul.f32.gmra.mxu0 %v2792_v49  ;;  %9465 = vst [vmem:[#allocation56_spill] sm:$0xff] %v7770_v60  ;;  %v9473_v60 = vld [vmem:[#allocation365_spill] sm:$0xff] }
 0x54d   :  { %v3038_v40 = vpop.f32.mrf.mxu2  ;;  %v3244_v34 = vpop.f32.mrf.mxu3 }
 0x54e   :  { %v7765_v57 = vadd.f32 %v3244_v34, %v3035_v58  ;;  %v2409_v55 = vpop.f32.mrf.mxu1  ;;  %v2641_v34 = vmul.f32 %v9469_v35, %v9468_v7  ;;  %v9470_v58 = vld [vmem:[#allocation124_spill] sm:$0xff]  ;;  %v9478_v7 = vld [vmem:[#allocation138_spill] sm:$0xff]  ;;  %v9479_v35 = vld [vmem:[#allocation393_spill] sm:$0xff] }
 0x54f   :  { %v2603_v43 = vmul.f32 %v2409_v55, %v9462_v48  ;;  %v2643_v29 = vmul.f32 %v9471_v24, %v9470_v58  ;;  %v9480_v58 = vld [vmem:[#allocation128_spill] sm:$0xff]  ;;  %v9481_v24 = vld [vmem:[#allocation391_spill] sm:$0xff] }
 0x551   :  { %v2795_v49 = vmul.f32 %v2603_v43, %v9466_v61  ;;  %2456 = vmatmul.f32.gmra.mxu1 %v9467_v63  ;;  %v2833_v43 = vmul.f32 %v2641_v34, %v9473_v60  ;;  %v9474_v61 = vld [vmem:[#allocation145_spill] sm:$0xff] }
 0x552   :  { %3088 = vmatmul.f32.gmra.mxu2 %v2832_v22  ;;  %3294 = vmatmul.f32.gmra.mxu3 %v2830_v33  ;;  %v2835_v63 = vmul.f32 %v2643_v29, %v9474_v61  ;;  %v9475_v22 = vld [vmem:[#allocation331_spill] sm:$0xff]  ;;  %v7785_v13 = vpop.f32.mrf.mxu0  ;;  %v9483_v61 = vld [vmem:[#allocation369_spill] sm:$0xff] }
 0x553   :  { %3467 = vmatmul.f32.gmra.mxu0 %v2795_v49  ;;  %v9476_v49 = vld [vmem:[#allocation31_spill] sm:$0xff]  ;;  %9477 = vst [vmem:[#allocation321_spill] sm:$0xff] %v7785_v13 }
 0x554   :  { %v9482_v29 = vld [vmem:[#allocation95_spill] sm:$0xff] }
 0x555   :  { %v3041_v55 = vpop.f32.mrf.mxu2  ;;  %v3247_v48 = vpop.f32.mrf.mxu3 }
 0x556   :  { %v7778_v52 = vadd.f32 %v3247_v48, %v3038_v40  ;;  %v2412_v14 = vpop.f32.mrf.mxu1  ;;  %v2644_v40 = vmul.f32 %v9479_v35, %v9478_v7  ;;  %v2646_v48 = vmul.f32 %v9481_v24, %v9480_v58  ;;  %v9487_v7 = vld [vmem:[#allocation142_spill] sm:$0xff]  ;;  %v9488_v35 = vld [vmem:[#allocation397_spill] sm:$0xff]  ;;  %v9489_v24 = vld [vmem:[#allocation132_spill] sm:$0xff] }
 0x557   :  { %v2606_v12 = vmul.f32 %v2412_v14, %v9472_v6  ;;  %v2647_v58 = vmul.f32 %v9488_v35, %v9487_v7  ;;  %v9497_v7 = vld [vmem:[#allocation146_spill] sm:$0xff]  ;;  %v9498_v35 = vld [vmem:[#allocation403_spill] sm:$0xff] }
 0x559   :  { %v2798_v33 = vmul.f32 %v2606_v12, %v9475_v22  ;;  %2459 = vmatmul.f32.gmra.mxu1 %v9476_v49  ;;  %v2836_v22 = vmul.f32 %v2644_v40, %v9483_v61  ;;  %v9484_v49 = vld [vmem:[#allocation149_spill] sm:$0xff]  ;;  %v9492_v61 = vld [vmem:[#allocation99_spill] sm:$0xff] }
 0x55a   :  { %3091 = vmatmul.f32.gmra.mxu2 %v2835_v63  ;;  %3297 = vmatmul.f32.gmra.mxu3 %v2833_v43  ;;  %v2838_v13 = vmul.f32 %v2646_v48, %v9484_v49  ;;  %v9485_v63 = vld [vmem:[#allocation335_spill] sm:$0xff]  ;;  %v7802_v0 = vpop.f32.mrf.mxu0  ;;  %v9493_v49 = vld [vmem:[#allocation373_spill] sm:$0xff] }
 0x55b   :  { %3470 = vmatmul.f32.gmra.mxu0 %v2798_v33  ;;  %v9486_v33 = vld [vmem:[#allocation34_spill] sm:$0xff]  ;;  %9491 = vst [vmem:[#allocation101_spill] sm:$0xff] %v7802_v0 }
 0x55d   :  { %v3044_v14 = vpop.f32.mrf.mxu2  ;;  %v3250_v6 = vpop.f32.mrf.mxu3 }
 0x55e   :  { %v7791_v60 = vadd.f32 %v3250_v6, %v3041_v55  ;;  %v2415_v34 = vpop.f32.mrf.mxu1  ;;  %v9490_v55 = vld [vmem:[#allocation395_spill] sm:$0xff] }
 0x55f   :  { %v2609_v12 = vmul.f32 %v2415_v34, %v9482_v29  ;;  %v2649_v6 = vmul.f32 %v9490_v55, %v9489_v24  ;;  %v2650_v24 = vmul.f32 %v9498_v35, %v9497_v7  ;;  %v9499_v55 = vld [vmem:[#allocation136_spill] sm:$0xff]  ;;  %v9507_v7 = vld [vmem:[#allocation150_spill] sm:$0xff] }
 0x560   :  { %v9508_v35 = vld [vmem:[#allocation408_spill] sm:$0xff] }
 0x561   :  { %v2801_v43 = vmul.f32 %v2609_v12, %v9485_v63  ;;  %2462 = vmatmul.f32.gmra.mxu1 %v9486_v33  ;;  %v2839_v63 = vmul.f32 %v2647_v58, %v9493_v49  ;;  %v9503_v49 = vld [vmem:[#allocation377_spill] sm:$0xff] }
 0x562   :  { %3094 = vmatmul.f32.gmra.mxu2 %v2838_v13  ;;  %3300 = vmatmul.f32.gmra.mxu3 %v2836_v22  ;;  %v9494_v13 = vld [vmem:[#allocation153_spill] sm:$0xff] }
 0x563   :  { %3473 = vmatmul.f32.gmra.mxu0 %v2801_v43  ;;  %v2841_v22 = vmul.f32 %v2649_v6, %v9494_v13  ;;  %v9495_v43 = vld [vmem:[#allocation339_spill] sm:$0xff]  ;;  %v9504_v13 = vld [vmem:[#allocation157_spill] sm:$0xff] }
 0x565   :  { %v3047_v34 = vpop.f32.mrf.mxu2  ;;  %v3253_v29 = vpop.f32.mrf.mxu3 }
 0x566   :  { %v7804_v40 = vadd.f32 %v3253_v29, %v3044_v14  ;;  %v2418_v48 = vpop.f32.mrf.mxu1  ;;  %v9500_v14 = vld [vmem:[#allocation399_spill] sm:$0xff] }
 0x567   :  { %v2612_v12 = vmul.f32 %v2418_v48, %v9492_v61  ;;  %v2652_v29 = vmul.f32 %v9500_v14, %v9499_v55  ;;  %v7815_v48 = vpop.f32.mrf.mxu0  ;;  %v9502_v61 = vld [vmem:[#allocation103_spill] sm:$0xff]  ;;  %v2653_v55 = vmul.f32 %v9508_v35, %v9507_v7  ;;  %v9509_v14 = vld [vmem:[#allocation140_spill] sm:$0xff]  ;;  %v9517_v7 = vld [vmem:[#allocation154_spill] sm:$0xff] }
 0x568   :  { %9501 = vst [vmem:[#allocation299_spill] sm:$0xff] %v7815_v48  ;;  %v9518_v35 = vld [vmem:[#allocation412_spill] sm:$0xff] }
 0x569   :  { %v2804_v33 = vmul.f32 %v2612_v12, %v9495_v43  ;;  %2465 = vmatmul.f32.gmra.mxu1 %v9496_v50  ;;  %v2842_v50 = vmul.f32 %v2650_v24, %v9503_v49  ;;  %v9512_v49 = vld [vmem:[#allocation381_spill] sm:$0xff] }
 0x56a   :  { %3097 = vmatmul.f32.gmra.mxu2 %v2841_v22  ;;  %3303 = vmatmul.f32.gmra.mxu3 %v2839_v63  ;;  %v2844_v63 = vmul.f32 %v2652_v29, %v9504_v13  ;;  %v9505_v22 = vld [vmem:[#allocation343_spill] sm:$0xff]  ;;  %v9513_v13 = vld [vmem:[#allocation161_spill] sm:$0xff] }
 0x56b   :  { %3476 = vmatmul.f32.gmra.mxu0 %v2804_v33  ;;  %v9506_v33 = vld [vmem:[#allocation40_spill] sm:$0xff] }
 0x56d   :  { %v3050_v0 = vpop.f32.mrf.mxu2  ;;  %v3256_v3 = vpop.f32.mrf.mxu3 }
 0x56e   :  { %v7817_v58 = vadd.f32 %v3256_v3, %v3047_v34  ;;  %v2421_v6 = vpop.f32.mrf.mxu1  ;;  %v9510_v3 = vld [vmem:[#allocation402_spill] sm:$0xff] }
 0x56f   :  { %v2615_v12 = vmul.f32 %v2421_v6, %v9502_v61  ;;  %v2655_v34 = vmul.f32 %v9510_v3, %v9509_v14  ;;  %v9511_v61 = vld [vmem:[#allocation107_spill] sm:$0xff]  ;;  %v9520_v14 = vld [vmem:[#allocation406_spill] sm:$0xff] }
 0x571   :  { %v2807_v43 = vmul.f32 %v2615_v12, %v9505_v22  ;;  %2468 = vmatmul.f32.gmra.mxu1 %v9506_v33  ;;  %v2845_v12 = vmul.f32 %v2653_v55, %v9512_v49  ;;  %v2847_v22 = vmul.f32 %v2655_v34, %v9513_v13  ;;  %v9516_v33 = vld [vmem:[#allocation12_spill] sm:$0xff]  ;;  %v9521_v49 = vld [vmem:[#allocation111_spill] sm:$0xff] }
 0x572   :  { %3100 = vmatmul.f32.gmra.mxu2 %v2844_v63  ;;  %3306 = vmatmul.f32.gmra.mxu3 %v2842_v50  ;;  %v7833_v63 = vpop.f32.mrf.mxu0  ;;  %v9515_v50 = vld [vmem:[#allocation347_spill] sm:$0xff] }
 0x573   :  { %3479 = vmatmul.f32.gmra.mxu0 %v2807_v43  ;;  %9514 = vst [vmem:[#allocation301_spill] sm:$0xff] %v7833_v63 }
 0x575   :  { %v3053_v48 = vpop.f32.mrf.mxu2  ;;  %v3259_v11 = vpop.f32.mrf.mxu3 }
 0x576   :  { %v7828_v6 = vadd.f32 %v3259_v11, %v3050_v0  ;;  %v2424_v24 = vpop.f32.mrf.mxu1  ;;  %v2656_v11 = vmul.f32 %v9518_v35, %v9517_v7  ;;  %v9519_v0 = vld [vmem:[#allocation144_spill] sm:$0xff]  ;;  %v9526_v7 = vld [vmem:[#allocation14_spill] sm:$0xff] }
 0x577   :  { %v2618_v29 = vmul.f32 %v2424_v24, %v9511_v61  ;;  %v2658_v3 = vmul.f32 %v9520_v14, %v9519_v0  ;;  %v9527_v35 = vld [vmem:[#allocation158_spill] sm:$0xff]  ;;  %v9528_v0 = vld [vmem:[#allocation416_spill] sm:$0xff] }
 0x578   :  { %v9529_v14 = vld [vmem:[#allocation148_spill] sm:$0xff] }
 0x579   :  { %v2810_v43 = vmul.f32 %v2618_v29, %v9515_v50  ;;  %2471 = vmatmul.f32.gmra.mxu1 %v9516_v33  ;;  %v9522_v29 = vld [vmem:[#allocation385_spill] sm:$0xff] }
 0x57a   :  { %3103 = vmatmul.f32.gmra.mxu2 %v2847_v22  ;;  %3309 = vmatmul.f32.gmra.mxu3 %v2845_v12  ;;  %v2848_v50 = vmul.f32 %v2656_v11, %v9522_v29  ;;  %v9523_v33 = vld [vmem:[#allocation165_spill] sm:$0xff] }
 0x57b   :  { %3482 = vmatmul.f32.gmra.mxu0 %v2810_v43  ;;  %v2850_v22 = vmul.f32 %v2658_v3, %v9523_v33  ;;  %v9525_v43 = vld [vmem:[#allocation351_spill] sm:$0xff]  ;;  %v9532_v33 = vld [vmem:[#allocation388_spill] sm:$0xff] }
 0x57d   :  { %v7841_v24 = vpop.f32.mrf.mxu2  ;;  %v3262_v55 = vpop.f32.mrf.mxu3 }
 0x57e   :  { %v7843_v61 = vadd.f32 %v3262_v55, %v3053_v48  ;;  %v2427_v34 = vpop.f32.mrf.mxu1  ;;  %v2659_v48 = vmul.f32 %v9528_v0, %v9527_v35  ;;  %v9530_v55 = vld [vmem:[#allocation410_spill] sm:$0xff] }
 0x57f   :  { %v2621_v13 = vmul.f32 %v2427_v34, %v9521_v49  ;;  %v2661_v26 = vmul.f32 %v9530_v55, %v9529_v14  ;;  %v9531_v49 = vld [vmem:[#allocation115_spill] sm:$0xff]  ;;  %v9536_v35 = vld [vmem:[#allocation162_spill] sm:$0xff]  ;;  %v9538_v55 = vld [vmem:[#allocation152_spill] sm:$0xff] }
 0x580   :  { %v7848_v12 = vpop.f32.mrf.mxu0  ;;  %v9537_v0 = vld [vmem:[#allocation422_spill] sm:$0xff]  ;;  %v2664_v25 = vmul.f32 %v9539_v1, %v9538_v55  ;;  %v9547_v55 = vld [vmem:[#allocation156_spill] sm:$0xff] }
 0x581   :  { %9524 = vst [vmem:[#allocation94_spill] sm:$0xff] %v7848_v12  ;;  %v2813_v63 = vmul.f32 %v2621_v13, %v9525_v43  ;;  %2474 = vmatmul.f32.gmra.mxu1 %v9526_v7  ;;  %v2851_v13 = vmul.f32 %v2659_v48, %v9532_v33  ;;  %v9533_v43 = vld [vmem:[#allocation169_spill] sm:$0xff]  ;;  %v2662_v14 = vmul.f32 %v9537_v0, %v9536_v35  ;;  %v9545_v1 = vld [vmem:[#allocation166_spill] sm:$0xff]  ;;  %v9546_v35 = vld [vmem:[#allocation427_spill] sm:$0xff] }
 0x582   :  { %3106 = vmatmul.f32.gmra.mxu2 %v2850_v22  ;;  %3312 = vmatmul.f32.gmra.mxu3 %v2848_v50  ;;  %v2853_v7 = vmul.f32 %v2661_v26, %v9533_v43  ;;  %v9541_v43 = vld [vmem:[#allocation392_spill] sm:$0xff]  ;;  %v2665_v0 = vmul.f32 %v9546_v35, %v9545_v1  ;;  %v2667_v53 = vmul.f32 %v9548_v37, %v9547_v55  ;;  %v9554_v37 = vld [vmem:[#allocation170_spill] sm:$0xff]  ;;  %v9555_v1 = vld [vmem:[#allocation431_spill] sm:$0xff] }
 0x583   :  { %3485 = vmatmul.f32.gmra.mxu0 %v2813_v63  ;;  %v9534_v63 = vld [vmem:[#allocation355_spill] sm:$0xff]  ;;  %v2668_v35 = vmul.f32 %v9555_v1, %v9554_v37  ;;  %v9556_v55 = vld [vmem:[#allocation160_spill] sm:$0xff] }
 0x584   :  { %v2670_v21 = vmul.f32 %v9557_v41, %v9556_v55  ;;  %v9563_v41 = vld [vmem:[#allocation174_spill] sm:$0xff]  ;;  %v9564_v37 = vld [vmem:[#allocation435_spill] sm:$0xff]  ;;  %v9565_v55 = vld [vmem:[#allocation164_spill] sm:$0xff] }
 0x585   :  { %v7856_v34 = vpop.f32.mrf.mxu2  ;;  %v7858_v11 = vpop.f32.mrf.mxu3  ;;  %v2671_v1 = vmul.f32 %v9564_v37, %v9563_v41  ;;  %v2673_v56 = vmul.f32 %v9566_v10, %v9565_v55  ;;  %v9573_v10 = vld [vmem:[#allocation178_spill] sm:$0xff]  ;;  %v9574_v41 = vld [vmem:[#allocation441_spill] sm:$0xff]  ;;  %v9575_v37 = vld [vmem:[#allocation168_spill] sm:$0xff] }
 0x586   :  { %v2430_v3 = vpop.f32.mrf.mxu1  ;;  %v9576_v55 = vld [vmem:[#allocation429_spill] sm:$0xff] }
 0x587   :  { %v2624_v29 = vmul.f32 %v2430_v3, %v9531_v49  ;;  %v9540_v49 = vld [vmem:[#allocation119_spill] sm:$0xff] }
 0x588   :  { %v7863_v22 = vpop.f32.mrf.mxu0 }
 0x589   :  { %v2816_v50 = vmul.f32 %v2624_v29, %v9534_v63  ;;  %2477 = vmatmul.f32.gmra.mxu1 %v9535_v38  ;;  %v2854_v29 = vmul.f32 %v2662_v14, %v9541_v43  ;;  %v9542_v63 = vld [vmem:[#allocation173_spill] sm:$0xff] }
 0x58a   :  { %3109 = vmatmul.f32.gmra.mxu2 %v2853_v7  ;;  %3315 = vmatmul.f32.gmra.mxu3 %v2851_v13  ;;  %v2856_v38 = vmul.f32 %v2664_v25, %v9542_v63  ;;  %v9543_v13 = vld [vmem:[#allocation359_spill] sm:$0xff]  ;;  %v9550_v63 = vld [vmem:[#allocation396_spill] sm:$0xff] }
 0x58b   :  { %3488 = vmatmul.f32.gmra.mxu0 %v2816_v50 }
 0x58d   :  { %v7871_v3 = vpop.f32.mrf.mxu2  ;;  %v7873_v48 = vpop.f32.mrf.mxu3 }
 0x58e   :  { %v2433_v26 = vpop.f32.mrf.mxu1 }
 0x58f   :  { %v2627_v33 = vmul.f32 %v2433_v26, %v9540_v49  ;;  %v9549_v49 = vld [vmem:[#allocation123_spill] sm:$0xff] }
 0x590   :  { %v7878_v7 = vpop.f32.mrf.mxu0 }
 0x591   :  { %v2819_v50 = vmul.f32 %v2627_v33, %v9543_v13  ;;  %2480 = vmatmul.f32.gmra.mxu1 %v9544_v17  ;;  %v2857_v33 = vmul.f32 %v2665_v0, %v9550_v63  ;;  %v9551_v13 = vld [vmem:[#allocation177_spill] sm:$0xff] }
 0x592   :  { %3112 = vmatmul.f32.gmra.mxu2 %v2856_v38  ;;  %3318 = vmatmul.f32.gmra.mxu3 %v2854_v29  ;;  %v2859_v17 = vmul.f32 %v2667_v53, %v9551_v13  ;;  %v9552_v29 = vld [vmem:[#allocation363_spill] sm:$0xff]  ;;  %v9559_v13 = vld [vmem:[#allocation400_spill] sm:$0xff] }
 0x593   :  { %3491 = vmatmul.f32.gmra.mxu0 %v2819_v50  ;;  %v9558_v53 = vld [vmem:[#allocation127_spill] sm:$0xff]  ;;  %v2860_v30 = vmul.f32 %v2668_v35, %v9559_v13 }
 0x594   :  { %v9568_v13 = vld [vmem:[#allocation131_spill] sm:$0xff] }
 0x595   :  { %v7886_v26 = vpop.f32.mrf.mxu2  ;;  %v7888_v14 = vpop.f32.mrf.mxu3 }
 0x596   :  { %v2436_v25 = vpop.f32.mrf.mxu1 }
 0x597   :  { %v2630_v43 = vmul.f32 %v2436_v25, %v9549_v49 }
 0x598   :  { %v7893_v38 = vpop.f32.mrf.mxu0 }
 0x599   :  { %v2822_v50 = vmul.f32 %v2630_v43, %v9552_v29  ;;  %2483 = vmatmul.f32.gmra.mxu1 %v9553_v9  ;;  %v9560_v43 = vld [vmem:[#allocation181_spill] sm:$0xff] }
 0x59a   :  { %3115 = vmatmul.f32.gmra.mxu2 %v2859_v17  ;;  %3321 = vmatmul.f32.gmra.mxu3 %v2857_v33  ;;  %v2862_v29 = vmul.f32 %v2670_v21, %v9560_v43  ;;  %v9561_v33 = vld [vmem:[#allocation367_spill] sm:$0xff] }
 0x59b   :  { %3494 = vmatmul.f32.gmra.mxu0 %v2822_v50  ;;  %v9562_v50 = vld [vmem:[#allocation22_spill] sm:$0xff] }
 0x59d   :  { %v3068_v25 = vpop.f32.mrf.mxu2  ;;  %v7901_v49 = vpop.f32.mrf.mxu3 }
 0x59e   :  { %v2439_v0 = vpop.f32.mrf.mxu1 }
 0x59f   :  { %v2633_v63 = vmul.f32 %v2439_v0, %v9558_v53 }
 0x5a0   :  { %v7906_v9 = vpop.f32.mrf.mxu0 }
 0x5a1   :  { %v2825_v17 = vmul.f32 %v2633_v63, %v9561_v33  ;;  %2486 = vmatmul.f32.gmra.mxu1 %v9562_v50  ;;  %v2863_v63 = vmul.f32 %v2671_v1, %v9569_v42  ;;  %v9570_v33 = vld [vmem:[#allocation185_spill] sm:$0xff]  ;;  %v9578_v1 = vld [vmem:[#allocation135_spill] sm:$0xff] }
 0x5a2   :  { %3118 = vmatmul.f32.gmra.mxu2 %v2862_v29  ;;  %3324 = vmatmul.f32.gmra.mxu3 %v2860_v30  ;;  %v2865_v50 = vmul.f32 %v2673_v56, %v9570_v33  ;;  %v9571_v30 = vld [vmem:[#allocation371_spill] sm:$0xff] }
 0x5a3   :  { %3497 = vmatmul.f32.gmra.mxu0 %v2825_v17 }
 0x5a5   :  { %v3071_v0 = vpop.f32.mrf.mxu2  ;;  %v3277_v53 = vpop.f32.mrf.mxu3 }
 0x5a6   :  { %v7914_v35 = vadd.f32 %v3277_v53, %v3068_v25  ;;  %v2442_v21 = vpop.f32.mrf.mxu1  ;;  %v2674_v25 = vmul.f32 %v9574_v41, %v9573_v10  ;;  %v2676_v53 = vmul.f32 %v9576_v55, %v9575_v37  ;;  %v9583_v10 = vld [vmem:[#allocation182_spill] sm:$0xff]  ;;  %v9585_v37 = vld [vmem:[#allocation172_spill] sm:$0xff]  ;;  %v9586_v55 = vld [vmem:[#allocation433_spill] sm:$0xff] }
 0x5a7   :  { %v2636_v43 = vmul.f32 %v2442_v21, %v9568_v13  ;;  %v9584_v41 = vld [vmem:[#allocation446_spill] sm:$0xff] }
 0x5a8   :  { %9567 = vst [vmem:[#allocation346_spill] sm:$0xff] %v7914_v35  ;;  %v7919_v29 = vpop.f32.mrf.mxu0  ;;  %v9579_v35 = vld [vmem:[#allocation407_spill] sm:$0xff] }
 0x5a9   :  { %v2828_v17 = vmul.f32 %v2636_v43, %v9571_v30  ;;  %2489 = vmatmul.f32.gmra.mxu1 %v9572_v54  ;;  %v2866_v43 = vmul.f32 %v2674_v25, %v9579_v35  ;;  %v9580_v30 = vld [vmem:[#allocation189_spill] sm:$0xff] }
 0x5aa   :  { %3121 = vmatmul.f32.gmra.mxu2 %v2865_v50  ;;  %3327 = vmatmul.f32.gmra.mxu3 %v2863_v63  ;;  %v2868_v54 = vmul.f32 %v2676_v53, %v9580_v30  ;;  %v9581_v63 = vld [vmem:[#allocation375_spill] sm:$0xff] }
 0x5ab   :  { %3500 = vmatmul.f32.gmra.mxu0 %v2828_v17  ;;  %v9588_v53 = vld [vmem:[#allocation139_spill] sm:$0xff] }
 0x5ad   :  { %v3074_v21 = vpop.f32.mrf.mxu2  ;;  %v3280_v13 = vpop.f32.mrf.mxu3 }
 0x5ae   :  { %v7927_v42 = vadd.f32 %v3280_v13, %v3071_v0  ;;  %v2445_v56 = vpop.f32.mrf.mxu1  ;;  %v2677_v0 = vmul.f32 %v9584_v41, %v9583_v10  ;;  %v2679_v13 = vmul.f32 %v9586_v55, %v9585_v37  ;;  %v9593_v10 = vld [vmem:[#allocation186_spill] sm:$0xff]  ;;  %v9595_v37 = vld [vmem:[#allocation176_spill] sm:$0xff]  ;;  %v9596_v55 = vld [vmem:[#allocation437_spill] sm:$0xff] }
 0x5af   :  { %v2639_v33 = vmul.f32 %v2445_v56, %v9578_v1  ;;  %v9594_v41 = vld [vmem:[#allocation450_spill] sm:$0xff] }
 0x5b0   :  { %9577 = vst [vmem:[#allocation84_spill] sm:$0xff] %v7927_v42  ;;  %v7932_v50 = vpop.f32.mrf.mxu0  ;;  %v9589_v42 = vld [vmem:[#allocation411_spill] sm:$0xff] }
 0x5b1   :  { %v2831_v17 = vmul.f32 %v2639_v33, %v9581_v63  ;;  %2492 = vmatmul.f32.gmra.mxu1 %v9582_v39  ;;  %v2869_v33 = vmul.f32 %v2677_v0, %v9589_v42  ;;  %v9590_v63 = vld [vmem:[#allocation193_spill] sm:$0xff] }
 0x5b2   :  { %3124 = vmatmul.f32.gmra.mxu2 %v2868_v54  ;;  %3330 = vmatmul.f32.gmra.mxu3 %v2866_v43  ;;  %v2871_v39 = vmul.f32 %v2679_v13, %v9590_v63  ;;  %v9591_v43 = vld [vmem:[#allocation379_spill] sm:$0xff] }
 0x5b3   :  { %3503 = vmatmul.f32.gmra.mxu0 %v2831_v17  ;;  %v9598_v13 = vld [vmem:[#allocation143_spill] sm:$0xff] }
 0x5b5   :  { %v3077_v56 = vpop.f32.mrf.mxu2  ;;  %v3283_v1 = vpop.f32.mrf.mxu3 }
 0x5b6   :  { %v7940_v35 = vadd.f32 %v3283_v1, %v3074_v21  ;;  %v2448_v25 = vpop.f32.mrf.mxu1  ;;  %v2680_v21 = vmul.f32 %v9594_v41, %v9593_v10  ;;  %v2682_v1 = vmul.f32 %v9596_v55, %v9595_v37  ;;  %v9602_v10 = vld [vmem:[#allocation32_spill] sm:$0xff]  ;;  %v9604_v41 = vld [vmem:[#allocation454_spill] sm:$0xff] }
 0x5b7   :  { %v2642_v30 = vmul.f32 %v2448_v25, %v9588_v53  ;;  %v9605_v55 = vld [vmem:[#allocation180_spill] sm:$0xff] }
 0x5b8   :  { %9587 = vst [vmem:[#allocation348_spill] sm:$0xff] %v7940_v35  ;;  %v7945_v54 = vpop.f32.mrf.mxu0  ;;  %v9599_v35 = vld [vmem:[#allocation415_spill] sm:$0xff] }
 0x5b9   :  { %v2834_v17 = vmul.f32 %v2642_v30, %v9591_v43  ;;  %2495 = vmatmul.f32.gmra.mxu1 %v9592_v15  ;;  %v2872_v30 = vmul.f32 %v2680_v21, %v9599_v35  ;;  %v9600_v43 = vld [vmem:[#allocation197_spill] sm:$0xff] }
 0x5ba   :  { %3127 = vmatmul.f32.gmra.mxu2 %v2871_v39  ;;  %3333 = vmatmul.f32.gmra.mxu3 %v2869_v33  ;;  %v2874_v15 = vmul.f32 %v2682_v1, %v9600_v43  ;;  %v9601_v33 = vld [vmem:[#allocation382_spill] sm:$0xff] }
 0x5bb   :  { %3506 = vmatmul.f32.gmra.mxu0 %v2834_v17 }
 0x5bd   :  { %v3080_v25 = vpop.f32.mrf.mxu2  ;;  %v3286_v53 = vpop.f32.mrf.mxu3 }
 0x5be   :  { %v7953_v42 = vadd.f32 %v3286_v53, %v3077_v56  ;;  %v2451_v0 = vpop.f32.mrf.mxu1  ;;  %v9603_v56 = vld [vmem:[#allocation190_spill] sm:$0xff]  ;;  %v9606_v53 = vld [vmem:[#allocation440_spill] sm:$0xff] }
 0x5bf   :  { %v2645_v63 = vmul.f32 %v2451_v0, %v9598_v13  ;;  %v2683_v37 = vmul.f32 %v9604_v41, %v9603_v56  ;;  %v2685_v0 = vmul.f32 %v9606_v53, %v9605_v55  ;;  %v9613_v56 = vld [vmem:[#allocation194_spill] sm:$0xff]  ;;  %v9614_v41 = vld [vmem:[#allocation184_spill] sm:$0xff] }
 0x5c0   :  { %9597 = vst [vmem:[#allocation59_spill] sm:$0xff] %v7953_v42  ;;  %v3462_v39 = vpop.f32.mrf.mxu0  ;;  %v9612_v42 = vld [vmem:[#allocation35_spill] sm:$0xff]  ;;  %v9615_v55 = vld [vmem:[#allocation444_spill] sm:$0xff] }
 0x5c1   :  { %v2837_v17 = vmul.f32 %v2645_v63, %v9601_v33  ;;  %v7960_v12 = vadd.f32 %v3462_v39, %v7804_v40  ;;  %2498 = vmatmul.f32.gmra.mxu1 %v9602_v10  ;;  %v9608_v63 = vld [vmem:[#allocation147_spill] sm:$0xff]  ;;  %v9610_v33 = vld [vmem:[#allocation201_spill] sm:$0xff]  ;;  %v2688_v53 = vmul.f32 %v9615_v55, %v9614_v41  ;;  %v9624_v41 = vld [vmem:[#allocation448_spill] sm:$0xff] }
 0x5c2   :  { %3130 = vmatmul.f32.gmra.mxu2 %v2874_v15  ;;  %3336 = vmatmul.f32.gmra.mxu3 %v2872_v30  ;;  %v9609_v40 = vld [vmem:[#allocation419_spill] sm:$0xff]  ;;  %v2877_v10 = vmul.f32 %v2685_v0, %v9610_v33  ;;  %v9611_v30 = vld [vmem:[#allocation386_spill] sm:$0xff] }
 0x5c3   :  { %3509 = vmatmul.f32.gmra.mxu0 %v2837_v17  ;;  %v2875_v39 = vmul.f32 %v2683_v37, %v9609_v40  ;;  %v9618_v33 = vld [vmem:[#allocation423_spill] sm:$0xff] }
 0x5c5   :  { %v3083_v35 = vpop.f32.mrf.mxu2  ;;  %v3289_v21 = vpop.f32.mrf.mxu3 }
 0x5c6   :  { %v7967_v1 = vadd.f32 %v3289_v21, %v3080_v25  ;;  %v2454_v13 = vpop.f32.mrf.mxu1  ;;  %v2686_v25 = vmul.f32 %v7392_v59, %v9613_v56  ;;  %v9622_v59 = vld [vmem:[#allocation198_spill] sm:$0xff]  ;;  %v9623_v56 = vld [vmem:[#allocation188_spill] sm:$0xff] }
 0x5c7   :  { %v2648_v43 = vmul.f32 %v2454_v13, %v9608_v63  ;;  %v9617_v63 = vld [vmem:[#allocation151_spill] sm:$0xff]  ;;  %v2691_v55 = vmul.f32 %v9624_v41, %v9623_v56  ;;  %v9633_v56 = vld [vmem:[#allocation452_spill] sm:$0xff] }
 0x5c8   :  { %9607 = vst [vmem:[#allocation324_spill] sm:$0xff] %v7967_v1  ;;  %v7972_v15 = vpop.f32.mrf.mxu0  ;;  %v9621_v1 = vld [vmem:[#allocation38_spill] sm:$0xff] }
 0x5c9   :  { %v2840_v17 = vmul.f32 %v2648_v43, %v9611_v30  ;;  %2501 = vmatmul.f32.gmra.mxu1 %v9612_v42  ;;  %v2878_v43 = vmul.f32 %v2686_v25, %v9618_v33  ;;  %v9619_v30 = vld [vmem:[#allocation205_spill] sm:$0xff] }
 0x5ca   :  { %3133 = vmatmul.f32.gmra.mxu2 %v2877_v10  ;;  %3339 = vmatmul.f32.gmra.mxu3 %v2875_v39  ;;  %v2880_v42 = vmul.f32 %v2688_v53, %v9619_v30  ;;  %v9620_v39 = vld [vmem:[#allocation390_spill] sm:$0xff] }
 0x5cb   :  { %3512 = vmatmul.f32.gmra.mxu0 %v2840_v17  ;;  %v9627_v30 = vld [vmem:[#allocation426_spill] sm:$0xff] }
 0x5cd   :  { %v3086_v21 = vpop.f32.mrf.mxu2  ;;  %v3292_v13 = vpop.f32.mrf.mxu3 }
 0x5ce   :  { %v7980_v37 = vadd.f32 %v3292_v13, %v3083_v35  ;;  %v2457_v0 = vpop.f32.mrf.mxu1  ;;  %v2689_v35 = vmul.f32 %v7413_v51, %v9622_v59  ;;  %v9631_v51 = vld [vmem:[#allocation202_spill] sm:$0xff]  ;;  %v9632_v59 = vld [vmem:[#allocation192_spill] sm:$0xff] }
 0x5cf   :  { %v2651_v40 = vmul.f32 %v2457_v0, %v9617_v63  ;;  %v9626_v63 = vld [vmem:[#allocation155_spill] sm:$0xff]  ;;  %v2694_v41 = vmul.f32 %v9633_v56, %v9632_v59  ;;  %v9642_v59 = vld [vmem:[#allocation456_spill] sm:$0xff] }
 0x5d0   :  { %9616 = vst [vmem:[#allocation105_spill] sm:$0xff] %v7980_v37  ;;  %v7985_v10 = vpop.f32.mrf.mxu0  ;;  %v9630_v37 = vld [vmem:[#allocation41_spill] sm:$0xff] }
 0x5d1   :  { %v2843_v17 = vmul.f32 %v2651_v40, %v9620_v39  ;;  %2504 = vmatmul.f32.gmra.mxu1 %v9621_v1  ;;  %v2881_v40 = vmul.f32 %v2689_v35, %v9627_v30  ;;  %v9628_v39 = vld [vmem:[#allocation209_spill] sm:$0xff] }
 0x5d2   :  { %3136 = vmatmul.f32.gmra.mxu2 %v2880_v42  ;;  %3342 = vmatmul.f32.gmra.mxu3 %v2878_v43  ;;  %v2883_v1 = vmul.f32 %v2691_v55, %v9628_v39  ;;  %v9629_v43 = vld [vmem:[#allocation394_spill] sm:$0xff] }
 0x5d3   :  { %3515 = vmatmul.f32.gmra.mxu0 %v2843_v17  ;;  %v9636_v39 = vld [vmem:[#allocation430_spill] sm:$0xff] }
 0x5d5   :  { %v3089_v13 = vpop.f32.mrf.mxu2  ;;  %v3295_v0 = vpop.f32.mrf.mxu3 }
 0x5d6   :  { %v7993_v25 = vadd.f32 %v3295_v0, %v3086_v21  ;;  %v2460_v53 = vpop.f32.mrf.mxu1  ;;  %v2692_v21 = vmul.f32 %v7431_v32, %v9631_v51  ;;  %v9640_v32 = vld [vmem:[#allocation206_spill] sm:$0xff]  ;;  %v9641_v51 = vld [vmem:[#allocation196_spill] sm:$0xff] }
 0x5d7   :  { %v2654_v33 = vmul.f32 %v2460_v53, %v9626_v63  ;;  %v9635_v63 = vld [vmem:[#allocation159_spill] sm:$0xff]  ;;  %v2697_v56 = vmul.f32 %v9642_v59, %v9641_v51 }
 0x5d8   :  { %9625 = vst [vmem:[#allocation302_spill] sm:$0xff] %v7993_v25  ;;  %v7998_v42 = vpop.f32.mrf.mxu0  ;;  %v9639_v25 = vld [vmem:[#allocation44_spill] sm:$0xff] }
 0x5d9   :  { %v2846_v17 = vmul.f32 %v2654_v33, %v9629_v43  ;;  %2507 = vmatmul.f32.gmra.mxu1 %v9630_v37  ;;  %v2884_v33 = vmul.f32 %v2692_v21, %v9636_v39  ;;  %v9637_v43 = vld [vmem:[#allocation213_spill] sm:$0xff] }
 0x5da   :  { %3139 = vmatmul.f32.gmra.mxu2 %v2883_v1  ;;  %3345 = vmatmul.f32.gmra.mxu3 %v2881_v40  ;;  %v2886_v37 = vmul.f32 %v2694_v41, %v9637_v43  ;;  %v9638_v40 = vld [vmem:[#allocation398_spill] sm:$0xff] }
 0x5db   :  { %3518 = vmatmul.f32.gmra.mxu0 %v2846_v17  ;;  %v9644_v43 = vld [vmem:[#allocation434_spill] sm:$0xff] }
 0x5dd   :  { %v3092_v0 = vpop.f32.mrf.mxu2  ;;  %v3298_v53 = vpop.f32.mrf.mxu3 }
 0x5de   :  { %v8006_v35 = vadd.f32 %v3298_v53, %v3089_v13  ;;  %v2463_v55 = vpop.f32.mrf.mxu1  ;;  %v2695_v13 = vmul.f32 %v7454_v27, %v9640_v32  ;;  %v9648_v27 = vld [vmem:[#allocation210_spill] sm:$0xff] }
 0x5df   :  { %v2657_v30 = vmul.f32 %v2463_v55, %v9635_v63  ;;  %v9643_v63 = vld [vmem:[#allocation163_spill] sm:$0xff]  ;;  %v2698_v32 = vmul.f32 %v7474_v23, %v9648_v27  ;;  %v8739_v23 = vlaneseq  ;;  %v9656_v27 = vld [vmem:[#allocation204_spill] sm:$0xff] }
 0x5e0   :  { %9634 = vst [vmem:[#allocation303_spill] sm:$0xff] %v8006_v35  ;;  %v8011_v1 = vpop.f32.mrf.mxu0  ;;  %v9647_v35 = vld [vmem:[#allocation47_spill] sm:$0xff] }
 0x5e1   :  { %v2849_v17 = vmul.f32 %v2657_v30, %v9638_v40  ;;  %2510 = vmatmul.f32.gmra.mxu1 %v9639_v25  ;;  %v2887_v30 = vmul.f32 %v2695_v13, %v9644_v43  ;;  %v9645_v40 = vld [vmem:[#allocation217_spill] sm:$0xff]  ;;  %v9651_v43 = vld [vmem:[#allocation438_spill] sm:$0xff] }
 0x5e2   :  { %3142 = vmatmul.f32.gmra.mxu2 %v2886_v37  ;;  %3348 = vmatmul.f32.gmra.mxu3 %v2884_v33  ;;  %v2889_v25 = vmul.f32 %v2697_v56, %v9645_v40  ;;  %v9646_v33 = vld [vmem:[#allocation401_spill] sm:$0xff]  ;;  %v9650_v56 = vld [vmem:[#allocation167_spill] sm:$0xff] }
 0x5e3   :  { %3521 = vmatmul.f32.gmra.mxu0 %v2849_v17  ;;  %v9652_v40 = vld [vmem:[#allocation221_spill] sm:$0xff] }
 0x5e5   :  { %v3095_v53 = vpop.f32.mrf.mxu2  ;;  %v3301_v55 = vpop.f32.mrf.mxu3 }
 0x5e6   :  { %v8019_v21 = vadd.f32 %v3301_v55, %v3092_v0  ;;  %v2466_v41 = vpop.f32.mrf.mxu1  ;;  %v9649_v0 = vld [vmem:[#allocation200_spill] sm:$0xff] }
 0x5e7   :  { %v2660_v39 = vmul.f32 %v2466_v41, %v9643_v63  ;;  %v2700_v51 = vmul.f32 %v7390_v62, %v9649_v0  ;;  %v9655_v62 = vld [vmem:[#allocation214_spill] sm:$0xff]  ;;  %v2703_v0 = vmul.f32 %v7406_v19, %v9656_v27 }
 0x5e8   :  { %v3477_v37 = vpop.f32.mrf.mxu0 }
 0x5e9   :  { %v2852_v17 = vmul.f32 %v2660_v39, %v9646_v33  ;;  %2513 = vmatmul.f32.gmra.mxu1 %v9647_v35  ;;  %v2890_v39 = vmul.f32 %v2698_v32, %v9651_v43  ;;  %v2892_v35 = vmul.f32 %v2700_v51, %v9652_v40  ;;  %v3275_v43 = vadd.f32 %v7901_v49, %v7886_v26 }
 0x5ea   :  { %3145 = vmatmul.f32.gmra.mxu2 %v2889_v25  ;;  %3351 = vmatmul.f32.gmra.mxu3 %v2887_v30  ;;  %v9653_v30 = vld [vmem:[#allocation405_spill] sm:$0xff] }
 0x5eb   :  { %3524 = vmatmul.f32.gmra.mxu0 %v2852_v17  ;;  %v9654_v17 = vld [vmem:[#allocation50_spill] sm:$0xff] }
 0x5ed   :  { %v3098_v59 = vpop.f32.mrf.mxu2  ;;  %v3304_v55 = vpop.f32.mrf.mxu3 }
 0x5ee   :  { %v8030_v41 = vadd.f32 %v3304_v55, %v3095_v53  ;;  %v2469_v13 = vpop.f32.mrf.mxu1  ;;  %v2701_v53 = vmul.f32 %v7493_v8, %v9655_v62  ;;  %v9658_v8 = vld [vmem:[#allocation442_spill] sm:$0xff]  ;;  %v9660_v62 = vld [vmem:[#allocation409_spill] sm:$0xff] }
 0x5ef   :  { %v2663_v63 = vmul.f32 %v2469_v13, %v9650_v56  ;;  %v8044_v56 = vand.u32 127, %v8739_v23  ;;  %v9661_v23 = vld [vmem:[#allocation13_spill] sm:$0xff] }
 0x5f0   :  { %v3480_v25 = vpop.f32.mrf.mxu0 }
 0x5f1   :  { %v2855_v33 = vmul.f32 %v2663_v63, %v9653_v30  ;;  %2516 = vmatmul.f32.gmra.mxu1 %v9654_v17  ;;  %v3272_v63 = vadd.f32 %v7888_v14, %v7871_v3  ;;  %v9659_v30 = vld [vmem:[#allocation225_spill] sm:$0xff]  ;;  %vm3632_vm1 = vcmp.eq.s32.totalorder %v8044_v56, 20  ;;  %v9662_v14 = vld [vmem:[#allocation218_spill] sm:$0xff] }
 0x5f2   :  { %3148 = vmatmul.f32.gmra.mxu2 %v2892_v35  ;;  %3354 = vmatmul.f32.gmra.mxu3 %v2890_v39  ;;  %v9657_v39 = vld [vmem:[#allocation171_spill] sm:$0xff]  ;;  %v2893_v35 = vmul.f32 %v2701_v53, %v9658_v8  ;;  %v2895_v19 = vmul.f32 %v2703_v0, %v9659_v30  ;;  %v2704_v49 = vmul.f32 %v7509_v36, %v9662_v14  ;;  %v9663_v53 = vld [vmem:[#allocation208_spill] sm:$0xff]  ;;  %v9672_v14 = vld [vmem:[#allocation233_spill] sm:$0xff] }
 0x5f3   :  { %3527 = vmatmul.f32.gmra.mxu0 %v2855_v33  ;;  %v3481_v17 = vadd.f32 %v3480_v25, %v3272_v63  ;;  %v9664_v36 = vld [vmem:[#allocation175_spill] sm:$0xff]  ;;  %v3472_v8 = vadd.f32 %v7998_v42, %v7843_v61  ;;  %v3466_v42 = vadd.f32 %v7972_v15, %v7817_v58  ;;  %v3460_v15 = vadd.f32 %v7945_v54, %v7791_v60  ;;  %v9676_v54 = vld [vmem:[#allocation216_spill] sm:$0xff] }
 0x5f4   :  { %v9668_v30 = vld [vmem:[#allocation15_spill] sm:$0xff]  ;;  %v3641_v60 = vsel %vm3632_vm1, 1.0, %v7960_v12  ;;  %v3451_v12 = vadd.f32 %v7906_v9, %v7754_v45  ;;  %v9681_v45 = vld [vmem:[#allocation420_spill] sm:$0xff] }
 0x5f5   :  { %v3101_v55 = vpop.f32.mrf.mxu2  ;;  %v3307_v13 = vpop.f32.mrf.mxu3 }
 0x5f6   :  { %v8041_v32 = vadd.f32 %v3307_v13, %v3098_v59  ;;  %v2472_v51 = vpop.f32.mrf.mxu1  ;;  %v3269_v59 = vadd.f32 %v7873_v48, %v7856_v34  ;;  %v2706_v34 = vmul.f32 %v7422_v31, %v9663_v53  ;;  %v3266_v48 = vadd.f32 %v7858_v11, %v7841_v24  ;;  %v9666_v11 = vld [vmem:[#allocation229_spill] sm:$0xff] }
 0x5f7   :  { %v2666_v40 = vmul.f32 %v2472_v51, %v9657_v39  ;;  %v9665_v39 = vld [vmem:[#allocation445_spill] sm:$0xff] }
 0x5f8   :  { %v3483_v33 = vpop.f32.mrf.mxu0  ;;  %v3478_v3 = vadd.f32 %v3477_v37, %v3269_v59  ;;  %v3647_v37 = vsel %vm3632_vm1, 1.0, %v3481_v17  ;;  %v3475_v0 = vadd.f32 %v8011_v1, %v3266_v48  ;;  %v2896_v24 = vmul.f32 %v2704_v49, %v9665_v39  ;;  %v9667_v1 = vld [vmem:[#allocation413_spill] sm:$0xff]  ;;  %v9669_v59 = vld [vmem:[#allocation212_spill] sm:$0xff] }
 0x5f9   :  { %v2858_v27 = vmul.f32 %v2666_v40, %v9660_v62  ;;  %v3484_v13 = vadd.f32 %v3483_v33, %v3275_v43  ;;  %2519 = vmatmul.f32.gmra.mxu1 %v9661_v23  ;;  %v2898_v40 = vmul.f32 %v2706_v34, %v9666_v11  ;;  %v2709_v61 = vmul.f32 %v7439_v44, %v9669_v59  ;;  %v9670_v62 = vld [vmem:[#allocation222_spill] sm:$0xff]  ;;  %v9673_v53 = vld [vmem:[#allocation449_spill] sm:$0xff] }
 0x5fa   :  { %3151 = vmatmul.f32.gmra.mxu2 %v2895_v19  ;;  %3357 = vmatmul.f32.gmra.mxu3 %v2893_v35  ;;  %v3646_v31 = vsel %vm3632_vm1, 1.0, %v3478_v3  ;;  %v3469_v19 = vadd.f32 %v7985_v10, %v7828_v6  ;;  %v3645_v33 = vsel %vm3632_vm1, 1.0, %v3475_v0  ;;  %v3644_v17 = vsel %vm3632_vm1, 1.0, %v3472_v8  ;;  %v9674_v48 = vld [vmem:[#allocation417_spill] sm:$0xff] }
 0x5fb   :  { %3530 = vmatmul.f32.gmra.mxu0 %v2858_v27  ;;  %v3648_v26 = vsel %vm3632_vm1, 1.0, %v3484_v13  ;;  %v2707_v27 = vmul.f32 %v7528_v2, %v9670_v62  ;;  %v2901_v58 = vmul.f32 %v2709_v61, %v9672_v14  ;;  %v3642_v2 = vsel %vm3632_vm1, 1.0, %v3466_v42  ;;  %v9675_v0 = vld [vmem:[#allocation17_spill] sm:$0xff] }
 0x5fc   :  { %3720 = vmatpush.msra.mxu1 %v3648_v26  ;;  %v3643_v3 = vsel %vm3632_vm1, 1.0, %v3469_v19  ;;  %v9671_v26 = vld [vmem:[#allocation179_spill] sm:$0xff]  ;;  %v9679_v11 = vld [vmem:[#allocation237_spill] sm:$0xff]  ;;  %v3445_v19 = vadd.f32 %v7878_v7, %v7728_v18  ;;  %v3637_v59 = vsel %vm3632_vm1, 1.0, %v3451_v12  ;;  %v3442_v61 = vadd.f32 %v7863_v22, %v7715_v16 }
 0x5fd   :  { %v8066_v25 = vpop.f32.mrf.mxu2  ;;  %v3310_v23 = vpop.f32.mrf.mxu3  ;;  %v2899_v34 = vmul.f32 %v2707_v27, %v9673_v53  ;;  %v9685_v27 = vld [vmem:[#allocation94_spill] sm:$0xff]  ;;  %v9686_v16 = vld [vmem:[#allocation187_spill] sm:$0xff]  ;;  %v9696_v12 = vld [vmem:[#allocation245_spill] sm:$0xff] }
 0x5fe   :  { %v8071_v51 = vadd.f32 %v3310_v23, %v3101_v55  ;;  %v2475_v63 = vpop.f32.mrf.mxu1  ;;  %3721 = vmatpush.msra.mxu1 %v3647_v37  ;;  %v3457_v37 = vadd.f32 %v7932_v50, %v7778_v52  ;;  %v9677_v52 = vld [vmem:[#allocation226_spill] sm:$0xff] }
 0x5ff   :  { %v2669_v43 = vmul.f32 %v2475_v63, %v9664_v36  ;;  %v2712_v63 = vmul.f32 %v7458_v28, %v9676_v54  ;;  %v3454_v36 = vadd.f32 %v7919_v29, %v7765_v57  ;;  %v2710_v50 = vmul.f32 %v7547_v4, %v9677_v52  ;;  %v9678_v57 = vld [vmem:[#allocation183_spill] sm:$0xff] }
 0x600   :  { %v8080_v35 = vpop.f32.mrf.mxu0  ;;  %3722 = vmatpush.msra.mxu1 %v3646_v31  ;;  %v3639_v28 = vsel %vm3632_vm1, 1.0, %v3457_v37  ;;  %v3448_v4 = vadd.f32 %v7893_v38, %v7741_v20  ;;  %v9683_v20 = vld [vmem:[#allocation220_spill] sm:$0xff]  ;;  %v9695_v52 = vld [vmem:[#allocation191_spill] sm:$0xff] }
 0x601   :  { %v2861_v55 = vmul.f32 %v2669_v43, %v9667_v1  ;;  %2522 = vmatmul.f32.gmra.mxu1 %v9668_v30  ;;  %v3640_v43 = vsel %vm3632_vm1, 1.0, %v3460_v15  ;;  %v3638_v1 = vsel %vm3632_vm1, 1.0, %v3454_v36  ;;  %v2715_v38 = vmul.f32 %v7472_v5, %v9683_v20 }
 0x602   :  { %3154 = vmatmul.f32.gmra.mxu2 %v2898_v40  ;;  %3360 = vmatmul.f32.gmra.mxu3 %v2896_v24  ;;  %v2904_v40 = vmul.f32 %v2712_v63, %v9679_v11  ;;  %v3636_v42 = vsel %vm3632_vm1, 1.0, %v3448_v4  ;;  %v3635_v5 = vsel %vm3632_vm1, 1.0, %v3445_v19  ;;  %v9698_v11 = vld [vmem:[#allocation428_spill] sm:$0xff]  ;;  %v9699_v4 = vld [vmem:[#allocation23_spill] sm:$0xff] }
 0x603   :  { %3723 = vmatpush.msra.mxu1 %v3645_v33  ;;  %3533 = vmatmul.f32.gmra.mxu0 %v2861_v55  ;;  %v9680_v55 = vld [vmem:[#allocation453_spill] sm:$0xff]  ;;  %v9682_v33 = vld [vmem:[#allocation19_spill] sm:$0xff] }
 0x604   :  { %v2902_v30 = vmul.f32 %v2710_v50, %v9680_v55  ;;  %v9701_v55 = vld [vmem:[#allocation55_spill] sm:$0xff] }
 0x605   :  { %v8096_v6 = vpop.f32.mrf.mxu2  ;;  %v8098_v10 = vpop.f32.mrf.mxu3  ;;  %3724 = vmatpush.msra.mxu1 %v3644_v17  ;;  %v9684_v17 = vld [vmem:[#allocation230_spill] sm:$0xff] }
 0x606   :  { %v2478_v13 = vpop.f32.mrf.mxu1  ;;  %v2713_v18 = vmul.f32 %v7566_v47, %v9684_v17  ;;  %v3634_v47 = vsel %vm3632_vm1, 1.0, %v3442_v61  ;;  %v9704_v61 = vld [vmem:[#allocation195_spill] sm:$0xff]  ;;  %v9705_v17 = vld [vmem:[#allocation249_spill] sm:$0xff] }
 0x607   :  { %v2672_v44 = vmul.f32 %v2478_v13, %v9671_v26  ;;  %3725 = vmatpush.msra.mxu1 %v3643_v3  ;;  %v3439_v13 = vadd.f32 %v9685_v27, %v7702_v46  ;;  %v9687_v26 = vld [vmem:[#allocation241_spill] sm:$0xff] }
 0x608   :  { %v8106_v49 = vpop.f32.mrf.mxu0  ;;  %v9690_v46 = vld [vmem:[#allocation21_spill] sm:$0xff] }
 0x609   :  { %v2864_v23 = vmul.f32 %v2672_v44, %v9674_v48  ;;  %3726 = vmatpush.msra.mxu1 %v3642_v2  ;;  %v2907_v44 = vmul.f32 %v2715_v38, %v9687_v26  ;;  %v9689_v2 = vld [vmem:[#allocation424_spill] sm:$0xff] }
 0x60a   :  { %2525 = vmatmul.f32.gmra.mxu1 %v9675_v0  ;;  %3157 = vmatmul.f32.gmra.mxu2 %v2901_v58  ;;  %v9688_v58 = vld [vmem:[#allocation457_spill] sm:$0xff]  ;;  %v9691_v48 = vld [vmem:[#allocation224_spill] sm:$0xff]  ;;  %v9693_v0 = vld [vmem:[#allocation234_spill] sm:$0xff] }
 0x60b   :  { %3363 = vmatmul.f32.gmra.mxu3 %v2899_v34  ;;  %3727 = vmatpush.msra.mxu1 %v3641_v60  ;;  %v2905_v15 = vmul.f32 %v2713_v18, %v9688_v58  ;;  %v3633_v34 = vsel %vm3632_vm1, 1.0, %v3439_v13  ;;  %v9694_v60 = vld [vmem:[#allocation328_spill] sm:$0xff]  ;;  %v9706_v13 = vld [vmem:[#allocation461_spill] sm:$0xff]  ;;  %v9711_v58 = vld [vmem:[#allocation242_spill] sm:$0xff] }
 0x60c   :  { %3536 = vmatmul.f32.gmra.mxu0 %v2864_v23  ;;  %v9692_v23 = vld [vmem:[#allocation52_spill] sm:$0xff]  ;;  %v2716_v54 = vmul.f32 %v9694_v60, %v9693_v0  ;;  %v9714_v0 = vld [vmem:[#allocation253_spill] sm:$0xff] }
 0x60d   :  { %v8126_v31 = vpop.f32.mrf.mxu2  ;;  %v8128_v39 = vpop.f32.mrf.mxu3  ;;  %3728 = vmatpush.msra.mxu1 %v3640_v43  ;;  %v2718_v37 = vmul.f32 %v9692_v23, %v9691_v48  ;;  %v9709_v26 = vld [vmem:[#allocation232_spill] sm:$0xff]  ;;  %v9713_v23 = vld [vmem:[#allocation199_spill] sm:$0xff] }
 0x60e   :  { %v2481_v24 = vpop.f32.mrf.mxu1 }
 0x60f   :  { %v2675_v29 = vmul.f32 %v2481_v24, %v9678_v57  ;;  %3729 = vmatpush.msra.mxu1 %v3639_v28  ;;  %v2910_v24 = vmul.f32 %v2718_v37, %v9696_v12  ;;  %v9697_v57 = vld [vmem:[#allocation459_spill] sm:$0xff] }
 0x610   :  { %v8138_v8 = vpop.f32.mrf.mxu0  ;;  %v9717_v12 = vld [vmem:[#allocation27_spill] sm:$0xff] }
 0x611   :  { %v2867_v9 = vmul.f32 %v2675_v29, %v9681_v45  ;;  %3730 = vmatpush.msra.mxu1 %v3638_v1  ;;  %v2908_v29 = vmul.f32 %v2716_v54, %v9697_v57  ;;  %v9700_v1 = vld [vmem:[#allocation228_spill] sm:$0xff]  ;;  %v9702_v45 = vld [vmem:[#allocation238_spill] sm:$0xff] }
 0x612   :  { %2528 = vmatmul.f32.gmra.mxu1 %v9682_v33  ;;  %3160 = vmatmul.f32.gmra.mxu2 %v2904_v40  ;;  %v9719_v57 = vld [vmem:[#allocation60_spill] sm:$0xff] }
 0x613   :  { %3366 = vmatmul.f32.gmra.mxu3 %v2902_v30  ;;  %3731 = vmatpush.msra.mxu1 %v3637_v59  ;;  %v2721_v30 = vmul.f32 %v9701_v55, %v9700_v1 }
 0x614   :  { %3539 = vmatmul.f32.gmra.mxu0 %v2867_v9  ;;  %v9703_v9 = vld [vmem:[#allocation79_spill] sm:$0xff] }
 0x615   :  { %v8157_v7 = vpop.f32.mrf.mxu2  ;;  %v8159_v62 = vpop.f32.mrf.mxu3  ;;  %3732 = vmatpush.msra.mxu1 %v3636_v42  ;;  %v2719_v19 = vmul.f32 %v9703_v9, %v9702_v45  ;;  %v2913_v18 = vmul.f32 %v2721_v30, %v9705_v17  ;;  %v9722_v9 = vld [vmem:[#allocation203_spill] sm:$0xff] }
 0x616   :  { %v2484_v3 = vpop.f32.mrf.mxu1  ;;  %v9725_v17 = vld [vmem:[#allocation439_spill] sm:$0xff] }
 0x617   :  { %v2678_v22 = vmul.f32 %v2484_v3, %v9686_v16  ;;  %3733 = vmatpush.msra.mxu1 %v3635_v5  ;;  %v2911_v3 = vmul.f32 %v2719_v19, %v9706_v13  ;;  %v9707_v5 = vld [vmem:[#allocation432_spill] sm:$0xff]  ;;  %v9726_v13 = vld [vmem:[#allocation30_spill] sm:$0xff] }
 0x618   :  { %v8167_v14 = vpop.f32.mrf.mxu0 }
 0x619   :  { %v2870_v53 = vmul.f32 %v2678_v22, %v9689_v2  ;;  %3734 = vmatpush.msra.mxu1 %v3634_v47  ;;  %v9708_v22 = vld [vmem:[#allocation25_spill] sm:$0xff] }
 0x61a   :  { %2531 = vmatmul.f32.gmra.mxu1 %v9690_v46  ;;  %3163 = vmatmul.f32.gmra.mxu2 %v2907_v44  ;;  %v9710_v44 = vld [vmem:[#allocation57_spill] sm:$0xff] }
 0x61b   :  { %3369 = vmatmul.f32.gmra.mxu3 %v2905_v15  ;;  %3735 = vmatpush.msra.mxu1 %v3633_v34  ;;  %v2724_v47 = vmul.f32 %v9710_v44, %v9709_v26  ;;  %v9712_v15 = vld [vmem:[#allocation289_spill] sm:$0xff] }
 0x61c   :  { %3542 = vmatmul.f32.gmra.mxu0 %v2870_v53  ;;  %v2722_v2 = vmul.f32 %v9712_v15, %v9711_v58  ;;  %v9730_v26 = vld [vmem:[#allocation293_spill] sm:$0xff] }
 0x61d   :  { %v3116_v63 = vpop.f32.mrf.mxu2  ;;  %v8180_v36 = vpop.f32.mrf.mxu3  ;;  %v2916_v60 = vmul.f32 %v2724_v47, %v9714_v0  ;;  %v9733_v0 = vld [vmem:[#allocation46_spill] sm:$0xff] }
 0x61e   :  { %v2487_v43 = vpop.f32.mrf.mxu1 }
 0x61f   :  { %v2681_v50 = vmul.f32 %v2487_v43, %v9695_v52  ;;  %v9716_v52 = vld [vmem:[#allocation436_spill] sm:$0xff] }
 0x620   :  { %v8184_v28 = vpop.f32.mrf.mxu0 }
 0x621   :  { %v2873_v40 = vmul.f32 %v2681_v50, %v9698_v11  ;;  %v9720_v11 = vld [vmem:[#allocation246_spill] sm:$0xff] }
 0x622   :  { %2534 = vmatmul.f32.gmra.mxu1 %v9699_v4  ;;  %3166 = vmatmul.f32.gmra.mxu2 %v2910_v24  ;;  %v9718_v24 = vld [vmem:[#allocation236_spill] sm:$0xff] }
 0x623   :  { %3372 = vmatmul.f32.gmra.mxu3 %v2908_v29  ;;  %v2727_v29 = vmul.f32 %v9719_v57, %v9718_v24  ;;  %v9737_v24 = vld [vmem:[#allocation66_spill] sm:$0xff] }
 0x624   :  { %3545 = vmatmul.f32.gmra.mxu0 %v2873_v40  ;;  %v9721_v40 = vld [vmem:[#allocation336_spill] sm:$0xff] }
 0x625   :  { %v3119_v33 = vpop.f32.mrf.mxu2  ;;  %v3325_v59 = vpop.f32.mrf.mxu3  ;;  %v2725_v4 = vmul.f32 %v9721_v40, %v9720_v11  ;;  %v9739_v11 = vld [vmem:[#allocation78_spill] sm:$0xff] }
 0x626   :  { %v8193_v20 = vadd.f32 %v3325_v59, %v3116_v63  ;;  %v2490_v38 = vpop.f32.mrf.mxu1  ;;  %v9715_v63 = vld [vmem:[#allocation463_spill] sm:$0xff] }
 0x627   :  { %v2684_v42 = vmul.f32 %v2490_v38, %v9704_v61  ;;  %v2914_v43 = vmul.f32 %v2722_v2, %v9715_v63  ;;  %v9724_v61 = vld [vmem:[#allocation464_spill] sm:$0xff]  ;;  %v9734_v63 = vld [vmem:[#allocation443_spill] sm:$0xff] }
 0x628   :  { %v8197_v27 = vpop.f32.mrf.mxu0 }
 0x629   :  { %v2876_v16 = vmul.f32 %v2684_v42, %v9707_v5  ;;  %v2917_v42 = vmul.f32 %v2725_v4, %v9724_v61  ;;  %v9728_v5 = vld [vmem:[#allocation63_spill] sm:$0xff]  ;;  %v9742_v61 = vld [vmem:[#allocation465_spill] sm:$0xff] }
 0x62a   :  { %2537 = vmatmul.f32.gmra.mxu1 %v9708_v22  ;;  %3169 = vmatmul.f32.gmra.mxu2 %v2913_v18  ;;  %v9729_v22 = vld [vmem:[#allocation250_spill] sm:$0xff] }
 0x62b   :  { %3375 = vmatmul.f32.gmra.mxu3 %v2911_v3  ;;  %v9727_v3 = vld [vmem:[#allocation240_spill] sm:$0xff]  ;;  %v2728_v44 = vmul.f32 %v9730_v26, %v9729_v22  ;;  %v9747_v22 = vld [vmem:[#allocation258_spill] sm:$0xff]  ;;  %v9748_v26 = vld [vmem:[#allocation297_spill] sm:$0xff] }
 0x62c   :  { %3548 = vmatmul.f32.gmra.mxu0 %v2876_v16  ;;  %v2730_v16 = vmul.f32 %v9728_v5, %v9727_v3  ;;  %v9745_v3 = vld [vmem:[#allocation248_spill] sm:$0xff]  ;;  %v9746_v5 = vld [vmem:[#allocation325_spill] sm:$0xff] }
 0x62d   :  { %v3122_v53 = vpop.f32.mrf.mxu2  ;;  %v3328_v46 = vpop.f32.mrf.mxu3 }
 0x62e   :  { %v8206_v34 = vadd.f32 %v3328_v46, %v3119_v33  ;;  %v2493_v48 = vpop.f32.mrf.mxu1  ;;  %v9723_v33 = vld [vmem:[#allocation257_spill] sm:$0xff] }
 0x62f   :  { %v2687_v37 = vmul.f32 %v2493_v48, %v9713_v23  ;;  %v2919_v59 = vmul.f32 %v2727_v29, %v9723_v33  ;;  %v9732_v48 = vld [vmem:[#allocation261_spill] sm:$0xff]  ;;  %v9738_v29 = vld [vmem:[#allocation254_spill] sm:$0xff] }
 0x630   :  { %v8210_v54 = vpop.f32.mrf.mxu0  ;;  %v2922_v23 = vmul.f32 %v2730_v16, %v9732_v48  ;;  %v2731_v40 = vmul.f32 %v9739_v11, %v9738_v29  ;;  %v2736_v16 = vmul.f32 %v9746_v5, %v9745_v3  ;;  %v9756_v11 = vld [vmem:[#allocation262_spill] sm:$0xff]  ;;  %v9761_v3 = vld [vmem:[#allocation455_spill] sm:$0xff] }
 0x631   :  { %v2879_v50 = vmul.f32 %v2687_v37, %v9716_v52 }
 0x632   :  { %2540 = vmatmul.f32.gmra.mxu1 %v9717_v12  ;;  %3172 = vmatmul.f32.gmra.mxu2 %v2916_v60  ;;  %v2920_v60 = vmul.f32 %v2728_v44, %v9733_v0  ;;  %v9736_v12 = vld [vmem:[#allocation244_spill] sm:$0xff]  ;;  %v2734_v44 = vmul.f32 %v9748_v26, %v9747_v22 }
 0x633   :  { %3378 = vmatmul.f32.gmra.mxu3 %v2914_v43  ;;  %v2733_v57 = vmul.f32 %v9737_v24, %v9736_v12  ;;  %v9753_v12 = vld [vmem:[#allocation39_spill] sm:$0xff]  ;;  %v9754_v24 = vld [vmem:[#allocation252_spill] sm:$0xff] }
 0x634   :  { %3551 = vmatmul.f32.gmra.mxu0 %v2879_v50  ;;  %v9735_v50 = vld [vmem:[#allocation33_spill] sm:$0xff]  ;;  %v9763_v22 = vld [vmem:[#allocation256_spill] sm:$0xff] }
 0x635   :  { %v3125_v1 = vpop.f32.mrf.mxu2  ;;  %v3331_v55 = vpop.f32.mrf.mxu3  ;;  %v9764_v26 = vld [vmem:[#allocation72_spill] sm:$0xff] }
 0x636   :  { %v8219_v30 = vadd.f32 %v3331_v55, %v3122_v53  ;;  %v2496_v45 = vpop.f32.mrf.mxu1  ;;  %v9731_v53 = vld [vmem:[#allocation207_spill] sm:$0xff] }
 0x637   :  { %v2690_v19 = vmul.f32 %v2496_v45, %v9722_v9  ;;  %v9740_v9 = vld [vmem:[#allocation211_spill] sm:$0xff] }
 0x638   :  { %v8223_v38 = vpop.f32.mrf.mxu0 }
 0x639   :  { %v2882_v18 = vmul.f32 %v2690_v19, %v9725_v17  ;;  %v9743_v17 = vld [vmem:[#allocation447_spill] sm:$0xff] }
 0x63a   :  { %2543 = vmatmul.f32.gmra.mxu1 %v9726_v13  ;;  %3175 = vmatmul.f32.gmra.mxu2 %v2919_v59  ;;  %v9744_v13 = vld [vmem:[#allocation36_spill] sm:$0xff] }
 0x63b   :  { %3381 = vmatmul.f32.gmra.mxu3 %v2917_v42  ;;  %v2923_v42 = vmul.f32 %v2731_v40, %v9742_v61  ;;  %v9757_v40 = vld [vmem:[#allocation90_spill] sm:$0xff]  ;;  %v9759_v61 = vld [vmem:[#allocation273_spill] sm:$0xff] }
 0x63c   :  { %3554 = vmatmul.f32.gmra.mxu0 %v2882_v18 }
 0x63d   :  { %v3128_v47 = vpop.f32.mrf.mxu2  ;;  %v3334_v58 = vpop.f32.mrf.mxu3 }
 0x63e   :  { %v8232_v15 = vadd.f32 %v3334_v58, %v3125_v1  ;;  %v2499_v2 = vpop.f32.mrf.mxu1 }
 0x63f   :  { %v2693_v46 = vmul.f32 %v2499_v2, %v9731_v53 }
 0x640   :  { %v3510_v37 = vpop.f32.mrf.mxu0 }
 0x641   :  { %v2885_v43 = vmul.f32 %v2693_v46, %v9734_v63  ;;  %v8239_v52 = vadd.f32 %v3510_v37, %v8019_v21  ;;  %v9741_v21 = vld [vmem:[#allocation265_spill] sm:$0xff]  ;;  %v9749_v46 = vld [vmem:[#allocation215_spill] sm:$0xff] }
 0x642   :  { %2546 = vmatmul.f32.gmra.mxu1 %v9735_v50  ;;  %3178 = vmatmul.f32.gmra.mxu2 %v2922_v23  ;;  %v2925_v33 = vmul.f32 %v2733_v57, %v9741_v21  ;;  %v9750_v23 = vld [vmem:[#allocation269_spill] sm:$0xff]  ;;  %v9758_v21 = vld [vmem:[#allocation219_spill] sm:$0xff] }
 0x643   :  { %3384 = vmatmul.f32.gmra.mxu3 %v2920_v60  ;;  %v2928_v37 = vmul.f32 %v2736_v16, %v9750_v23  ;;  %v9751_v60 = vld [vmem:[#allocation466_spill] sm:$0xff]  ;;  %v9755_v57 = vld [vmem:[#allocation85_spill] sm:$0xff] }
 0x644   :  { %3557 = vmatmul.f32.gmra.mxu0 %v2885_v43  ;;  %v2926_v63 = vmul.f32 %v2734_v44, %v9751_v60  ;;  %v9752_v43 = vld [vmem:[#allocation451_spill] sm:$0xff]  ;;  %v2739_v29 = vmul.f32 %v9755_v57, %v9754_v24  ;;  %v9762_v16 = vld [vmem:[#allocation42_spill] sm:$0xff]  ;;  %v2742_v44 = vmul.f32 %v9764_v26, %v9763_v22  ;;  %v9769_v24 = vld [vmem:[#allocation468_spill] sm:$0xff] }
 0x645   :  { %v3131_v4 = vpop.f32.mrf.mxu2  ;;  %v3337_v1 = vpop.f32.mrf.mxu3  ;;  %v9767_v60 = vld [vmem:[#allocation223_spill] sm:$0xff]  ;;  %v9778_v26 = vld [vmem:[#allocation469_spill] sm:$0xff] }
 0x646   :  { %v8246_v55 = vadd.f32 %v3337_v1, %v3128_v47  ;;  %v2502_v45 = vpop.f32.mrf.mxu1 }
 0x647   :  { %v2696_v19 = vmul.f32 %v2502_v45, %v9740_v9 }
 0x648   :  { %v8250_v59 = vpop.f32.mrf.mxu0 }
 0x649   :  { %v2888_v18 = vmul.f32 %v2696_v19, %v9743_v17 }
 0x64a   :  { %2549 = vmatmul.f32.gmra.mxu1 %v9744_v13  ;;  %3181 = vmatmul.f32.gmra.mxu2 %v2925_v33 }
 0x64b   :  { %3387 = vmatmul.f32.gmra.mxu3 %v2923_v42  ;;  %v2931_v42 = vmul.f32 %v2739_v29, %v9759_v61  ;;  %v9770_v29 = vld [vmem:[#allocation458_spill] sm:$0xff] }
 0x64c   :  { %3560 = vmatmul.f32.gmra.mxu0 %v2888_v18  ;;  %v9760_v18 = vld [vmem:[#allocation467_spill] sm:$0xff] }
 0x64d   :  { %v3134_v47 = vpop.f32.mrf.mxu2  ;;  %v3340_v58 = vpop.f32.mrf.mxu3 }
 0x64e   :  { %v8259_v2 = vadd.f32 %v3340_v58, %v3131_v4  ;;  %v2505_v53 = vpop.f32.mrf.mxu1  ;;  %v2737_v4 = vmul.f32 %v9757_v40, %v9756_v11  ;;  %v9766_v58 = vld [vmem:[#allocation342_spill] sm:$0xff]  ;;  %v9771_v40 = vld [vmem:[#allocation45_spill] sm:$0xff] }
 0x64f   :  { %v2699_v48 = vmul.f32 %v2505_v53, %v9749_v46 }
 0x650   :  { %v8263_v0 = vpop.f32.mrf.mxu0  ;;  %v2929_v13 = vmul.f32 %v2737_v4, %v9760_v18  ;;  %v9772_v4 = vld [vmem:[#allocation260_spill] sm:$0xff] }
 0x651   :  { %v2891_v50 = vmul.f32 %v2699_v48, %v9752_v43  ;;  %v9768_v43 = vld [vmem:[#allocation277_spill] sm:$0xff] }
 0x652   :  { %2552 = vmatmul.f32.gmra.mxu1 %v9753_v12  ;;  %3184 = vmatmul.f32.gmra.mxu2 %v2928_v37 }
 0x653   :  { %3390 = vmatmul.f32.gmra.mxu3 %v2926_v63 }
 0x654   :  { %3563 = vmatmul.f32.gmra.mxu0 %v2891_v50  ;;  %v2934_v50 = vmul.f32 %v2742_v44, %v9768_v43  ;;  %v9784_v43 = vld [vmem:[#allocation344_spill] sm:$0xff] }
 0x655   :  { %v3137_v1 = vpop.f32.mrf.mxu2  ;;  %v3343_v45 = vpop.f32.mrf.mxu3 }
 0x656   :  { %v8272_v9 = vadd.f32 %v3343_v45, %v3134_v47  ;;  %v2508_v19 = vpop.f32.mrf.mxu1  ;;  %v9765_v47 = vld [vmem:[#allocation266_spill] sm:$0xff]  ;;  %v9773_v45 = vld [vmem:[#allocation89_spill] sm:$0xff] }
 0x657   :  { %v2702_v33 = vmul.f32 %v2508_v19, %v9758_v21  ;;  %v2740_v53 = vmul.f32 %v9766_v58, %v9765_v47  ;;  %v2745_v19 = vmul.f32 %v9773_v45, %v9772_v4  ;;  %v9775_v21 = vld [vmem:[#allocation81_spill] sm:$0xff]  ;;  %v9779_v47 = vld [vmem:[#allocation460_spill] sm:$0xff] }
 0x658   :  { %v8276_v17 = vpop.f32.mrf.mxu0  ;;  %v9786_v4 = vld [vmem:[#allocation284_spill] sm:$0xff] }
 0x659   :  { %v2894_v5 = vmul.f32 %v2702_v33, %v9761_v3  ;;  %v2932_v57 = vmul.f32 %v2740_v53, %v9769_v24  ;;  %v9780_v53 = vld [vmem:[#allocation48_spill] sm:$0xff] }
 0x65a   :  { %2555 = vmatmul.f32.gmra.mxu1 %v9762_v16  ;;  %3187 = vmatmul.f32.gmra.mxu2 %v2931_v42 }
 0x65b   :  { %3393 = vmatmul.f32.gmra.mxu3 %v2929_v13  ;;  %v9776_v13 = vld [vmem:[#allocation227_spill] sm:$0xff] }
 0x65c   :  { %3566 = vmatmul.f32.gmra.mxu0 %v2894_v5  ;;  %v9777_v5 = vld [vmem:[#allocation281_spill] sm:$0xff] }
 0x65d   :  { %v8285_v46 = vpop.f32.mrf.mxu2  ;;  %v3346_v48 = vpop.f32.mrf.mxu3  ;;  %v2937_v16 = vmul.f32 %v2745_v19, %v9777_v5  ;;  %v9791_v5 = vld [vmem:[#allocation56_spill] sm:$0xff] }
 0x65e   :  { %v8287_v23 = vadd.f32 %v3346_v48, %v3137_v1  ;;  %v2511_v37 = vpop.f32.mrf.mxu1  ;;  %v9774_v1 = vld [vmem:[#allocation270_spill] sm:$0xff]  ;;  %v9781_v48 = vld [vmem:[#allocation264_spill] sm:$0xff] }
 0x65f   :  { %v2705_v63 = vmul.f32 %v2511_v37, %v9767_v60  ;;  %v2743_v33 = vmul.f32 %v9775_v21, %v9774_v1  ;;  %v9782_v37 = vld [vmem:[#allocation75_spill] sm:$0xff]  ;;  %v9787_v1 = vld [vmem:[#allocation470_spill] sm:$0xff] }
 0x660   :  { %v8291_v12 = vpop.f32.mrf.mxu0  ;;  %v2748_v60 = vmul.f32 %v9782_v37, %v9781_v48  ;;  %v3320_v37 = vadd.f32 %v8159_v62, %v8126_v31  ;;  %v9799_v62 = vld [vmem:[#allocation272_spill] sm:$0xff] }
 0x661   :  { %v2897_v11 = vmul.f32 %v2705_v63, %v9770_v29  ;;  %v2935_v44 = vmul.f32 %v2743_v33, %v9778_v26  ;;  %v9783_v63 = vld [vmem:[#allocation274_spill] sm:$0xff]  ;;  %v9792_v26 = vld [vmem:[#allocation268_spill] sm:$0xff] }
 0x662   :  { %2558 = vmatmul.f32.gmra.mxu1 %v9771_v40  ;;  %3190 = vmatmul.f32.gmra.mxu2 %v2934_v50  ;;  %v2746_v50 = vmul.f32 %v9784_v43, %v9783_v63  ;;  %v2940_v45 = vmul.f32 %v2748_v60, %v9786_v4  ;;  %v9788_v33 = vld [vmem:[#allocation462_spill] sm:$0xff]  ;;  %v3323_v60 = vadd.f32 %v8180_v36, %v8157_v7  ;;  %v9794_v63 = vld [vmem:[#allocation235_spill] sm:$0xff] }
 0x663   :  { %3396 = vmatmul.f32.gmra.mxu3 %v2932_v57  ;;  %v9800_v36 = vld [vmem:[#allocation338_spill] sm:$0xff] }
 0x664   :  { %3569 = vmatmul.f32.gmra.mxu0 %v2897_v11  ;;  %v9785_v11 = vld [vmem:[#allocation231_spill] sm:$0xff]  ;;  %v2938_v21 = vmul.f32 %v2746_v50, %v9787_v1 }
 0x665   :  { %v8300_v61 = vpop.f32.mrf.mxu2  ;;  %v8302_v42 = vpop.f32.mrf.mxu3  ;;  %v9795_v50 = vld [vmem:[#allocation471_spill] sm:$0xff] }
 0x666   :  { %v2514_v18 = vpop.f32.mrf.mxu1 }
 0x667   :  { %v2708_v3 = vmul.f32 %v2514_v18, %v9776_v13  ;;  %v9789_v13 = vld [vmem:[#allocation51_spill] sm:$0xff] }
 0x668   :  { %v3525_v22 = vpop.f32.mrf.mxu0 }
 0x669   :  { %v2900_v58 = vmul.f32 %v2708_v3, %v9779_v47  ;;  %v9790_v3 = vld [vmem:[#allocation278_spill] sm:$0xff] }
 0x66a   :  { %2561 = vmatmul.f32.gmra.mxu1 %v9780_v53  ;;  %3193 = vmatmul.f32.gmra.mxu2 %v2937_v16  ;;  %v2749_v16 = vmul.f32 %v9791_v5, %v9790_v3  ;;  %v2754_v3 = vmul.f32 %v9800_v36, %v9799_v62  ;;  %v3314_v5 = vadd.f32 %v8098_v10, %v8066_v25  ;;  %v9804_v10 = vld [vmem:[#allocation292_spill] sm:$0xff] }
 0x66b   :  { %3399 = vmatmul.f32.gmra.mxu3 %v2935_v44  ;;  %v9793_v44 = vld [vmem:[#allocation93_spill] sm:$0xff]  ;;  %v9811_v62 = vld [vmem:[#allocation296_spill] sm:$0xff] }
 0x66c   :  { %3572 = vmatmul.f32.gmra.mxu0 %v2900_v58  ;;  %v2751_v47 = vmul.f32 %v9793_v44, %v9792_v26  ;;  %v3523_v44 = vadd.f32 %v8291_v12, %v3314_v5  ;;  %v3517_v12 = vadd.f32 %v8263_v0, %v8041_v32 }
 0x66d   :  { %v8313_v24 = vpop.f32.mrf.mxu2  ;;  %v8315_v57 = vpop.f32.mrf.mxu3 }
 0x66e   :  { %v2517_v29 = vpop.f32.mrf.mxu1 }
 0x66f   :  { %v2711_v40 = vmul.f32 %v2517_v29, %v9785_v11  ;;  %v2941_v29 = vmul.f32 %v2749_v16, %v9795_v50  ;;  %v9796_v11 = vld [vmem:[#allocation288_spill] sm:$0xff]  ;;  %v9805_v50 = vld [vmem:[#allocation69_spill] sm:$0xff] }
 0x670   :  { %v3528_v19 = vpop.f32.mrf.mxu0 }
 0x671   :  { %v2903_v18 = vmul.f32 %v2711_v40, %v9788_v33  ;;  %v2943_v40 = vmul.f32 %v2751_v47, %v9796_v11  ;;  %v3529_v1 = vadd.f32 %v3528_v19, %v3320_v37  ;;  %v9806_v11 = vld [vmem:[#allocation54_spill] sm:$0xff] }
 0x672   :  { %2564 = vmatmul.f32.gmra.mxu1 %v9789_v13  ;;  %3196 = vmatmul.f32.gmra.mxu2 %v2940_v45  ;;  %v3317_v45 = vadd.f32 %v8128_v39, %v8096_v6  ;;  %v9798_v13 = vld [vmem:[#allocation53_spill] sm:$0xff]  ;;  %v9801_v6 = vld [vmem:[#allocation282_spill] sm:$0xff] }
 0x673   :  { %3402 = vmatmul.f32.gmra.mxu3 %v2938_v21  ;;  %v9797_v21 = vld [vmem:[#allocation43_spill] sm:$0xff]  ;;  %v9802_v39 = vld [vmem:[#allocation321_spill] sm:$0xff] }
 0x674   :  { %3575 = vmatmul.f32.gmra.mxu0 %v2903_v18  ;;  %v3526_v31 = vadd.f32 %v3525_v22, %v3317_v45  ;;  %v2752_v19 = vmul.f32 %v9802_v39, %v9801_v6  ;;  %v3663_v22 = vsel %vm3632_vm1, 1.0, %v3529_v1  ;;  %v9807_v45 = vld [vmem:[#allocation276_spill] sm:$0xff]  ;;  %v9808_v1 = vld [vmem:[#allocation318_spill] sm:$0xff]  ;;  %v9814_v39 = vld [vmem:[#allocation285_spill] sm:$0xff] }
 0x675   :  { %v8326_v58 = vpop.f32.mrf.mxu2  ;;  %v8328_v53 = vpop.f32.mrf.mxu3 }
 0x676   :  { %v2520_v48 = vpop.f32.mrf.mxu1  ;;  %v3662_v25 = vsel %vm3632_vm1, 1.0, %v3526_v31  ;;  %v3659_v31 = vsel %vm3632_vm1, 1.0, %v3517_v12 }
 0x677   :  { %v2714_v43 = vmul.f32 %v2520_v48, %v9794_v63  ;;  %v9803_v48 = vld [vmem:[#allocation239_spill] sm:$0xff]  ;;  %v3520_v63 = vadd.f32 %v8276_v17, %v8071_v51  ;;  %v3514_v51 = vadd.f32 %v8250_v59, %v8030_v41 }
 0x678   :  { %v3531_v4 = vpop.f32.mrf.mxu0  ;;  %v9812_v41 = vld [vmem:[#allocation303_spill] sm:$0xff] }
 0x679   :  { %v2906_v33 = vmul.f32 %v2714_v43, %v9797_v21  ;;  %v3532_v18 = vadd.f32 %v3531_v4, %v3323_v60  ;;  %v2946_v60 = vmul.f32 %v2754_v3, %v9804_v10  ;;  %v3661_v4 = vsel %vm3632_vm1, 1.0, %v3523_v44  ;;  %v9813_v3 = vld [vmem:[#allocation243_spill] sm:$0xff]  ;;  %v9815_v44 = vld [vmem:[#allocation302_spill] sm:$0xff]  ;;  %v9818_v10 = vld [vmem:[#allocation97_spill] sm:$0xff] }
 0x67a   :  { %2567 = vmatmul.f32.gmra.mxu1 %v9798_v13  ;;  %3199 = vmatmul.f32.gmra.mxu2 %v2943_v40  ;;  %v2757_v21 = vmul.f32 %v9808_v1, %v9807_v45  ;;  %v3660_v17 = vsel %vm3632_vm1, 1.0, %v3520_v63  ;;  %v3508_v59 = vadd.f32 %v8223_v38, %v9812_v41  ;;  %v3658_v6 = vsel %vm3632_vm1, 1.0, %v3514_v51  ;;  %v9819_v63 = vld [vmem:[#allocation105_spill] sm:$0xff] }
 0x67b   :  { %3405 = vmatmul.f32.gmra.mxu3 %v2941_v29  ;;  %v3664_v7 = vsel %vm3632_vm1, 1.0, %v3532_v18  ;;  %v2944_v29 = vmul.f32 %v2752_v19, %v9805_v50  ;;  %v9810_v18 = vld [vmem:[#allocation101_spill] sm:$0xff]  ;;  %v3657_v38 = vsel %vm3632_vm1, 1.0, %v8239_v52  ;;  %v3502_v50 = vadd.f32 %v8197_v27, %v9819_v63  ;;  %v9823_v27 = vld [vmem:[#allocation300_spill] sm:$0xff] }
 0x67c   :  { %3578 = vmatmul.f32.gmra.mxu0 %v2906_v33  ;;  %3740 = vmatpush.msra.mxu2 %v3664_v7  ;;  %v9809_v33 = vld [vmem:[#allocation286_spill] sm:$0xff]  ;;  %v2949_v36 = vmul.f32 %v2757_v21, %v9811_v62 }
 0x67d   :  { %v8349_v16 = vpop.f32.mrf.mxu2  ;;  %v8351_v26 = vpop.f32.mrf.mxu3  ;;  %v2755_v13 = vmul.f32 %v9810_v18, %v9809_v33  ;;  %v9825_v18 = vld [vmem:[#allocation247_spill] sm:$0xff] }
 0x67e   :  { %v2523_v47 = vpop.f32.mrf.mxu1  ;;  %3741 = vmatpush.msra.mxu2 %v3663_v22 }
 0x67f   :  { %v2717_v37 = vmul.f32 %v2523_v47, %v9803_v48  ;;  %v2947_v19 = vmul.f32 %v2755_v13, %v9814_v39  ;;  %v3505_v47 = vadd.f32 %v8210_v54, %v9815_v44  ;;  %v9816_v48 = vld [vmem:[#allocation49_spill] sm:$0xff]  ;;  %v9820_v54 = vld [vmem:[#allocation290_spill] sm:$0xff] }
 0x680   :  { %v8362_v43 = vpop.f32.mrf.mxu0  ;;  %3742 = vmatpush.msra.mxu2 %v3662_v25  ;;  %v9817_v25 = vld [vmem:[#allocation280_spill] sm:$0xff]  ;;  %v9831_v44 = vld [vmem:[#allocation301_spill] sm:$0xff] }
 0x681   :  { %v2909_v40 = vmul.f32 %v2717_v37, %v9806_v11  ;;  %v9821_v11 = vld [vmem:[#allocation299_spill] sm:$0xff]  ;;  %v3655_v1 = vsel %vm3632_vm1, 1.0, %v3505_v47 }
 0x682   :  { %3202 = vmatmul.f32.gmra.mxu2 %v2946_v60  ;;  %v2760_v60 = vmul.f32 %v9818_v10, %v9817_v25 }
 0x683   :  { %3408 = vmatmul.f32.gmra.mxu3 %v2944_v29  ;;  %3743 = vmatpush.msra.mxu2 %v3661_v4  ;;  %v3656_v29 = vsel %vm3632_vm1, 1.0, %v3508_v59  ;;  %v9822_v4 = vld [vmem:[#allocation324_spill] sm:$0xff]  ;;  %v9828_v59 = vld [vmem:[#allocation58_spill] sm:$0xff] }
 0x684   :  { %3581 = vmatmul.f32.gmra.mxu0 %v2909_v40  ;;  %v2758_v40 = vmul.f32 %v9821_v11, %v9820_v54  ;;  %v3499_v52 = vadd.f32 %v8184_v28, %v9822_v4  ;;  %v2952_v51 = vmul.f32 %v2760_v60, %v9823_v27  ;;  %v9835_v11 = vld [vmem:[#allocation61_spill] sm:$0xff] }
 0x685   :  { %v8378_v32 = vpop.f32.mrf.mxu2  ;;  %v8380_v0 = vpop.f32.mrf.mxu3  ;;  %3744 = vmatpush.msra.mxu2 %v3660_v17  ;;  %v9824_v17 = vld [vmem:[#allocation59_spill] sm:$0xff] }
 0x686   :  { %v3496_v33 = vadd.f32 %v8167_v14, %v9824_v17  ;;  %v9829_v14 = vld [vmem:[#allocation84_spill] sm:$0xff] }
 0x687   :  { %v2526_v7 = vpop.f32.mrf.mxu1  ;;  %3745 = vmatpush.msra.mxu2 %v3659_v31  ;;  %v3654_v31 = vsel %vm3632_vm1, 1.0, %v3502_v50  ;;  %v9834_v50 = vld [vmem:[#allocation82_spill] sm:$0xff]  ;;  %v9837_v17 = vld [vmem:[#allocation64_spill] sm:$0xff] }
 0x688   :  { %v2720_v5 = vmul.f32 %v2526_v7, %v9813_v3  ;;  %v9826_v7 = vld [vmem:[#allocation332_spill] sm:$0xff]  ;;  %v3652_v39 = vsel %vm3632_vm1, 1.0, %v3496_v33 }
 0x689   :  { %v8391_v22 = vpop.f32.mrf.mxu0  ;;  %3746 = vmatpush.msra.mxu2 %v3658_v6  ;;  %v2950_v62 = vmul.f32 %v2758_v40, %v9826_v7  ;;  %v3490_v6 = vadd.f32 %v8106_v49, %v9829_v14  ;;  %v9833_v49 = vld [vmem:[#allocation251_spill] sm:$0xff] }
 0x68a   :  { %v2912_v37 = vmul.f32 %v2720_v5, %v9816_v48  ;;  %3205 = vmatmul.f32.gmra.mxu2 %v2949_v36  ;;  %v9827_v36 = vld [vmem:[#allocation348_spill] sm:$0xff]  ;;  %v3653_v5 = vsel %vm3632_vm1, 1.0, %v3499_v52 }
 0x68b   :  { %3411 = vmatmul.f32.gmra.mxu3 %v2947_v19  ;;  %3747 = vmatpush.msra.mxu2 %v3657_v38  ;;  %v3493_v41 = vadd.f32 %v8138_v8, %v9827_v36  ;;  %v9830_v19 = vld [vmem:[#allocation294_spill] sm:$0xff]  ;;  %v3650_v63 = vsel %vm3632_vm1, 1.0, %v3490_v6 }
 0x68c   :  { %3584 = vmatmul.f32.gmra.mxu0 %v2912_v37  ;;  %v2761_v47 = vmul.f32 %v9831_v44, %v9830_v19  ;;  %v9832_v8 = vld [vmem:[#allocation346_spill] sm:$0xff]  ;;  %v9840_v19 = vld [vmem:[#allocation263_spill] sm:$0xff] }
 0x68d   :  { %v8407_v12 = vpop.f32.mrf.mxu2  ;;  %3748 = vmatpush.msra.mxu2 %v3656_v29  ;;  %v3487_v37 = vadd.f32 %v8080_v35, %v9832_v8  ;;  %v3651_v25 = vsel %vm3632_vm1, 1.0, %v3493_v41  ;;  %v9841_v8 = vld [vmem:[#allocation70_spill] sm:$0xff] }
 0x68e   :  { %v8411_v45 = vpop.f32.mrf.mxu3  ;;  %v2953_v29 = vmul.f32 %v2761_v47, %v9834_v50 }
 0x68f   :  { %v2529_v21 = vpop.f32.mrf.mxu1  ;;  %3749 = vmatpush.msra.mxu2 %v3655_v1  ;;  %v3649_v35 = vsel %vm3632_vm1, 1.0, %v3487_v37 }
 0x690   :  { %v2723_v13 = vmul.f32 %v2529_v21, %v9825_v18  ;;  %v9836_v21 = vld [vmem:[#allocation255_spill] sm:$0xff] }
 0x691   :  { %v8422_v28 = vpop.f32.mrf.mxu0  ;;  %3750 = vmatpush.msra.mxu2 %v3654_v31 }
 0x692   :  { %v2915_v3 = vmul.f32 %v2723_v13, %v9828_v59  ;;  %3208 = vmatmul.f32.gmra.mxu2 %v2952_v51  ;;  %v9839_v59 = vld [vmem:[#allocation67_spill] sm:$0xff] }
 0x693   :  { %3414 = vmatmul.f32.gmra.mxu3 %v2950_v62  ;;  %3751 = vmatpush.msra.mxu2 %v3653_v5  ;;  %v9838_v62 = vld [vmem:[#allocation259_spill] sm:$0xff] }
 0x694   :  { %3587 = vmatmul.f32.gmra.mxu0 %v2915_v3 }
 0x695   :  { %v8435_v48 = vpop.f32.mrf.mxu2  ;;  %3752 = vmatpush.msra.mxu2 %v3652_v39 }
 0x696   :  { %v8439_v38 = vpop.f32.mrf.mxu3 }
 0x697   :  { %v2532_v10 = vpop.f32.mrf.mxu1  ;;  %3753 = vmatpush.msra.mxu2 %v3651_v25 }
 0x698   :  { %v2726_v60 = vmul.f32 %v2532_v10, %v9833_v49 }
 0x699   :  { %v8447_v54 = vpop.f32.mrf.mxu0  ;;  %3754 = vmatpush.msra.mxu2 %v3650_v63  ;;  %v9842_v63 = vld [vmem:[#allocation267_spill] sm:$0xff] }
 0x69a   :  { %v2918_v40 = vmul.f32 %v2726_v60, %v9835_v11  ;;  %v9843_v11 = vld [vmem:[#allocation73_spill] sm:$0xff] }
 0x69b   :  { %3417 = vmatmul.f32.gmra.mxu3 %v2953_v29  ;;  %3755 = vmatpush.msra.mxu2 %v3649_v35 }
 0x69c   :  { %3590 = vmatmul.f32.gmra.mxu0 %v2918_v40 }
 0x69d   :  { %v3164_v4 = vpop.f32.mrf.mxu2 }
 0x69e   :  { %v8452_v52 = vpop.f32.mrf.mxu3 }
 0x69f   :  { %v2535_v1 = vpop.f32.mrf.mxu1 }
 0x6a0   :  { %v2729_v27 = vmul.f32 %v2535_v1, %v9836_v21 }
 0x6a1   :  { %v8455_v51 = vpop.f32.mrf.mxu0 }
 0x6a2   :  { %v2921_v33 = vmul.f32 %v2729_v27, %v9837_v17  ;;  %v9844_v27 = vld [vmem:[#allocation271_spill] sm:$0xff] }
 0x6a4   :  { %3593 = vmatmul.f32.gmra.mxu0 %v2921_v33 }
 0x6a5   :  { %v3167_v18 = vpop.f32.mrf.mxu2 }
 0x6a6   :  { %v3373_v13 = vpop.f32.mrf.mxu3 }
 0x6a7   :  { %v8458_v31 = vadd.f32 %v3373_v13, %v3164_v4  ;;  %v2538_v7 = vpop.f32.mrf.mxu1 }
 0x6a8   :  { %v2732_v36 = vmul.f32 %v2538_v7, %v9838_v62 }
 0x6a9   :  { %v8461_v41 = vpop.f32.mrf.mxu0 }
 0x6aa   :  { %v2924_v3 = vmul.f32 %v2732_v36, %v9839_v59 }
 0x6ac   :  { %3596 = vmatmul.f32.gmra.mxu0 %v2924_v3  ;;  %v9846_v3 = vld [vmem:[#allocation275_spill] sm:$0xff] }
 0x6ad   :  { %v3170_v5 = vpop.f32.mrf.mxu2 }
 0x6ae   :  { %v3376_v14 = vpop.f32.mrf.mxu3 }
 0x6af   :  { %v8464_v6 = vadd.f32 %v3376_v14, %v3167_v18  ;;  %v2541_v39 = vpop.f32.mrf.mxu1  ;;  %v9845_v18 = vld [vmem:[#allocation76_spill] sm:$0xff] }
 0x6b0   :  { %v2735_v44 = vmul.f32 %v2541_v39, %v9840_v19  ;;  %v9847_v39 = vld [vmem:[#allocation309_spill] sm:$0xff] }
 0x6b1   :  { %v8467_v47 = vpop.f32.mrf.mxu0 }
 0x6b2   :  { %v2927_v37 = vmul.f32 %v2735_v44, %v9841_v8 }
 0x6b4   :  { %3599 = vmatmul.f32.gmra.mxu0 %v2927_v37 }
 0x6b5   :  { %v3173_v25 = vpop.f32.mrf.mxu2 }
 0x6b6   :  { %v3379_v10 = vpop.f32.mrf.mxu3 }
 0x6b7   :  { %v8470_v49 = vadd.f32 %v3379_v10, %v3170_v5  ;;  %v2544_v60 = vpop.f32.mrf.mxu1 }
 0x6b8   :  { %v2738_v50 = vmul.f32 %v2544_v60, %v9842_v63 }
 0x6b9   :  { %v8473_v29 = vpop.f32.mrf.mxu0 }
 0x6ba   :  { %v2930_v40 = vmul.f32 %v2738_v50, %v9843_v11  ;;  %v9849_v50 = vld [vmem:[#allocation330_spill] sm:$0xff] }
 0x6bc   :  { %3602 = vmatmul.f32.gmra.mxu0 %v2930_v40 }
 0x6bd   :  { %v3176_v35 = vpop.f32.mrf.mxu2 }
 0x6be   :  { %v3382_v4 = vpop.f32.mrf.mxu3 }
 0x6bf   :  { %v8476_v1 = vadd.f32 %v3382_v4, %v3173_v25  ;;  %v2547_v21 = vpop.f32.mrf.mxu1  ;;  %v9848_v25 = vld [vmem:[#allocation279_spill] sm:$0xff] }
 0x6c0   :  { %v2741_v17 = vmul.f32 %v2547_v21, %v9844_v27  ;;  %v9850_v21 = vld [vmem:[#allocation283_spill] sm:$0xff] }
 0x6c1   :  { %v8479_v33 = vpop.f32.mrf.mxu0 }
 0x6c2   :  { %v2933_v13 = vmul.f32 %v2741_v17, %v9845_v18  ;;  %v9851_v18 = vld [vmem:[#allocation312_spill] sm:$0xff] }
 0x6c4   :  { %3605 = vmatmul.f32.gmra.mxu0 %v2933_v13 }
 0x6c5   :  { %v3179_v59 = vpop.f32.mrf.mxu2 }
 0x6c6   :  { %v3385_v7 = vpop.f32.mrf.mxu3 }
 0x6c7   :  { %v8482_v62 = vadd.f32 %v3385_v7, %v3176_v35  ;;  %v2550_v36 = vpop.f32.mrf.mxu1 }
 0x6c8   :  { %v2744_v5 = vmul.f32 %v2550_v36, %v9846_v3 }
 0x6c9   :  { %v8485_v14 = vpop.f32.mrf.mxu0 }
 0x6ca   :  { %v2936_v19 = vmul.f32 %v2744_v5, %v9847_v39  ;;  %v9852_v5 = vld [vmem:[#allocation287_spill] sm:$0xff] }
 0x6cc   :  { %3608 = vmatmul.f32.gmra.mxu0 %v2936_v19 }
 0x6cd   :  { %v3182_v63 = vpop.f32.mrf.mxu2 }
 0x6ce   :  { %v3388_v44 = vpop.f32.mrf.mxu3 }
 0x6cf   :  { %v8488_v8 = vadd.f32 %v3388_v44, %v3179_v59  ;;  %v2553_v37 = vpop.f32.mrf.mxu1  ;;  %v9853_v44 = vld [vmem:[#allocation334_spill] sm:$0xff] }
 0x6d0   :  { %v2747_v10 = vmul.f32 %v2553_v37, %v9848_v25 }
 0x6d1   :  { %v3564_v60 = vpop.f32.mrf.mxu0 }
 0x6d2   :  { %v2939_v11 = vmul.f32 %v2747_v10, %v9849_v50 }
 0x6d4   :  { %3611 = vmatmul.f32.gmra.mxu0 %v2939_v11  ;;  %v9854_v11 = vld [vmem:[#allocation291_spill] sm:$0xff] }
 0x6d5   :  { %v3185_v7 = vpop.f32.mrf.mxu2 }
 0x6d6   :  { %v3391_v40 = vpop.f32.mrf.mxu3 }
 0x6d7   :  { %v8492_v35 = vadd.f32 %v3391_v40, %v3182_v63  ;;  %v2556_v4 = vpop.f32.mrf.mxu1 }
 0x6d8   :  { %v2750_v27 = vmul.f32 %v2556_v4, %v9850_v21  ;;  %v9855_v21 = vld [vmem:[#allocation315_spill] sm:$0xff] }
 0x6d9   :  { %v3567_v17 = vpop.f32.mrf.mxu0 }
 0x6da   :  { %v2942_v13 = vmul.f32 %v2750_v27, %v9851_v18 }
 0x6dc   :  { %3614 = vmatmul.f32.gmra.mxu0 %v2942_v13  ;;  %v9856_v13 = vld [vmem:[#allocation295_spill] sm:$0xff] }
 0x6dd   :  { %v3188_v25 = vpop.f32.mrf.mxu2 }
 0x6de   :  { %v3394_v36 = vpop.f32.mrf.mxu3 }
 0x6df   :  { %v8496_v59 = vadd.f32 %v3394_v36, %v3185_v7  ;;  %v2559_v3 = vpop.f32.mrf.mxu1 }
 0x6e0   :  { %v2753_v39 = vmul.f32 %v2559_v3, %v9852_v5  ;;  %v9857_v3 = vld [vmem:[#allocation86_spill] sm:$0xff] }
 0x6e1   :  { %v3570_v19 = vpop.f32.mrf.mxu0 }
 0x6e2   :  { %v2945_v37 = vmul.f32 %v2753_v39, %v9853_v44  ;;  %v3368_v44 = vadd.f32 %v8439_v38, %v8407_v12 }
 0x6e4   :  { %3617 = vmatmul.f32.gmra.mxu0 %v2945_v37  ;;  %v3371_v37 = vadd.f32 %v8452_v52, %v8435_v48  ;;  %v3359_v48 = vadd.f32 %v8351_v26, %v8326_v58 }
 0x6e6   :  { %v3397_v10 = vpop.f32.mrf.mxu3  ;;  %v3568_v52 = vadd.f32 %v3567_v17, %v3359_v48 }
 0x6e7   :  { %v8500_v63 = vadd.f32 %v3397_v10, %v3188_v25  ;;  %v2562_v50 = vpop.f32.mrf.mxu1  ;;  %v9858_v25 = vld [vmem:[#allocation298_spill] sm:$0xff] }
 0x6e8   :  { %v2756_v40 = vmul.f32 %v2562_v50, %v9854_v11  ;;  %v3365_v11 = vadd.f32 %v8411_v45, %v8378_v32  ;;  %v3356_v45 = vadd.f32 %v8328_v53, %v8313_v24  ;;  %v3350_v24 = vadd.f32 %v8302_v42, %v8285_v46 }
 0x6e9   :  { %v3573_v4 = vpop.f32.mrf.mxu0  ;;  %v3676_v17 = vsel %vm3632_vm1, 1.0, %v3568_v52  ;;  %v3553_v46 = vadd.f32 %v8467_v47, %v8272_v9 }
 0x6ea   :  { %v2948_v27 = vmul.f32 %v2756_v40, %v9855_v21  ;;  %v9859_v21 = vld [vmem:[#allocation340_spill] sm:$0xff] }
 0x6eb   :  { %v3671_v9 = vsel %vm3632_vm1, 1.0, %v3553_v46 }
 0x6ec   :  { %3620 = vmatmul.f32.gmra.mxu0 %v2948_v27 }
 0x6ef   :  { %v2565_v18 = vpop.f32.mrf.mxu1 }
 0x6f0   :  { %v2759_v7 = vmul.f32 %v2565_v18, %v9856_v13  ;;  %v3362_v13 = vadd.f32 %v8380_v0, %v8349_v16 }
 0x6f1   :  { %v3576_v36 = vpop.f32.mrf.mxu0 }
 0x6f2   :  { %v2951_v5 = vmul.f32 %v2759_v7, %v9857_v3  ;;  %v3577_v40 = vadd.f32 %v3576_v36, %v3368_v44  ;;  %v3574_v7 = vadd.f32 %v3573_v4, %v3365_v11  ;;  %v3571_v38 = vadd.f32 %v3570_v19, %v3362_v13 }
 0x6f3   :  { %v3353_v4 = vadd.f32 %v8315_v57, %v8300_v61  ;;  %v3565_v36 = vadd.f32 %v3564_v60, %v3356_v45  ;;  %v3559_v19 = vadd.f32 %v8479_v33, %v3350_v24  ;;  %v3556_v57 = vadd.f32 %v8473_v29, %v8287_v23 }
 0x6f4   :  { %3623 = vmatmul.f32.gmra.mxu0 %v2951_v5  ;;  %v3679_v32 = vsel %vm3632_vm1, 1.0, %v3577_v40  ;;  %v3678_v16 = vsel %vm3632_vm1, 1.0, %v3574_v7  ;;  %v3677_v26 = vsel %vm3632_vm1, 1.0, %v3571_v38  ;;  %v3547_v29 = vadd.f32 %v8455_v51, %v8246_v55 }
 0x6f5   :  { %v3562_v53 = vadd.f32 %v8485_v14, %v3353_v4  ;;  %v3675_v61 = vsel %vm3632_vm1, 1.0, %v3565_v36  ;;  %v3673_v33 = vsel %vm3632_vm1, 1.0, %v3559_v19  ;;  %v3550_v14 = vadd.f32 %v8461_v41, %v8259_v2 }
 0x6f6   :  { %v3672_v23 = vsel %vm3632_vm1, 1.0, %v3556_v57  ;;  %v3541_v2 = vadd.f32 %v8422_v28, %v8219_v30  ;;  %v3669_v55 = vsel %vm3632_vm1, 1.0, %v3547_v29  ;;  %v3538_v51 = vadd.f32 %v8391_v22, %v8206_v34 }
 0x6f7   :  { %v2568_v39 = vpop.f32.mrf.mxu1  ;;  %v3670_v47 = vsel %vm3632_vm1, 1.0, %v3550_v14 }
 0x6f8   :  { %v2762_v10 = vmul.f32 %v2568_v39, %v9858_v25  ;;  %v3667_v30 = vsel %vm3632_vm1, 1.0, %v3541_v2  ;;  %v3666_v28 = vsel %vm3632_vm1, 1.0, %v3538_v51  ;;  %v3400_v25 = vpop.f32.mrf.mxu3 }
 0x6f9   :  { %v3579_v50 = vpop.f32.mrf.mxu0 }
 0x6fa   :  { %v2954_v27 = vmul.f32 %v2762_v10, %v9859_v21  ;;  %v3580_v18 = vadd.f32 %v3579_v50, %v3371_v37  ;;  %v3191_v50 = vpop.f32.mrf.mxu2 }
 0x6fb   :  { %v3401_v51 = vadd.f32 %v3400_v25, %v3191_v50 }
 0x6fc   :  { %v3680_v12 = vsel %vm3632_vm1, 1.0, %v3580_v18  ;;  %3626 = vmatmul.f32.gmra.mxu0 %v2954_v27 }
 0x6fd   :  { %3760 = vmatpush.msra.mxu3 %v3680_v12 }
 0x6ff   :  { %3761 = vmatpush.msra.mxu3 %v3679_v32 }
 0x700   :  { %v3403_v21 = vpop.f32.mrf.mxu3 }
 0x701   :  { %v3582_v0 = vpop.f32.mrf.mxu0  ;;  %3762 = vmatpush.msra.mxu3 %v3678_v16 }
 0x702   :  { %v8529_v58 = vadd.f32 %v3582_v0, %v8458_v31  ;;  %v3674_v31 = vsel %vm3632_vm1, 1.0, %v3562_v53 }
 0x703   :  { %3763 = vmatpush.msra.mxu3 %v3677_v26  ;;  %v4623_v26 = vmov 1.0  }
 0x705   :  { %3764 = vmatpush.msra.mxu3 %v3676_v17 }
 0x707   :  { %3765 = vmatpush.msra.mxu3 %v3675_v61 }
 0x708   :  { %v3406_v18 = vpop.f32.mrf.mxu3 }
 0x709   :  { %v3585_v60 = vpop.f32.mrf.mxu0  ;;  %3766 = vmatpush.msra.mxu3 %v3674_v31 }
 0x70a   :  { %v8548_v42 = vadd.f32 %v3585_v60, %v8464_v6  ;;  %v3544_v6 = vadd.f32 %v8447_v54, %v8232_v15  ;;  %v3535_v54 = vadd.f32 %v8362_v43, %v8193_v20 }
 0x70b   :  { %3767 = vmatpush.msra.mxu3 %v3673_v33 }
 0x70c   :  { %v3668_v15 = vsel %vm3632_vm1, 1.0, %v3544_v6  ;;  %v3665_v34 = vsel %vm3632_vm1, 1.0, %v3535_v54 }
 0x70d   :  { %3768 = vmatpush.msra.mxu3 %v3672_v23 }
 0x70f   :  { %3769 = vmatpush.msra.mxu3 %v3671_v9 }
 0x710   :  { %v3409_v7 = vpop.f32.mrf.mxu3 }
 0x711   :  { %v3588_v3 = vpop.f32.mrf.mxu0  ;;  %3770 = vmatpush.msra.mxu3 %v3670_v47 }
 0x712   :  { %v8567_v41 = vadd.f32 %v3588_v3, %v8470_v49 }
 0x713   :  { %3771 = vmatpush.msra.mxu3 %v3669_v55 }
 0x715   :  { %3772 = vmatpush.msra.mxu3 %v3668_v15 }
 0x717   :  { %3773 = vmatpush.msra.mxu3 %v3667_v30 }
 0x719   :  { %v3591_v49 = vpop.f32.mrf.mxu0  ;;  %3774 = vmatpush.msra.mxu3 %v3666_v28 }
 0x71a   :  { %v8582_v5 = vadd.f32 %v3591_v49, %v8476_v1 }
 0x71b   :  { %3775 = vmatpush.msra.mxu3 %v3665_v34 }
 0x721   :  { %v3594_v22 = vpop.f32.mrf.mxu0 }
 0x722   :  { %v8587_v39 = vadd.f32 %v3594_v22, %v8482_v62  ;;  %v3194_v62 = vpop.f32.mrf.mxu2 }
 0x723   :  { %v3404_v3 = vadd.f32 %v3403_v21, %v3194_v62 }
 0x729   :  { %v3597_v20 = vpop.f32.mrf.mxu0 }
 0x72a   :  { %v8590_v43 = vadd.f32 %v3597_v20, %v8488_v8  ;;  %v3197_v13 = vpop.f32.mrf.mxu2 }
 0x72b   :  { %v3407_v9 = vadd.f32 %v3406_v18, %v3197_v13 }
 0x72c   :  { %v3686_v25 = vsel %vm3632_vm1, 1.0, %v8590_v43  ;;  %v3682_v43 = vsel %vm3632_vm1, 1.0, %v8548_v42 }
 0x731   :  { %v3600_v44 = vpop.f32.mrf.mxu0 }
 0x732   :  { %v8593_v37 = vadd.f32 %v3600_v44, %v8492_v35  ;;  %v3200_v12 = vpop.f32.mrf.mxu2  ;;  %v3412_v35 = vpop.f32.mrf.mxu3 }
 0x733   :  { %v3410_v14 = vadd.f32 %v3409_v7, %v3200_v12 }
 0x734   :  { %v3687_v44 = vsel %vm3632_vm1, 1.0, %v8593_v37  ;;  %v3683_v37 = vsel %vm3632_vm1, 1.0, %v8567_v41 }
 0x739   :  { %v3603_v10 = vpop.f32.mrf.mxu0 }
 0x73a   :  { %v8596_v1 = vadd.f32 %v3603_v10, %v8496_v59  ;;  %v3203_v32 = vpop.f32.mrf.mxu2  ;;  %v3415_v52 = vpop.f32.mrf.mxu3  ;;  %v8602_v59 = vld [vmem:[%s8678_s1] sm:$0xf]  ;;  %v3685_v10 = vsel %vm3632_vm1, 1.0, %v8587_v39  ;;  %v3681_v39 = vsel %vm3632_vm1, 1.0, %v8529_v58 }
 0x73b   :  { %v3704_v0 = vperm.slane %v8602_v59, 1  ;;  %v3705_v36 = vperm.slane %v8602_v59, 2  ;;  %v3703_v53 = vperm.slane %v8602_v59, 0  ;;  %v3413_v60 = vadd.f32 %v3412_v35, %v3203_v32 }
 0x73c   :  { %v3688_v20 = vsel %vm3632_vm1, 1.0, %v8596_v1  ;;  %v3684_v1 = vsel %vm3632_vm1, 1.0, %v8582_v5  ;;  %v3706_v50 = vperm.slane %v8602_v59, 3  ;;  %v4624_v5 = vmov 20  }
 0x73d   :  { %4445 = vset.pattern.permute.xlu0 %v4624_v5 }
 0x741   :  { %v3606_v11 = vpop.f32.mrf.mxu0 }
 0x742   :  { %v3607_v40 = vadd.f32 %v3606_v11, %v8500_v63  ;;  %v9860_v63 = vlaneseq  ;;  %v3206_v4 = vpop.f32.mrf.mxu2  ;;  %v3418_v17 = vpop.f32.mrf.mxu3 }
 0x743   :  { %v3416_v61 = vadd.f32 %v3415_v52, %v3206_v4  ;;  %v4626_v4 = vmov 8.0  }
 0x744   :  { %v3699_v16 = vshrl.u32 %v9860_v63, 7  ;;  %v3689_v22 = vsel %vm3632_vm1, 1.0, %v3607_v40 }
 0x746   :  { %vm3708_vm2 = vcmp.eq.s32.totalorder %v3699_v16, %v3704_v0  ;;  %vm3709_vm3 = vcmp.eq.s32.totalorder %v3699_v16, %v3705_v36  ;;  %vm3707_vm4 = vcmp.eq.s32.totalorder %v3699_v16, %v3703_v53  ;;  %vm3710_vm5 = vcmp.eq.s32.totalorder %v3699_v16, %v3706_v50 }
 0x747   :  { %4410 = vmatmul.msk.f32.vlgmr.msra.gmra.mxu2 %vm3708_vm2, %v4623_v26  ;;  %4411 = vmatmul.msk.f32.vlgmr.msra.gmra.mxu3 %vm3709_vm3, %v4623_v26  ;;  %vm3903_vm2 = vcmask 31744  }
 0x748   :  { %4409 = vmatmul.msk.f32.vlgmr.msra.gmra.mxu1 %vm3707_vm4, %v4623_v26 }
 0x749   :  { %v3609_v27 = vpop.f32.mrf.mxu0 }
 0x74a   :  { %v3209_v19 = vpop.f32.mrf.mxu2  ;;  %v3610_v30 = vadd.f32 %v3609_v27, %v3401_v51 }
 0x74b   :  { %v3419_v57 = vadd.f32 %v3418_v17, %v3209_v19 }
 0x74c   :  { %v3690_v34 = vsel %vm3632_vm1, 1.0, %v3610_v30 }
 0x751   :  { %v3612_v8 = vpop.f32.mrf.mxu0 }
 0x752   :  { %v3613_v15 = vadd.f32 %v3612_v8, %v3404_v3 }
 0x754   :  { %v3691_v49 = vsel %vm3632_vm1, 1.0, %v3613_v15 }
 0x759   :  { %v3615_v48 = vpop.f32.mrf.mxu0 }
 0x75a   :  { %v3616_v2 = vadd.f32 %v3615_v48, %v3407_v9 }
 0x75c   :  { %v3692_v28 = vsel %vm3632_vm1, 1.0, %v3616_v2 }
 0x761   :  { %v3618_v38 = vpop.f32.mrf.mxu0 }
 0x762   :  { %v3619_v6 = vadd.f32 %v3618_v38, %v3410_v14 }
 0x764   :  { %v3693_v54 = vsel %vm3632_vm1, 1.0, %v3619_v6 }
 0x769   :  { %v3621_v45 = vpop.f32.mrf.mxu0 }
 0x76a   :  { %v3622_v23 = vadd.f32 %v3621_v45, %v3413_v60  ;;  %v3828_v45 = vld [vmem:[%s8682_s5] sm:$0xff] }
 0x76c   :  { %v3694_v55 = vsel %vm3632_vm1, 1.0, %v3622_v23  ;;  %v4627_v23 = vmov 12.0  }
 0x771   :  { %v3624_v24 = vpop.f32.mrf.mxu0 }
 0x772   :  { %v3625_v46 = vadd.f32 %v3624_v24, %v3416_v61 }
 0x774   :  { %v3695_v47 = vsel %vm3632_vm1, 1.0, %v3625_v46 }
 0x779   :  { %v3627_v31 = vpop.f32.mrf.mxu0 }
 0x77a   :  { %v3628_v33 = vadd.f32 %v3627_v31, %v3419_v57 }
 0x77c   :  { %v3696_v29 = vsel %vm3632_vm1, 1.0, %v3628_v33 }
 0x77d   :  { %3780 = vmatpush.msrb.mxu1 %v3696_v29 }
 0x77f   :  { %3781 = vmatpush.msrb.mxu1 %v3695_v47 }
 0x781   :  { %3782 = vmatpush.msrb.mxu1 %v3694_v55  ;;  %v3899_v55 = vld [vmem:[%s8685_s8] sm:$0xf] }
 0x782   :  { %4413 = vmatpush.msk.msrb.mxu2 %vm3906_vm14, %v3899_v55 }
 0x783   :  { %3783 = vmatpush.msrb.mxu1 %v3693_v54 }
 0x785   :  { %3784 = vmatpush.msrb.mxu1 %v3692_v28 }
 0x787   :  { %3785 = vmatpush.msrb.mxu1 %v3691_v49 }
 0x789   :  { %3786 = vmatpush.msrb.mxu1 %v3690_v34 }
 0x78b   :  { %3787 = vmatpush.msrb.mxu1 %v3689_v22 }
 0x78d   :  { %3788 = vmatpush.msrb.mxu1 %v3688_v20  ;;  %v4446_v20 = vld [vmem:[%s8683_s6] ss:$0 sm:$0xff] }
 0x78f   :  { %3789 = vmatpush.msrb.mxu1 %v3687_v44 }
 0x791   :  { %3790 = vmatpush.msrb.mxu1 %v3686_v25 }
 0x793   :  { %3791 = vmatpush.msrb.mxu1 %v3685_v10 }
 0x795   :  { %3792 = vmatpush.msrb.mxu1 %v3684_v1 }
 0x797   :  { %3793 = vmatpush.msrb.mxu1 %v3683_v37 }
 0x799   :  { %3794 = vmatpush.msrb.mxu1 %v3682_v43 }
 0x79b   :  { %3795 = vmatpush.msrb.mxu1 %v3681_v39 }
 0x79c   :  { %4412 = vmatmul.msk.f32.vlgmr.msrb.gmra.mxu1 %vm3710_vm5, %v4623_v26 }
 0x7c5   :  { %v3737_v11 = vpop.f32.mrf.mxu1 }
 0x7ca   :  { %v3757_v40 = vpop.f32.mrf.mxu2  ;;  %v3777_v62 = vpop.f32.mrf.mxu3 }
 0x7cb   :  { %v3758_v21 = vadd.f32 %v3757_v40, %v3737_v11 }
 0x7cd   :  { %v3778_v41 = vadd.f32 %v3777_v62, %v3758_v21 }
 0x819   :  { %v3797_v27 = vpop.f32.mrf.mxu1 }
 0x81a   :  { %v3798_v18 = vadd.f32 %v3797_v27, %v3778_v41 }
 0x81c   :  { %v3806_v13 = vmax.f32 %v3798_v18, 1.0 }
 0x81e   :  { %4448 = vrcp.f32 %v3806_v13  ;;  %v3818_v12 = vand.u32 2147483648, %v3806_v13  ;;  %v3816_v56 = vand.u32 2147483647, %v3806_v13  ;;  %vm3812_vm7 = vweird.f32 %v3806_v13 }
 0x81f   :  { %4450 = vrcp.f32 %v4626_v4 }
 0x820   :  { %v3819_v35 = vor.u32 1.1754944e-38, %v3818_v12  ;;  %vm3817_vm9 = vcmp.eq.f32.partialorder %v3816_v56, 8.507059e+37  ;;  %4452 = vrcp.f32 %v4627_v23 }
 0x824   :  { %v4449_v42 = vpop.eup %4448 }
 0x825   :  { %v3808_v8 = vmul.f32 %v4449_v42, %v3806_v13  ;;  %vm3813_vm6 = vweird.f32 %v4449_v42  ;;  %v4451_v36 = vpop.eup %4450 }
 0x826   :  { %vm3814_vm8 = vmor %vm3812_vm7, %vm3813_vm6  ;;  %v3836_v26 = vmul.f32 8.0, %v4451_v36  ;;  %vm3840_vm11 = vweird.f32 %v4451_v36  ;;  %v4453_v29 = vpop.eup %4452  ;;  %vm3936_vm6 = vcmask 162816  }
 0x827   :  { %v3809_v7 = vsub.f32 1.0, %v3808_v8  ;;  %v3880_v9 = vmul.f32 12.0, %v4453_v29  ;;  %vm3884_vm13 = vweird.f32 %v4453_v29 }
 0x828   :  { %v3837_v24 = vsub.f32 1.0, %v3836_v26 }
 0x829   :  { %v3810_v48 = vmul.f32 %v4449_v42, %v3809_v7  ;;  %v3881_v6 = vsub.f32 1.0, %v3880_v9 }
 0x82a   :  { %v3838_v53 = vmul.f32 %v4451_v36, %v3837_v24 }
 0x82b   :  { %v3811_v58 = vadd.f32 %v4449_v42, %v3810_v48  ;;  %v3882_v47 = vmul.f32 %v4453_v29, %v3881_v6 }
 0x82c   :  { %v3839_v17 = vadd.f32 %v4451_v36, %v3838_v53 }
 0x82d   :  { %v3815_v38 = vsel %vm3814_vm8, %v4449_v42, %v3811_v58  ;;  %v3883_v3 = vadd.f32 %v4453_v29, %v3882_v47  ;;  %v4447_v42 = vld [vmem:[%s8684_s7] ss:$0 sm:$0xff] }
 0x82e   :  { %v3820_v32 = vsel %vm3817_vm9, %v3819_v35, %v3815_v38  ;;  %v3841_v19 = vsel %vm3840_vm11, %v4451_v36, %v3839_v17 }
 0x82f   :  { %3824 = vperm.xlu0 %4445, %v3820_v32   ;;  %v3885_v2 = vsel %vm3884_vm13, %v4453_v29, %v3883_v3 }
 0x8a1   :  { %v3825_v52 = vpop.permute.xlu0 %3824 }
 0x8a2   :  { %v3827_v59 = vmul.f32 %v3825_v52, %v3798_v18 }
 0x8a4   :  { %v8652_v63 = vadd.f32 %v3828_v45, %v3827_v59 }
 0x8a6   :  { %v3832_v16 = vsel %vm3831_vm10, %v8652_v63, 0.0  ;;  %v3870_v0 = vmul.f32 %v8652_v63, %v8652_v63 }
 0x8a7   :  { %3833 = vadd.xlane.f32.xlu2 %v3832_v16 }
 0x8a8   :  { %3872 = vrot.lane.b32.xlu0 %v3870_v0, %s4625_s13 }
 0x91a   :  { %v3873_v61 = vpop.permute.xlu0 %3872  ;;  %v3834_v57 = vpop.xlane.xlu2 %3833 }
 0x91b   :  { %v3842_v31 = vmul.f32 %v3841_v19, %v3834_v57  ;;  %v3876_v60 = vsel %vm3875_vm12, %v3873_v61, 0.0 }
 0x91c   :  { %3877 = vadd.xlane.f32.xlu1 %v3876_v60 }
 0x91d   :  { %v3843_v46 = vsub.f32 %v8652_v63, %v3842_v31 }
 0x91f   :  { %v3844_v33 = vmul.f32 %v3843_v46, %v3843_v46 }
 0x921   :  { %v3845_v14 = vsel %vm3831_vm10, %v3844_v33, 0.0 }
 0x922   :  { %3846 = vadd.xlane.f32.xlu2 %v3845_v14 }
 0x98f   :  { %v3878_v51 = vpop.xlane.xlu1 %3877 }
 0x990   :  { %v3886_v15 = vmul.f32 %v3885_v2, %v3878_v51 }
 0x992   :  { %v3887_v54 = vadd.f32 1e-05, %v3886_v15 }
 0x994   :  { %4454 = vrsqrt.f32 %v3887_v54  ;;  %vm3894_vm0 = vweird.f32 %v3887_v54 }
 0x995   :  { %v3847_v37 = vpop.xlane.xlu2 %3846 }
 0x996   :  { %v3848_v43 = vmul.f32 %v3847_v37, %v3841_v19 }
 0x998   :  { %v3849_v39 = vadd.f32 1e-05, %v3848_v43 }
 0x99a   :  { %v4455_v30 = vpop.eup %4454  ;;  %4456 = vrsqrt.f32 %v3849_v39  ;;  %vm3856_vm4 = vweird.f32 %v3849_v39 }
 0x99b   :  { %v3889_v28 = vmul.f32 %v4455_v30, %v3887_v54  ;;  %vm3895_vm15 = vweird.f32 %v4455_v30 }
 0x99c   :  { %vm3896_vm1 = vmor %vm3894_vm0, %vm3895_vm15 }
 0x99d   :  { %v3890_v49 = vmul.f32 %v4455_v30, %v3889_v28 }
 0x99f   :  { %v3891_v34 = vmul.f32 0.5, %v3890_v49 }
 0x9a0   :  { %v4457_v5 = vpop.eup %4456 }
 0x9a1   :  { %v3892_v22 = vsub.f32 1.5, %v3891_v34  ;;  %v3851_v11 = vmul.f32 %v4457_v5, %v3849_v39  ;;  %vm3857_vm3 = vweird.f32 %v4457_v5 }
 0x9a2   :  { %vm3858_vm5 = vmor %vm3856_vm4, %vm3857_vm3 }
 0x9a3   :  { %v3893_v44 = vmul.f32 %v4455_v30, %v3892_v22  ;;  %v3852_v40 = vmul.f32 %v4457_v5, %v3851_v11 }
 0x9a5   :  { %v3897_v25 = vsel %vm3896_vm1, %v4455_v30, %v3893_v44  ;;  %v3853_v21 = vmul.f32 0.5, %v3852_v40 }
 0x9a6   :  { %v3898_v10 = vmul.f32 %v4446_v20, %v3897_v25 }
 0x9a7   :  { %v3854_v62 = vsub.f32 1.5, %v3853_v21 }
 0x9a8   :  { %3901 = vrot.lane.b32.xlu1 %v3898_v10, %s4625_s13 }
 0x9a9   :  { %v3855_v41 = vmul.f32 %v4457_v5, %v3854_v62 }
 0x9ab   :  { %v3859_v27 = vsel %vm3858_vm5, %v4457_v5, %v3855_v41 }
 0x9ac   :  { %v3863_v18 = vmul.f32 %v4446_v20, %v3859_v27 }
 0x9ae   :  { %v3864_v13 = vmul.f32 %v3863_v18, %v3843_v46 }
 0x9b0   :  { %v3869_v7 = vadd.f32 %v4447_v42, %v3864_v13 }
 0xa1a   :  { %v3902_v1 = vpop.permute.xlu1 %3901 }
 0xa1b   :  { %4414 = vmatmul.msk.f32.vlgmr.msrb.gmra.mxu2 %vm3903_vm2, %v3902_v1 }
 0xa9e   :  { %v3927_v50 = vpop.f32.mrf.mxu2 }
 0xa9f   :  { %3931 = vrot.lane.b32.xlu0 %v3927_v50, %s4622_s22  ;;  %s4628_s22 = smov [#allocation8]  }
 0xaa0   :  { %s3944_s17 = sshll.u32 %s4628_s22, 4  ;;  %s3945_s17 = int_to_ptr.vmem [resolvable:$true] %s3944_s17 }
 0xb11   :  { %v3932_v8 = vpop.permute.xlu0 %3931 }
 0xb12   :  { %v3934_v12 = vmul.f32 %v3932_v8, %v8652_v63 }
 0xb14   :  { %v3935_v48 = vsel %vm3831_vm10, %v3869_v7, %v3934_v12 }
 0xb15   :  { %v3937_v56 = vsel %vm3936_vm6, %v3935_v48, 0.0 }
 0xb16   :  { %3938 = vst [vmem:[#allocation8] sm:$0xff] %v3937_v56 }
 0xb17   :  { %3949 = dma.vmem_to_hbm [thread:$0]  %s3945_s17, 128, %s3947_s20, [#allocation5]  }
 0xb18   :  { %4615 = dma.done.wait [#allocation5], 128  }
 0xb19   :  { %4616 = vsyncadd [#allocation5], 4294967168 }
 0xb1a   :  { %3954 = vsyncpa [#allocation4], 1 }
 0xb1b   :  { %3955 = vsyncpa [#allocation7], 1 }
 0xb1c   :  { %3956 = vsyncpa [#allocation5], 1 }

</bundles_post_ra>
